<compile_context>
chip_gen: v7x
topology: tpu7x:2x2x1
jax: 0.10.0
libtpu: 0.0.40
codegen_flags: <defaults>
</compile_context>

<pallas_src>
import functools

import jax
import jax.numpy as jnp
from jax.experimental import pallas as pl
from jax.experimental.pallas import tpu as pltpu

LANE = 128  # vreg lane width; channel dims are padded to a multiple of this.


def _round_up(v: int, m: int) -> int:
    return ((v + m - 1) // m) * m


def sepconv_kernel(x_ref, w1_ref, wdw_ref, w2_ref, sb_ref, o_ref, h_scr):
    # x_ref:   (1, H, W, Cp)   full NHWC image for batch b (resident across row tiles)
    # w1_ref:  (Cp, Mp)        pw_conv1 weight (padded)
    # wdw_ref: (KH, KW, Mp)    depthwise weight (padded)
    # w2_ref:  (Mp, Cp)        pw_conv2 weight (padded)
    # sb_ref:  (2,) in SMEM    [StarReLU scale, StarReLU bias]
    # o_ref:   (1, TH, W, Cp)  output row tile
    # h_scr:   (H+KH-1, W, Mp) VMEM f32: StarReLU(pw_conv1(x)), zero halo along H,
    #                          persistent across the row-tile grid axis.
    hi = pl.program_id(1)
    _, H, W, Cp = x_ref.shape
    Mp = w1_ref.shape[1]
    KH, KW, _ = wdw_ref.shape
    ph, pw = (KH - 1) // 2, (KW - 1) // 2
    TH = o_ref.shape[1]

    # ---- per-image preamble (row tile 0): pw_conv1 + StarReLU for all rows ----
    @pl.when(hi == 0)
    def _():
        # Zero only the 2*ph halo rows; interior rows are fully overwritten below.
        h_scr[0:ph, :, :] = jnp.zeros((ph, W, Mp), jnp.float32)
        h_scr[ph + H:H + KH - 1, :, :] = jnp.zeros((KH - 1 - ph, W, Mp), jnp.float32)

        # 1x1 conv as (H*W, Cp) @ (Cp, Mp) on the MXU, f32 accumulation.
        # (W is a multiple of 8 so this reshape is a pure re-tiling, no copy.)
        x2d = x_ref[0].reshape(H * W, Cp)
        h = jnp.dot(x2d, w1_ref[...], preferred_element_type=jnp.float32)
        # StarReLU: scale * relu(h)^2 + bias
        r = jnp.maximum(h, 0.0)
        h = sb_ref[0] * (r * r) + sb_ref[1]
        # Aligned dense store; offset is only along the leading H axis.
        h_scr[ph:ph + H, :, :] = h.reshape(H, W, Mp)

    # ---- depthwise KHxKW conv for this row tile --------------------------------
    row0 = pl.multiple_of(hi * TH, TH)
    wdw = wdw_ref[...]  # hoisted once
    # Pre-broadcastable per-tap weights, built once outside the MAC chain.
    taps = [[wdw[i, j].reshape(1, 1, Mp) for j in range(KW)] for i in range(KH)]
    col = jax.lax.broadcasted_iota(jnp.int32, (1, W, 1), 1)

    acc = jnp.zeros((TH, W, Mp), jnp.float32)
    for dw in range(KW):
        off = dw - pw
        # Re-load the slab per W-tap to keep vreg pressure low (VMEM loads are cheap).
        slab = h_scr[pl.ds(row0, TH + KH - 1), :, :]        # (TH+KH-1, W, Mp)
        if off == 0:
            shifted = slab
        else:
            # shifted[:, w, :] = slab[:, w + off, :]  (XLU sublane rotate + edge mask)
            shifted = pltpu.roll(slab, (-off) % W, axis=1)
            valid = (col + off >= 0) & (col + off < W)
            shifted = jnp.where(valid, shifted, 0.0)
        for dh in range(KH):
            # H shift is a cheap static leading-dim slice.
            acc = acc + shifted[dh:dh + TH] * taps[dh][dw]

    # ---- pointwise conv 2: (TH*W, Mp) @ (Mp, Cp) -------------------------------
    out = jnp.dot(acc.reshape(TH * W, Mp), w2_ref[...],
                  preferred_element_type=jnp.float32)
    o_ref[...] = out.reshape(1, TH, W, Cp).astype(o_ref.dtype)


@functools.partial(jax.jit, static_argnames=("row_tile",))
def sep_conv(x_nchw, w1, wdw, w2, scale_bias, *, row_tile=8):
    """SepConv forward. x_nchw: (B, dim, H, W). Returns (B, dim, H, W)."""
    x = jnp.transpose(x_nchw, (0, 2, 3, 1))  # NCHW -> NHWC
    B, H, W, C = x.shape
    M = w1.shape[1]
    KH, KW = wdw.shape[0], wdw.shape[1]

    # Lane-dense channel padding (zeros): results for the real channels are
    # unchanged (zero weight rows/cols), padded output channels are sliced off.
    Cp = _round_up(C, LANE)
    Mp = _round_up(M, LANE)
    x_p = jnp.pad(x, ((0, 0), (0, 0), (0, 0), (0, Cp - C)))
    w1_p = jnp.pad(w1, ((0, Cp - C), (0, Mp - M)))
    wdw_p = jnp.pad(wdw, ((0, 0), (0, 0), (0, Mp - M)))
    w2_p = jnp.pad(w2, ((0, Mp - M), (0, Cp - C)))

    # Row tile: gives the pipeline > B steps and bounds per-step live state
    # (important on v7x's 64 MiB VMEM at large H).  Must divide H evenly.
    TH = row_tile if (H % row_tile == 0) else H
    NH = H // TH

    itemsize = x_p.dtype.itemsize
    flops = B * H * W * (4 * Cp * Mp + 2 * KH * KW * Mp + 4 * Mp)
    bytes_accessed = (x_p.size + B * H * W * Cp
                      + w1_p.size + wdw_p.size + w2_p.size) * itemsize

    out = pl.pallas_call(
        sepconv_kernel,
        out_shape=jax.ShapeDtypeStruct((B, H, W, Cp), x.dtype),
        grid_spec=pltpu.PrefetchScalarGridSpec(
            num_scalar_prefetch=0,
            grid=(B, NH),
            in_specs=[
                # Full image per batch element; block index does not change with
                # the row-tile axis, so it stays resident (no re-DMA across hi).
                pl.BlockSpec((1, H, W, Cp), lambda b, hi: (b, 0, 0, 0)),
                pl.BlockSpec((Cp, Mp), lambda b, hi: (0, 0)),
                pl.BlockSpec((KH, KW, Mp), lambda b, hi: (0, 0, 0)),
                pl.BlockSpec((Mp, Cp), lambda b, hi: (0, 0)),
                pl.BlockSpec(memory_space=pltpu.MemorySpace.SMEM),
            ],
            out_specs=pl.BlockSpec((1, TH, W, Cp), lambda b, hi: (b, hi, 0, 0)),
            scratch_shapes=[
                pltpu.VMEM((H + KH - 1, W, Mp), jnp.float32),
            ],
        ),
        compiler_params=pltpu.CompilerParams(
            dimension_semantics=("parallel", "arbitrary"),
            vmem_limit_bytes=64 * 1024 * 1024,
        ),
        cost_estimate=pl.CostEstimate(
            flops=int(flops),
            transcendentals=0,
            bytes_accessed=int(bytes_accessed),
        ),
    )(x_p, w1_p, wdw_p, w2_p, scale_bias)

    out = out[..., :C]                         # drop padded channels
    return jnp.transpose(out, (0, 3, 1, 2))    # NHWC -> NCHW


def sep_conv_ref(x_nchw, w1, wdw, w2, scale_bias):
    """Pure-JAX reference (matches PyTorch SepConv semantics)."""
    x = jnp.transpose(x_nchw, (0, 2, 3, 1))
    M = w1.shape[1]
    h = jnp.einsum("bhwc,cm->bhwm", x, w1)
    r = jnp.maximum(h, 0.0)
    h = scale_bias[0] * r * r + scale_bias[1]
    dw_hwio = wdw[:, :, None, :]  # (KH, KW, 1, M)
    KH, KW = wdw.shape[0], wdw.shape[1]
    h = jax.lax.conv_general_dilated(
        h, dw_hwio, window_strides=(1, 1),
        padding=(((KH - 1) // 2,) * 2, ((KW - 1) // 2,) * 2),
        dimension_numbers=("NHWC", "HWIO", "NHWC"),
        feature_group_count=M)
    out = jnp.einsum("bhwm,mc->bhwc", h, w2)
    return jnp.transpose(out, (0, 3, 1, 2))


if __name__ == "__main__":
    key = jax.random.PRNGKey(0)
    k1, k2, k3, k4 = jax.random.split(key, 4)

    B, dim, H, W = 2, 4, 16, 16
    expansion_ratio = 2
    mid = int(expansion_ratio * dim)  # 8
    KH, KW = 7, 7

    # Deterministic synthetic parameters (shapes from SepConv.__init__).
    x = jax.random.normal(k1, (B, dim, H, W), jnp.float32)
    w1 = jax.random.normal(k2, (dim, mid), jnp.float32) * 0.1       # pw_conv1
    wdw = jax.random.normal(k3, (KH, KW, mid), jnp.float32) * 0.05  # dwconv
    w2 = jax.random.normal(k4, (mid, dim), jnp.float32) * 0.1       # pw_conv2
    scale_bias = jnp.array([1.0, 0.0], jnp.float32)                 # StarReLU defaults

    out = sep_conv(x, w1, wdw, w2, scale_bias)
    jax.block_until_ready(out)

    ref = sep_conv_ref(x, w1, wdw, w2, scale_bias)
    max_err = float(jnp.max(jnp.abs(out - ref)))
    assert jnp.allclose(out, ref, atol=1e-4, rtol=1e-4), max_err

    print("KERNEL_OK")
</pallas_src>

<mosaic_0001>
module attributes {stable_mosaic.version = 11 : i64} {
  func.func @sepconv_kernel(%arg0: i32, %arg1: i32, %arg2: memref<1x16x16x128xf32, #tpu.memory_space<vmem>>, %arg3: memref<128x128xf32, #tpu.memory_space<vmem>>, %arg4: memref<7x7x128xf32, #tpu.memory_space<vmem>>, %arg5: memref<128x128xf32, #tpu.memory_space<vmem>>, %arg6: memref<2xf32, #tpu.memory_space<smem>>, %arg7: memref<1x8x16x128xf32, #tpu.memory_space<vmem>>, %arg8: memref<22x16x128xf32, #tpu.memory_space<vmem>>) attributes {dimension_semantics = [#tpu.dimension_semantics<parallel>, #tpu.dimension_semantics<arbitrary>], iteration_bounds = array<i64: 2, 2>, scalar_prefetch = 0 : i64, scratch_operands = 1 : i64, tpu.core_type = #tpu.core_type<tc>, window_params = [{transform_indices = @transform_0, window_bounds = array<i64: 1, 16, 16, 128>}, {pipeline_mode = #tpu.pipeline_mode<synchronous>, transform_indices = @transform_1, window_bounds = array<i64: 128, 128>}, {pipeline_mode = #tpu.pipeline_mode<synchronous>, transform_indices = @transform_2, window_bounds = array<i64: 7, 7, 128>}, {pipeline_mode = #tpu.pipeline_mode<synchronous>, transform_indices = @transform_3, window_bounds = array<i64: 128, 128>}, {transform_indices = @transform_4, window_bounds = array<i64: 2>}, {transform_indices = @transform_5, window_bounds = array<i64: 1, 8, 16, 128>}]} {
    %c0_i32 = arith.constant 0 : i32
    %0 = arith.cmpi eq, %arg1, %c0_i32 : i32
    %1 = arith.extui %0 : i1 to i32
    %c0_i32_0 = arith.constant 0 : i32
    %2 = arith.cmpi ne, %1, %c0_i32_0 : i32
    scf.if %2 {
      %cst_50 = arith.constant 0.000000e+00 : f32
      %454 = vector.broadcast %cst_50 : f32 to vector<3x16x128xf32>
      %c0_51 = arith.constant 0 : index
      %c0_52 = arith.constant 0 : index
      %c0_53 = arith.constant 0 : index
      %455 = vector.load %arg8[%c0_51, %c0_52, %c0_53] : memref<22x16x128xf32, #tpu.memory_space<vmem>>, vector<3x16x128xf32>
      tpu.vector_store %arg8[%c0_51, %c0_52, %c0_53], %454 {strides = array<i32>} : memref<22x16x128xf32, #tpu.memory_space<vmem>>, vector<3x16x128xf32>,
      %cst_54 = arith.constant 0.000000e+00 : f32
      %456 = vector.broadcast %cst_54 : f32 to vector<3x16x128xf32>
      %c19 = arith.constant 19 : index
      %c0_55 = arith.constant 0 : index
      %c0_56 = arith.constant 0 : index
      %457 = vector.load %arg8[%c19, %c0_55, %c0_56] : memref<22x16x128xf32, #tpu.memory_space<vmem>>, vector<3x16x128xf32>
      tpu.vector_store %arg8[%c19, %c0_55, %c0_56], %456 {strides = array<i32>} : memref<22x16x128xf32, #tpu.memory_space<vmem>>, vector<3x16x128xf32>,
      %c0_57 = arith.constant 0 : index
      %c0_58 = arith.constant 0 : index
      %c0_59 = arith.constant 0 : index
      %c0_60 = arith.constant 0 : index
      %458 = vector.load %arg2[%c0_57, %c0_58, %c0_59, %c0_60] : memref<1x16x16x128xf32, #tpu.memory_space<vmem>>, vector<1x16x16x128xf32>
      %459 = vector.shape_cast %458 : vector<1x16x16x128xf32> to vector<16x16x128xf32>
      %460 = vector.shape_cast %459 : vector<16x16x128xf32> to vector<256x128xf32>
      %c0_61 = arith.constant 0 : index
      %c0_62 = arith.constant 0 : index
      %461 = vector.load %arg3[%c0_61, %c0_62] : memref<128x128xf32, #tpu.memory_space<vmem>>, vector<128x128xf32>
      %cst_63 = arith.constant dense<0.000000e+00> : vector<256x128xf32>
      %462 = tpu.matmul %460, %461, %cst_63 {dimension_numbers = #tpu.dot_dimension_numbers<[1], [0], [0], [1], [0, 0, 1, 1], [], []>} : vector<256x128xf32>, vector<128x128xf32>, vector<256x128xf32> -> vector<256x128xf32>
      %cst_64 = arith.constant 0.000000e+00 : f32
      %463 = vector.broadcast %cst_64 : f32 to vector<256x128xf32>
      %464 = arith.maximumf %462, %463 : vector<256x128xf32>
      %c0_65 = arith.constant 0 : index
      %465 = memref.load %arg6[%c0_65] : memref<2xf32, #tpu.memory_space<smem>>
      %466 = arith.mulf %464, %464 : vector<256x128xf32>
      %467 = vector.broadcast %465 : f32 to vector<256x128xf32>
      %468 = arith.mulf %467, %466 : vector<256x128xf32>
      %c1 = arith.constant 1 : index
      %469 = memref.load %arg6[%c1] : memref<2xf32, #tpu.memory_space<smem>>
      %470 = vector.broadcast %469 : f32 to vector<256x128xf32>
      %471 = arith.addf %468, %470 : vector<256x128xf32>
      %472 = vector.shape_cast %471 : vector<256x128xf32> to vector<16x16x128xf32>
      %c3 = arith.constant 3 : index
      %c0_66 = arith.constant 0 : index
      %c0_67 = arith.constant 0 : index
      %473 = vector.load %arg8[%c3, %c0_66, %c0_67] : memref<22x16x128xf32, #tpu.memory_space<vmem>>, vector<16x16x128xf32>
      tpu.vector_store %arg8[%c3, %c0_66, %c0_67], %472 {strides = array<i32>} : memref<22x16x128xf32, #tpu.memory_space<vmem>>, vector<16x16x128xf32>,
    } else {
    }
    %c8_i32 = arith.constant 8 : i32
    %3 = arith.muli %arg1, %c8_i32 : i32
    %4 = tpu.assume_multiple %3, 8 : i32
    %c0 = arith.constant 0 : index
    %c0_1 = arith.constant 0 : index
    %c0_2 = arith.constant 0 : index
    %5 = vector.load %arg4[%c0, %c0_1, %c0_2] : memref<7x7x128xf32, #tpu.memory_space<vmem>>, vector<7x7x128xf32>
    %6 = vector.extract_strided_slice %5 {offsets = [0, 0, 0], sizes = [1, 1, 128], strides = [1, 1, 1]} : vector<7x7x128xf32> to vector<1x1x128xf32>
    %7 = vector.shape_cast %6 : vector<1x1x128xf32> to vector<128xf32>
    %8 = vector.shape_cast %7 : vector<128xf32> to vector<1x1x128xf32>
    %9 = vector.extract_strided_slice %5 {offsets = [0, 1, 0], sizes = [1, 1, 128], strides = [1, 1, 1]} : vector<7x7x128xf32> to vector<1x1x128xf32>
    %10 = vector.shape_cast %9 : vector<1x1x128xf32> to vector<128xf32>
    %11 = vector.shape_cast %10 : vector<128xf32> to vector<1x1x128xf32>
    %12 = vector.extract_strided_slice %5 {offsets = [0, 2, 0], sizes = [1, 1, 128], strides = [1, 1, 1]} : vector<7x7x128xf32> to vector<1x1x128xf32>
    %13 = vector.shape_cast %12 : vector<1x1x128xf32> to vector<128xf32>
    %14 = vector.shape_cast %13 : vector<128xf32> to vector<1x1x128xf32>
    %15 = vector.extract_strided_slice %5 {offsets = [0, 3, 0], sizes = [1, 1, 128], strides = [1, 1, 1]} : vector<7x7x128xf32> to vector<1x1x128xf32>
    %16 = vector.shape_cast %15 : vector<1x1x128xf32> to vector<128xf32>
    %17 = vector.shape_cast %16 : vector<128xf32> to vector<1x1x128xf32>
    %18 = vector.extract_strided_slice %5 {offsets = [0, 4, 0], sizes = [1, 1, 128], strides = [1, 1, 1]} : vector<7x7x128xf32> to vector<1x1x128xf32>
    %19 = vector.shape_cast %18 : vector<1x1x128xf32> to vector<128xf32>
    %20 = vector.shape_cast %19 : vector<128xf32> to vector<1x1x128xf32>
    %21 = vector.extract_strided_slice %5 {offsets = [0, 5, 0], sizes = [1, 1, 128], strides = [1, 1, 1]} : vector<7x7x128xf32> to vector<1x1x128xf32>
    %22 = vector.shape_cast %21 : vector<1x1x128xf32> to vector<128xf32>
    %23 = vector.shape_cast %22 : vector<128xf32> to vector<1x1x128xf32>
    %24 = vector.extract_strided_slice %5 {offsets = [0, 6, 0], sizes = [1, 1, 128], strides = [1, 1, 1]} : vector<7x7x128xf32> to vector<1x1x128xf32>
    %25 = vector.shape_cast %24 : vector<1x1x128xf32> to vector<128xf32>
    %26 = vector.shape_cast %25 : vector<128xf32> to vector<1x1x128xf32>
    %27 = vector.extract_strided_slice %5 {offsets = [1, 0, 0], sizes = [1, 1, 128], strides = [1, 1, 1]} : vector<7x7x128xf32> to vector<1x1x128xf32>
    %28 = vector.shape_cast %27 : vector<1x1x128xf32> to vector<128xf32>
    %29 = vector.shape_cast %28 : vector<128xf32> to vector<1x1x128xf32>
    %30 = vector.extract_strided_slice %5 {offsets = [1, 1, 0], sizes = [1, 1, 128], strides = [1, 1, 1]} : vector<7x7x128xf32> to vector<1x1x128xf32>
    %31 = vector.shape_cast %30 : vector<1x1x128xf32> to vector<128xf32>
    %32 = vector.shape_cast %31 : vector<128xf32> to vector<1x1x128xf32>
    %33 = vector.extract_strided_slice %5 {offsets = [1, 2, 0], sizes = [1, 1, 128], strides = [1, 1, 1]} : vector<7x7x128xf32> to vector<1x1x128xf32>
    %34 = vector.shape_cast %33 : vector<1x1x128xf32> to vector<128xf32>
    %35 = vector.shape_cast %34 : vector<128xf32> to vector<1x1x128xf32>
    %36 = vector.extract_strided_slice %5 {offsets = [1, 3, 0], sizes = [1, 1, 128], strides = [1, 1, 1]} : vector<7x7x128xf32> to vector<1x1x128xf32>
    %37 = vector.shape_cast %36 : vector<1x1x128xf32> to vector<128xf32>
    %38 = vector.shape_cast %37 : vector<128xf32> to vector<1x1x128xf32>
    %39 = vector.extract_strided_slice %5 {offsets = [1, 4, 0], sizes = [1, 1, 128], strides = [1, 1, 1]} : vector<7x7x128xf32> to vector<1x1x128xf32>
    %40 = vector.shape_cast %39 : vector<1x1x128xf32> to vector<128xf32>
    %41 = vector.shape_cast %40 : vector<128xf32> to vector<1x1x128xf32>
    %42 = vector.extract_strided_slice %5 {offsets = [1, 5, 0], sizes = [1, 1, 128], strides = [1, 1, 1]} : vector<7x7x128xf32> to vector<1x1x128xf32>
    %43 = vector.shape_cast %42 : vector<1x1x128xf32> to vector<128xf32>
    %44 = vector.shape_cast %43 : vector<128xf32> to vector<1x1x128xf32>
    %45 = vector.extract_strided_slice %5 {offsets = [1, 6, 0], sizes = [1, 1, 128], strides = [1, 1, 1]} : vector<7x7x128xf32> to vector<1x1x128xf32>
    %46 = vector.shape_cast %45 : vector<1x1x128xf32> to vector<128xf32>
    %47 = vector.shape_cast %46 : vector<128xf32> to vector<1x1x128xf32>
    %48 = vector.extract_strided_slice %5 {offsets = [2, 0, 0], sizes = [1, 1, 128], strides = [1, 1, 1]} : vector<7x7x128xf32> to vector<1x1x128xf32>
    %49 = vector.shape_cast %48 : vector<1x1x128xf32> to vector<128xf32>
    %50 = vector.shape_cast %49 : vector<128xf32> to vector<1x1x128xf32>
    %51 = vector.extract_strided_slice %5 {offsets = [2, 1, 0], sizes = [1, 1, 128], strides = [1, 1, 1]} : vector<7x7x128xf32> to vector<1x1x128xf32>
    %52 = vector.shape_cast %51 : vector<1x1x128xf32> to vector<128xf32>
    %53 = vector.shape_cast %52 : vector<128xf32> to vector<1x1x128xf32>
    %54 = vector.extract_strided_slice %5 {offsets = [2, 2, 0], sizes = [1, 1, 128], strides = [1, 1, 1]} : vector<7x7x128xf32> to vector<1x1x128xf32>
    %55 = vector.shape_cast %54 : vector<1x1x128xf32> to vector<128xf32>
    %56 = vector.shape_cast %55 : vector<128xf32> to vector<1x1x128xf32>
    %57 = vector.extract_strided_slice %5 {offsets = [2, 3, 0], sizes = [1, 1, 128], strides = [1, 1, 1]} : vector<7x7x128xf32> to vector<1x1x128xf32>
    %58 = vector.shape_cast %57 : vector<1x1x128xf32> to vector<128xf32>
    %59 = vector.shape_cast %58 : vector<128xf32> to vector<1x1x128xf32>
    %60 = vector.extract_strided_slice %5 {offsets = [2, 4, 0], sizes = [1, 1, 128], strides = [1, 1, 1]} : vector<7x7x128xf32> to vector<1x1x128xf32>
    %61 = vector.shape_cast %60 : vector<1x1x128xf32> to vector<128xf32>
    %62 = vector.shape_cast %61 : vector<128xf32> to vector<1x1x128xf32>
    %63 = vector.extract_strided_slice %5 {offsets = [2, 5, 0], sizes = [1, 1, 128], strides = [1, 1, 1]} : vector<7x7x128xf32> to vector<1x1x128xf32>
    %64 = vector.shape_cast %63 : vector<1x1x128xf32> to vector<128xf32>
    %65 = vector.shape_cast %64 : vector<128xf32> to vector<1x1x128xf32>
    %66 = vector.extract_strided_slice %5 {offsets = [2, 6, 0], sizes = [1, 1, 128], strides = [1, 1, 1]} : vector<7x7x128xf32> to vector<1x1x128xf32>
    %67 = vector.shape_cast %66 : vector<1x1x128xf32> to vector<128xf32>
    %68 = vector.shape_cast %67 : vector<128xf32> to vector<1x1x128xf32>
    %69 = vector.extract_strided_slice %5 {offsets = [3, 0, 0], sizes = [1, 1, 128], strides = [1, 1, 1]} : vector<7x7x128xf32> to vector<1x1x128xf32>
    %70 = vector.shape_cast %69 : vector<1x1x128xf32> to vector<128xf32>
    %71 = vector.shape_cast %70 : vector<128xf32> to vector<1x1x128xf32>
    %72 = vector.extract_strided_slice %5 {offsets = [3, 1, 0], sizes = [1, 1, 128], strides = [1, 1, 1]} : vector<7x7x128xf32> to vector<1x1x128xf32>
    %73 = vector.shape_cast %72 : vector<1x1x128xf32> to vector<128xf32>
    %74 = vector.shape_cast %73 : vector<128xf32> to vector<1x1x128xf32>
    %75 = vector.extract_strided_slice %5 {offsets = [3, 2, 0], sizes = [1, 1, 128], strides = [1, 1, 1]} : vector<7x7x128xf32> to vector<1x1x128xf32>
    %76 = vector.shape_cast %75 : vector<1x1x128xf32> to vector<128xf32>
    %77 = vector.shape_cast %76 : vector<128xf32> to vector<1x1x128xf32>
    %78 = vector.extract_strided_slice %5 {offsets = [3, 3, 0], sizes = [1, 1, 128], strides = [1, 1, 1]} : vector<7x7x128xf32> to vector<1x1x128xf32>
    %79 = vector.shape_cast %78 : vector<1x1x128xf32> to vector<128xf32>
    %80 = vector.shape_cast %79 : vector<128xf32> to vector<1x1x128xf32>
    %81 = vector.extract_strided_slice %5 {offsets = [3, 4, 0], sizes = [1, 1, 128], strides = [1, 1, 1]} : vector<7x7x128xf32> to vector<1x1x128xf32>
    %82 = vector.shape_cast %81 : vector<1x1x128xf32> to vector<128xf32>
    %83 = vector.shape_cast %82 : vector<128xf32> to vector<1x1x128xf32>
    %84 = vector.extract_strided_slice %5 {offsets = [3, 5, 0], sizes = [1, 1, 128], strides = [1, 1, 1]} : vector<7x7x128xf32> to vector<1x1x128xf32>
    %85 = vector.shape_cast %84 : vector<1x1x128xf32> to vector<128xf32>
    %86 = vector.shape_cast %85 : vector<128xf32> to vector<1x1x128xf32>
    %87 = vector.extract_strided_slice %5 {offsets = [3, 6, 0], sizes = [1, 1, 128], strides = [1, 1, 1]} : vector<7x7x128xf32> to vector<1x1x128xf32>
    %88 = vector.shape_cast %87 : vector<1x1x128xf32> to vector<128xf32>
    %89 = vector.shape_cast %88 : vector<128xf32> to vector<1x1x128xf32>
    %90 = vector.extract_strided_slice %5 {offsets = [4, 0, 0], sizes = [1, 1, 128], strides = [1, 1, 1]} : vector<7x7x128xf32> to vector<1x1x128xf32>
    %91 = vector.shape_cast %90 : vector<1x1x128xf32> to vector<128xf32>
    %92 = vector.shape_cast %91 : vector<128xf32> to vector<1x1x128xf32>
    %93 = vector.extract_strided_slice %5 {offsets = [4, 1, 0], sizes = [1, 1, 128], strides = [1, 1, 1]} : vector<7x7x128xf32> to vector<1x1x128xf32>
    %94 = vector.shape_cast %93 : vector<1x1x128xf32> to vector<128xf32>
    %95 = vector.shape_cast %94 : vector<128xf32> to vector<1x1x128xf32>
    %96 = vector.extract_strided_slice %5 {offsets = [4, 2, 0], sizes = [1, 1, 128], strides = [1, 1, 1]} : vector<7x7x128xf32> to vector<1x1x128xf32>
    %97 = vector.shape_cast %96 : vector<1x1x128xf32> to vector<128xf32>
    %98 = vector.shape_cast %97 : vector<128xf32> to vector<1x1x128xf32>
    %99 = vector.extract_strided_slice %5 {offsets = [4, 3, 0], sizes = [1, 1, 128], strides = [1, 1, 1]} : vector<7x7x128xf32> to vector<1x1x128xf32>
    %100 = vector.shape_cast %99 : vector<1x1x128xf32> to vector<128xf32>
    %101 = vector.shape_cast %100 : vector<128xf32> to vector<1x1x128xf32>
    %102 = vector.extract_strided_slice %5 {offsets = [4, 4, 0], sizes = [1, 1, 128], strides = [1, 1, 1]} : vector<7x7x128xf32> to vector<1x1x128xf32>
    %103 = vector.shape_cast %102 : vector<1x1x128xf32> to vector<128xf32>
    %104 = vector.shape_cast %103 : vector<128xf32> to vector<1x1x128xf32>
    %105 = vector.extract_strided_slice %5 {offsets = [4, 5, 0], sizes = [1, 1, 128], strides = [1, 1, 1]} : vector<7x7x128xf32> to vector<1x1x128xf32>
    %106 = vector.shape_cast %105 : vector<1x1x128xf32> to vector<128xf32>
    %107 = vector.shape_cast %106 : vector<128xf32> to vector<1x1x128xf32>
    %108 = vector.extract_strided_slice %5 {offsets = [4, 6, 0], sizes = [1, 1, 128], strides = [1, 1, 1]} : vector<7x7x128xf32> to vector<1x1x128xf32>
    %109 = vector.shape_cast %108 : vector<1x1x128xf32> to vector<128xf32>
    %110 = vector.shape_cast %109 : vector<128xf32> to vector<1x1x128xf32>
    %111 = vector.extract_strided_slice %5 {offsets = [5, 0, 0], sizes = [1, 1, 128], strides = [1, 1, 1]} : vector<7x7x128xf32> to vector<1x1x128xf32>
    %112 = vector.shape_cast %111 : vector<1x1x128xf32> to vector<128xf32>
    %113 = vector.shape_cast %112 : vector<128xf32> to vector<1x1x128xf32>
    %114 = vector.extract_strided_slice %5 {offsets = [5, 1, 0], sizes = [1, 1, 128], strides = [1, 1, 1]} : vector<7x7x128xf32> to vector<1x1x128xf32>
    %115 = vector.shape_cast %114 : vector<1x1x128xf32> to vector<128xf32>
    %116 = vector.shape_cast %115 : vector<128xf32> to vector<1x1x128xf32>
    %117 = vector.extract_strided_slice %5 {offsets = [5, 2, 0], sizes = [1, 1, 128], strides = [1, 1, 1]} : vector<7x7x128xf32> to vector<1x1x128xf32>
    %118 = vector.shape_cast %117 : vector<1x1x128xf32> to vector<128xf32>
    %119 = vector.shape_cast %118 : vector<128xf32> to vector<1x1x128xf32>
    %120 = vector.extract_strided_slice %5 {offsets = [5, 3, 0], sizes = [1, 1, 128], strides = [1, 1, 1]} : vector<7x7x128xf32> to vector<1x1x128xf32>
    %121 = vector.shape_cast %120 : vector<1x1x128xf32> to vector<128xf32>
    %122 = vector.shape_cast %121 : vector<128xf32> to vector<1x1x128xf32>
    %123 = vector.extract_strided_slice %5 {offsets = [5, 4, 0], sizes = [1, 1, 128], strides = [1, 1, 1]} : vector<7x7x128xf32> to vector<1x1x128xf32>
    %124 = vector.shape_cast %123 : vector<1x1x128xf32> to vector<128xf32>
    %125 = vector.shape_cast %124 : vector<128xf32> to vector<1x1x128xf32>
    %126 = vector.extract_strided_slice %5 {offsets = [5, 5, 0], sizes = [1, 1, 128], strides = [1, 1, 1]} : vector<7x7x128xf32> to vector<1x1x128xf32>
    %127 = vector.shape_cast %126 : vector<1x1x128xf32> to vector<128xf32>
    %128 = vector.shape_cast %127 : vector<128xf32> to vector<1x1x128xf32>
    %129 = vector.extract_strided_slice %5 {offsets = [5, 6, 0], sizes = [1, 1, 128], strides = [1, 1, 1]} : vector<7x7x128xf32> to vector<1x1x128xf32>
    %130 = vector.shape_cast %129 : vector<1x1x128xf32> to vector<128xf32>
    %131 = vector.shape_cast %130 : vector<128xf32> to vector<1x1x128xf32>
    %132 = vector.extract_strided_slice %5 {offsets = [6, 0, 0], sizes = [1, 1, 128], strides = [1, 1, 1]} : vector<7x7x128xf32> to vector<1x1x128xf32>
    %133 = vector.shape_cast %132 : vector<1x1x128xf32> to vector<128xf32>
    %134 = vector.shape_cast %133 : vector<128xf32> to vector<1x1x128xf32>
    %135 = vector.extract_strided_slice %5 {offsets = [6, 1, 0], sizes = [1, 1, 128], strides = [1, 1, 1]} : vector<7x7x128xf32> to vector<1x1x128xf32>
    %136 = vector.shape_cast %135 : vector<1x1x128xf32> to vector<128xf32>
    %137 = vector.shape_cast %136 : vector<128xf32> to vector<1x1x128xf32>
    %138 = vector.extract_strided_slice %5 {offsets = [6, 2, 0], sizes = [1, 1, 128], strides = [1, 1, 1]} : vector<7x7x128xf32> to vector<1x1x128xf32>
    %139 = vector.shape_cast %138 : vector<1x1x128xf32> to vector<128xf32>
    %140 = vector.shape_cast %139 : vector<128xf32> to vector<1x1x128xf32>
    %141 = vector.extract_strided_slice %5 {offsets = [6, 3, 0], sizes = [1, 1, 128], strides = [1, 1, 1]} : vector<7x7x128xf32> to vector<1x1x128xf32>
    %142 = vector.shape_cast %141 : vector<1x1x128xf32> to vector<128xf32>
    %143 = vector.shape_cast %142 : vector<128xf32> to vector<1x1x128xf32>
    %144 = vector.extract_strided_slice %5 {offsets = [6, 4, 0], sizes = [1, 1, 128], strides = [1, 1, 1]} : vector<7x7x128xf32> to vector<1x1x128xf32>
    %145 = vector.shape_cast %144 : vector<1x1x128xf32> to vector<128xf32>
    %146 = vector.shape_cast %145 : vector<128xf32> to vector<1x1x128xf32>
    %147 = vector.extract_strided_slice %5 {offsets = [6, 5, 0], sizes = [1, 1, 128], strides = [1, 1, 1]} : vector<7x7x128xf32> to vector<1x1x128xf32>
    %148 = vector.shape_cast %147 : vector<1x1x128xf32> to vector<128xf32>
    %149 = vector.shape_cast %148 : vector<128xf32> to vector<1x1x128xf32>
    %150 = vector.extract_strided_slice %5 {offsets = [6, 6, 0], sizes = [1, 1, 128], strides = [1, 1, 1]} : vector<7x7x128xf32> to vector<1x1x128xf32>
    %151 = vector.shape_cast %150 : vector<1x1x128xf32> to vector<128xf32>
    %152 = vector.shape_cast %151 : vector<128xf32> to vector<1x1x128xf32>
    %153 = tpu.iota {dimensions = array<i32: 1>} : vector<1x16x1xi32>
    %cst = arith.constant 0.000000e+00 : f32
    %154 = vector.broadcast %cst : f32 to vector<8x16x128xf32>
    %155 = arith.index_cast %4 : i32 to index
    %c0_3 = arith.constant 0 : index
    %c0_4 = arith.constant 0 : index
    %156 = vector.load %arg8[%155, %c0_3, %c0_4] : memref<22x16x128xf32, #tpu.memory_space<vmem>>, vector<14x16x128xf32>
    %c3_i32 = arith.constant 3 : i32
    %157 = tpu.dynamic_rotate %156 by %c3_i32 dim 1 : vector<14x16x128xf32>, i32 -> vector<14x16x128xf32>
    %c-3_i32 = arith.constant -3 : i32
    %158 = vector.broadcast %c-3_i32 : i32 to vector<1x16x1xi32>
    %159 = arith.addi %153, %158 : vector<1x16x1xi32>
    %c0_i32_5 = arith.constant 0 : i32
    %160 = vector.broadcast %c0_i32_5 : i32 to vector<1x16x1xi32>
    %161 = arith.cmpi sge, %159, %160 : vector<1x16x1xi32>
    %c-3_i32_6 = arith.constant -3 : i32
    %162 = vector.broadcast %c-3_i32_6 : i32 to vector<1x16x1xi32>
    %163 = arith.addi %153, %162 : vector<1x16x1xi32>
    %c16_i32 = arith.constant 16 : i32
    %164 = vector.broadcast %c16_i32 : i32 to vector<1x16x1xi32>
    %165 = arith.cmpi slt, %163, %164 : vector<1x16x1xi32>
    %166 = arith.andi %161, %165 : vector<1x16x1xi1>
    %cst_7 = arith.constant 0.000000e+00 : f32
    %167 = vector.shape_cast %166 : vector<1x16x1xi1> to vector<1x16x1xi1>
    %168 = vector.broadcast %167 : vector<1x16x1xi1> to vector<14x16x128xi1>
    %169 = vector.broadcast %cst_7 : f32 to vector<14x16x128xf32>
    %170 = arith.select %168, %157, %169 : vector<14x16x128xi1>, vector<14x16x128xf32>
    %171 = vector.extract_strided_slice %170 {offsets = [0, 0, 0], sizes = [8, 16, 128], strides = [1, 1, 1]} : vector<14x16x128xf32> to vector<8x16x128xf32>
    %172 = vector.broadcast %8 : vector<1x1x128xf32> to vector<8x16x128xf32>
    %173 = arith.mulf %171, %172 : vector<8x16x128xf32>
    %174 = arith.addf %154, %173 : vector<8x16x128xf32>
    %175 = vector.extract_strided_slice %170 {offsets = [1, 0, 0], sizes = [8, 16, 128], strides = [1, 1, 1]} : vector<14x16x128xf32> to vector<8x16x128xf32>
    %176 = vector.broadcast %29 : vector<1x1x128xf32> to vector<8x16x128xf32>
    %177 = arith.mulf %175, %176 : vector<8x16x128xf32>
    %178 = arith.addf %174, %177 : vector<8x16x128xf32>
    %179 = vector.extract_strided_slice %170 {offsets = [2, 0, 0], sizes = [8, 16, 128], strides = [1, 1, 1]} : vector<14x16x128xf32> to vector<8x16x128xf32>
    %180 = vector.broadcast %50 : vector<1x1x128xf32> to vector<8x16x128xf32>
    %181 = arith.mulf %179, %180 : vector<8x16x128xf32>
    %182 = arith.addf %178, %181 : vector<8x16x128xf32>
    %183 = vector.extract_strided_slice %170 {offsets = [3, 0, 0], sizes = [8, 16, 128], strides = [1, 1, 1]} : vector<14x16x128xf32> to vector<8x16x128xf32>
    %184 = vector.broadcast %71 : vector<1x1x128xf32> to vector<8x16x128xf32>
    %185 = arith.mulf %183, %184 : vector<8x16x128xf32>
    %186 = arith.addf %182, %185 : vector<8x16x128xf32>
    %187 = vector.extract_strided_slice %170 {offsets = [4, 0, 0], sizes = [8, 16, 128], strides = [1, 1, 1]} : vector<14x16x128xf32> to vector<8x16x128xf32>
    %188 = vector.broadcast %92 : vector<1x1x128xf32> to vector<8x16x128xf32>
    %189 = arith.mulf %187, %188 : vector<8x16x128xf32>
    %190 = arith.addf %186, %189 : vector<8x16x128xf32>
    %191 = vector.extract_strided_slice %170 {offsets = [5, 0, 0], sizes = [8, 16, 128], strides = [1, 1, 1]} : vector<14x16x128xf32> to vector<8x16x128xf32>
    %192 = vector.broadcast %113 : vector<1x1x128xf32> to vector<8x16x128xf32>
    %193 = arith.mulf %191, %192 : vector<8x16x128xf32>
    %194 = arith.addf %190, %193 : vector<8x16x128xf32>
    %195 = vector.extract_strided_slice %170 {offsets = [6, 0, 0], sizes = [8, 16, 128], strides = [1, 1, 1]} : vector<14x16x128xf32> to vector<8x16x128xf32>
    %196 = vector.broadcast %134 : vector<1x1x128xf32> to vector<8x16x128xf32>
    %197 = arith.mulf %195, %196 : vector<8x16x128xf32>
    %198 = arith.addf %194, %197 : vector<8x16x128xf32>
    %199 = arith.index_cast %4 : i32 to index
    %c0_8 = arith.constant 0 : index
    %c0_9 = arith.constant 0 : index
    %200 = vector.load %arg8[%199, %c0_8, %c0_9] : memref<22x16x128xf32, #tpu.memory_space<vmem>>, vector<14x16x128xf32>
    %c2_i32 = arith.constant 2 : i32
    %201 = tpu.dynamic_rotate %200 by %c2_i32 dim 1 : vector<14x16x128xf32>, i32 -> vector<14x16x128xf32>
    %c-2_i32 = arith.constant -2 : i32
    %202 = vector.broadcast %c-2_i32 : i32 to vector<1x16x1xi32>
    %203 = arith.addi %153, %202 : vector<1x16x1xi32>
    %c0_i32_10 = arith.constant 0 : i32
    %204 = vector.broadcast %c0_i32_10 : i32 to vector<1x16x1xi32>
    %205 = arith.cmpi sge, %203, %204 : vector<1x16x1xi32>
    %c-2_i32_11 = arith.constant -2 : i32
    %206 = vector.broadcast %c-2_i32_11 : i32 to vector<1x16x1xi32>
    %207 = arith.addi %153, %206 : vector<1x16x1xi32>
    %c16_i32_12 = arith.constant 16 : i32
    %208 = vector.broadcast %c16_i32_12 : i32 to vector<1x16x1xi32>
    %209 = arith.cmpi slt, %207, %208 : vector<1x16x1xi32>
    %210 = arith.andi %205, %209 : vector<1x16x1xi1>
    %cst_13 = arith.constant 0.000000e+00 : f32
    %211 = vector.shape_cast %210 : vector<1x16x1xi1> to vector<1x16x1xi1>
    %212 = vector.broadcast %211 : vector<1x16x1xi1> to vector<14x16x128xi1>
    %213 = vector.broadcast %cst_13 : f32 to vector<14x16x128xf32>
    %214 = arith.select %212, %201, %213 : vector<14x16x128xi1>, vector<14x16x128xf32>
    %215 = vector.extract_strided_slice %214 {offsets = [0, 0, 0], sizes = [8, 16, 128], strides = [1, 1, 1]} : vector<14x16x128xf32> to vector<8x16x128xf32>
    %216 = vector.broadcast %11 : vector<1x1x128xf32> to vector<8x16x128xf32>
    %217 = arith.mulf %215, %216 : vector<8x16x128xf32>
    %218 = arith.addf %198, %217 : vector<8x16x128xf32>
    %219 = vector.extract_strided_slice %214 {offsets = [1, 0, 0], sizes = [8, 16, 128], strides = [1, 1, 1]} : vector<14x16x128xf32> to vector<8x16x128xf32>
    %220 = vector.broadcast %32 : vector<1x1x128xf32> to vector<8x16x128xf32>
    %221 = arith.mulf %219, %220 : vector<8x16x128xf32>
    %222 = arith.addf %218, %221 : vector<8x16x128xf32>
    %223 = vector.extract_strided_slice %214 {offsets = [2, 0, 0], sizes = [8, 16, 128], strides = [1, 1, 1]} : vector<14x16x128xf32> to vector<8x16x128xf32>
    %224 = vector.broadcast %53 : vector<1x1x128xf32> to vector<8x16x128xf32>
    %225 = arith.mulf %223, %224 : vector<8x16x128xf32>
    %226 = arith.addf %222, %225 : vector<8x16x128xf32>
    %227 = vector.extract_strided_slice %214 {offsets = [3, 0, 0], sizes = [8, 16, 128], strides = [1, 1, 1]} : vector<14x16x128xf32> to vector<8x16x128xf32>
    %228 = vector.broadcast %74 : vector<1x1x128xf32> to vector<8x16x128xf32>
    %229 = arith.mulf %227, %228 : vector<8x16x128xf32>
    %230 = arith.addf %226, %229 : vector<8x16x128xf32>
    %231 = vector.extract_strided_slice %214 {offsets = [4, 0, 0], sizes = [8, 16, 128], strides = [1, 1, 1]} : vector<14x16x128xf32> to vector<8x16x128xf32>
    %232 = vector.broadcast %95 : vector<1x1x128xf32> to vector<8x16x128xf32>
    %233 = arith.mulf %231, %232 : vector<8x16x128xf32>
    %234 = arith.addf %230, %233 : vector<8x16x128xf32>
    %235 = vector.extract_strided_slice %214 {offsets = [5, 0, 0], sizes = [8, 16, 128], strides = [1, 1, 1]} : vector<14x16x128xf32> to vector<8x16x128xf32>
    %236 = vector.broadcast %116 : vector<1x1x128xf32> to vector<8x16x128xf32>
    %237 = arith.mulf %235, %236 : vector<8x16x128xf32>
    %238 = arith.addf %234, %237 : vector<8x16x128xf32>
    %239 = vector.extract_strided_slice %214 {offsets = [6, 0, 0], sizes = [8, 16, 128], strides = [1, 1, 1]} : vector<14x16x128xf32> to vector<8x16x128xf32>
    %240 = vector.broadcast %137 : vector<1x1x128xf32> to vector<8x16x128xf32>
    %241 = arith.mulf %239, %240 : vector<8x16x128xf32>
    %242 = arith.addf %238, %241 : vector<8x16x128xf32>
    %243 = arith.index_cast %4 : i32 to index
    %c0_14 = arith.constant 0 : index
    %c0_15 = arith.constant 0 : index
    %244 = vector.load %arg8[%243, %c0_14, %c0_15] : memref<22x16x128xf32, #tpu.memory_space<vmem>>, vector<14x16x128xf32>
    %c1_i32 = arith.constant 1 : i32
    %245 = tpu.dynamic_rotate %244 by %c1_i32 dim 1 : vector<14x16x128xf32>, i32 -> vector<14x16x128xf32>
    %c-1_i32 = arith.constant -1 : i32
    %246 = vector.broadcast %c-1_i32 : i32 to vector<1x16x1xi32>
    %247 = arith.addi %153, %246 : vector<1x16x1xi32>
    %c0_i32_16 = arith.constant 0 : i32
    %248 = vector.broadcast %c0_i32_16 : i32 to vector<1x16x1xi32>
    %249 = arith.cmpi sge, %247, %248 : vector<1x16x1xi32>
    %c-1_i32_17 = arith.constant -1 : i32
    %250 = vector.broadcast %c-1_i32_17 : i32 to vector<1x16x1xi32>
    %251 = arith.addi %153, %250 : vector<1x16x1xi32>
    %c16_i32_18 = arith.constant 16 : i32
    %252 = vector.broadcast %c16_i32_18 : i32 to vector<1x16x1xi32>
    %253 = arith.cmpi slt, %251, %252 : vector<1x16x1xi32>
    %254 = arith.andi %249, %253 : vector<1x16x1xi1>
    %cst_19 = arith.constant 0.000000e+00 : f32
    %255 = vector.shape_cast %254 : vector<1x16x1xi1> to vector<1x16x1xi1>
    %256 = vector.broadcast %255 : vector<1x16x1xi1> to vector<14x16x128xi1>
    %257 = vector.broadcast %cst_19 : f32 to vector<14x16x128xf32>
    %258 = arith.select %256, %245, %257 : vector<14x16x128xi1>, vector<14x16x128xf32>
    %259 = vector.extract_strided_slice %258 {offsets = [0, 0, 0], sizes = [8, 16, 128], strides = [1, 1, 1]} : vector<14x16x128xf32> to vector<8x16x128xf32>
    %260 = vector.broadcast %14 : vector<1x1x128xf32> to vector<8x16x128xf32>
    %261 = arith.mulf %259, %260 : vector<8x16x128xf32>
    %262 = arith.addf %242, %261 : vector<8x16x128xf32>
    %263 = vector.extract_strided_slice %258 {offsets = [1, 0, 0], sizes = [8, 16, 128], strides = [1, 1, 1]} : vector<14x16x128xf32> to vector<8x16x128xf32>
    %264 = vector.broadcast %35 : vector<1x1x128xf32> to vector<8x16x128xf32>
    %265 = arith.mulf %263, %264 : vector<8x16x128xf32>
    %266 = arith.addf %262, %265 : vector<8x16x128xf32>
    %267 = vector.extract_strided_slice %258 {offsets = [2, 0, 0], sizes = [8, 16, 128], strides = [1, 1, 1]} : vector<14x16x128xf32> to vector<8x16x128xf32>
    %268 = vector.broadcast %56 : vector<1x1x128xf32> to vector<8x16x128xf32>
    %269 = arith.mulf %267, %268 : vector<8x16x128xf32>
    %270 = arith.addf %266, %269 : vector<8x16x128xf32>
    %271 = vector.extract_strided_slice %258 {offsets = [3, 0, 0], sizes = [8, 16, 128], strides = [1, 1, 1]} : vector<14x16x128xf32> to vector<8x16x128xf32>
    %272 = vector.broadcast %77 : vector<1x1x128xf32> to vector<8x16x128xf32>
    %273 = arith.mulf %271, %272 : vector<8x16x128xf32>
    %274 = arith.addf %270, %273 : vector<8x16x128xf32>
    %275 = vector.extract_strided_slice %258 {offsets = [4, 0, 0], sizes = [8, 16, 128], strides = [1, 1, 1]} : vector<14x16x128xf32> to vector<8x16x128xf32>
    %276 = vector.broadcast %98 : vector<1x1x128xf32> to vector<8x16x128xf32>
    %277 = arith.mulf %275, %276 : vector<8x16x128xf32>
    %278 = arith.addf %274, %277 : vector<8x16x128xf32>
    %279 = vector.extract_strided_slice %258 {offsets = [5, 0, 0], sizes = [8, 16, 128], strides = [1, 1, 1]} : vector<14x16x128xf32> to vector<8x16x128xf32>
    %280 = vector.broadcast %119 : vector<1x1x128xf32> to vector<8x16x128xf32>
    %281 = arith.mulf %279, %280 : vector<8x16x128xf32>
    %282 = arith.addf %278, %281 : vector<8x16x128xf32>
    %283 = vector.extract_strided_slice %258 {offsets = [6, 0, 0], sizes = [8, 16, 128], strides = [1, 1, 1]} : vector<14x16x128xf32> to vector<8x16x128xf32>
    %284 = vector.broadcast %140 : vector<1x1x128xf32> to vector<8x16x128xf32>
    %285 = arith.mulf %283, %284 : vector<8x16x128xf32>
    %286 = arith.addf %282, %285 : vector<8x16x128xf32>
    %287 = arith.index_cast %4 : i32 to index
    %c0_20 = arith.constant 0 : index
    %c0_21 = arith.constant 0 : index
    %288 = vector.load %arg8[%287, %c0_20, %c0_21] : memref<22x16x128xf32, #tpu.memory_space<vmem>>, vector<14x16x128xf32>
    %289 = vector.extract_strided_slice %288 {offsets = [0, 0, 0], sizes = [8, 16, 128], strides = [1, 1, 1]} : vector<14x16x128xf32> to vector<8x16x128xf32>
    %290 = vector.broadcast %17 : vector<1x1x128xf32> to vector<8x16x128xf32>
    %291 = arith.mulf %289, %290 : vector<8x16x128xf32>
    %292 = arith.addf %286, %291 : vector<8x16x128xf32>
    %293 = vector.extract_strided_slice %288 {offsets = [1, 0, 0], sizes = [8, 16, 128], strides = [1, 1, 1]} : vector<14x16x128xf32> to vector<8x16x128xf32>
    %294 = vector.broadcast %38 : vector<1x1x128xf32> to vector<8x16x128xf32>
    %295 = arith.mulf %293, %294 : vector<8x16x128xf32>
    %296 = arith.addf %292, %295 : vector<8x16x128xf32>
    %297 = vector.extract_strided_slice %288 {offsets = [2, 0, 0], sizes = [8, 16, 128], strides = [1, 1, 1]} : vector<14x16x128xf32> to vector<8x16x128xf32>
    %298 = vector.broadcast %59 : vector<1x1x128xf32> to vector<8x16x128xf32>
    %299 = arith.mulf %297, %298 : vector<8x16x128xf32>
    %300 = arith.addf %296, %299 : vector<8x16x128xf32>
    %301 = vector.extract_strided_slice %288 {offsets = [3, 0, 0], sizes = [8, 16, 128], strides = [1, 1, 1]} : vector<14x16x128xf32> to vector<8x16x128xf32>
    %302 = vector.broadcast %80 : vector<1x1x128xf32> to vector<8x16x128xf32>
    %303 = arith.mulf %301, %302 : vector<8x16x128xf32>
    %304 = arith.addf %300, %303 : vector<8x16x128xf32>
    %305 = vector.extract_strided_slice %288 {offsets = [4, 0, 0], sizes = [8, 16, 128], strides = [1, 1, 1]} : vector<14x16x128xf32> to vector<8x16x128xf32>
    %306 = vector.broadcast %101 : vector<1x1x128xf32> to vector<8x16x128xf32>
    %307 = arith.mulf %305, %306 : vector<8x16x128xf32>
    %308 = arith.addf %304, %307 : vector<8x16x128xf32>
    %309 = vector.extract_strided_slice %288 {offsets = [5, 0, 0], sizes = [8, 16, 128], strides = [1, 1, 1]} : vector<14x16x128xf32> to vector<8x16x128xf32>
    %310 = vector.broadcast %122 : vector<1x1x128xf32> to vector<8x16x128xf32>
    %311 = arith.mulf %309, %310 : vector<8x16x128xf32>
    %312 = arith.addf %308, %311 : vector<8x16x128xf32>
    %313 = vector.extract_strided_slice %288 {offsets = [6, 0, 0], sizes = [8, 16, 128], strides = [1, 1, 1]} : vector<14x16x128xf32> to vector<8x16x128xf32>
    %314 = vector.broadcast %143 : vector<1x1x128xf32> to vector<8x16x128xf32>
    %315 = arith.mulf %313, %314 : vector<8x16x128xf32>
    %316 = arith.addf %312, %315 : vector<8x16x128xf32>
    %317 = arith.index_cast %4 : i32 to index
    %c0_22 = arith.constant 0 : index
    %c0_23 = arith.constant 0 : index
    %318 = vector.load %arg8[%317, %c0_22, %c0_23] : memref<22x16x128xf32, #tpu.memory_space<vmem>>, vector<14x16x128xf32>
    %c15_i32 = arith.constant 15 : i32
    %319 = tpu.dynamic_rotate %318 by %c15_i32 dim 1 : vector<14x16x128xf32>, i32 -> vector<14x16x128xf32>
    %c1_i32_24 = arith.constant 1 : i32
    %320 = vector.broadcast %c1_i32_24 : i32 to vector<1x16x1xi32>
    %321 = arith.addi %153, %320 : vector<1x16x1xi32>
    %c0_i32_25 = arith.constant 0 : i32
    %322 = vector.broadcast %c0_i32_25 : i32 to vector<1x16x1xi32>
    %323 = arith.cmpi sge, %321, %322 : vector<1x16x1xi32>
    %c1_i32_26 = arith.constant 1 : i32
    %324 = vector.broadcast %c1_i32_26 : i32 to vector<1x16x1xi32>
    %325 = arith.addi %153, %324 : vector<1x16x1xi32>
    %c16_i32_27 = arith.constant 16 : i32
    %326 = vector.broadcast %c16_i32_27 : i32 to vector<1x16x1xi32>
    %327 = arith.cmpi slt, %325, %326 : vector<1x16x1xi32>
    %328 = arith.andi %323, %327 : vector<1x16x1xi1>
    %cst_28 = arith.constant 0.000000e+00 : f32
    %329 = vector.shape_cast %328 : vector<1x16x1xi1> to vector<1x16x1xi1>
    %330 = vector.broadcast %329 : vector<1x16x1xi1> to vector<14x16x128xi1>
    %331 = vector.broadcast %cst_28 : f32 to vector<14x16x128xf32>
    %332 = arith.select %330, %319, %331 : vector<14x16x128xi1>, vector<14x16x128xf32>
    %333 = vector.extract_strided_slice %332 {offsets = [0, 0, 0], sizes = [8, 16, 128], strides = [1, 1, 1]} : vector<14x16x128xf32> to vector<8x16x128xf32>
    %334 = vector.broadcast %20 : vector<1x1x128xf32> to vector<8x16x128xf32>
    %335 = arith.mulf %333, %334 : vector<8x16x128xf32>
    %336 = arith.addf %316, %335 : vector<8x16x128xf32>
    %337 = vector.extract_strided_slice %332 {offsets = [1, 0, 0], sizes = [8, 16, 128], strides = [1, 1, 1]} : vector<14x16x128xf32> to vector<8x16x128xf32>
    %338 = vector.broadcast %41 : vector<1x1x128xf32> to vector<8x16x128xf32>
    %339 = arith.mulf %337, %338 : vector<8x16x128xf32>
    %340 = arith.addf %336, %339 : vector<8x16x128xf32>
    %341 = vector.extract_strided_slice %332 {offsets = [2, 0, 0], sizes = [8, 16, 128], strides = [1, 1, 1]} : vector<14x16x128xf32> to vector<8x16x128xf32>
    %342 = vector.broadcast %62 : vector<1x1x128xf32> to vector<8x16x128xf32>
    %343 = arith.mulf %341, %342 : vector<8x16x128xf32>
    %344 = arith.addf %340, %343 : vector<8x16x128xf32>
    %345 = vector.extract_strided_slice %332 {offsets = [3, 0, 0], sizes = [8, 16, 128], strides = [1, 1, 1]} : vector<14x16x128xf32> to vector<8x16x128xf32>
    %346 = vector.broadcast %83 : vector<1x1x128xf32> to vector<8x16x128xf32>
    %347 = arith.mulf %345, %346 : vector<8x16x128xf32>
    %348 = arith.addf %344, %347 : vector<8x16x128xf32>
    %349 = vector.extract_strided_slice %332 {offsets = [4, 0, 0], sizes = [8, 16, 128], strides = [1, 1, 1]} : vector<14x16x128xf32> to vector<8x16x128xf32>
    %350 = vector.broadcast %104 : vector<1x1x128xf32> to vector<8x16x128xf32>
    %351 = arith.mulf %349, %350 : vector<8x16x128xf32>
    %352 = arith.addf %348, %351 : vector<8x16x128xf32>
    %353 = vector.extract_strided_slice %332 {offsets = [5, 0, 0], sizes = [8, 16, 128], strides = [1, 1, 1]} : vector<14x16x128xf32> to vector<8x16x128xf32>
    %354 = vector.broadcast %125 : vector<1x1x128xf32> to vector<8x16x128xf32>
    %355 = arith.mulf %353, %354 : vector<8x16x128xf32>
    %356 = arith.addf %352, %355 : vector<8x16x128xf32>
    %357 = vector.extract_strided_slice %332 {offsets = [6, 0, 0], sizes = [8, 16, 128], strides = [1, 1, 1]} : vector<14x16x128xf32> to vector<8x16x128xf32>
    %358 = vector.broadcast %146 : vector<1x1x128xf32> to vector<8x16x128xf32>
    %359 = arith.mulf %357, %358 : vector<8x16x128xf32>
    %360 = arith.addf %356, %359 : vector<8x16x128xf32>
    %361 = arith.index_cast %4 : i32 to index
    %c0_29 = arith.constant 0 : index
    %c0_30 = arith.constant 0 : index
    %362 = vector.load %arg8[%361, %c0_29, %c0_30] : memref<22x16x128xf32, #tpu.memory_space<vmem>>, vector<14x16x128xf32>
    %c14_i32 = arith.constant 14 : i32
    %363 = tpu.dynamic_rotate %362 by %c14_i32 dim 1 : vector<14x16x128xf32>, i32 -> vector<14x16x128xf32>
    %c2_i32_31 = arith.constant 2 : i32
    %364 = vector.broadcast %c2_i32_31 : i32 to vector<1x16x1xi32>
    %365 = arith.addi %153, %364 : vector<1x16x1xi32>
    %c0_i32_32 = arith.constant 0 : i32
    %366 = vector.broadcast %c0_i32_32 : i32 to vector<1x16x1xi32>
    %367 = arith.cmpi sge, %365, %366 : vector<1x16x1xi32>
    %c2_i32_33 = arith.constant 2 : i32
    %368 = vector.broadcast %c2_i32_33 : i32 to vector<1x16x1xi32>
    %369 = arith.addi %153, %368 : vector<1x16x1xi32>
    %c16_i32_34 = arith.constant 16 : i32
    %370 = vector.broadcast %c16_i32_34 : i32 to vector<1x16x1xi32>
    %371 = arith.cmpi slt, %369, %370 : vector<1x16x1xi32>
    %372 = arith.andi %367, %371 : vector<1x16x1xi1>
    %cst_35 = arith.constant 0.000000e+00 : f32
    %373 = vector.shape_cast %372 : vector<1x16x1xi1> to vector<1x16x1xi1>
    %374 = vector.broadcast %373 : vector<1x16x1xi1> to vector<14x16x128xi1>
    %375 = vector.broadcast %cst_35 : f32 to vector<14x16x128xf32>
    %376 = arith.select %374, %363, %375 : vector<14x16x128xi1>, vector<14x16x128xf32>
    %377 = vector.extract_strided_slice %376 {offsets = [0, 0, 0], sizes = [8, 16, 128], strides = [1, 1, 1]} : vector<14x16x128xf32> to vector<8x16x128xf32>
    %378 = vector.broadcast %23 : vector<1x1x128xf32> to vector<8x16x128xf32>
    %379 = arith.mulf %377, %378 : vector<8x16x128xf32>
    %380 = arith.addf %360, %379 : vector<8x16x128xf32>
    %381 = vector.extract_strided_slice %376 {offsets = [1, 0, 0], sizes = [8, 16, 128], strides = [1, 1, 1]} : vector<14x16x128xf32> to vector<8x16x128xf32>
    %382 = vector.broadcast %44 : vector<1x1x128xf32> to vector<8x16x128xf32>
    %383 = arith.mulf %381, %382 : vector<8x16x128xf32>
    %384 = arith.addf %380, %383 : vector<8x16x128xf32>
    %385 = vector.extract_strided_slice %376 {offsets = [2, 0, 0], sizes = [8, 16, 128], strides = [1, 1, 1]} : vector<14x16x128xf32> to vector<8x16x128xf32>
    %386 = vector.broadcast %65 : vector<1x1x128xf32> to vector<8x16x128xf32>
    %387 = arith.mulf %385, %386 : vector<8x16x128xf32>
    %388 = arith.addf %384, %387 : vector<8x16x128xf32>
    %389 = vector.extract_strided_slice %376 {offsets = [3, 0, 0], sizes = [8, 16, 128], strides = [1, 1, 1]} : vector<14x16x128xf32> to vector<8x16x128xf32>
    %390 = vector.broadcast %86 : vector<1x1x128xf32> to vector<8x16x128xf32>
    %391 = arith.mulf %389, %390 : vector<8x16x128xf32>
    %392 = arith.addf %388, %391 : vector<8x16x128xf32>
    %393 = vector.extract_strided_slice %376 {offsets = [4, 0, 0], sizes = [8, 16, 128], strides = [1, 1, 1]} : vector<14x16x128xf32> to vector<8x16x128xf32>
    %394 = vector.broadcast %107 : vector<1x1x128xf32> to vector<8x16x128xf32>
    %395 = arith.mulf %393, %394 : vector<8x16x128xf32>
    %396 = arith.addf %392, %395 : vector<8x16x128xf32>
    %397 = vector.extract_strided_slice %376 {offsets = [5, 0, 0], sizes = [8, 16, 128], strides = [1, 1, 1]} : vector<14x16x128xf32> to vector<8x16x128xf32>
    %398 = vector.broadcast %128 : vector<1x1x128xf32> to vector<8x16x128xf32>
    %399 = arith.mulf %397, %398 : vector<8x16x128xf32>
    %400 = arith.addf %396, %399 : vector<8x16x128xf32>
    %401 = vector.extract_strided_slice %376 {offsets = [6, 0, 0], sizes = [8, 16, 128], strides = [1, 1, 1]} : vector<14x16x128xf32> to vector<8x16x128xf32>
    %402 = vector.broadcast %149 : vector<1x1x128xf32> to vector<8x16x128xf32>
    %403 = arith.mulf %401, %402 : vector<8x16x128xf32>
    %404 = arith.addf %400, %403 : vector<8x16x128xf32>
    %405 = arith.index_cast %4 : i32 to index
    %c0_36 = arith.constant 0 : index
    %c0_37 = arith.constant 0 : index
    %406 = vector.load %arg8[%405, %c0_36, %c0_37] : memref<22x16x128xf32, #tpu.memory_space<vmem>>, vector<14x16x128xf32>
    %c13_i32 = arith.constant 13 : i32
    %407 = tpu.dynamic_rotate %406 by %c13_i32 dim 1 : vector<14x16x128xf32>, i32 -> vector<14x16x128xf32>
    %c3_i32_38 = arith.constant 3 : i32
    %408 = vector.broadcast %c3_i32_38 : i32 to vector<1x16x1xi32>
    %409 = arith.addi %153, %408 : vector<1x16x1xi32>
    %c0_i32_39 = arith.constant 0 : i32
    %410 = vector.broadcast %c0_i32_39 : i32 to vector<1x16x1xi32>
    %411 = arith.cmpi sge, %409, %410 : vector<1x16x1xi32>
    %c3_i32_40 = arith.constant 3 : i32
    %412 = vector.broadcast %c3_i32_40 : i32 to vector<1x16x1xi32>
    %413 = arith.addi %153, %412 : vector<1x16x1xi32>
    %c16_i32_41 = arith.constant 16 : i32
    %414 = vector.broadcast %c16_i32_41 : i32 to vector<1x16x1xi32>
    %415 = arith.cmpi slt, %413, %414 : vector<1x16x1xi32>
    %416 = arith.andi %411, %415 : vector<1x16x1xi1>
    %cst_42 = arith.constant 0.000000e+00 : f32
    %417 = vector.shape_cast %416 : vector<1x16x1xi1> to vector<1x16x1xi1>
    %418 = vector.broadcast %417 : vector<1x16x1xi1> to vector<14x16x128xi1>
    %419 = vector.broadcast %cst_42 : f32 to vector<14x16x128xf32>
    %420 = arith.select %418, %407, %419 : vector<14x16x128xi1>, vector<14x16x128xf32>
    %421 = vector.extract_strided_slice %420 {offsets = [0, 0, 0], sizes = [8, 16, 128], strides = [1, 1, 1]} : vector<14x16x128xf32> to vector<8x16x128xf32>
    %422 = vector.broadcast %26 : vector<1x1x128xf32> to vector<8x16x128xf32>
    %423 = arith.mulf %421, %422 : vector<8x16x128xf32>
    %424 = arith.addf %404, %423 : vector<8x16x128xf32>
    %425 = vector.extract_strided_slice %420 {offsets = [1, 0, 0], sizes = [8, 16, 128], strides = [1, 1, 1]} : vector<14x16x128xf32> to vector<8x16x128xf32>
    %426 = vector.broadcast %47 : vector<1x1x128xf32> to vector<8x16x128xf32>
    %427 = arith.mulf %425, %426 : vector<8x16x128xf32>
    %428 = arith.addf %424, %427 : vector<8x16x128xf32>
    %429 = vector.extract_strided_slice %420 {offsets = [2, 0, 0], sizes = [8, 16, 128], strides = [1, 1, 1]} : vector<14x16x128xf32> to vector<8x16x128xf32>
    %430 = vector.broadcast %68 : vector<1x1x128xf32> to vector<8x16x128xf32>
    %431 = arith.mulf %429, %430 : vector<8x16x128xf32>
    %432 = arith.addf %428, %431 : vector<8x16x128xf32>
    %433 = vector.extract_strided_slice %420 {offsets = [3, 0, 0], sizes = [8, 16, 128], strides = [1, 1, 1]} : vector<14x16x128xf32> to vector<8x16x128xf32>
    %434 = vector.broadcast %89 : vector<1x1x128xf32> to vector<8x16x128xf32>
    %435 = arith.mulf %433, %434 : vector<8x16x128xf32>
    %436 = arith.addf %432, %435 : vector<8x16x128xf32>
    %437 = vector.extract_strided_slice %420 {offsets = [4, 0, 0], sizes = [8, 16, 128], strides = [1, 1, 1]} : vector<14x16x128xf32> to vector<8x16x128xf32>
    %438 = vector.broadcast %110 : vector<1x1x128xf32> to vector<8x16x128xf32>
    %439 = arith.mulf %437, %438 : vector<8x16x128xf32>
    %440 = arith.addf %436, %439 : vector<8x16x128xf32>
    %441 = vector.extract_strided_slice %420 {offsets = [5, 0, 0], sizes = [8, 16, 128], strides = [1, 1, 1]} : vector<14x16x128xf32> to vector<8x16x128xf32>
    %442 = vector.broadcast %131 : vector<1x1x128xf32> to vector<8x16x128xf32>
    %443 = arith.mulf %441, %442 : vector<8x16x128xf32>
    %444 = arith.addf %440, %443 : vector<8x16x128xf32>
    %445 = vector.extract_strided_slice %420 {offsets = [6, 0, 0], sizes = [8, 16, 128], strides = [1, 1, 1]} : vector<14x16x128xf32> to vector<8x16x128xf32>
    %446 = vector.broadcast %152 : vector<1x1x128xf32> to vector<8x16x128xf32>
    %447 = arith.mulf %445, %446 : vector<8x16x128xf32>
    %448 = arith.addf %444, %447 : vector<8x16x128xf32>
    %449 = vector.shape_cast %448 : vector<8x16x128xf32> to vector<128x128xf32>
    %c0_43 = arith.constant 0 : index
    %c0_44 = arith.constant 0 : index
    %450 = vector.load %arg5[%c0_43, %c0_44] : memref<128x128xf32, #tpu.memory_space<vmem>>, vector<128x128xf32>
    %cst_45 = arith.constant dense<0.000000e+00> : vector<128x128xf32>
    %451 = tpu.matmul %449, %450, %cst_45 {dimension_numbers = #tpu.dot_dimension_numbers<[1], [0], [0], [1], [0, 0, 1, 1], [], []>} : vector<128x128xf32>, vector<128x128xf32>, vector<128x128xf32> -> vector<128x128xf32>
    %452 = vector.shape_cast %451 : vector<128x128xf32> to vector<1x8x16x128xf32>
    %c0_46 = arith.constant 0 : index
    %c0_47 = arith.constant 0 : index
    %c0_48 = arith.constant 0 : index
    %c0_49 = arith.constant 0 : index
    %453 = vector.load %arg7[%c0_46, %c0_47, %c0_48, %c0_49] : memref<1x8x16x128xf32, #tpu.memory_space<vmem>>, vector<1x8x16x128xf32>
    tpu.vector_store %arg7[%c0_46, %c0_47, %c0_48, %c0_49], %452 {strides = array<i32>} : memref<1x8x16x128xf32, #tpu.memory_space<vmem>>, vector<1x8x16x128xf32>,
    return
  }
  func.func @transform_0(%arg0: i32, %arg1: i32) -> (i32, i32, i32, i32) {
    %c0_i32 = arith.constant 0 : i32
    %c0_i32_0 = arith.constant 0 : i32
    %c0_i32_1 = arith.constant 0 : i32
    %c0_i32_2 = arith.constant 0 : i32
    return %arg0, %c0_i32, %c0_i32_0, %c0_i32_1 : i32, i32, i32, i32
  }
  func.func @transform_1(%arg0: i32, %arg1: i32) -> (i32, i32) {
    %c0_i32 = arith.constant 0 : i32
    %c0_i32_0 = arith.constant 0 : i32
    %c0_i32_1 = arith.constant 0 : i32
    return %c0_i32, %c0_i32_0 : i32, i32
  }
  func.func @transform_2(%arg0: i32, %arg1: i32) -> (i32, i32, i32) {
    %c0_i32 = arith.constant 0 : i32
    %c0_i32_0 = arith.constant 0 : i32
    %c0_i32_1 = arith.constant 0 : i32
    %c0_i32_2 = arith.constant 0 : i32
    return %c0_i32, %c0_i32_0, %c0_i32_1 : i32, i32, i32
  }
  func.func @transform_3(%arg0: i32, %arg1: i32) -> (i32, i32) {
    %c0_i32 = arith.constant 0 : i32
    %c0_i32_0 = arith.constant 0 : i32
    %c0_i32_1 = arith.constant 0 : i32
    return %c0_i32, %c0_i32_0 : i32, i32
  }
  func.func @transform_4(%arg0: i32, %arg1: i32) -> i32 {
    %c0_i32 = arith.constant 0 : i32
    %c0_i32_0 = arith.constant 0 : i32
    return %c0_i32 : i32
  }
  func.func @transform_5(%arg0: i32, %arg1: i32) -> (i32, i32, i32, i32) {
    %c0_i32 = arith.constant 0 : i32
    %c0_i32_0 = arith.constant 0 : i32
    %c0_i32_1 = arith.constant 0 : i32
    return %arg0, %arg1, %c0_i32, %c0_i32_0 : i32, i32, i32, i32
  }
}

</mosaic_0001>

<bundles_post_ra>
// kernel: sep_conv.1
= control target key start
LH: loop header
LB: loop body
LE: loop exit
PB: predicated region body
PF: predicated region fallthrough
CT: control target
= control target key end

     0   :  { %s8755_s0 = inlined_call_operand.hbm [shape: f32[2,16,16,128], index: 0, kind: input, shape index: {}]   ;;  %s8756_s1 = inlined_call_operand.hbm [shape: f32[128,128], index: 1, kind: input, shape index: {}]   ;;  %s8757_s2 = inlined_call_operand.hbm [shape: f32[7,7,128], index: 2, kind: input, shape index: {}]   ;;  %s8758_s3 = inlined_call_operand.hbm [shape: f32[128,128], index: 3, kind: input, shape index: {}]   ;;  %s8759_s4 = inlined_call_operand.hbm [shape: f32[2], index: 4, kind: input, shape index: {}]   ;;  %s8760_s5 = inlined_call_operand.hbm [shape: f32[2,16,16,128], index: 5, kind: output, shape index: {}]  }
   0x1   :  { %9402 = sst [smem:[#allocation241_spill]] %s8756_s1 }
   0x2   :  { %9403 = sst [smem:[#allocation242_spill]] %s8757_s2 }
   0x3   :  { %9404 = sst [smem:[#allocation243_spill]] %s8758_s3 }
   0x4   :  { %9405 = sst [smem:[#allocation244_spill]] %s8760_s5 }
   0x5   :  { %10 = vsyncpa [#allocation4], 0 }
   0x6   :  { %12 = vsyncpa [#allocation4 + $0x1], 0 }
   0x7   :  { %13 = vsyncpa [#allocation8], 0 }
   0x8   :  { %14 = vsyncpa [#allocation11], 0 }
   0x9   :  { %15 = vsyncpa [#allocation6], 0 }
   0xa   :  { %16 = vsyncpa [#allocation5], 0 }
   0xb   :  { %18 = vsyncpa [#allocation5 + $0x1], 0  ;;  %s4327_s18 = smov 0   ;;  %s4329_s19 = smov 0  }
   0xc   :  { %s4331_s20 = smov 0   ;;  %s4333_s21 = smov 0  }
   0xd   :  { %s4335_s22 = smov 0   ;;  %s4337_s23 = smov 0  }
   0xe   :  { %s4339_s24 = smov 0   ;;  %s4341_s25 = smov 0  }
   0xf   :  { %s4343_s26 = smov 0   ;;  %s4345_s27 = smov 0  }
  0x10   :  { %s4347_s28 = smov 0  }
  0x11 LB: > { %9406 = sst [smem:[#allocation19_spill]] %s4244_s18  ;;  %s3480_s29 = sadd.s32 4294967295, %s4284_s28   ;;  %s4284_s28 = sphi %s4347_s28, %s24_s28   ;;  %s4280_s27 = sphi %s4345_s27, %s10743_s27   ;;  %s4276_s26 = sphi %s4343_s26, %s10742_s26   ;;  %s4272_s25 = sphi %s4341_s25, %s10741_s25   ;;  %s4268_s24 = sphi %s4339_s24, %s10740_s24   ;;  %s4264_s23 = sphi %s4337_s23, %s10739_s23   ;;  %s4260_s22 = sphi %s4335_s22, %s10738_s22   ;;  %s4256_s21 = sphi %s4333_s21, %s10737_s21   ;;  %s4252_s20 = sphi %s4331_s20, %s10736_s20   ;;  %s4248_s19 = sphi %s4329_s19, %s10735_s19   ;;  %s4244_s18 = sphi %s4327_s18, %s10734_s18  }
  0x12   : > { %9407 = sst [smem:[#allocation20_spill]] %s4272_s25  ;;  %s3481_s30 = sadd.s32 4294967294, %s4284_s28  }
  0x13   : > { %p56_p0 = scmp.ne.s32.totalorder %s4260_s22, %s4256_s21  ;;  %p4383_p1 = scmp.eq.s32.totalorder %s3480_s29, 0 }
  0x14   : > { %p165_p2 = scmp.ne.s32.totalorder %s4252_s20, %s4248_s19  ;;  %p166_p3 = scmp.eq.s32.totalorder %s3480_s29, 3 }
  0x15   : > { %s9408_s6 = scalar_select %p4383_p1, 1, 0 }
  0x16   : > { %p4391_p4 = por %p4383_p1, %p56_p0  ;;  %p171_p5 = scmp.ne.s32.totalorder %s4248_s19, %s4244_s18 }
  0x17   : > { %p4397_p6 = por %p166_p3, %p165_p2  ;;  %p172_p7 = scmp.eq.s32.totalorder %s3481_s30, 3 }
  0x18   : > { %s9409_s7 = scalar_select %p4391_p4, 1, 0 }
  0x19   : > { %s9410_s8 = scalar_select %p4397_p6, 1, 0 }
  0x1a   : > { %p3482_p8 = scmp.ge.s32.totalorder %s4284_s28, 1  ;;  %p179_p9 = scmp.lt.s32.totalorder %s4284_s28, 5 }
  0x1b   : > { %9411 = sst [smem:[#allocation21_spill]] %s9410_s8  ;;  %p4403_p10 = por %p172_p7, %p171_p5 }
  0x1c   : > { %p4407_p11 = pnand %p3482_p8, %p179_p9  ;;  %s4286_s11 = smov [#allocation7]  }
  0x1d   : > { %s9412_s9 = scalar_select %p4403_p10, 1, 0 }
  0x1e   : > { %s9414_s10 = scalar_select %p4407_p11, 1, 0 }
  0x1f   : > { %9413 = sst [smem:[#allocation22_spill]] %s9412_s9  ;;  %s191_s12 = sshll.u32 %s4286_s11, 4  ;;  %s192_s12 = int_to_ptr.vmem [resolvable:$true] %s191_s12 }
  0x20   : > { %p3844_p12 = pneg %p4407_p11  ;;  %s4287_s14 = smov [#allocation9]  }
  0x21   : > { %s204_s15 = sshll.u32 %s4287_s14, 4  ;;  %s9416_s1 = sld [smem:[#allocation241_spill]]  ;;  %s4419_s15 = int_to_ptr.vmem [resolvable:$true] %s204_s15 }
  0x22   : > { %p4415_p13 = pnand %p3844_p12, %p4383_p1 }
  0x24   : > { %p4429_p2 = pneg %p4415_p13 }
  0x27   : > { %s4023_s21 = scalar_lea.hbm %s9416_s1, 2048 }
  0x28   : > { %p4024_p0 = scmp.ne.s32.totalorder %s9416_s1, %s4023_s21  ;;  %p4030_p7 = scmp.lt.u32.totalorder %s4023_s21, %s9416_s1 }
  0x2a   : > { %p4026_p3 = pnand %p4429_p2, %p4024_p0 }
  0x2c   : > { %p4027_p5 = pneg %p4026_p3 }
  0x2e   : > { %p4032_p8 = pnand %p4030_p7, %p4027_p5 }
  0x30   : > { %4035 = shalt.err (!%p4032_p8)
}
  0x31   : > { %s4036_s16 = scalar_lea.vmem %s192_s12, 2048  ;;  %p4044_p6 = scmp.lt.s32.totalorder %s192_s12, %s192_s12 }
  0x32   : > { %p4037_p9 = scmp.ne.s32.totalorder %s192_s12, %s4036_s16  ;;  %p4045_p1 = scmp.lt.s32.totalorder %s4036_s16, %s4036_s16 }
  0x34   : > { %p4039_p12 = pnand %p4037_p9, %p4429_p2  ;;  %p4046_p4 = por %p4045_p1, %p4044_p6 }
  0x36   : > { %p4040_p10 = pneg %p4039_p12 }
  0x38   : > { %p4047_p11 = pnand %p4046_p4, %p4040_p10 }
  0x3a   : > { %4050 = shalt.err (!%p4047_p11)
}
  0x3b   : > { %s8771_s17 = smov 128   ;;  %s8772_s29 = smov 8  }
  0x3c   : > { %3847 = dma.hbm_to_vmem [thread:$0]  (!%p4415_p13), %s9416_s1, 2048, %s192_s12, [#allocation8], %s8771_s17, %s8771_s17, %s8772_s29  }
  0x3d   : > { %s9418_s2 = sld [smem:[#allocation242_spill]] }
  0x43   : > { %s4051_s18 = scalar_lea.hbm %s9418_s2, 896 }
  0x44   : > { %p4052_p1 = scmp.ne.s32.totalorder %s9418_s2, %s4051_s18  ;;  %p4058_p10 = scmp.lt.u32.totalorder %s4051_s18, %s9418_s2 }
  0x46   : > { %p4054_p4 = pnand %p4052_p1, %p4429_p2 }
  0x48   : > { %p4055_p6 = pneg %p4054_p4 }
  0x4a   : > { %p4060_p11 = pnand %p4058_p10, %p4055_p6 }
  0x4c   : > { %4063 = shalt.err (!%p4060_p11)
}
  0x4d   : > { %s4064_s12 = scalar_lea.vmem %s4419_s15, 896  ;;  %p4072_p7 = scmp.lt.s32.totalorder %s4419_s15, %s4419_s15 }
  0x4e   : > { %p4065_p0 = scmp.ne.s32.totalorder %s4419_s15, %s4064_s12  ;;  %p4073_p8 = scmp.lt.s32.totalorder %s4064_s12, %s4064_s12 }
  0x50   : > { %p4067_p3 = pnand %p4065_p0, %p4429_p2  ;;  %p4074_p9 = por %p4073_p8, %p4072_p7 }
  0x52   : > { %p4068_p5 = pneg %p4067_p3 }
  0x54   : > { %p4075_p12 = pnand %p4074_p9, %p4068_p5 }
  0x56   : > { %4078 = shalt.err (!%p4075_p12)
}
  0x57   : > { %3850 = dma.hbm_to_vmem [thread:$0]  (!%p4415_p13), %s9418_s2, 896, %s4419_s15, [#allocation8], %s8771_s17, %s8771_s17, %s8772_s29  }
  0x58   : > { %s4290_s25 = smov [#allocation10]   ;;  %s9419_s3 = sld [smem:[#allocation243_spill]] }
  0x59   : > { %s217_s8 = sshll.u32 %s4290_s25, 4  ;;  %s218_s8 = int_to_ptr.vmem [resolvable:$true] %s217_s8 }
  0x5e   : > { %s4079_s30 = scalar_lea.hbm %s9419_s3, 2048 }
  0x5f   : > { %p4080_p1 = scmp.ne.s32.totalorder %s9419_s3, %s4079_s30  ;;  %p4086_p10 = scmp.lt.u32.totalorder %s4079_s30, %s9419_s3 }
  0x61   : > { %p4082_p4 = pnand %p4080_p1, %p4429_p2 }
  0x63   : > { %p4083_p6 = pneg %p4082_p4 }
  0x65   : > { %p4088_p11 = pnand %p4086_p10, %p4083_p6 }
  0x67   : > { %4091 = shalt.err (!%p4088_p11)
}
  0x68   : > { %s4092_s15 = scalar_lea.vmem %s218_s8, 2048  ;;  %p4100_p7 = scmp.lt.s32.totalorder %s218_s8, %s218_s8 }
  0x69   : > { %p4093_p0 = scmp.ne.s32.totalorder %s218_s8, %s4092_s15  ;;  %p4101_p8 = scmp.lt.s32.totalorder %s4092_s15, %s4092_s15 }
  0x6b   : > { %p4095_p3 = pnand %p4093_p0, %p4429_p2  ;;  %p4102_p9 = por %p4101_p8, %p4100_p7 }
  0x6d   : > { %p4096_p5 = pneg %p4095_p3 }
  0x6f   : > { %p4103_p12 = pnand %p4102_p9, %p4096_p5 }
  0x71   : > { %4106 = shalt.err (!%p4103_p12)
}
  0x72   : > { %3853 = dma.hbm_to_vmem [thread:$0]  (!%p4415_p13), %s9419_s3, 2048, %s218_s8, [#allocation11], %s8771_s17, %s8771_s17, %s8772_s29  }
  0x73   : > { %s4107_s9 = scalar_lea.hbm %s8759_s4, 16 }
  0x74   : > { %p4108_p1 = scmp.ne.s32.totalorder %s8759_s4, %s4107_s9  ;;  %p4114_p10 = scmp.lt.u32.totalorder %s4107_s9, %s8759_s4 }
  0x76   : > { %p4110_p4 = pnand %p4108_p1, %p4429_p2 }
  0x78   : > { %p4111_p6 = pneg %p4110_p4 }
  0x7a   : > { %p4116_p11 = pnand %p4114_p10, %p4111_p6 }
  0x7c   : > { %4119 = shalt.err (!%p4116_p11)
}
  0x7d   : > { %s4291_s12 = smov [#allocation12]   ;;  %s33_s11 = sadd.s32 1, %s4276_s26 }
  0x7e   : > { %3856 = dma.hbm_to_smem (!%p4415_p13), %s8759_s4, 16, %s4291_s12, [#allocation6]  }
  0x7f   : > { %p34_p2 = scmp.ge.s32.totalorder %s33_s11, 2  ;;  %s36_s13 = sadd.s32 1, %s4280_s27 }
  0x80   : > { %s43_s1 = sadd.s32 1, %s4264_s23  ;;  %p50_p0 = scmp.ne.s32.totalorder %s4264_s23, %s4260_s22 }
  0x81   : > { %s10745_s11 = smov (%p34_p2, %s33_s11), 0  ;;  %s10747_s13 = smov (!%p34_p2, %s36_s13), %s4280_s27 }
  0x82   : > { %p51_p3 = scmp.eq.s32.totalorder %s4284_s28, 0  ;;  %s151_s5 = ssub.s32 %s4276_s26, %s10745_s11 }
  0x83   : > { %p38_p5 = scmp.ge.s32.totalorder %s10747_s13, 2  ;;  %s155_s18 = sadd.s32 1, %s4252_s20 }
  0x84   : > { %p4523_p7 = por %p51_p3, %p50_p0  ;;  %p3869_p13 = scmp.lt.s32.totalorder %s4284_s28, 4 }
  0x85   : > { %s10749_s13 = smov (%p38_p5, %s10747_s13), 0  ;;  %s240_s9 = sand.u32 1, %s4264_s23  }
  0x86   : > { %s3509_s21 = sshll.u32 %s4280_s27, 12  ;;  %s40_s30 = ssub.s32 %s4280_s27, %s10749_s13 }
  0x87   : > { %p41_p8 = scmp.eq.s32.totalorder %s40_s30, 0  ;;  %s152_s14 = sor.u32 %s151_s5, %s40_s30 }
  0x88   : > { %p153_p9 = scmp.eq.s32.totalorder %s152_s14, 0  ;;  %s3488_s16 = sshll.u32 %s240_s9, 8 }
  0x89   : > { %s4535_s12 = scalar_select %p41_p8, %s4264_s23, %s43_s1  }
  0x8a   : > { %s4538_s8 = scalar_select %p153_p9, %s4252_s20, %s155_s18  }
  0x8b   : > { %s4543_s29 = scalar_lea.hbm %s8755_s0, %s3509_s21  ;;  %s244_s2 = scalar_lea.vmem [#allocation3], %s3488_s16 }
  0x8c   : > { %s251_s3 = sshll.u32 %s244_s2, 4  ;;  %p4549_p12 = pnand %p3869_p13, %p4523_p7  ;;  %s4553_s3 = int_to_ptr.vmem [resolvable:$true] %s251_s3 }
  0x8d   : > { %s4555_s1 = scalar_lea.sflag [#allocation4], %s240_s9  ;;  %s4120_s17 = scalar_lea.hbm %s4543_s29, 4096 }
  0x8e   : > { %p4121_p1 = scmp.ne.s32.totalorder %s4543_s29, %s4120_s17  ;;  %p4122_p4 = pneg %p4549_p12 }
  0x8f   : > { %s4125_s25 = scalar_lea.hbm %s8755_s0, 8192  ;;  %p4126_p11 = scmp.lt.u32.totalorder %s4543_s29, %s8755_s0 }
  0x90   : > { %p4123_p6 = pnand %p4122_p4, %p4121_p1  ;;  %p4127_p2 = scmp.lt.u32.totalorder %s4125_s25, %s4120_s17 }
  0x91   : > { %p4129_p3 = scmp.lt.u32.totalorder %s4120_s17, %s4543_s29 }
  0x92   : > { %p4124_p10 = pneg %p4123_p6  ;;  %p4128_p0 = por %p4127_p2, %p4126_p11 }
  0x94   : > { %p4130_p5 = por %p4129_p3, %p4128_p0 }
  0x96   : > { %p4131_p7 = pnand %p4130_p5, %p4124_p10 }
  0x98   : > { %4134 = shalt.err (!%p4131_p7)
}
  0x99   : > { %s4135_s9 = scalar_lea.vmem %s4553_s3, 4096  ;;  %s4292_s14 = smov [#allocation3]  }
  0x9a   : > { %p4136_p13 = scmp.ne.s32.totalorder %s4553_s3, %s4135_s9  ;;  %s4140_s16 = sshll.u32 %s4292_s14, 4  ;;  %s4141_s16 = int_to_ptr.vmem [resolvable:$false] %s4140_s16 }
  0x9b   : > { %s4142_s15 = scalar_lea.vmem %s4141_s16, 8192  ;;  %p4143_p1 = scmp.lt.s32.totalorder %s4553_s3, %s4141_s16 }
  0x9c   : > { %p4138_p8 = pnand %p4136_p13, %p4122_p4  ;;  %p4144_p6 = scmp.lt.s32.totalorder %s4142_s15, %s4135_s9 }
  0x9e   : > { %p4139_p9 = pneg %p4138_p8  ;;  %p4145_p11 = por %p4144_p6, %p4143_p1 }
  0xa0   : > { %p4146_p2 = pnand %p4145_p11, %p4139_p9 }
  0xa2   : > { %4149 = shalt.err (!%p4146_p2)
}
  0xa3   : > { %s9422_s17 = smov 8   ;;  %s9423_s2 = smov 128  }
  0xa4   : > { %3860 = dma.hbm_to_vmem [thread:$0]  (!%p4549_p12), %s4543_s29, 4096, %s4553_s3, %s4555_s1, %s9423_s2, %s9423_s2, %s9422_s17  }
  0xa5   : > { %p9424_p4 = scmp.ne.s32.totalorder %s9414_s10, 0 }
  0xa7   : > { %263 = sbr.rel (%p9424_p4) target bundleno = 1294 (0x50e), region = 40 }
  0xae   : > { %s265_s18 = sand.u32 1, %s4260_s22   ;;  %p9425_p10 = scmp.ne.s32.totalorder %s9409_s7, 0 }
  0xaf   : > { %s3492_s25 = sshll.u32 %s265_s18, 8  ;;  %s266_s21 = scalar_lea.sflag [#allocation4], %s265_s18 }
  0xb0   : > { %s4589_s30 = scalar_lea.vmem [#allocation3], %s3492_s25 }
  0xb1   : > { %4223 = dma.done.wait (%p9425_p10), %s266_s21, 4096  }
  0xb2   : > { %4225 = vsyncadd (%p9425_p10), %s266_s21, 4294963200  ;;  %p9426_p0 = scmp.ne.s32.totalorder %s9408_s6, 0 }
  0xb4   : > { %4227 = dma.done.wait (%p9426_p0), [#allocation8], 2944  }
  0xb5   : > { %4229 = vsyncadd (%p9426_p0), [#allocation8], 4294964352 }
  0xb6   : > { %4231 = dma.done.wait (%p9426_p0), [#allocation11], 2048  }
  0xb7   : > { %4233 = vsyncadd (%p9426_p0), [#allocation11], 4294965248 }
  0xb8   : > { %4235 = dma.done.wait (%p9426_p0), [#allocation6], 16  }
  0xb9   : > { %4237 = vsyncadd (%p9426_p0), [#allocation6], 4294967280 }
  0xba   : > { %290 = sfence }
  0xbb   : > { %s310_s3 = sand.u32 1, %s4248_s19   ;;  %p3498_p12 = scmp.ne.s32.totalorder %s4268_s24, 0 }
  0xbc   : > { %s3497_s7 = sshll.u32 %s310_s3, 7  ;;  %v363_v0 = vld [vmem:[#allocation7] sm:$0xff] (!%p3498_p12)  ;;  %v364_v1 = vld [vmem:[#allocation7 + $0x8] sm:$0xff] (!%p3498_p12)  ;;  %v365_v2 = vld [vmem:[#allocation7 + $0x10] sm:$0xff] (!%p3498_p12)  ;;  %v4293_v3 = vmov (!%p3498_p12), 0.0   ;;  %s636_s6 = sld [smem:[#allocation12]] (!%p3498_p12) }
  0xbd   : > { %s4610_s10 = scalar_lea.vmem [#allocation13], %s3497_s7  ;;  %317 = sbr.rel (%p3498_p12) target bundleno = 473 (0x1d9), region = 64  ;;  %318 = vst [vmem:[#allocation2] sm:$0xff] (!%p3498_p12), %v4293_v3  ;;  %319 = vst [vmem:[#allocation2 + $0x8] sm:$0xff] (!%p3498_p12), %v4293_v3  ;;  %v3728_v4 = vpack.c.bf16 (!%p3498_p12), %v364_v1, %v363_v0  ;;  %v366_v5 = vld [vmem:[#allocation7 + $0x18] sm:$0xff] (!%p3498_p12)  ;;  %v367_v7 = vld [vmem:[#allocation7 + $0x20] sm:$0xff] (!%p3498_p12) }
  0xbe   : > { %320 = vst [vmem:[#allocation2 + $0x10] sm:$0xff] (!%p3498_p12), %v4293_v3  ;;  %321 = vst [vmem:[#allocation2 + $0x18] sm:$0xff] (!%p3498_p12), %v4293_v3  ;;  %v3732_v6 = vpack.c.bf16 (!%p3498_p12), %v366_v5, %v365_v2  ;;  %v368_v8 = vld [vmem:[#allocation7 + $0x28] sm:$0xff] (!%p3498_p12)  ;;  %v331_v10 = vld [vmem:[%s4589_s30] sm:$0xff] (!%p3498_p12)  ;;  %s3499_s29 = sld [smem:[#allocation12 + $0x1]] (!%p3498_p12) }
  0xbf   : > { %322 = vst [vmem:[#allocation2 + $0x20] sm:$0xff] (!%p3498_p12), %v4293_v3  ;;  %323 = vst [vmem:[#allocation2 + $0x28] sm:$0xff] (!%p3498_p12), %v4293_v3  ;;  %3729 = vmatprep.subr.bf16.mxu0 (!%p3498_p12), %v3728_v4  ;;  %3792 = vmatprep.subr.bf16.mxu1 (!%p3498_p12), %v3728_v4  ;;  %v3736_v9 = vpack.c.bf16 (!%p3498_p12), %v368_v8, %v367_v7  ;;  %v347_v11 = vld [vmem:[%s4589_s30 + $0x80] sm:$0xff] (!%p3498_p12)  ;;  %v369_v12 = vld [vmem:[#allocation7 + $0x30] sm:$0xff] (!%p3498_p12) }
  0xc0   : > { %325 = vst [vmem:[#allocation2 + $0x130] sm:$0xff] (!%p3498_p12), %v4293_v3  ;;  %326 = vst [vmem:[#allocation2 + $0x138] sm:$0xff] (!%p3498_p12), %v4293_v3  ;;  %3731 = vmatpush3.bf16.msra.mxu0 (!%p3498_p12), %v3728_v4  ;;  %3800 = vmatpush3.bf16.msra.mxu1 (!%p3498_p12), %v3728_v4  ;;  %v370_v13 = vld [vmem:[#allocation7 + $0x38] sm:$0xff] (!%p3498_p12)  ;;  %v371_v15 = vld [vmem:[#allocation7 + $0x40] sm:$0xff] (!%p3498_p12) }
  0xc1   : > { %327 = vst [vmem:[#allocation2 + $0x140] sm:$0xff] (!%p3498_p12), %v4293_v3  ;;  %328 = vst [vmem:[#allocation2 + $0x148] sm:$0xff] (!%p3498_p12), %v4293_v3  ;;  %3733 = vmatprep.subr.bf16.mxu0 (!%p3498_p12), %v3732_v6  ;;  %3793 = vmatprep.subr.bf16.mxu1 (!%p3498_p12), %v3732_v6  ;;  %v3740_v14 = vpack.c.bf16 (!%p3498_p12), %v370_v13, %v369_v12  ;;  %v372_v16 = vld [vmem:[#allocation7 + $0x48] sm:$0xff] (!%p3498_p12)  ;;  %v373_v18 = vld [vmem:[#allocation7 + $0x50] sm:$0xff] (!%p3498_p12) }
  0xc2   : > { %329 = vst [vmem:[#allocation2 + $0x150] sm:$0xff] (!%p3498_p12), %v4293_v3  ;;  %330 = vst [vmem:[#allocation2 + $0x158] sm:$0xff] (!%p3498_p12), %v4293_v3  ;;  %3624 = vmatprep.mubr.f32.mxu0 (!%p3498_p12), %v331_v10  ;;  %3648 = vmatprep.mubr.f32.mxu1 (!%p3498_p12), %v347_v11  ;;  %v3744_v17 = vpack.c.bf16 (!%p3498_p12), %v372_v16, %v371_v15  ;;  %v374_v19 = vld [vmem:[#allocation7 + $0x58] sm:$0xff] (!%p3498_p12)  ;;  %v375_v21 = vld [vmem:[#allocation7 + $0x60] sm:$0xff] (!%p3498_p12)  ;;  %v4645_v63 = vstv (!%p3498_p12), %s636_s6 }
  0xc3   : > { %v3748_v20 = vpack.c.bf16 (!%p3498_p12), %v374_v19, %v373_v18  ;;  %v376_v22 = vld [vmem:[#allocation7 + $0x68] sm:$0xff] (!%p3498_p12)  ;;  %v377_v24 = vld [vmem:[#allocation7 + $0x70] sm:$0xff] (!%p3498_p12)  ;;  %v378_v25 = vld [vmem:[#allocation7 + $0x78] sm:$0xff] (!%p3498_p12) }
  0xc4   : > { %3735 = vmatpush3.bf16.msra.mxu0 %v3732_v6  ;;  %3801 = vmatpush3.bf16.msra.mxu1 %v3732_v6  ;;  %v3752_v23 = vpack.c.bf16 %v376_v22, %v375_v21  ;;  %v3756_v26 = vpack.c.bf16 %v378_v25, %v377_v24  ;;  %v332_v27 = vld [vmem:[%s4589_s30 + $0x8] sm:$0xff]  ;;  %v333_v29 = vld [vmem:[%s4589_s30 + $0x10] sm:$0xff]  ;;  %v334_v31 = vld [vmem:[%s4589_s30 + $0x18] sm:$0xff]  ;;  %v4647_v4 = vstv %s3499_s29 }
  0xc5   : > { %3737 = vmatprep.subr.bf16.mxu0 %v3736_v9  ;;  %3794 = vmatprep.subr.bf16.mxu1 %v3736_v9  ;;  %v348_v28 = vld [vmem:[%s4589_s30 + $0x88] sm:$0xff]  ;;  %v349_v30 = vld [vmem:[%s4589_s30 + $0x90] sm:$0xff]  ;;  %v350_v32 = vld [vmem:[%s4589_s30 + $0x98] sm:$0xff] }
  0xc6   : > { %v335_v33 = vld [vmem:[%s4589_s30 + $0x20] sm:$0xff]  ;;  %v336_v35 = vld [vmem:[%s4589_s30 + $0x28] sm:$0xff]  ;;  %v337_v37 = vld [vmem:[%s4589_s30 + $0x30] sm:$0xff] }
  0xc7   : > { %v351_v34 = vld [vmem:[%s4589_s30 + $0xa0] sm:$0xff]  ;;  %v352_v36 = vld [vmem:[%s4589_s30 + $0xa8] sm:$0xff]  ;;  %v353_v38 = vld [vmem:[%s4589_s30 + $0xb0] sm:$0xff] }
  0xc8   : > { %3739 = vmatpush3.bf16.msra.mxu0 %v3736_v9  ;;  %3802 = vmatpush3.bf16.msra.mxu1 %v3736_v9  ;;  %v338_v39 = vld [vmem:[%s4589_s30 + $0x38] sm:$0xff]  ;;  %v339_v41 = vld [vmem:[%s4589_s30 + $0x40] sm:$0xff]  ;;  %v340_v43 = vld [vmem:[%s4589_s30 + $0x48] sm:$0xff] }
  0xc9   : > { %3741 = vmatprep.subr.bf16.mxu0 %v3740_v14  ;;  %3795 = vmatprep.subr.bf16.mxu1 %v3740_v14  ;;  %v354_v40 = vld [vmem:[%s4589_s30 + $0xb8] sm:$0xff]  ;;  %v355_v42 = vld [vmem:[%s4589_s30 + $0xc0] sm:$0xff]  ;;  %v356_v44 = vld [vmem:[%s4589_s30 + $0xc8] sm:$0xff] }
  0xca   : > { %v341_v45 = vld [vmem:[%s4589_s30 + $0x50] sm:$0xff]  ;;  %v342_v47 = vld [vmem:[%s4589_s30 + $0x58] sm:$0xff]  ;;  %v343_v49 = vld [vmem:[%s4589_s30 + $0x60] sm:$0xff] }
  0xcb   : > { %v357_v46 = vld [vmem:[%s4589_s30 + $0xd0] sm:$0xff]  ;;  %v358_v48 = vld [vmem:[%s4589_s30 + $0xd8] sm:$0xff]  ;;  %v359_v50 = vld [vmem:[%s4589_s30 + $0xe0] sm:$0xff] }
  0xcc   : > { %3743 = vmatpush3.bf16.msra.mxu0 %v3740_v14  ;;  %3803 = vmatpush3.bf16.msra.mxu1 %v3740_v14  ;;  %v344_v51 = vld [vmem:[%s4589_s30 + $0x68] sm:$0xff]  ;;  %v345_v53 = vld [vmem:[%s4589_s30 + $0x70] sm:$0xff]  ;;  %v346_v55 = vld [vmem:[%s4589_s30 + $0x78] sm:$0xff] }
  0xcd   : > { %3745 = vmatprep.subr.bf16.mxu0 %v3744_v17  ;;  %3796 = vmatprep.subr.bf16.mxu1 %v3744_v17  ;;  %v360_v52 = vld [vmem:[%s4589_s30 + $0xe8] sm:$0xff]  ;;  %v361_v54 = vld [vmem:[%s4589_s30 + $0xf0] sm:$0xff]  ;;  %v362_v56 = vld [vmem:[%s4589_s30 + $0xf8] sm:$0xff] }
  0xd0   : > { %3747 = vmatpush3.bf16.msra.mxu0 %v3744_v17  ;;  %3804 = vmatpush3.bf16.msra.mxu1 %v3744_v17 }
  0xd1   : > { %3749 = vmatprep.subr.bf16.mxu0 %v3748_v20  ;;  %3797 = vmatprep.subr.bf16.mxu1 %v3748_v20 }
  0xd4   : > { %3751 = vmatpush3.bf16.msra.mxu0 %v3748_v20  ;;  %3805 = vmatpush3.bf16.msra.mxu1 %v3748_v20 }
  0xd5   : > { %3753 = vmatprep.subr.bf16.mxu0 %v3752_v23  ;;  %3798 = vmatprep.subr.bf16.mxu1 %v3752_v23 }
  0xd8   : > { %3755 = vmatpush3.bf16.msra.mxu0 %v3752_v23  ;;  %3806 = vmatpush3.bf16.msra.mxu1 %v3752_v23 }
  0xd9   : > { %3757 = vmatprep.subr.bf16.mxu0 %v3756_v26  ;;  %3799 = vmatprep.subr.bf16.mxu1 %v3756_v26 }
  0xdc   : > { %3759 = vmatpush3.bf16.msra.mxu0 %v3756_v26  ;;  %3807 = vmatpush3.bf16.msra.mxu1 %v3756_v26 }
  0xdf   : > { %3625 = vmatmul.mubr.f32.vlgmr.msra.gmra.mrb[0].mxu0 %v332_v27  ;;  %3649 = vmatmul.mubr.f32.vlgmr.msra.gmra.mrb[0].mxu1 %v348_v28 }
  0xe0   : > { %3627 = vmatprep.mubr.f32.mxu0 %v333_v29  ;;  %3651 = vmatprep.mubr.f32.mxu1 %v349_v30 }
  0xe3   : > { %3628 = vmatmul.mubr.f32.gmra.mrb[2].mxu0 %v334_v31  ;;  %3652 = vmatmul.mubr.f32.gmra.mrb[2].mxu1 %v350_v32 }
  0xe4   : > { %3630 = vmatprep.mubr.f32.mxu0 %v335_v33  ;;  %3654 = vmatprep.mubr.f32.mxu1 %v351_v34 }
  0xe7   : > { %3631 = vmatmul.mubr.f32.gmra.mrb[4].mxu0 %v336_v35  ;;  %3655 = vmatmul.mubr.f32.gmra.mrb[4].mxu1 %v352_v36 }
  0xe8   : > { %3633 = vmatprep.mubr.f32.mxu0 %v337_v37  ;;  %3657 = vmatprep.mubr.f32.mxu1 %v353_v38 }
  0xeb   : > { %3634 = vmatmul.mubr.f32.gmra.mrb[6].mxu0 %v338_v39  ;;  %3658 = vmatmul.mubr.f32.gmra.mrb[6].mxu1 %v354_v40 }
  0xec   : > { %3636 = vmatprep.mubr.f32.mxu0 %v339_v41  ;;  %3660 = vmatprep.mubr.f32.mxu1 %v355_v42 }
  0xef   : > { %3637 = vmatmul.mubr.f32.gmra.mrb[8].mxu0 %v340_v43  ;;  %3661 = vmatmul.mubr.f32.gmra.mrb[8].mxu1 %v356_v44 }
  0xf0   : > { %3639 = vmatprep.mubr.f32.mxu0 %v341_v45  ;;  %3663 = vmatprep.mubr.f32.mxu1 %v357_v46 }
  0xf3   : > { %3640 = vmatmul.mubr.f32.gmra.mrb[10].mxu0 %v342_v47  ;;  %3664 = vmatmul.mubr.f32.gmra.mrb[10].mxu1 %v358_v48 }
  0xf4   : > { %3642 = vmatprep.mubr.f32.mxu0 %v343_v49  ;;  %3666 = vmatprep.mubr.f32.mxu1 %v359_v50 }
  0xf7   : > { %3643 = vmatmul.mubr.f32.gmra.mrb[12].mxu0 %v344_v51  ;;  %3667 = vmatmul.mubr.f32.gmra.mrb[12].mxu1 %v360_v52 }
  0xf8   : > { %3645 = vmatprep.mubr.f32.mxu0 %v345_v53  ;;  %3669 = vmatprep.mubr.f32.mxu1 %v361_v54 }
  0xfb   : > { %3646 = vmatmul.mubr.f32.gmra.mrb[14].mxu0 %v346_v55  ;;  %3670 = vmatmul.mubr.f32.gmra.mrb[14].mxu1 %v362_v56 }
 0x1b2   : > { %v3626_v57 = vpop.f32.mrb[0].mxu0  ;;  %v3650_v58 = vpop.f32.mrb[0].mxu1 }
 0x1b3   : > { %v605_v59 = vmax.f32 %v3626_v57, 0.0  ;;  %v621_v60 = vmax.f32 %v3650_v58, 0.0  ;;  %v445_v61 = vpop.f32.mrb[1].mxu0  ;;  %v525_v62 = vpop.f32.mrb[1].mxu1 }
 0x1b4   : > { %v604_v0 = vmax.f32 %v445_v61, 0.0  ;;  %v620_v1 = vmax.f32 %v525_v62, 0.0 }
 0x1b5   : > { %v638_v2 = vmul.f32 %v605_v59, %v605_v59  ;;  %v654_v3 = vmul.f32 %v621_v60, %v621_v60 }
 0x1b6   : > { %v637_v5 = vmul.f32 %v604_v0, %v604_v0  ;;  %v653_v6 = vmul.f32 %v620_v1, %v620_v1  ;;  %v3629_v7 = vpop.f32.mrb[2].mxu0  ;;  %v3653_v8 = vpop.f32.mrb[2].mxu1 }
 0x1b7   : > { %v671_v9 = vmul.f32 %v4645_v63, %v638_v2  ;;  %v687_v10 = vmul.f32 %v4645_v63, %v654_v3  ;;  %v607_v11 = vmax.f32 %v3629_v7, 0.0  ;;  %v623_v12 = vmax.f32 %v3653_v8, 0.0  ;;  %v455_v13 = vpop.f32.mrb[3].mxu0  ;;  %v535_v14 = vpop.f32.mrb[3].mxu1 }
 0x1b8   : > { %v670_v15 = vmul.f32 %v4645_v63, %v637_v5  ;;  %v686_v16 = vmul.f32 %v4645_v63, %v653_v6  ;;  %v606_v17 = vmax.f32 %v455_v13, 0.0  ;;  %v622_v18 = vmax.f32 %v535_v14, 0.0 }
 0x1b9   : > { %v705_v19 = vadd.f32 %v4647_v4, %v671_v9  ;;  %v721_v20 = vadd.f32 %v4647_v4, %v687_v10  ;;  %v640_v21 = vmul.f32 %v607_v11, %v607_v11  ;;  %v656_v22 = vmul.f32 %v623_v12, %v623_v12 }
 0x1ba   : > { %v704_v23 = vadd.f32 %v4647_v4, %v670_v15  ;;  %v720_v24 = vadd.f32 %v4647_v4, %v686_v16  ;;  %v639_v25 = vmul.f32 %v606_v17, %v606_v17  ;;  %v655_v26 = vmul.f32 %v622_v18, %v622_v18  ;;  %v3632_v27 = vpop.f32.mrb[4].mxu0  ;;  %v3656_v28 = vpop.f32.mrb[4].mxu1 }
 0x1bb   : > { %738 = vst [vmem:[#allocation2 + $0x38] sm:$0xff] %v705_v19  ;;  %754 = vst [vmem:[#allocation2 + $0xb8] sm:$0xff] %v721_v20  ;;  %v673_v29 = vmul.f32 %v4645_v63, %v640_v21  ;;  %v689_v30 = vmul.f32 %v4645_v63, %v656_v22  ;;  %v609_v31 = vmax.f32 %v3632_v27, 0.0  ;;  %v625_v32 = vmax.f32 %v3656_v28, 0.0  ;;  %v465_v33 = vpop.f32.mrb[5].mxu0  ;;  %v545_v34 = vpop.f32.mrb[5].mxu1 }
 0x1bc   : > { %737 = vst [vmem:[#allocation2 + $0x30] sm:$0xff] %v704_v23  ;;  %753 = vst [vmem:[#allocation2 + $0xb0] sm:$0xff] %v720_v24  ;;  %v672_v35 = vmul.f32 %v4645_v63, %v639_v25  ;;  %v688_v36 = vmul.f32 %v4645_v63, %v655_v26  ;;  %v608_v37 = vmax.f32 %v465_v33, 0.0  ;;  %v624_v38 = vmax.f32 %v545_v34, 0.0 }
 0x1bd   : > { %v707_v39 = vadd.f32 %v4647_v4, %v673_v29  ;;  %v723_v40 = vadd.f32 %v4647_v4, %v689_v30  ;;  %v642_v41 = vmul.f32 %v609_v31, %v609_v31  ;;  %v658_v42 = vmul.f32 %v625_v32, %v625_v32 }
 0x1be   : > { %v706_v43 = vadd.f32 %v4647_v4, %v672_v35  ;;  %v722_v44 = vadd.f32 %v4647_v4, %v688_v36  ;;  %v641_v45 = vmul.f32 %v608_v37, %v608_v37  ;;  %v657_v46 = vmul.f32 %v624_v38, %v624_v38  ;;  %v3635_v47 = vpop.f32.mrb[6].mxu0  ;;  %v3659_v48 = vpop.f32.mrb[6].mxu1 }
 0x1bf   : > { %740 = vst [vmem:[#allocation2 + $0x48] sm:$0xff] %v707_v39  ;;  %756 = vst [vmem:[#allocation2 + $0xc8] sm:$0xff] %v723_v40  ;;  %v675_v49 = vmul.f32 %v4645_v63, %v642_v41  ;;  %v691_v50 = vmul.f32 %v4645_v63, %v658_v42  ;;  %v611_v51 = vmax.f32 %v3635_v47, 0.0  ;;  %v627_v52 = vmax.f32 %v3659_v48, 0.0  ;;  %v475_v53 = vpop.f32.mrb[7].mxu0  ;;  %v555_v54 = vpop.f32.mrb[7].mxu1 }
 0x1c0   : > { %739 = vst [vmem:[#allocation2 + $0x40] sm:$0xff] %v706_v43  ;;  %755 = vst [vmem:[#allocation2 + $0xc0] sm:$0xff] %v722_v44  ;;  %v674_v55 = vmul.f32 %v4645_v63, %v641_v45  ;;  %v690_v56 = vmul.f32 %v4645_v63, %v657_v46  ;;  %v610_v57 = vmax.f32 %v475_v53, 0.0  ;;  %v626_v58 = vmax.f32 %v555_v54, 0.0 }
 0x1c1   : > { %v709_v59 = vadd.f32 %v4647_v4, %v675_v49  ;;  %v725_v60 = vadd.f32 %v4647_v4, %v691_v50  ;;  %v644_v61 = vmul.f32 %v611_v51, %v611_v51  ;;  %v660_v62 = vmul.f32 %v627_v52, %v627_v52 }
 0x1c2   : > { %v708_v0 = vadd.f32 %v4647_v4, %v674_v55  ;;  %v724_v1 = vadd.f32 %v4647_v4, %v690_v56  ;;  %v643_v2 = vmul.f32 %v610_v57, %v610_v57  ;;  %v659_v3 = vmul.f32 %v626_v58, %v626_v58  ;;  %v3638_v5 = vpop.f32.mrb[8].mxu0  ;;  %v3662_v6 = vpop.f32.mrb[8].mxu1 }
 0x1c3   : > { %742 = vst [vmem:[#allocation2 + $0x58] sm:$0xff] %v709_v59  ;;  %758 = vst [vmem:[#allocation2 + $0xd8] sm:$0xff] %v725_v60  ;;  %v677_v7 = vmul.f32 %v4645_v63, %v644_v61  ;;  %v693_v8 = vmul.f32 %v4645_v63, %v660_v62  ;;  %v613_v9 = vmax.f32 %v3638_v5, 0.0  ;;  %v629_v10 = vmax.f32 %v3662_v6, 0.0  ;;  %v485_v11 = vpop.f32.mrb[9].mxu0  ;;  %v565_v12 = vpop.f32.mrb[9].mxu1 }
 0x1c4   : > { %741 = vst [vmem:[#allocation2 + $0x50] sm:$0xff] %v708_v0  ;;  %757 = vst [vmem:[#allocation2 + $0xd0] sm:$0xff] %v724_v1  ;;  %v676_v13 = vmul.f32 %v4645_v63, %v643_v2  ;;  %v692_v14 = vmul.f32 %v4645_v63, %v659_v3  ;;  %v612_v15 = vmax.f32 %v485_v11, 0.0  ;;  %v628_v16 = vmax.f32 %v565_v12, 0.0 }
 0x1c5   : > { %v711_v17 = vadd.f32 %v4647_v4, %v677_v7  ;;  %v727_v18 = vadd.f32 %v4647_v4, %v693_v8  ;;  %v646_v19 = vmul.f32 %v613_v9, %v613_v9  ;;  %v662_v20 = vmul.f32 %v629_v10, %v629_v10 }
 0x1c6   : > { %v710_v21 = vadd.f32 %v4647_v4, %v676_v13  ;;  %v726_v22 = vadd.f32 %v4647_v4, %v692_v14  ;;  %v645_v23 = vmul.f32 %v612_v15, %v612_v15  ;;  %v661_v24 = vmul.f32 %v628_v16, %v628_v16  ;;  %v3641_v25 = vpop.f32.mrb[10].mxu0  ;;  %v3665_v26 = vpop.f32.mrb[10].mxu1 }
 0x1c7   : > { %744 = vst [vmem:[#allocation2 + $0x68] sm:$0xff] %v711_v17  ;;  %760 = vst [vmem:[#allocation2 + $0xe8] sm:$0xff] %v727_v18  ;;  %v679_v27 = vmul.f32 %v4645_v63, %v646_v19  ;;  %v695_v28 = vmul.f32 %v4645_v63, %v662_v20  ;;  %v615_v29 = vmax.f32 %v3641_v25, 0.0  ;;  %v631_v30 = vmax.f32 %v3665_v26, 0.0  ;;  %v495_v31 = vpop.f32.mrb[11].mxu0  ;;  %v575_v32 = vpop.f32.mrb[11].mxu1 }
 0x1c8   : > { %743 = vst [vmem:[#allocation2 + $0x60] sm:$0xff] %v710_v21  ;;  %759 = vst [vmem:[#allocation2 + $0xe0] sm:$0xff] %v726_v22  ;;  %v678_v33 = vmul.f32 %v4645_v63, %v645_v23  ;;  %v694_v34 = vmul.f32 %v4645_v63, %v661_v24  ;;  %v614_v35 = vmax.f32 %v495_v31, 0.0  ;;  %v630_v36 = vmax.f32 %v575_v32, 0.0 }
 0x1c9   : > { %v713_v37 = vadd.f32 %v4647_v4, %v679_v27  ;;  %v729_v38 = vadd.f32 %v4647_v4, %v695_v28  ;;  %v648_v39 = vmul.f32 %v615_v29, %v615_v29  ;;  %v664_v40 = vmul.f32 %v631_v30, %v631_v30 }
 0x1ca   : > { %v712_v41 = vadd.f32 %v4647_v4, %v678_v33  ;;  %v728_v42 = vadd.f32 %v4647_v4, %v694_v34  ;;  %v647_v43 = vmul.f32 %v614_v35, %v614_v35  ;;  %v663_v44 = vmul.f32 %v630_v36, %v630_v36  ;;  %v3644_v45 = vpop.f32.mrb[12].mxu0  ;;  %v3668_v46 = vpop.f32.mrb[12].mxu1 }
 0x1cb   : > { %746 = vst [vmem:[#allocation2 + $0x78] sm:$0xff] %v713_v37  ;;  %762 = vst [vmem:[#allocation2 + $0xf8] sm:$0xff] %v729_v38  ;;  %v681_v47 = vmul.f32 %v4645_v63, %v648_v39  ;;  %v697_v48 = vmul.f32 %v4645_v63, %v664_v40  ;;  %v617_v49 = vmax.f32 %v3644_v45, 0.0  ;;  %v633_v50 = vmax.f32 %v3668_v46, 0.0  ;;  %v505_v51 = vpop.f32.mrb[13].mxu0  ;;  %v585_v52 = vpop.f32.mrb[13].mxu1 }
 0x1cc   : > { %745 = vst [vmem:[#allocation2 + $0x70] sm:$0xff] %v712_v41  ;;  %761 = vst [vmem:[#allocation2 + $0xf0] sm:$0xff] %v728_v42  ;;  %v680_v53 = vmul.f32 %v4645_v63, %v647_v43  ;;  %v696_v54 = vmul.f32 %v4645_v63, %v663_v44  ;;  %v616_v55 = vmax.f32 %v505_v51, 0.0  ;;  %v632_v56 = vmax.f32 %v585_v52, 0.0 }
 0x1cd   : > { %v715_v57 = vadd.f32 %v4647_v4, %v681_v47  ;;  %v731_v58 = vadd.f32 %v4647_v4, %v697_v48  ;;  %v650_v59 = vmul.f32 %v617_v49, %v617_v49  ;;  %v666_v60 = vmul.f32 %v633_v50, %v633_v50 }
 0x1ce   : > { %v714_v61 = vadd.f32 %v4647_v4, %v680_v53  ;;  %v730_v62 = vadd.f32 %v4647_v4, %v696_v54  ;;  %v649_v0 = vmul.f32 %v616_v55, %v616_v55  ;;  %v665_v1 = vmul.f32 %v632_v56, %v632_v56  ;;  %v3647_v2 = vpop.f32.mrb[14].mxu0  ;;  %v3671_v3 = vpop.f32.mrb[14].mxu1 }
 0x1cf   : > { %748 = vst [vmem:[#allocation2 + $0x88] sm:$0xff] %v715_v57  ;;  %764 = vst [vmem:[#allocation2 + $0x108] sm:$0xff] %v731_v58  ;;  %v683_v5 = vmul.f32 %v4645_v63, %v650_v59  ;;  %v699_v6 = vmul.f32 %v4645_v63, %v666_v60  ;;  %v619_v7 = vmax.f32 %v3647_v2, 0.0  ;;  %v635_v8 = vmax.f32 %v3671_v3, 0.0  ;;  %v515_v9 = vpop.f32.mrb[15].mxu0  ;;  %v595_v10 = vpop.f32.mrb[15].mxu1 }
 0x1d0   : > { %747 = vst [vmem:[#allocation2 + $0x80] sm:$0xff] %v714_v61  ;;  %763 = vst [vmem:[#allocation2 + $0x100] sm:$0xff] %v730_v62  ;;  %v682_v11 = vmul.f32 %v4645_v63, %v649_v0  ;;  %v698_v12 = vmul.f32 %v4645_v63, %v665_v1  ;;  %v618_v13 = vmax.f32 %v515_v9, 0.0  ;;  %v634_v14 = vmax.f32 %v595_v10, 0.0 }
 0x1d1   : > { %v717_v15 = vadd.f32 %v4647_v4, %v683_v5  ;;  %v733_v16 = vadd.f32 %v4647_v4, %v699_v6  ;;  %v652_v17 = vmul.f32 %v619_v7, %v619_v7  ;;  %v668_v18 = vmul.f32 %v635_v8, %v635_v8 }
 0x1d2   : > { %v716_v19 = vadd.f32 %v4647_v4, %v682_v11  ;;  %v732_v20 = vadd.f32 %v4647_v4, %v698_v12  ;;  %v651_v21 = vmul.f32 %v618_v13, %v618_v13  ;;  %v667_v22 = vmul.f32 %v634_v14, %v634_v14 }
 0x1d3   : > { %750 = vst [vmem:[#allocation2 + $0x98] sm:$0xff] %v717_v15  ;;  %766 = vst [vmem:[#allocation2 + $0x118] sm:$0xff] %v733_v16  ;;  %v685_v23 = vmul.f32 %v4645_v63, %v652_v17  ;;  %v701_v24 = vmul.f32 %v4645_v63, %v668_v18 }
 0x1d4   : > { %749 = vst [vmem:[#allocation2 + $0x90] sm:$0xff] %v716_v19  ;;  %765 = vst [vmem:[#allocation2 + $0x110] sm:$0xff] %v732_v20  ;;  %v684_v25 = vmul.f32 %v4645_v63, %v651_v21  ;;  %v700_v26 = vmul.f32 %v4645_v63, %v667_v22 }
 0x1d5   : > { %v719_v27 = vadd.f32 %v4647_v4, %v685_v23  ;;  %v735_v28 = vadd.f32 %v4647_v4, %v701_v24 }
 0x1d6   : > { %v718_v29 = vadd.f32 %v4647_v4, %v684_v25  ;;  %v734_v30 = vadd.f32 %v4647_v4, %v700_v26 }
 0x1d7   : > { %752 = vst [vmem:[#allocation2 + $0xa8] sm:$0xff] %v719_v27  ;;  %768 = vst [vmem:[#allocation2 + $0x128] sm:$0xff] %v735_v28 }
 0x1d8   : > { %751 = vst [vmem:[#allocation2 + $0xa0] sm:$0xff] %v718_v29  ;;  %767 = vst [vmem:[#allocation2 + $0x120] sm:$0xff] %v734_v30 }
 0x1d9 PF: > { %v3156_v31 = vld [vmem:[#allocation10] sm:$0xff]  ;;  %v3157_v32 = vld [vmem:[#allocation10 + $0x8] sm:$0xff]  ;;  %v3158_v33 = vld [vmem:[#allocation10 + $0x10] sm:$0xff]  ;;  %v777_v34 = vlaneseq  ;;  %s3510_s5 = sshll.u32 %s4268_s24, 7  ;;  %s10727_s9 = sld [smem:[#allocation20_spill]] }
 0x1da   : > { %v3760_v35 = vpack.c.bf16 %v3157_v32, %v3156_v31  ;;  %v3159_v63 = vld [vmem:[#allocation10 + $0x18] sm:$0xff]  ;;  %v3160_v37 = vld [vmem:[#allocation10 + $0x20] sm:$0xff]  ;;  %v3161_v38 = vld [vmem:[#allocation10 + $0x28] sm:$0xff]  ;;  %s4716_s1 = scalar_lea.vmem [#allocation2], %s3510_s5  ;;  %s10728_s14 = sld [smem:[#allocation21_spill]] }
 0x1db   : > { %v3764_v36 = vpack.c.bf16 %v3159_v63, %v3158_v33  ;;  %v4714_v4 = vshrl.u32 %v777_v34, 7  ;;  %v3768_v39 = vpack.c.bf16 %v3161_v38, %v3160_v37  ;;  %v3162_v40 = vld [vmem:[#allocation10 + $0x30] sm:$0xff]  ;;  %v3163_v41 = vld [vmem:[#allocation10 + $0x38] sm:$0xff]  ;;  %v3164_v43 = vld [vmem:[#allocation10 + $0x40] sm:$0xff]  ;;  %s3511_s16 = sshll.u32 %s4268_s24, 4  ;;  %s3350_s18 = sshll.u32 %s4610_s10, 4  ;;  %s8688_s18 = int_to_ptr.vmem [resolvable:$true] %s3350_s18 }
 0x1dc   : > { %3761 = vmatprep.subr.bf16.mxu0 %v3760_v35  ;;  %3808 = vmatprep.subr.bf16.mxu1 %v3760_v35  ;;  %v3165_v44 = vld [vmem:[#allocation10 + $0x48] sm:$0xff]  ;;  %v3772_v50 = vpack.c.bf16 %v3163_v41, %v3162_v40  ;;  %v3166_v18 = vld [vmem:[#allocation10 + $0x50] sm:$0xff]  ;;  %v3167_v19 = vld [vmem:[#allocation10 + $0x58] sm:$0xff]  ;;  %s10729_s30 = sld [smem:[#allocation244_spill]]  ;;  %s8694_s24 = scalar_lea.sflag [#allocation5], %s310_s3 }
 0x1dd   : > { %3763 = vmatpush3.bf16.msra.mxu0 %v3760_v35  ;;  %3816 = vmatpush3.bf16.msra.mxu1 %v3760_v35  ;;  %vm838_vm0 = vcmp.lt.s32.totalorder %v4714_v4, 3  ;;  %v4732_v48 = vadd.s32 4294967293, %v4714_v4  ;;  %v4735_v49 = vsub.s32 0, %v4714_v4  ;;  %v3776_v13 = vpack.c.bf16 %v3165_v44, %v3164_v43  ;;  %v4783_v14 = vld [vmem:[#allocation9] sm:$0x7f]  ;;  %v3168_v25 = vld [vmem:[#allocation10 + $0x60] sm:$0xff] }
 0x1de   : > { %3765 = vmatprep.subr.bf16.mxu0 %v3764_v36  ;;  %3809 = vmatprep.subr.bf16.mxu1 %v3764_v36  ;;  %v4807_v23 = vld [vmem:[#allocation9 + $0x8] sm:$0x7f]  ;;  %v3169_v26 = vld [vmem:[#allocation10 + $0x68] sm:$0xff]  ;;  %v3780_v29 = vpack.c.bf16 %v3167_v19, %v3166_v18  ;;  %v4846_v40 = vld [vmem:[#allocation9 + $0x10] sm:$0x7f]  ;;  %vm1187_vm2 = vcmp.lt.s32.totalorder %v4714_v4, 2 }
 0x1df   : > { %v4719_v42 = vld [vmem:[%s4716_s1] sm:$0xff]  ;;  %v4722_v45 = vld [vmem:[%s4716_s1 + $0x8] sm:$0xff]  ;;  %v4725_v46 = vld [vmem:[%s4716_s1 + $0x10] sm:$0xff]  ;;  %9431 = vst [vmem:[#allocation27_spill] sm:$0xff] %v4732_v48  ;;  %vm869_vm1 = vcmp.ge.s32.totalorder %v4732_v48, 0  ;;  %v4822_v28 = vrot.slane %v4783_v14, %v4735_v49  ;;  %v4832_v33 = vrot.slane %v4807_v23, %v4735_v49  ;;  %v3784_v34 = vpack.c.bf16 %v3169_v26, %v3168_v25  ;;  %s3505_s15 = sshll.u32 %s10727_s9, 5 }
 0x1e0   : > { %9427 = vst [vmem:[#allocation23_spill] sm:$0xff] %v4719_v42  ;;  %9428 = vst [vmem:[#allocation24_spill] sm:$0xff] %v4722_v45  ;;  %v4728_v47 = vld [vmem:[%s4716_s1 + $0x18] sm:$0xff]  ;;  %v4738_v51 = vld [vmem:[%s4716_s1 + $0x20] sm:$0xff]  ;;  %v810_v54 = vrot.slane %v4719_v42, 5  ;;  %v811_v55 = vrot.slane %v4725_v46, 5  ;;  %v4878_v18 = vrot.slane %v4846_v40, %v4735_v49  ;;  %s3347_s17 = sadd.s32 %s3511_s16, %s3505_s15 }
 0x1e1   : > { %3767 = vmatpush3.bf16.msra.mxu0 %v3764_v36  ;;  %3817 = vmatpush3.bf16.msra.mxu1 %v3764_v36  ;;  %9429 = vst [vmem:[#allocation25_spill] sm:$0xff] %v4725_v46  ;;  %9430 = vst [vmem:[#allocation26_spill] sm:$0xff] %v4728_v47  ;;  %v4741_v52 = vld [vmem:[%s4716_s1 + $0x28] sm:$0xff]  ;;  %v4744_v53 = vld [vmem:[%s4716_s1 + $0x30] sm:$0xff]  ;;  %v824_v56 = vrot.slane %v4722_v45, 5  ;;  %v812_v60 = vrot.slane %v4738_v51, 5 }
 0x1e2   : > { %3769 = vmatprep.subr.bf16.mxu0 %v3768_v39  ;;  %3810 = vmatprep.subr.bf16.mxu1 %v3768_v39  ;;  %9432 = vst [vmem:[#allocation28_spill] sm:$0xff] %v4738_v51  ;;  %9433 = vst [vmem:[#allocation29_spill] sm:$0xff] %v4741_v52  ;;  %v4750_v57 = vld [vmem:[%s4716_s1 + $0x38] sm:$0xff]  ;;  %v4753_v58 = vld [vmem:[%s4716_s1 + $0x40] sm:$0xff]  ;;  %v813_v61 = vrot.slane %v4744_v53, 5  ;;  %v825_v62 = vrot.slane %v4728_v47, 5 }
 0x1e3   : > { %9434 = vst [vmem:[#allocation30_spill] sm:$0xff] %v4744_v53  ;;  %9435 = vst [vmem:[#allocation31_spill] sm:$0xff] %v4750_v57  ;;  %v4756_v59 = vld [vmem:[%s4716_s1 + $0x48] sm:$0xff]  ;;  %v4762_v0 = vld [vmem:[%s4716_s1 + $0x50] sm:$0xff]  ;;  %v814_v3 = vrot.slane %v4753_v58, 5  ;;  %v826_v5 = vrot.slane %v4741_v52, 5  ;;  %v839_v7 = vsel %vm838_vm0, %v810_v54, %v824_v56  ;;  %v853_v35 = vsel %vm838_vm0, %v824_v56, %v810_v54 }
 0x1e4   : > { %9436 = vst [vmem:[#allocation32_spill] sm:$0xff] %v4753_v58  ;;  %9437 = vst [vmem:[#allocation33_spill] sm:$0xff] %v4756_v59  ;;  %v4765_v1 = vld [vmem:[%s4716_s1 + $0x58] sm:$0xff]  ;;  %v4768_v2 = vld [vmem:[%s4716_s1 + $0x60] sm:$0xff]  ;;  %v827_v6 = vrot.slane %v4750_v57, 5  ;;  %v815_v9 = vrot.slane %v4762_v0, 5  ;;  %v840_v12 = vsel %vm838_vm0, %v811_v55, %v825_v62  ;;  %v854_v27 = vsel %vm838_vm0, %v825_v62, %v811_v55 }
 0x1e5   : > { %9438 = vst [vmem:[#allocation34_spill] sm:$0xff] %v4762_v0  ;;  %9439 = vst [vmem:[#allocation35_spill] sm:$0xff] %v4765_v1  ;;  %3771 = vmatpush3.bf16.msra.mxu0 %v3768_v39  ;;  %3818 = vmatpush3.bf16.msra.mxu1 %v3768_v39  ;;  %v4776_v8 = vld [vmem:[%s4716_s1 + $0x68] sm:$0xff]  ;;  %v828_v10 = vrot.slane %v4756_v59, 5  ;;  %v829_v11 = vrot.slane %v4765_v1, 5  ;;  %v816_v15 = vrot.slane %v4768_v2, 5  ;;  %v4789_v17 = vsel %vm838_vm0, %v812_v60, %v826_v5 }
 0x1e6   : > { %9440 = vst [vmem:[#allocation36_spill] sm:$0xff] %v4768_v2  ;;  %9441 = vst [vmem:[#allocation37_spill] sm:$0xff] %v4776_v8  ;;  %3773 = vmatprep.subr.bf16.mxu0 %v3772_v50  ;;  %3811 = vmatprep.subr.bf16.mxu1 %v3772_v50  ;;  %v8773_v16 = vrot.slane %v4776_v8, 5  ;;  %v4793_v20 = vsel %vm838_vm0, %v813_v61, %v827_v6  ;;  %v855_v30 = vsel %vm838_vm0, %v826_v5, %v812_v60  ;;  %v3170_v54 = vld [vmem:[#allocation10 + $0x70] sm:$0xff]  ;;  %v3171_v55 = vld [vmem:[#allocation10 + $0x78] sm:$0xff]  ;;  %s3506_s2 = sshll.u32 %s3347_s17, 7 }
 0x1e7   : > { %v4797_v21 = vsel %vm838_vm0, %v814_v3, %v828_v10  ;;  %v4805_v22 = vsel %vm838_vm0, %v815_v9, %v829_v11  ;;  %9444 = vst [vmem:[#allocation40_spill] sm:$0xff] %v4822_v28  ;;  %v856_v31 = vsel %vm838_vm0, %v827_v6, %v813_v61  ;;  %v857_v32 = vsel %vm838_vm0, %v828_v10, %v814_v3  ;;  %v4870_v10 = vld [vmem:[#allocation9 + $0x18] sm:$0x7f]  ;;  %s8686_s7 = scalar_lea.hbm %s10729_s30, %s3506_s2  ;;  %s4150_s6 = scalar_lea.vmem %s8688_s18, 2048 }
 0x1e8   : > { %9442 = vst [vmem:[#allocation38_spill] sm:$0xff] %v4805_v22  ;;  %v4815_v24 = vsel %vm838_vm0, %v816_v15, %v8773_v16  ;;  %9445 = vst [vmem:[#allocation41_spill] sm:$0xff] %v4832_v33  ;;  %v881_v63 = vsel %vm869_vm1, %v854_v27, 0.0  ;;  %v883_v36 = vsel %vm869_vm1, %v855_v30, 0.0  ;;  %v4842_v37 = vsel %vm869_vm1, %v856_v31, 0.0  ;;  %p4151_p3 = scmp.ne.s32.totalorder %s8688_s18, %s4150_s6  ;;  %p10730_p5 = scmp.ne.s32.totalorder %s10728_s14, 0 }
 0x1e9   : > { %9443 = vst [vmem:[#allocation39_spill] sm:$0xff] %v4815_v24  ;;  %3775 = vmatpush3.bf16.msra.mxu0 %v3772_v50  ;;  %3819 = vmatpush3.bf16.msra.mxu1 %v3772_v50  ;;  %v912_v38 = vmul.f32 %v4822_v28, %v839_v7  ;;  %v913_v39 = vmul.f32 %v4822_v28, %v881_v63  ;;  %v4850_v41 = vsel %vm869_vm1, %v857_v32, 0.0  ;;  %9446 = vst [vmem:[#allocation42_spill] sm:$0xff] %v4878_v18  ;;  %s4294_s29 = smov [#allocation13]  }
 0x1ea   : > { %3777 = vmatprep.subr.bf16.mxu0 %v3776_v13  ;;  %3812 = vmatprep.subr.bf16.mxu1 %v3776_v13  ;;  %v914_v43 = vmul.f32 %v4822_v28, %v840_v12  ;;  %v915_v44 = vmul.f32 %v4822_v28, %v883_v36  ;;  %v916_v50 = vmul.f32 %v4822_v28, %v4789_v17  ;;  %v9458_v48 = vrot.slane %v4744_v53, 6  ;;  %p4152_p7 = pnand %p4151_p3, %p10730_p5  ;;  %s4154_s5 = sshll.u32 %s4294_s29, 4  ;;  %s4155_s5 = int_to_ptr.vmem [resolvable:$false] %s4154_s5 }
 0x1eb   : > { %v917_v56 = vmul.f32 %v4822_v28, %v4842_v37  ;;  %v918_v60 = vmul.f32 %v4822_v28, %v4793_v20  ;;  %v948_v61 = vmul.f32 %v4832_v33, %v840_v12  ;;  %v949_v62 = vmul.f32 %v4832_v33, %v883_v36  ;;  %p4157_p8 = scmp.lt.s32.totalorder %s8688_s18, %s4155_s5 }
 0x1ec   : > { %v950_v3 = vmul.f32 %v4832_v33, %v4789_v17  ;;  %v951_v5 = vmul.f32 %v4832_v33, %v4842_v37  ;;  %v952_v6 = vmul.f32 %v4832_v33, %v4793_v20  ;;  %v953_v7 = vmul.f32 %v4832_v33, %v4850_v41  ;;  %p4153_p13 = pneg %p4152_p7 }
 0x1ed   : > { %3779 = vmatpush3.bf16.msra.mxu0 %v3776_v13  ;;  %3820 = vmatpush3.bf16.msra.mxu1 %v3776_v13  ;;  %v879_v12 = vsel %vm869_vm1, %v853_v35, 0.0  ;;  %v954_v13 = vmul.f32 %v4832_v33, %v4797_v21  ;;  %v3788_v19 = vpack.c.bf16 %v3171_v55, %v3170_v54  ;;  %v964_v25 = vadd.f32 %v948_v61, %v912_v38  ;;  %v4905_v61 = vld [vmem:[%s4716_s1 + $0x70] sm:$0xff] }
 0x1ee   : > { %3781 = vmatprep.subr.bf16.mxu0 %v3780_v29  ;;  %3813 = vmatprep.subr.bf16.mxu1 %v3780_v29  ;;  %v965_v26 = vadd.f32 %v949_v62, %v913_v39  ;;  %v966_v27 = vadd.f32 %v950_v3, %v914_v43  ;;  %v967_v30 = vadd.f32 %v951_v5, %v915_v44  ;;  %v4895_v44 = vld [vmem:[#allocation9 + $0x20] sm:$0x7f]  ;;  %v4908_v62 = vld [vmem:[%s4716_s1 + $0x78] sm:$0xff]  ;;  %vm1536_vm4 = vcmp.lt.s32.totalorder %v4714_v4, 1 }
 0x1ef   : > { %v4880_v31 = vadd.f32 %v953_v7, %v917_v56  ;;  %v911_v32 = vmul.f32 %v4822_v28, %v879_v12  ;;  %v4883_v35 = vadd.f32 %v954_v13, %v918_v60  ;;  %v4887_v16 = vrot.slane %v4870_v10, %v4735_v49 }
 0x1f0   : > { %v984_v38 = vmul.f32 %v4878_v18, %v4789_v17  ;;  %v985_v39 = vmul.f32 %v4878_v18, %v4842_v37  ;;  %v986_v43 = vmul.f32 %v4878_v18, %v4793_v20  ;;  %v988_v54 = vmul.f32 %v4878_v18, %v4797_v21 }
 0x1f1   : > { %3783 = vmatpush3.bf16.msra.mxu0 %v3780_v29  ;;  %3821 = vmatpush3.bf16.msra.mxu1 %v3780_v29  ;;  %v968_v29 = vadd.f32 %v952_v6, %v916_v50  ;;  %9447 = vst [vmem:[#allocation43_spill] sm:$0xff] %v4887_v16  ;;  %v947_v50 = vmul.f32 %v4832_v33, %v881_v63  ;;  %vm2137_vm6 = vcmp.lt.s32.totalorder %v4714_v4, 7  ;;  %vm2486_vm7 = vcmp.lt.s32.totalorder %v4714_v4, 6 }
 0x1f2   : > { %3785 = vmatprep.subr.bf16.mxu0 %v3784_v34  ;;  %3814 = vmatprep.subr.bf16.mxu1 %v3784_v34  ;;  %v1000_v17 = vadd.f32 %v984_v38, %v964_v25  ;;  %v1001_v55 = vadd.f32 %v985_v39, %v965_v26  ;;  %v1002_v56 = vadd.f32 %v986_v43, %v966_v27  ;;  %v817_v25 = vrot.slane %v4905_v61, 5 }
 0x1f3   : > { %v4910_v3 = vadd.f32 %v988_v54, %v968_v29  ;;  %v4914_v63 = vrot.slane %v4895_v44, %v4735_v49  ;;  %v858_v5 = vsel %vm838_vm0, %v829_v11, %v815_v9  ;;  %v963_v6 = vadd.f32 %v947_v50, %v911_v32 }
 0x1f4   : > { %v983_v7 = vmul.f32 %v4878_v18, %v883_v36  ;;  %v1020_v12 = vmul.f32 %v4887_v16, %v4793_v20  ;;  %v1021_v13 = vmul.f32 %v4887_v16, %v4850_v41  ;;  %v831_v26 = vrot.slane %v4908_v62, 5  ;;  %v4937_v20 = vld [vmem:[#allocation9 + $0x30] sm:$0x7f] }
 0x1f5   : > { %3787 = vmatpush3.bf16.msra.mxu0 %v3784_v34  ;;  %3822 = vmatpush3.bf16.msra.mxu1 %v3784_v34  ;;  %v987_v34 = vmul.f32 %v4878_v18, %v4850_v41  ;;  %9448 = vst [vmem:[#allocation44_spill] sm:$0xff] %v4914_v63  ;;  %v4933_v9 = vsel %vm869_vm1, %v858_v5, 0.0  ;;  %9451 = vst [vmem:[#allocation47_spill] sm:$0xff] %v4937_v20  ;;  %v1019_v32 = vmul.f32 %v4887_v16, %v4842_v37 }
 0x1f6   : > { %3789 = vmatprep.subr.bf16.mxu0 %v3788_v19  ;;  %3815 = vmatprep.subr.bf16.mxu1 %v3788_v19  ;;  %v1036_v27 = vadd.f32 %v1020_v12, %v1000_v17  ;;  %9449 = vst [vmem:[#allocation45_spill] sm:$0xff] %v4933_v9  ;;  %v1037_v11 = vadd.f32 %v1021_v13, %v1001_v55  ;;  %v9452_v39 = vrot.slane %v4776_v8, 5  ;;  %vm2835_vm8 = vcmp.lt.s32.totalorder %v4714_v4, 5 }
 0x1f7   : > { %v4902_v60 = vadd.f32 %v987_v34, %v967_v30  ;;  %v4935_v30 = vld [vmem:[#allocation9 + $0x28] sm:$0x7f]  ;;  %v999_v29 = vadd.f32 %v983_v7, %v963_v6  ;;  %v1056_v38 = vmul.f32 %v4914_v63, %v4797_v21  ;;  %v860_v50 = vsel %vm838_vm0, %v831_v26, %v817_v25 }
 0x1f8   : > { %9450 = vst [vmem:[#allocation46_spill] sm:$0xff] %v4935_v30  ;;  %v859_v43 = vsel %vm838_vm0, %v9452_v39, %v816_v15  ;;  %v919_v34 = vmul.f32 %v4822_v28, %v4850_v41  ;;  %v955_v54 = vmul.f32 %v4832_v33, %v4933_v9  ;;  %v920_v17 = vmul.f32 %v4822_v28, %v4797_v21 }
 0x1f9   : > { %3791 = vmatpush3.bf16.msra.mxu0 %v3788_v19  ;;  %3823 = vmatpush3.bf16.msra.mxu1 %v3788_v19  ;;  %v1022_v19 = vmul.f32 %v4887_v16, %v4797_v21  ;;  %v1072_v37 = vadd.f32 %v1056_v38, %v1036_v27  ;;  %v956_v55 = vmul.f32 %v4832_v33, %v4805_v22  ;;  %v4979_v13 = vsel %vm869_vm1, %v859_v43, 0.0 }
 0x1fa   : > { %v4965_v15 = vrot.slane %v4937_v20, %v4735_v49  ;;  %v1035_v5 = vadd.f32 %v1019_v32, %v999_v29  ;;  %v1055_v6 = vmul.f32 %v4914_v63, %v4850_v41  ;;  %v1057_v7 = vmul.f32 %v4914_v63, %v4933_v9  ;;  %9456 = vst [vmem:[#allocation51_spill] sm:$0xff] %v4979_v13 }
 0x1fb   : > { %v1038_v36 = vadd.f32 %v1022_v19, %v1002_v56  ;;  %v4961_v56 = vrot.slane %v4935_v30, %v4735_v49  ;;  %v1058_v21 = vmul.f32 %v4914_v63, %v4805_v22  ;;  %v4975_v12 = vsel %vm838_vm0, %v817_v25, %v831_v26 }
 0x1fc   : > { %9454 = vst [vmem:[#allocation49_spill] sm:$0xff] %v4965_v15  ;;  %9455 = vst [vmem:[#allocation50_spill] sm:$0xff] %v4975_v12  ;;  %v4983_v49 = vsel %vm869_vm1, %v860_v50, 0.0  ;;  %v1159_v41 = vrot.slane %v4719_v42, 6  ;;  %v971_v19 = vadd.f32 %v955_v54, %v919_v34  ;;  %v1160_v27 = vrot.slane %v4725_v46, 6 }
 0x1fd   : > { %9453 = vst [vmem:[#allocation48_spill] sm:$0xff] %v4961_v56  ;;  %9457 = vst [vmem:[#allocation52_spill] sm:$0xff] %v4983_v49  ;;  %v1161_v29 = vrot.slane %v4738_v51, 6  ;;  %v972_v38 = vadd.f32 %v956_v55, %v920_v17  ;;  %v989_v25 = vmul.f32 %v4878_v18, %v4933_v9  ;;  %v1071_v43 = vadd.f32 %v1055_v6, %v1035_v5 }
 0x1fe   : > { %v1073_v50 = vadd.f32 %v1057_v7, %v1037_v11  ;;  %v1074_v33 = vadd.f32 %v1058_v21, %v1038_v36  ;;  %v1091_v34 = vmul.f32 %v4961_v56, %v4933_v9  ;;  %v1092_v54 = vmul.f32 %v4961_v56, %v4805_v22 }
 0x1ff   : > { %v1093_v17 = vmul.f32 %v4961_v56, %v4979_v13  ;;  %v1094_v55 = vmul.f32 %v4961_v56, %v4815_v24  ;;  %v1173_v26 = vrot.slane %v4722_v45, 6  ;;  %v1174_v5 = vrot.slane %v4728_v47, 6 }
 0x200   : > { %v1175_v11 = vrot.slane %v4741_v52, 6  ;;  %v1176_v36 = vrot.slane %v4750_v57, 6  ;;  %v990_v21 = vmul.f32 %v4878_v18, %v4805_v22  ;;  %v9460_v7 = vrot.slane %v4756_v59, 6 }
 0x201   : > { %v1188_v28 = vsel %vm1187_vm2, %v1159_v41, %v1173_v26  ;;  %v1189_v39 = vsel %vm1187_vm2, %v1160_v27, %v1174_v5  ;;  %v9461_v57 = vrot.slane %v4753_v58, 6  ;;  %v9463_v47 = vrot.slane %v4765_v1, 6 }
 0x202   : > { %v5016_v32 = vsel %vm1187_vm2, %v1161_v29, %v1175_v11  ;;  %v5022_v6 = vsel %vm1187_vm2, %v9458_v48, %v1176_v36  ;;  %v9464_v45 = vrot.slane %v4762_v0, 6  ;;  %v9466_v48 = vrot.slane %v4776_v8, 6 }
 0x203   : > { %9459 = vst [vmem:[#allocation53_spill] sm:$0xff] %v5022_v6  ;;  %v5032_v52 = vsel %vm1187_vm2, %v9461_v57, %v9460_v7  ;;  %v9467_v51 = vrot.slane %v4768_v2, 6  ;;  %v991_v57 = vmul.f32 %v4878_v18, %v4979_v13  ;;  %v1107_v7 = vadd.f32 %v1091_v34, %v1071_v43 }
 0x204   : > { %9462 = vst [vmem:[#allocation54_spill] sm:$0xff] %v5032_v52  ;;  %v5040_v20 = vsel %vm1187_vm2, %v9464_v45, %v9463_v47  ;;  %v1108_v30 = vadd.f32 %v1092_v54, %v1072_v37  ;;  %v1127_v42 = vmul.f32 %v4965_v15, %v4979_v13  ;;  %v1109_v56 = vadd.f32 %v1093_v17, %v1073_v50 }
 0x205   : > { %9465 = vst [vmem:[#allocation55_spill] sm:$0xff] %v5040_v20  ;;  %v5048_v46 = vsel %vm1187_vm2, %v9467_v51, %v9466_v48  ;;  %v1110_v52 = vadd.f32 %v1094_v55, %v1074_v33  ;;  %v1128_v45 = vmul.f32 %v4965_v15, %v4815_v24  ;;  %v1129_v47 = vmul.f32 %v4965_v15, %v4983_v49 }
 0x206   : > { %9468 = vst [vmem:[#allocation56_spill] sm:$0xff] %v5048_v46  ;;  %v1130_v51 = vmul.f32 %v4965_v15, %v4975_v12  ;;  %v1202_v48 = vsel %vm1187_vm2, %v1173_v26, %v1159_v41  ;;  %v5063_v43 = vadd.s32 4294967294, %v4714_v4  ;;  %v5066_v37 = vsub.s32 1, %v4714_v4 }
 0x207   : > { %v992_v33 = vmul.f32 %v4878_v18, %v4815_v24  ;;  %v1005_v50 = vadd.f32 %v989_v25, %v4880_v31  ;;  %v1006_v34 = vadd.f32 %v990_v21, %v4883_v35  ;;  %v1203_v54 = vsel %vm1187_vm2, %v1174_v5, %v1160_v27 }
 0x208   : > { %9469 = vst [vmem:[#allocation57_spill] sm:$0xff] %v5063_v43  ;;  %v5074_v17 = vadd.f32 %v991_v57, %v971_v19  ;;  %v1023_v41 = vmul.f32 %v4887_v16, %v4933_v9  ;;  %vm1218_vm3 = vcmp.ge.s32.totalorder %v5063_v43, 0  ;;  %v5081_v26 = vrot.slane %v4783_v14, %v5066_v37 }
 0x209   : > { %v1143_v55 = vadd.f32 %v1127_v42, %v1107_v7  ;;  %v1144_v18 = vadd.f32 %v1128_v45, %v1108_v30  ;;  %v1145_v15 = vadd.f32 %v1129_v47, %v1109_v56  ;;  %v1228_v31 = vsel %vm1218_vm3, %v1202_v48, 0.0 }
 0x20a   : > { %9470 = vst [vmem:[#allocation58_spill] sm:$0xff] %v5074_v17  ;;  %9471 = vst [vmem:[#allocation59_spill] sm:$0xff] %v5081_v26  ;;  %v1146_v35 = vadd.f32 %v1130_v51, %v1110_v52  ;;  %v1204_v19 = vsel %vm1187_vm2, %v1175_v11, %v1161_v29  ;;  %v1230_v27 = vsel %vm1218_vm3, %v1203_v54, 0.0  ;;  %v5091_v25 = vrot.slane %v4807_v23, %v5066_v37 }
 0x20b   : > { %v1260_v5 = vmul.f32 %v5081_v26, %v1228_v31  ;;  %v1261_v42 = vmul.f32 %v5081_v26, %v1188_v28  ;;  %v1262_v30 = vmul.f32 %v5081_v26, %v1230_v27  ;;  %v1263_v56 = vmul.f32 %v5081_v26, %v1189_v39 }
 0x20c   : > { %9472 = vst [vmem:[#allocation60_spill] sm:$0xff] %v5091_v25  ;;  %v5097_v21 = vadd.f32 %v992_v33, %v972_v38  ;;  %v1024_v52 = vmul.f32 %v4887_v16, %v4805_v22  ;;  %v1025_v29 = vmul.f32 %v4887_v16, %v4979_v13  ;;  %v9474_v11 = vrot.slane %v4744_v53, 6 }
 0x20d   : > { %v5109_v28 = vsel %vm1218_vm3, %v1204_v19, 0.0  ;;  %v1276_v7 = vadd.f32 %v1260_v5, %v1143_v55  ;;  %v1277_v45 = vadd.f32 %v1261_v42, %v1144_v18  ;;  %v5113_v38 = vrot.slane %v4846_v40, %v5066_v37 }
 0x20e   : > { %9473 = vst [vmem:[#allocation61_spill] sm:$0xff] %v5097_v21  ;;  %v1205_v57 = vsel %vm1187_vm2, %v1176_v36, %v9474_v11  ;;  %v1278_v47 = vadd.f32 %v1262_v30, %v1145_v15  ;;  %v1279_v51 = vadd.f32 %v1263_v56, %v1146_v35  ;;  %v1296_v48 = vmul.f32 %v5091_v25, %v1230_v27  ;;  %v9493_v21 = vld [vmem:[#allocation25_spill] sm:$0xff] }
 0x20f   : > { %9475 = vst [vmem:[#allocation62_spill] sm:$0xff] %v5113_v38  ;;  %v1297_v33 = vmul.f32 %v5091_v25, %v1189_v39  ;;  %v1026_v54 = vmul.f32 %v4887_v16, %v4815_v24  ;;  %v1039_v36 = vadd.f32 %v1023_v41, %v4902_v60  ;;  %v1298_v31 = vmul.f32 %v5091_v25, %v5109_v28 }
 0x210   : > { %v1299_v18 = vmul.f32 %v5091_v25, %v5016_v32  ;;  %v1040_v55 = vadd.f32 %v1024_v52, %v4910_v3  ;;  %v1059_v15 = vmul.f32 %v4914_v63, %v4979_v13  ;;  %v1060_v35 = vmul.f32 %v4914_v63, %v4815_v24  ;;  %v9489_v13 = vld [vmem:[#allocation23_spill] sm:$0xff] }
 0x211   : > { %v5131_v39 = vsel %vm1218_vm3, %v1205_v57, 0.0  ;;  %v1312_v19 = vadd.f32 %v1296_v48, %v1276_v7  ;;  %v1313_v60 = vadd.f32 %v1297_v33, %v1277_v45  ;;  %v1314_v41 = vadd.f32 %v1298_v31, %v1278_v47 }
 0x212   : > { %9476 = vst [vmem:[#allocation63_spill] sm:$0xff] %v5131_v39  ;;  %v1315_v27 = vadd.f32 %v1299_v18, %v1279_v51  ;;  %v1332_v5 = vmul.f32 %v5113_v38, %v5109_v28  ;;  %v1333_v3 = vmul.f32 %v5113_v38, %v5016_v32  ;;  %v1334_v42 = vmul.f32 %v5113_v38, %v5131_v39 }
 0x213   : > { %v1335_v30 = vmul.f32 %v5113_v38, %v5022_v6  ;;  %v5141_v56 = vadd.f32 %v1025_v29, %v1005_v50  ;;  %v5143_v52 = vadd.f32 %v1026_v54, %v1006_v34  ;;  %v8814_v11 = vrot.slane %v4905_v61, 6 }
 0x214   : > { %v9478_v57 = vrot.slane %v4753_v58, 6  ;;  %v9479_v7 = vrot.slane %v4756_v59, 6  ;;  %v8815_v47 = vrot.slane %v4908_v62, 6  ;;  %v1349_v51 = vadd.f32 %v1333_v3, %v1313_v60  ;;  %v9485_v3 = vld [vmem:[#allocation54_spill] sm:$0xff] }
 0x215   : > { %9477 = vst [vmem:[#allocation64_spill] sm:$0xff] %v5143_v52  ;;  %v1350_v48 = vadd.f32 %v1334_v42, %v1314_v41  ;;  %v1351_v33 = vadd.f32 %v1335_v30, %v1315_v27  ;;  %v5155_v50 = vmul.f32 %v4914_v63, %v4983_v49  ;;  %v5157_v34 = vadd.f32 %v1059_v15, %v1039_v36  ;;  %v9486_v30 = vld [vmem:[#allocation48_spill] sm:$0xff] }
 0x216   : > { %v1206_v45 = vsel %vm1187_vm2, %v9479_v7, %v9478_v57  ;;  %v5159_v29 = vadd.f32 %v1060_v35, %v1040_v55  ;;  %v5163_v54 = vrot.slane %v4870_v10, %v5066_v37  ;;  %v9481_v31 = vrot.slane %v4762_v0, 6 }
 0x217   : > { %v9482_v18 = vrot.slane %v4765_v1, 6  ;;  %v5173_v41 = vsel %vm1218_vm3, %v1206_v45, 0.0  ;;  %v1348_v27 = vadd.f32 %v1332_v5, %v1312_v19  ;;  %v5177_v36 = vrot.slane %v4895_v44, %v5066_v37 }
 0x218   : > { %9480 = vst [vmem:[#allocation65_spill] sm:$0xff] %v5163_v54  ;;  %9483 = vst [vmem:[#allocation66_spill] sm:$0xff] %v5173_v41  ;;  %v1368_v55 = vmul.f32 %v5163_v54, %v5131_v39  ;;  %v1369_v15 = vmul.f32 %v5163_v54, %v5022_v6  ;;  %v1370_v35 = vmul.f32 %v5163_v54, %v5173_v41  ;;  %v9487_v5 = vrot.slane %v4768_v2, 6  ;;  %v9501_v6 = vld [vmem:[#allocation31_spill] sm:$0xff] }
 0x219   : > { %v1207_v60 = vsel %vm1187_vm2, %v9482_v18, %v9481_v31  ;;  %9484 = vst [vmem:[#allocation67_spill] sm:$0xff] %v5177_v36  ;;  %v1371_v42 = vmul.f32 %v5163_v54, %v9485_v3  ;;  %v1095_v57 = vmul.f32 %v9486_v30, %v4983_v49  ;;  %v5191_v19 = vmul.f32 %v9486_v30, %v4975_v12 }
 0x21a   : > { %v9488_v7 = vrot.slane %v4776_v8, 6  ;;  %v1209_v31 = vsel %vm1187_vm2, %v8815_v47, %v8814_v11  ;;  %v1385_v18 = vadd.f32 %v1369_v15, %v1349_v51  ;;  %v1386_v52 = vadd.f32 %v1370_v35, %v1350_v48 }
 0x21b   : > { %v1387_v24 = vadd.f32 %v1371_v42, %v1351_v33  ;;  %v1508_v22 = vrot.slane %v9489_v13, 7  ;;  %v5208_v9 = vsel %vm1218_vm3, %v1207_v60, 0.0  ;;  %v1405_v30 = vmul.f32 %v5177_v36, %v9485_v3  ;;  %v9494_v33 = vld [vmem:[#allocation28_spill] sm:$0xff]  ;;  %v9499_v42 = vld [vmem:[#allocation26_spill] sm:$0xff] }
 0x21c   : > { %v1208_v45 = vsel %vm1187_vm2, %v9488_v7, %v9487_v5  ;;  %9490 = vst [vmem:[#allocation68_spill] sm:$0xff] %v5208_v9  ;;  %v9491_v5 = vld [vmem:[#allocation46_spill] sm:$0xff]  ;;  %v1509_v17 = vrot.slane %v9493_v21, 7  ;;  %v1384_v16 = vadd.f32 %v1368_v55, %v1348_v27  ;;  %v1404_v51 = vmul.f32 %v5177_v36, %v5173_v41  ;;  %v9496_v27 = vld [vmem:[#allocation47_spill] sm:$0xff] }
 0x21d   : > { %v5214_v7 = vrot.slane %v9491_v5, %v5066_v37  ;;  %v1406_v48 = vmul.f32 %v5177_v36, %v5208_v9  ;;  %v1510_v15 = vrot.slane %v9494_v33, 7  ;;  %v1407_v60 = vmul.f32 %v5177_v36, %v5040_v20 }
 0x21e   : > { %v1421_v35 = vadd.f32 %v1405_v30, %v1385_v18  ;;  %v5228_v47 = vsel %vm1218_vm3, %v1208_v45, 0.0  ;;  %v5232_v55 = vrot.slane %v9496_v27, %v5066_v37  ;;  %v1513_v49 = vrot.slane %v4762_v0, 7  ;;  %v9498_v18 = vld [vmem:[#allocation24_spill] sm:$0xff] }
 0x21f   : > { %9492 = vst [vmem:[#allocation46_spill] sm:$0xff] %v5214_v7  ;;  %9495 = vst [vmem:[#allocation69_spill] sm:$0xff] %v5228_v47  ;;  %v1514_v33 = vrot.slane %v4768_v2, 7  ;;  %v1440_v36 = vmul.f32 %v5214_v7, %v5208_v9  ;;  %v1441_v30 = vmul.f32 %v5214_v7, %v5040_v20  ;;  %v1522_v11 = vrot.slane %v9498_v18, 7  ;;  %v9500_v2 = vld [vmem:[#allocation29_spill] sm:$0xff] }
 0x220   : > { %9497 = vst [vmem:[#allocation47_spill] sm:$0xff] %v5232_v55  ;;  %v1523_v21 = vrot.slane %v9499_v42, 7  ;;  %v1420_v45 = vadd.f32 %v1404_v51, %v1384_v16  ;;  %v1422_v54 = vadd.f32 %v1406_v48, %v1386_v52  ;;  %v1442_v37 = vmul.f32 %v5214_v7, %v5228_v47 }
 0x221   : > { %v1443_v0 = vmul.f32 %v5214_v7, %v5048_v46  ;;  %v1423_v38 = vadd.f32 %v1407_v60, %v1387_v24  ;;  %v1524_v13 = vrot.slane %v9500_v2, 7  ;;  %v1525_v9 = vrot.slane %v9501_v6, 7 }
 0x222   : > { %v1526_v25 = vrot.slane %v4756_v59, 7  ;;  %v1527_v20 = vrot.slane %v4765_v1, 7  ;;  %v1528_v18 = vrot.slane %v4776_v8, 7  ;;  %v5253_v16 = vadd.s32 4294967295, %v4714_v4 }
 0x223   : > { %v1537_v52 = vsel %vm1536_vm4, %v1508_v22, %v1522_v11  ;;  %v1538_v24 = vsel %vm1536_vm4, %v1509_v17, %v1523_v21  ;;  %v5261_v51 = vsel %vm1536_vm4, %v1510_v15, %v1524_v13  ;;  %v9503_v48 = vrot.slane %v4744_v53, 7 }
 0x224   : > { %9502 = vst [vmem:[#allocation70_spill] sm:$0xff] %v5253_v16  ;;  %v5271_v7 = vsel %vm1218_vm3, %v1209_v31, 0.0  ;;  %v9506_v8 = vrot.slane %v4753_v58, 7  ;;  %v5281_v59 = vsel %vm1536_vm4, %v1513_v49, %v1527_v20  ;;  %v5285_v6 = vsel %vm1536_vm4, %v1514_v33, %v1528_v18 }
 0x225   : > { %v5267_v60 = vsel %vm1536_vm4, %v9503_v48, %v1525_v9  ;;  %9505 = vst [vmem:[#allocation72_spill] sm:$0xff] %v5271_v7  ;;  %9508 = vst [vmem:[#allocation74_spill] sm:$0xff] %v5281_v59  ;;  %v9510_v48 = vrot.slane %v4908_v62, 6  ;;  %v9511_v43 = vrot.slane %v4905_v61, 6  ;;  %v1477_v2 = vmul.f32 %v5232_v55, %v5048_v46 }
 0x226   : > { %9504 = vst [vmem:[#allocation71_spill] sm:$0xff] %v5267_v60  ;;  %v5277_v1 = vsel %vm1536_vm4, %v9506_v8, %v1526_v25  ;;  %9509 = vst [vmem:[#allocation75_spill] sm:$0xff] %v5285_v6  ;;  %v1476_v8 = vmul.f32 %v5232_v55, %v5228_v47  ;;  %v1478_v42 = vmul.f32 %v5232_v55, %v5271_v7  ;;  %vm1567_vm5 = vcmp.ge.s32.totalorder %v5253_v16, 0 }
 0x227   : > { %9507 = vst [vmem:[#allocation73_spill] sm:$0xff] %v5277_v1  ;;  %v5293_v31 = vsel %vm1187_vm2, %v9511_v43, %v9510_v48  ;;  %v1456_v59 = vadd.f32 %v1440_v36, %v1420_v45  ;;  %v1457_v3 = vadd.f32 %v1441_v30, %v1421_v35  ;;  %v1458_v6 = vadd.f32 %v1442_v37, %v1422_v54 }
 0x228   : > { %9512 = vst [vmem:[#allocation76_spill] sm:$0xff] %v5293_v31  ;;  %v1551_v41 = vsel %vm1536_vm4, %v1522_v11, %v1508_v22  ;;  %v1459_v39 = vadd.f32 %v1443_v0, %v1423_v38  ;;  %v1479_v43 = vmul.f32 %v5232_v55, %v5293_v31  ;;  %v1607_v48 = vsub.s32 2, %v4714_v4 }
 0x229   : > { %v5309_v46 = vmul.f32 %v4914_v63, %v4975_v12  ;;  %v5313_v36 = vadd.f32 %v5155_v50, %v5141_v56  ;;  %v5316_v54 = vadd.f32 %v1095_v57, %v5157_v34  ;;  %v1552_v0 = vsel %vm1536_vm4, %v1523_v21, %v1509_v17 }
 0x22a   : > { %v5322_v22 = vadd.f32 %v5191_v19, %v5159_v29  ;;  %v5326_v38 = vmul.f32 %v5081_v26, %v5109_v28  ;;  %v1515_v11 = vrot.slane %v4905_v61, 7  ;;  %v1577_v56 = vsel %vm1567_vm5, %v1551_v41, 0.0 }
 0x22b   : > { %9513 = vst [vmem:[#allocation77_spill] sm:$0xff] %v5309_v46  ;;  %9514 = vst [vmem:[#allocation78_spill] sm:$0xff] %v5313_v36  ;;  %v1492_v50 = vadd.f32 %v1476_v8, %v1456_v59  ;;  %v1493_v35 = vadd.f32 %v1477_v2, %v1457_v3  ;;  %v1494_v34 = vadd.f32 %v1478_v42, %v1458_v6  ;;  %v1579_v29 = vsel %vm1567_vm5, %v1552_v0, 0.0  ;;  %v9543_v36 = vld [vmem:[#allocation62_spill] sm:$0xff] }
 0x22c   : > { %9515 = vst [vmem:[#allocation79_spill] sm:$0xff] %v5316_v54  ;;  %9516 = vst [vmem:[#allocation80_spill] sm:$0xff] %v5322_v22  ;;  %v5332_v57 = vrot.slane %v4783_v14, %v1607_v48  ;;  %v1495_v17 = vadd.f32 %v1479_v43, %v1459_v39  ;;  %v1553_v21 = vsel %vm1536_vm4, %v1524_v13, %v1510_v15  ;;  %v9520_v6 = vrot.slane %v4744_v53, 7  ;;  %v9547_v22 = vld [vmem:[#allocation65_spill] sm:$0xff] }
 0x22d   : > { %9517 = vst [vmem:[#allocation81_spill] sm:$0xff] %v5326_v38  ;;  %v5339_v28 = vrot.slane %v4807_v23, %v1607_v48  ;;  %v9521_v13 = vrot.slane %v4753_v58, 7  ;;  %v1556_v15 = vsel %vm1536_vm4, %v1527_v20, %v1513_v49  ;;  %v1557_v42 = vsel %vm1536_vm4, %v1528_v18, %v1514_v33 }
 0x22e   : > { %9518 = vst [vmem:[#allocation82_spill] sm:$0xff] %v5332_v57  ;;  %v1609_v19 = vmul.f32 %v5332_v57, %v1577_v56  ;;  %v1610_v41 = vmul.f32 %v5332_v57, %v1537_v52  ;;  %v1611_v59 = vmul.f32 %v5332_v57, %v1579_v29  ;;  %v1612_v2 = vmul.f32 %v5332_v57, %v1538_v24 }
 0x22f   : > { %9519 = vst [vmem:[#allocation83_spill] sm:$0xff] %v5339_v28  ;;  %v1554_v39 = vsel %vm1536_vm4, %v1525_v9, %v9520_v6  ;;  %v1555_v3 = vsel %vm1536_vm4, %v1526_v25, %v9521_v13  ;;  %v5359_v30 = vsel %vm1567_vm5, %v1553_v21, 0.0  ;;  %v5362_v52 = vrot.slane %v4846_v40, %v1607_v48 }
 0x230   : > { %v1625_v45 = vadd.f32 %v1609_v19, %v1492_v50  ;;  %v1626_v37 = vadd.f32 %v1610_v41, %v1493_v35  ;;  %v1627_v9 = vadd.f32 %v1611_v59, %v1494_v34  ;;  %v1628_v8 = vadd.f32 %v1612_v2, %v1495_v17 }
 0x231   : > { %9522 = vst [vmem:[#allocation84_spill] sm:$0xff] %v5362_v52  ;;  %v1645_v43 = vmul.f32 %v5339_v28, %v1579_v29  ;;  %v1646_v25 = vmul.f32 %v5339_v28, %v1538_v24  ;;  %v1647_v20 = vmul.f32 %v5339_v28, %v5359_v30  ;;  %v1648_v49 = vmul.f32 %v5339_v28, %v5261_v51 }
 0x232   : > { %v5371_v33 = vrot.slane %v4870_v10, %v1607_v48  ;;  %v5374_v18 = vsub.s32 3, %v4714_v4  ;;  %v5378_v0 = vsel %vm1567_vm5, %v1554_v39, 0.0  ;;  %v5382_v56 = vsel %vm1567_vm5, %v1555_v3, 0.0 }
 0x233   : > { %v1661_v24 = vadd.f32 %v1645_v43, %v1625_v45  ;;  %v5385_v50 = vrot.slane %v4895_v44, %v1607_v48  ;;  %v1662_v35 = vadd.f32 %v1646_v25, %v1626_v37  ;;  %v1663_v34 = vadd.f32 %v1647_v20, %v1627_v9 }
 0x234   : > { %9523 = vst [vmem:[#allocation85_spill] sm:$0xff] %v5371_v33  ;;  %v1664_v17 = vadd.f32 %v1648_v49, %v1628_v8  ;;  %v1681_v21 = vmul.f32 %v5362_v52, %v5359_v30  ;;  %v1682_v29 = vmul.f32 %v5362_v52, %v5261_v51  ;;  %v1683_v19 = vmul.f32 %v5362_v52, %v5378_v0 }
 0x235   : > { %9524 = vst [vmem:[#allocation86_spill] sm:$0xff] %v5385_v50  ;;  %v1684_v41 = vmul.f32 %v5362_v52, %v5267_v60  ;;  %v5396_v59 = vrot.slane %v9491_v5, %v1607_v48  ;;  %v1717_v6 = vmul.f32 %v5371_v33, %v5378_v0  ;;  %v1718_v39 = vmul.f32 %v5371_v33, %v5267_v60 }
 0x236   : > { %v1697_v2 = vadd.f32 %v1681_v21, %v1661_v24  ;;  %v5403_v13 = vrot.slane %v9496_v27, %v1607_v48  ;;  %v1698_v3 = vadd.f32 %v1682_v29, %v1662_v35  ;;  %v1699_v45 = vadd.f32 %v1683_v19, %v1663_v34 }
 0x237   : > { %9525 = vst [vmem:[#allocation87_spill] sm:$0xff] %v5396_v59  ;;  %v1700_v37 = vadd.f32 %v1684_v41, %v1664_v17  ;;  %v1719_v9 = vmul.f32 %v5371_v33, %v5382_v56  ;;  %v1720_v8 = vmul.f32 %v5371_v33, %v5277_v1  ;;  %v1753_v25 = vmul.f32 %v5385_v50, %v5382_v56 }
 0x238   : > { %9526 = vst [vmem:[#allocation88_spill] sm:$0xff] %v5403_v13  ;;  %v1733_v43 = vadd.f32 %v1717_v6, %v1697_v2  ;;  %v1754_v20 = vmul.f32 %v5385_v50, %v5277_v1  ;;  %v1529_v49 = vrot.slane %v4908_v62, 7  ;;  %v5416_v48 = vsel %vm1567_vm5, %v1556_v15, 0.0  ;;  %v9530_v62 = vld [vmem:[#allocation63_spill] sm:$0xff]  ;;  %v9533_v6 = vld [vmem:[#allocation66_spill] sm:$0xff] }
 0x239   : > { %9527 = vst [vmem:[#allocation89_spill] sm:$0xff] %v5416_v48  ;;  %v1734_v24 = vadd.f32 %v1718_v39, %v1698_v3  ;;  %v1735_v35 = vadd.f32 %v1719_v9, %v1699_v45  ;;  %v1736_v34 = vadd.f32 %v1720_v8, %v1700_v37  ;;  %v1789_v21 = vmul.f32 %v5396_v59, %v5416_v48  ;;  %v9534_v3 = vld [vmem:[#allocation54_spill] sm:$0xff]  ;;  %v9535_v9 = vld [vmem:[#allocation60_spill] sm:$0xff] }
 0x23a   : > { %v1769_v17 = vadd.f32 %v1753_v25, %v1733_v43  ;;  %v5422_v29 = vrot.slane %v4783_v14, %v5374_v18  ;;  %v5426_v19 = vmul.f32 %v5081_v26, %v5016_v32  ;;  %v5430_v41 = vmul.f32 %v5081_v26, %v9530_v62  ;;  %v9537_v43 = vld [vmem:[#allocation53_spill] sm:$0xff] }
 0x23b   : > { %v5434_v15 = vsel %vm1567_vm5, %v1557_v42, 0.0  ;;  %v1770_v2 = vadd.f32 %v1754_v20, %v1734_v24  ;;  %v5438_v39 = vmul.f32 %v5081_v26, %v9533_v6  ;;  %v5442_v45 = vmul.f32 %v5081_v26, %v9534_v3  ;;  %v9540_v20 = vld [vmem:[#allocation68_spill] sm:$0xff] }
 0x23c   : > { %9528 = vst [vmem:[#allocation90_spill] sm:$0xff] %v5422_v29  ;;  %9529 = vst [vmem:[#allocation91_spill] sm:$0xff] %v5426_v19  ;;  %v1805_v37 = vadd.f32 %v1789_v21, %v1769_v17  ;;  %v1825_v32 = vmul.f32 %v5403_v13, %v5434_v15  ;;  %v5448_v8 = vmul.f32 %v9535_v9, %v9530_v62  ;;  %v9541_v17 = vld [vmem:[#allocation55_spill] sm:$0xff] }
 0x23d   : > { %9531 = vst [vmem:[#allocation63_spill] sm:$0xff] %v5430_v41  ;;  %9532 = vst [vmem:[#allocation92_spill] sm:$0xff] %v5434_v15  ;;  %v5452_v42 = vmul.f32 %v9535_v9, %v9537_v43  ;;  %v5456_v25 = vmul.f32 %v9535_v9, %v9533_v6  ;;  %v5460_v24 = vmul.f32 %v9535_v9, %v9540_v20  ;;  %v9542_v43 = vld [vmem:[#allocation23_spill] sm:$0xff] }
 0x23e   : > { %9536 = vst [vmem:[#allocation66_spill] sm:$0xff] %v5448_v8  ;;  %v5464_v21 = vmul.f32 %v9535_v9, %v9541_v17  ;;  %v1558_v62 = vsel %vm1536_vm4, %v1529_v49, %v1515_v11  ;;  %v1841_v46 = vadd.f32 %v1825_v32, %v1805_v37  ;;  %v1861_v41 = vmul.f32 %v5422_v29, %v9542_v43 }
 0x23f   : > { %9538 = vst [vmem:[#allocation93_spill] sm:$0xff] %v5452_v42  ;;  %9539 = vst [vmem:[#allocation94_spill] sm:$0xff] %v5456_v25  ;;  %v5474_v25 = vmul.f32 %v9543_v36, %v9533_v6  ;;  %v5478_v42 = vmul.f32 %v9543_v36, %v9534_v3  ;;  %v5482_v19 = vmul.f32 %v9543_v36, %v9540_v20 }
 0x240   : > { %v5486_v8 = vmul.f32 %v9547_v22, %v9540_v20  ;;  %v5490_v37 = vmul.f32 %v9547_v22, %v9541_v17  ;;  %v5494_v6 = vmul.f32 %v9547_v22, %v5228_v47  ;;  %v5500_v32 = vsel %vm1536_vm4, %v1515_v11, %v1529_v49 }
 0x241   : > { %9544 = vst [vmem:[#allocation95_spill] sm:$0xff] %v5474_v25  ;;  %9545 = vst [vmem:[#allocation96_spill] sm:$0xff] %v5478_v42  ;;  %v1877_v42 = vadd.f32 %v1861_v41, %v1841_v46  ;;  %v5517_v61 = vmul.f32 %v5332_v57, %v5359_v30  ;;  %v5521_v11 = vmul.f32 %v5332_v57, %v5261_v51  ;;  %v9565_v25 = vld [vmem:[#allocation28_spill] sm:$0xff] }
 0x242   : > { %9546 = vst [vmem:[#allocation97_spill] sm:$0xff] %v5482_v19  ;;  %9548 = vst [vmem:[#allocation98_spill] sm:$0xff] %v5486_v8  ;;  %v5505_v19 = vsel %vm1567_vm5, %v1558_v62, 0.0  ;;  %v5525_v49 = vmul.f32 %v5332_v57, %v5378_v0  ;;  %v5529_v46 = vrot.slane %v4870_v10, %v5374_v18  ;;  %v5533_v41 = vmul.f32 %v5332_v57, %v5382_v56  ;;  %v9561_v62 = vld [vmem:[#allocation25_spill] sm:$0xff] }
 0x243   : > { %9549 = vst [vmem:[#allocation99_spill] sm:$0xff] %v5490_v37  ;;  %9550 = vst [vmem:[#allocation100_spill] sm:$0xff] %v5494_v6  ;;  %v5509_v37 = vrot.slane %v4807_v23, %v5374_v18  ;;  %v5513_v6 = vrot.slane %v4846_v40, %v5374_v18  ;;  %v5537_v30 = vmul.f32 %v5332_v57, %v5277_v1 }
 0x244   : > { %9551 = vst [vmem:[#allocation101_spill] sm:$0xff] %v5500_v32  ;;  %9552 = vst [vmem:[#allocation102_spill] sm:$0xff] %v5505_v19  ;;  %v5543_v3 = vrot.slane %v4895_v44, %v5374_v18  ;;  %v1969_v9 = vmul.f32 %v5529_v46, %v4744_v53  ;;  %v5569_v17 = vmul.f32 %v5339_v28, %v5382_v56 }
 0x245   : > { %9553 = vst [vmem:[#allocation103_spill] sm:$0xff] %v5509_v37  ;;  %9554 = vst [vmem:[#allocation104_spill] sm:$0xff] %v5513_v6  ;;  %v1897_v51 = vmul.f32 %v5509_v37, %v9561_v62  ;;  %v1933_v38 = vmul.f32 %v5513_v6, %v9565_v25 }
 0x246   : > { %9555 = vst [vmem:[#allocation105_spill] sm:$0xff] %v5517_v61  ;;  %9556 = vst [vmem:[#allocation106_spill] sm:$0xff] %v5521_v11  ;;  %v1755_v11 = vmul.f32 %v5385_v50, %v5416_v48  ;;  %v9564_v61 = vld [vmem:[#allocation74_spill] sm:$0xff] }
 0x247   : > { %9557 = vst [vmem:[#allocation107_spill] sm:$0xff] %v5525_v49  ;;  %9558 = vst [vmem:[#allocation108_spill] sm:$0xff] %v5529_v46  ;;  %v5547_v49 = vmul.f32 %v5339_v28, %v5378_v0  ;;  %v1756_v8 = vmul.f32 %v5385_v50, %v9564_v61  ;;  %v1790_v54 = vmul.f32 %v5396_v59, %v9564_v61 }
 0x248   : > { %9559 = vst [vmem:[#allocation109_spill] sm:$0xff] %v5533_v41  ;;  %9560 = vst [vmem:[#allocation110_spill] sm:$0xff] %v5537_v30  ;;  %v1913_v57 = vadd.f32 %v1897_v51, %v1877_v42  ;;  %v5561_v0 = vrot.slane %v9491_v5, %v5374_v18  ;;  %v5573_v26 = vmul.f32 %v5339_v28, %v9564_v61 }
 0x249   : > { %9562 = vst [vmem:[#allocation111_spill] sm:$0xff] %v5543_v3  ;;  %9563 = vst [vmem:[#allocation112_spill] sm:$0xff] %v5547_v49  ;;  %v5565_v49 = vmul.f32 %v5339_v28, %v5267_v60  ;;  %v5577_v42 = vmul.f32 %v5362_v52, %v5382_v56  ;;  %v5581_v51 = vmul.f32 %v5362_v52, %v5277_v1  ;;  %v9574_v1 = vld [vmem:[#allocation34_spill] sm:$0xff] }
 0x24a   : > { %9566 = vst [vmem:[#allocation113_spill] sm:$0xff] %v5561_v0  ;;  %9568 = vst [vmem:[#allocation115_spill] sm:$0xff] %v5569_v17  ;;  %v1949_v20 = vadd.f32 %v1933_v38, %v1913_v57  ;;  %v2005_v60 = vmul.f32 %v5543_v3, %v4753_v58  ;;  %v1771_v17 = vadd.f32 %v1755_v11, %v1735_v35  ;;  %v9576_v11 = vld [vmem:[#allocation26_spill] sm:$0xff]  ;;  %v9580_v3 = vld [vmem:[#allocation33_spill] sm:$0xff] }
 0x24b   : > { %9567 = vst [vmem:[#allocation114_spill] sm:$0xff] %v5565_v49  ;;  %9569 = vst [vmem:[#allocation116_spill] sm:$0xff] %v5573_v26  ;;  %v5587_v49 = vrot.slane %v9496_v27, %v5374_v18  ;;  %v1772_v30 = vadd.f32 %v1756_v8, %v1736_v34  ;;  %v1791_v61 = vmul.f32 %v5396_v59, %v5434_v15  ;;  %v9573_v26 = vld [vmem:[#allocation75_spill] sm:$0xff]  ;;  %v9575_v34 = vld [vmem:[#allocation24_spill] sm:$0xff] }
 0x24c   : > { %9570 = vst [vmem:[#allocation117_spill] sm:$0xff] %v5577_v42  ;;  %9571 = vst [vmem:[#allocation118_spill] sm:$0xff] %v5581_v51  ;;  %v1792_v56 = vmul.f32 %v5396_v59, %v9573_v26  ;;  %v5593_v42 = vadd.f32 %v1790_v54, %v1770_v2  ;;  %v5597_v38 = vmul.f32 %v5403_v13, %v9573_v26  ;;  %v9577_v59 = vld [vmem:[#allocation36_spill] sm:$0xff]  ;;  %v9578_v26 = vld [vmem:[#allocation29_spill] sm:$0xff]  ;;  %v9583_v52 = vrot.slane %v9575_v34, 1 }
 0x24d   : > { %9572 = vst [vmem:[#allocation119_spill] sm:$0xff] %v5587_v49  ;;  %v1985_v57 = vadd.f32 %v1969_v9, %v1949_v20  ;;  %v2041_v51 = vmul.f32 %v5561_v0, %v9574_v1  ;;  %v2077_v54 = vmul.f32 %v5587_v49, %v9577_v59  ;;  %v9579_v8 = vld [vmem:[#allocation31_spill] sm:$0xff]  ;;  %v9582_v2 = vld [vmem:[#allocation37_spill] sm:$0xff]  ;;  %v9584_v9 = vrot.slane %v9542_v43, 1 }
 0x24e   : > { %v9581_v49 = vld [vmem:[#allocation35_spill] sm:$0xff]  ;;  %v9585_v20 = vrot.slane %v9576_v11, 1  ;;  %v1807_v35 = vadd.f32 %v1791_v61, %v1771_v17  ;;  %v5659_v17 = vmul.f32 %v5422_v29, %v9575_v34  ;;  %v9605_v28 = vrot.slane %v9577_v59, 1 }
 0x24f   : > { %v2021_v46 = vadd.f32 %v2005_v60, %v1985_v57  ;;  %v2208_v57 = vsub.s32 4, %v4714_v4  ;;  %v2138_v18 = vsel %vm2137_vm6, %v9584_v9, %v9583_v52  ;;  %v1827_v52 = vmul.f32 %v5403_v13, %v5505_v19 }
 0x250   : > { %v5645_v9 = vmul.f32 %v5403_v13, %v5500_v32  ;;  %v9595_v32 = vrot.slane %v9579_v8, 1  ;;  %v9596_v13 = vrot.slane %v4744_v53, 1 }
 0x251   : > { %v2057_v0 = vadd.f32 %v2041_v51, %v2021_v46  ;;  %v9586_v46 = vrot.slane %v9561_v62, 1  ;;  %v5633_v33 = vrot.slane %v4783_v14, %v2208_v57  ;;  %v5636_v16 = vrot.slane %v4807_v23, %v2208_v57 }
 0x252   : > { %v5639_v50 = vrot.slane %v4846_v40, %v2208_v57  ;;  %v5663_v19 = vrot.slane %v4870_v10, %v2208_v57  ;;  %v5671_v15 = vsel %vm2137_vm6, %v9596_v13, %v9595_v32  ;;  %v9604_v32 = vrot.slane %v9582_v2, 1 }
 0x253   : > { %v5630_v51 = vsel %vm2137_vm6, %v9586_v46, %v9585_v20  ;;  %v2093_v60 = vadd.f32 %v2077_v54, %v2057_v0  ;;  %9588 = vst [vmem:[#allocation121_spill] sm:$0xff] %v5633_v33  ;;  %9589 = vst [vmem:[#allocation122_spill] sm:$0xff] %v5636_v16  ;;  %v9591_v20 = vrot.slane %v9578_v26, 1  ;;  %v9592_v0 = vrot.slane %v9565_v25, 1 }
 0x254   : > { %9587 = vst [vmem:[#allocation120_spill] sm:$0xff] %v5630_v51  ;;  %9590 = vst [vmem:[#allocation123_spill] sm:$0xff] %v5639_v50  ;;  %v5655_v46 = vadd.f32 %v1792_v56, %v1772_v30  ;;  %v2210_v61 = vmul.f32 %v5633_v33, %v2138_v18  ;;  %v9598_v30 = vrot.slane %v9580_v3, 1  ;;  %v9599_v56 = vrot.slane %v4753_v58, 1 }
 0x255   : > { %v5653_v54 = vsel %vm2137_vm6, %v9592_v0, %v9591_v20  ;;  %9594 = vst [vmem:[#allocation125_spill] sm:$0xff] %v5663_v19  ;;  %9597 = vst [vmem:[#allocation126_spill] sm:$0xff] %v5671_v15  ;;  %v9601_v18 = vrot.slane %v9581_v49, 1  ;;  %v9602_v0 = vrot.slane %v9574_v1, 1  ;;  %v2246_v13 = vmul.f32 %v5636_v16, %v5630_v51 }
 0x256   : > { %9593 = vst [vmem:[#allocation124_spill] sm:$0xff] %v5653_v54  ;;  %v5679_v20 = vsel %vm2137_vm6, %v9599_v56, %v9598_v30  ;;  %v5697_v48 = vsel %vm2137_vm6, %v9605_v28, %v9604_v32  ;;  %v2226_v30 = vadd.f32 %v2210_v61, %v2093_v60  ;;  %v2282_v56 = vmul.f32 %v5639_v50, %v5653_v54 }
 0x257   : > { %9600 = vst [vmem:[#allocation127_spill] sm:$0xff] %v5679_v20  ;;  %v5687_v41 = vsel %vm2137_vm6, %v9602_v0, %v9601_v18  ;;  %9606 = vst [vmem:[#allocation129_spill] sm:$0xff] %v5697_v48  ;;  %v5702_v33 = vrot.slane %v4895_v44, %v2208_v57  ;;  %v5705_v18 = vrot.slane %v9491_v5, %v2208_v57  ;;  %v9616_v50 = vrot.slane %v9565_v25, 2 }
 0x258   : > { %9603 = vst [vmem:[#allocation128_spill] sm:$0xff] %v5687_v41  ;;  %v5708_v0 = vrot.slane %v9496_v27, %v2208_v57  ;;  %v2262_v55 = vadd.f32 %v2246_v13, %v2226_v30  ;;  %v2318_v28 = vmul.f32 %v5663_v19, %v5671_v15  ;;  %v2557_v57 = vsub.s32 5, %v4714_v4 }
 0x259   : > { %9607 = vst [vmem:[#allocation130_spill] sm:$0xff] %v5702_v33  ;;  %9608 = vst [vmem:[#allocation131_spill] sm:$0xff] %v5705_v18  ;;  %v2354_v51 = vmul.f32 %v5702_v33, %v5679_v20  ;;  %v2390_v30 = vmul.f32 %v5705_v18, %v5687_v41  ;;  %v9611_v18 = vrot.slane %v9575_v34, 2  ;;  %v9615_v13 = vrot.slane %v9578_v26, 2  ;;  %v5868_v34 = vld [vmem:[%s4716_s1 + $0x38] sm:$0xff] }
 0x25a   : > { %9609 = vst [vmem:[#allocation132_spill] sm:$0xff] %v5708_v0  ;;  %v2298_v6 = vadd.f32 %v2282_v56, %v2262_v55  ;;  %v2426_v32 = vmul.f32 %v5708_v0, %v5697_v48  ;;  %v5733_v16 = vrot.slane %v4783_v14, %v2557_v57  ;;  %v9612_v0 = vrot.slane %v9542_v43, 2  ;;  %9640 = vst [vmem:[#allocation149_spill] sm:$0xff] %v5868_v34  ;;  %v5943_v41 = vld [vmem:[%s4716_s1 + $0x98] sm:$0xff] }
 0x25b   : > { %v5757_v56 = vsel %vm2486_vm7, %v9616_v50, %v9615_v13  ;;  %v5766_v55 = vrot.slane %v4870_v10, %v2557_v57  ;;  %v5779_v50 = vadd.f32 %v5597_v38, %v5593_v42  ;;  %v9624_v13 = vrot.slane %v9579_v8, 2 }
 0x25c   : > { %v2334_v54 = vadd.f32 %v2318_v28, %v2298_v6  ;;  %9610 = vst [vmem:[#allocation133_spill] sm:$0xff] %v5733_v16  ;;  %v2487_v61 = vsel %vm2486_vm7, %v9612_v0, %v9611_v18  ;;  %v9613_v6 = vrot.slane %v9576_v11, 2  ;;  %v9614_v28 = vrot.slane %v9561_v62, 2  ;;  %9617 = vst [vmem:[#allocation134_spill] sm:$0xff] %v5757_v56 }
 0x25d   : > { %v5760_v18 = vrot.slane %v4807_v23, %v2557_v57  ;;  %v5763_v0 = vrot.slane %v4846_v40, %v2557_v57  ;;  %9620 = vst [vmem:[#allocation137_spill] sm:$0xff] %v5766_v55  ;;  %v2559_v25 = vmul.f32 %v5733_v16, %v2487_v61  ;;  %v5790_v11 = vadd.f32 %v1827_v52, %v1807_v35  ;;  %v5809_v35 = vld [vmem:[%s4716_s1] sm:$0xff]  ;;  %v5837_v52 = vld [vmem:[%s4716_s1 + $0x10] sm:$0xff] }
 0x25e   : > { %v5749_v60 = vsel %vm2486_vm7, %v9614_v28, %v9613_v6  ;;  %v2370_v14 = vadd.f32 %v2354_v51, %v2334_v54  ;;  %v5769_v6 = vrot.slane %v4895_v44, %v2557_v57  ;;  %v5772_v51 = vrot.slane %v9491_v5, %v2557_v57  ;;  %9633 = vst [vmem:[#allocation144_spill] sm:$0xff] %v5809_v35 }
 0x25f   : > { %9618 = vst [vmem:[#allocation135_spill] sm:$0xff] %v5760_v18  ;;  %9619 = vst [vmem:[#allocation136_spill] sm:$0xff] %v5763_v0  ;;  %v5775_v54 = vrot.slane %v9496_v27, %v2557_v57  ;;  %v9625_v28 = vrot.slane %v4744_v53, 2  ;;  %v9627_v57 = vrot.slane %v9580_v3, 2  ;;  %v9628_v62 = vrot.slane %v4753_v58, 2  ;;  %v5849_v3 = vld [vmem:[%s4716_s1 + $0x40] sm:$0xff] }
 0x260   : > { %9621 = vst [vmem:[#allocation138_spill] sm:$0xff] %v5769_v6  ;;  %9622 = vst [vmem:[#allocation139_spill] sm:$0xff] %v5772_v51  ;;  %v2406_v23 = vadd.f32 %v2390_v30, %v2370_v14  ;;  %v9630_v38 = vrot.slane %v9581_v49, 2  ;;  %v9631_v30 = vrot.slane %v9574_v1, 2  ;;  %v5845_v49 = vld [vmem:[%s4716_s1 + $0x30] sm:$0xff]  ;;  %v5857_v58 = vld [vmem:[%s4716_s1 + $0x18] sm:$0xff] }
 0x261   : > { %9623 = vst [vmem:[#allocation140_spill] sm:$0xff] %v5775_v54  ;;  %v5787_v26 = vsel %vm2486_vm7, %v9625_v28, %v9624_v13  ;;  %v5798_v42 = vsel %vm2486_vm7, %v9628_v62, %v9627_v57  ;;  %v9634_v13 = vrot.slane %v9582_v2, 2  ;;  %v9635_v62 = vrot.slane %v9577_v59, 2  ;;  %v5841_v59 = vld [vmem:[%s4716_s1 + $0x20] sm:$0xff]  ;;  %9637 = vst [vmem:[#allocation146_spill] sm:$0xff] %v5845_v49  ;;  %v5864_v53 = vld [vmem:[%s4716_s1 + $0x28] sm:$0xff] }
 0x262   : > { %9626 = vst [vmem:[#allocation141_spill] sm:$0xff] %v5787_v26  ;;  %9629 = vst [vmem:[#allocation142_spill] sm:$0xff] %v5798_v42  ;;  %v5806_v14 = vsel %vm2486_vm7, %v9631_v30, %v9630_v38  ;;  %v2442_v61 = vadd.f32 %v2426_v32, %v2406_v23  ;;  %v2595_v57 = vmul.f32 %v5760_v18, %v5749_v60  ;;  %v5861_v8 = vsub.s32 6, %v4714_v4  ;;  %v5873_v2 = vld [vmem:[%s4716_s1 + $0x80] sm:$0xff] }
 0x263   : > { %9632 = vst [vmem:[#allocation143_spill] sm:$0xff] %v5806_v14  ;;  %v5818_v28 = vsel %vm2486_vm7, %v9635_v62, %v9634_v13  ;;  %v2631_v38 = vmul.f32 %v5763_v0, %v5757_v56  ;;  %v2667_v30 = vmul.f32 %v5766_v55, %v5787_v26  ;;  %v2703_v32 = vmul.f32 %v5769_v6, %v5798_v42  ;;  %v5888_v6 = vld [vmem:[%s4716_s1 + $0x58] sm:$0xff]  ;;  %v5892_v55 = vld [vmem:[%s4716_s1 + $0x90] sm:$0xff]  ;;  %v3987_v42 = vld [vmem:[#allocation9 + $0x8] sm:$0x7f] }
 0x264   : > { %9636 = vst [vmem:[#allocation145_spill] sm:$0xff] %v5818_v28  ;;  %v5830_v23 = vmul.f32 %v5772_v51, %v5806_v14  ;;  %v5834_v13 = vmul.f32 %v5775_v54, %v5818_v28  ;;  %v2575_v62 = vadd.f32 %v2559_v25, %v2442_v61  ;;  %9638 = vst [vmem:[#allocation147_spill] sm:$0xff] %v5849_v3  ;;  %v5853_v61 = vld [vmem:[%s4716_s1 + $0x8] sm:$0xff]  ;;  %v5876_v54 = vld [vmem:[%s4716_s1 + $0x50] sm:$0xff]  ;;  %v9648_v33 = vrot.slane %v5809_v35, 3 }
 0x265   : > { %9639 = vst [vmem:[#allocation148_spill] sm:$0xff] %v5853_v61  ;;  %9641 = vst [vmem:[#allocation150_spill] sm:$0xff] %v5876_v54  ;;  %v5880_v51 = vld [vmem:[%s4716_s1 + $0x60] sm:$0xff]  ;;  %v5895_v28 = vld [vmem:[%s4716_s1 + $0x68] sm:$0xff]  ;;  %v5902_v25 = vrot.slane %v3987_v42, %v5861_v8  ;;  %v9647_v43 = vrot.slane %v5853_v61, 3  ;;  %v9650_v26 = vrot.slane %v5837_v52, 3  ;;  %v5920_v42 = vrot.slane %v4846_v40, %v5861_v8 }
 0x266   : > { %v2611_v1 = vadd.f32 %v2595_v57, %v2575_v62  ;;  %9642 = vst [vmem:[#allocation151_spill] sm:$0xff] %v5880_v51  ;;  %v5884_v62 = vld [vmem:[%s4716_s1 + $0x48] sm:$0xff]  ;;  %9644 = vst [vmem:[#allocation153_spill] sm:$0xff] %v5888_v6  ;;  %v3986_v14 = vld [vmem:[#allocation9] sm:$0x7f]  ;;  %v818_v61 = vrot.slane %v5873_v2, 5 }
 0x267   : > { %9643 = vst [vmem:[#allocation152_spill] sm:$0xff] %v5884_v62  ;;  %v5899_v57 = vrot.slane %v3986_v14, %v5861_v8  ;;  %9646 = vst [vmem:[#allocation155_spill] sm:$0xff] %v5902_v25  ;;  %v9653_v35 = vrot.slane %v5864_v53, 3  ;;  %v9654_v48 = vrot.slane %v5841_v59, 3  ;;  %v5940_v40 = vld [vmem:[%s4716_s1 + $0x88] sm:$0xff]  ;;  %v9660_v20 = vrot.slane %v5884_v62, 3 }
 0x268   : > { %v2647_v0 = vadd.f32 %v2631_v38, %v2611_v1  ;;  %v2836_v1 = vsel %vm2835_vm8, %v9648_v33, %v9647_v43  ;;  %v9649_v38 = vrot.slane %v5857_v58, 3  ;;  %9652 = vst [vmem:[#allocation157_spill] sm:$0xff] %v5920_v42  ;;  %v9656_v43 = vrot.slane %v5868_v34, 3 }
 0x269   : > { %9645 = vst [vmem:[#allocation154_spill] sm:$0xff] %v5899_v57  ;;  %v5929_v33 = vsel %vm2835_vm8, %v9654_v48, %v9653_v35  ;;  %v9661_v48 = vrot.slane %v5849_v3, 3  ;;  %v5967_v34 = vrot.slane %v4870_v10, %v5861_v8  ;;  %v5971_v62 = vrot.slane %v4895_v44, %v5861_v8  ;;  %v5974_v3 = vld [vmem:[%s4716_s1 + $0xa8] sm:$0xff] }
 0x26a   : > { %v5916_v14 = vsel %vm2835_vm8, %v9650_v26, %v9649_v38  ;;  %v2683_v19 = vadd.f32 %v2667_v30, %v2647_v0  ;;  %9655 = vst [vmem:[#allocation158_spill] sm:$0xff] %v5929_v33  ;;  %v9657_v26 = vrot.slane %v5845_v49, 3  ;;  %v5946_v0 = vld [vmem:[%s4716_s1 + $0xa0] sm:$0xff]  ;;  %v819_v30 = vrot.slane %v5892_v55, 5 }
 0x26b   : > { %9651 = vst [vmem:[#allocation156_spill] sm:$0xff] %v5916_v14  ;;  %9659 = vst [vmem:[#allocation160_spill] sm:$0xff] %v5946_v0  ;;  %v5955_v35 = vsel %vm2835_vm8, %v9661_v48, %v9660_v20  ;;  %v9663_v49 = vrot.slane %v5888_v6, 3  ;;  %v2908_v48 = vmul.f32 %v5899_v57, %v2836_v1  ;;  %v2944_v6 = vmul.f32 %v5902_v25, %v5916_v14  ;;  %v9669_v1 = vld [vmem:[#allocation52_spill] sm:$0xff]  ;;  %v9670_v57 = vld [vmem:[#allocation43_spill] sm:$0xff] }
 0x26c   : > { %v5937_v38 = vsel %vm2835_vm8, %v9657_v26, %v9656_v43  ;;  %9662 = vst [vmem:[#allocation161_spill] sm:$0xff] %v5955_v35  ;;  %v9664_v43 = vrot.slane %v5876_v54, 3  ;;  %9666 = vst [vmem:[#allocation163_spill] sm:$0xff] %v5967_v34  ;;  %v2719_v20 = vadd.f32 %v2703_v32, %v2683_v19  ;;  %v2980_v10 = vmul.f32 %v5920_v42, %v5929_v33 }
 0x26d   : > { %9658 = vst [vmem:[#allocation159_spill] sm:$0xff] %v5937_v38  ;;  %9667 = vst [vmem:[#allocation164_spill] sm:$0xff] %v5971_v62  ;;  %v832_v44 = vrot.slane %v5940_v40, 5  ;;  %v833_v54 = vrot.slane %v5943_v41, 5  ;;  %v834_v32 = vrot.slane %v5974_v3, 5  ;;  %v1027_v25 = vmul.f32 %v9670_v57, %v9669_v1 }
 0x26e   : > { %v5963_v26 = vsel %vm2835_vm8, %v9664_v43, %v9663_v49  ;;  %v5981_v49 = vrot.slane %v9491_v5, %v5861_v8  ;;  %v820_v43 = vrot.slane %v5946_v0, 5  ;;  %v2755_v19 = vadd.f32 %v5830_v23, %v2719_v20 }
 0x26f   : > { %9665 = vst [vmem:[#allocation162_spill] sm:$0xff] %v5963_v26  ;;  %v1028_v5 = vmul.f32 %v9670_v57, %v4975_v12  ;;  %v5996_v14 = vsel %vm838_vm0, %v818_v61, %v832_v44  ;;  %v6000_v42 = vsel %vm838_vm0, %v819_v30, %v833_v54  ;;  %v861_v33 = vsel %vm838_vm0, %v832_v44, %v818_v61 }
 0x270   : > { %9668 = vst [vmem:[#allocation165_spill] sm:$0xff] %v5981_v49  ;;  %9671 = vst [vmem:[#allocation166_spill] sm:$0xff] %v5996_v14  ;;  %v862_v23 = vsel %vm838_vm0, %v833_v54, %v819_v30  ;;  %v2791_v20 = vadd.f32 %v5834_v13, %v2755_v19  ;;  %v6009_v1 = vsel %vm838_vm0, %v820_v43, %v834_v32  ;;  %v6015_v18 = vsel %vm869_vm1, %v861_v33, 0.0  ;;  %v9678_v13 = vld [vmem:[#allocation58_spill] sm:$0xff]  ;;  %v9679_v30 = vld [vmem:[#allocation61_spill] sm:$0xff] }
 0x271   : > { %9672 = vst [vmem:[#allocation167_spill] sm:$0xff] %v6000_v42  ;;  %9673 = vst [vmem:[#allocation168_spill] sm:$0xff] %v6009_v1  ;;  %v863_v57 = vsel %vm838_vm0, %v834_v32, %v820_v43  ;;  %v6019_v56 = vsel %vm869_vm1, %v862_v23, 0.0  ;;  %v1043_v61 = vadd.f32 %v1027_v25, %v9678_v13  ;;  %v1044_v44 = vadd.f32 %v1028_v5, %v9679_v30  ;;  %v9680_v32 = vld [vmem:[#allocation48_spill] sm:$0xff] }
 0x272   : > { %9675 = vst [vmem:[#allocation169_spill] sm:$0xff] %v6015_v18  ;;  %9676 = vst [vmem:[#allocation170_spill] sm:$0xff] %v6019_v56  ;;  %v6023_v54 = vsel %vm869_vm1, %v863_v57, 0.0  ;;  %v2924_v19 = vadd.f32 %v2908_v48, %v2791_v20  ;;  %v1063_v43 = vmul.f32 %v4914_v63, %v6015_v18  ;;  %v1064_v33 = vmul.f32 %v4914_v63, %v5996_v14  ;;  %v9682_v48 = vld [vmem:[#allocation49_spill] sm:$0xff] }
 0x273   : > { %9677 = vst [vmem:[#allocation171_spill] sm:$0xff] %v6023_v54  ;;  %v1099_v16 = vmul.f32 %v9680_v32, %v6019_v56  ;;  %v3016_v23 = vmul.f32 %v5967_v34, %v5937_v38  ;;  %v6037_v57 = vrot.slane %v9496_v27, %v5861_v8  ;;  %v1100_v25 = vmul.f32 %v9680_v32, %v6000_v42  ;;  %v9793_v34 = vld [vmem:[#allocation149_spill] sm:$0xff] }
 0x274   : > { %v1135_v5 = vmul.f32 %v9682_v48, %v6023_v54  ;;  %v2960_v20 = vadd.f32 %v2944_v6, %v2924_v19  ;;  %v1079_v13 = vadd.f32 %v1063_v43, %v1043_v61  ;;  %v1080_v30 = vadd.f32 %v1064_v33, %v1044_v44 }
 0x275   : > { %9681 = vst [vmem:[#allocation58_spill] sm:$0xff] %v6037_v57  ;;  %v1136_v63 = vmul.f32 %v9682_v48, %v6009_v1  ;;  %v3052_v56 = vmul.f32 %v5971_v62, %v5955_v35  ;;  %v1167_v38 = vrot.slane %v5873_v2, 6  ;;  %v1168_v27 = vrot.slane %v5892_v55, 6  ;;  %v9749_v1 = vld [vmem:[#allocation113_spill] sm:$0xff]  ;;  %v9788_v62 = vld [vmem:[#allocation143_spill] sm:$0xff] }
 0x276   : > { %v1181_v8 = vrot.slane %v5940_v40, 6  ;;  %v2996_v14 = vadd.f32 %v2980_v10, %v2960_v20  ;;  %v1115_v32 = vadd.f32 %v1099_v16, %v1079_v13  ;;  %v1116_v42 = vadd.f32 %v1100_v25, %v1080_v30 }
 0x277   : > { %v1182_v54 = vrot.slane %v5943_v41, 6  ;;  %v9683_v6 = vrot.slane %v5895_v28, 3  ;;  %v9684_v61 = vrot.slane %v5880_v51, 3  ;;  %v3088_v19 = vmul.f32 %v5981_v49, %v5963_v26  ;;  %v9786_v49 = vld [vmem:[#allocation142_spill] sm:$0xff] }
 0x278   : > { %v9005_v33 = vrot.slane %v5974_v3, 6  ;;  %v3032_v10 = vadd.f32 %v3016_v23, %v2996_v14  ;;  %v1151_v16 = vadd.f32 %v1135_v5, %v1115_v32  ;;  %v1152_v25 = vadd.f32 %v1136_v63, %v1116_v42 }
 0x279   : > { %v6057_v44 = vsel %vm2835_vm8, %v9684_v61, %v9683_v6  ;;  %v1210_v20 = vsel %vm1187_vm2, %v1181_v8, %v1167_v38  ;;  %v1844_v13 = vadd.f32 %v5645_v9, %v5655_v46  ;;  %v1863_v30 = vmul.f32 %v5837_v52, %v5422_v29 }
 0x27a   : > { %9685 = vst [vmem:[#allocation61_spill] sm:$0xff] %v6057_v44  ;;  %v1864_v6 = vmul.f32 %v5857_v58, %v5422_v29  ;;  %v3124_v61 = vmul.f32 %v6037_v57, %v6057_v44  ;;  %v3068_v43 = vadd.f32 %v3052_v56, %v3032_v10  ;;  %v1211_v14 = vsel %vm1187_vm2, %v1182_v54, %v1168_v27  ;;  %v9770_v57 = vld [vmem:[#allocation131_spill] sm:$0xff] }
 0x27b   : > { %v1284_v63 = vadd.f32 %v5438_v39, %v1151_v16  ;;  %v1340_v42 = vmul.f32 %v9543_v36, %v5228_v47  ;;  %v1878_v9 = vadd.f32 %v5659_v17, %v5779_v50  ;;  %v9686_v46 = vrot.slane %v5946_v0, 6  ;;  %v9689_v16 = vld [vmem:[#allocation56_spill] sm:$0xff] }
 0x27c   : > { %v6088_v56 = vsel %vm1218_vm3, %v1210_v20, 0.0  ;;  %v1285_v5 = vadd.f32 %v5442_v45, %v1152_v25  ;;  %v3104_v39 = vadd.f32 %v3088_v19, %v3068_v43  ;;  %v1341_v47 = vmul.f32 %v9543_v36, %v9689_v16  ;;  %v9692_v25 = vld [vmem:[#allocation67_spill] sm:$0xff]  ;;  %v9735_v36 = vld [vmem:[#allocation158_spill] sm:$0xff] }
 0x27d   : > { %v1212_v32 = vsel %vm1187_vm2, %v9005_v33, %v9686_v46  ;;  %9688 = vst [vmem:[#allocation172_spill] sm:$0xff] %v6088_v56  ;;  %v1320_v10 = vadd.f32 %v5460_v24, %v1284_v63  ;;  %v1376_v17 = vmul.f32 %v9547_v22, %v5271_v7  ;;  %v1879_v50 = vadd.f32 %v1863_v30, %v5790_v11 }
 0x27e   : > { %v1898_v46 = vmul.f32 %v5857_v58, %v5509_v37  ;;  %v6101_v20 = vsel %vm1218_vm3, %v1211_v14, 0.0  ;;  %v1321_v45 = vadd.f32 %v5464_v21, %v1285_v5  ;;  %v3140_v19 = vadd.f32 %v3124_v61, %v3104_v39 }
 0x27f   : > { %9690 = vst [vmem:[#allocation173_spill] sm:$0xff] %v6101_v20  ;;  %v6106_v24 = vsel %vm1218_vm3, %v1212_v32, 0.0  ;;  %v1356_v43 = vadd.f32 %v1340_v42, %v1320_v10  ;;  %v1412_v63 = vmul.f32 %v9692_v25, %v6088_v56  ;;  %v1880_v33 = vadd.f32 %v1864_v6, %v1844_v13  ;;  %v9694_v32 = vld [vmem:[#allocation46_spill] sm:$0xff]  ;;  %v9695_v6 = vld [vmem:[#allocation104_spill] sm:$0xff]  ;;  %v9696_v10 = vld [vmem:[#allocation47_spill] sm:$0xff] }
 0x280   : > { %9691 = vst [vmem:[#allocation174_spill] sm:$0xff] %v6106_v24  ;;  %v1899_v11 = vmul.f32 %v5841_v59, %v5509_v37  ;;  %v1900_v30 = vmul.f32 %v5864_v53, %v5509_v37  ;;  %v6116_v14 = vsel %vm1187_vm2, %v1167_v38, %v1181_v8  ;;  %3704 = vmatprep.mubr.f32.mxu0 %v3140_v19 }
 0x281   : > { %9693 = vst [vmem:[#allocation175_spill] sm:$0xff] %v6116_v14  ;;  %v1357_v21 = vadd.f32 %v1341_v47, %v1321_v45  ;;  %v1377_v61 = vmul.f32 %v9547_v22, %v5293_v31  ;;  %v1392_v42 = vadd.f32 %v1376_v17, %v1356_v43  ;;  %v1448_v5 = vmul.f32 %v9694_v32, %v6101_v20 }
 0x282   : > { %v1914_v13 = vadd.f32 %v1898_v46, %v1878_v9  ;;  %v1934_v39 = vmul.f32 %v5864_v53, %v9695_v6  ;;  %v1484_v23 = vmul.f32 %v9696_v10, %v6106_v24  ;;  %v6132_v17 = vmul.f32 %v5841_v59, %v5422_v29 }
 0x283   : > { %v1428_v38 = vadd.f32 %v1412_v63, %v1392_v42  ;;  %v6136_v9 = vmul.f32 %v5864_v53, %v5422_v29  ;;  %v6140_v46 = vsel %vm1187_vm2, %v1168_v27, %v1182_v54  ;;  %v1413_v19 = vmul.f32 %v9692_v25, %v6116_v14  ;;  %v9720_v25 = vld [vmem:[#allocation122_spill] sm:$0xff]  ;;  %v9722_v14 = vld [vmem:[#allocation133_spill] sm:$0xff] }
 0x284   : > { %9697 = vst [vmem:[#allocation176_spill] sm:$0xff] %v6132_v17  ;;  %9699 = vst [vmem:[#allocation178_spill] sm:$0xff] %v6140_v46  ;;  %v1393_v43 = vadd.f32 %v1377_v61, %v1357_v21  ;;  %v1518_v42 = vrot.slane %v5946_v0, 7  ;;  %v1532_v45 = vrot.slane %v5974_v3, 7  ;;  %v6146_v8 = vadd.f32 %v1899_v11, %v1879_v50  ;;  %v9703_v17 = vld [vmem:[#allocation121_spill] sm:$0xff] }
 0x285   : > { %9698 = vst [vmem:[#allocation177_spill] sm:$0xff] %v6136_v9  ;;  %v1464_v63 = vadd.f32 %v1448_v5, %v1428_v38  ;;  %v6148_v47 = vadd.f32 %v1900_v30, %v1880_v33  ;;  %v6150_v56 = vadd.f32 %v1934_v39, %v1914_v13  ;;  %v9702_v9 = vld [vmem:[#allocation120_spill] sm:$0xff]  ;;  %v9705_v27 = vrot.slane %v5873_v2, 7  ;;  %v9709_v11 = vld [vmem:[#allocation89_spill] sm:$0xff]  ;;  %v9710_v30 = vld [vmem:[#allocation83_spill] sm:$0xff] }
 0x286   : > { %9700 = vst [vmem:[#allocation179_spill] sm:$0xff] %v6146_v8  ;;  %v6154_v24 = vmul.f32 %v9703_v17, %v9702_v9  ;;  %v9706_v21 = vrot.slane %v5940_v40, 7  ;;  %v9707_v5 = vrot.slane %v5892_v55, 7  ;;  %v9708_v50 = vrot.slane %v5943_v41, 7  ;;  %v9711_v39 = vld [vmem:[#allocation124_spill] sm:$0xff]  ;;  %v9762_v8 = vld [vmem:[#allocation119_spill] sm:$0xff] }
 0x287   : > { %9701 = vst [vmem:[#allocation180_spill] sm:$0xff] %v6148_v47  ;;  %v1500_v54 = vadd.f32 %v1484_v23, %v1464_v63  ;;  %v1653_v13 = vmul.f32 %v9710_v30, %v9709_v11  ;;  %v6172_v23 = vmul.f32 %v9703_v17, %v9711_v39  ;;  %v6176_v38 = vmul.f32 %v9703_v17, %v5671_v15  ;;  %v9718_v30 = vld [vmem:[#allocation92_spill] sm:$0xff] }
 0x288   : > { %9704 = vst [vmem:[#allocation120_spill] sm:$0xff] %v6154_v24  ;;  %v1559_v61 = vsel %vm1536_vm4, %v9706_v21, %v9705_v27  ;;  %v1560_v33 = vsel %vm1536_vm4, %v9708_v50, %v9707_v5  ;;  %v9714_v9 = vrot.slane %v5974_v3, 6  ;;  %v9715_v63 = vrot.slane %v5946_v0, 6  ;;  %v9719_v11 = vld [vmem:[#allocation84_spill] sm:$0xff] }
 0x289   : > { %9712 = vst [vmem:[#allocation124_spill] sm:$0xff] %v6172_v23  ;;  %9713 = vst [vmem:[#allocation181_spill] sm:$0xff] %v6176_v38  ;;  %v1449_v21 = vmul.f32 %v9694_v32, %v6140_v46  ;;  %v1429_v5 = vadd.f32 %v1413_v19, %v1393_v43  ;;  %v1561_v50 = vsel %vm1536_vm4, %v1532_v45, %v1518_v42  ;;  %v9717_v23 = vld [vmem:[#allocation109_spill] sm:$0xff]  ;;  %v6203_v19 = vsel %vm1567_vm5, %v1559_v61, 0.0  ;;  %v9731_v32 = vld [vmem:[#allocation154_spill] sm:$0xff] }
 0x28a   : > { %v6184_v27 = vsel %vm1187_vm2, %v9715_v63, %v9714_v9  ;;  %v1633_v47 = vadd.f32 %v9717_v23, %v1500_v54  ;;  %v1689_v38 = vmul.f32 %v9719_v11, %v9718_v30  ;;  %v6195_v20 = vmul.f32 %v9720_v25, %v9711_v39  ;;  %9725 = vst [vmem:[#allocation184_spill] sm:$0xff] %v6203_v19  ;;  %v9727_v54 = vld [vmem:[#allocation134_spill] sm:$0xff]  ;;  %v9728_v23 = vld [vmem:[#allocation135_spill] sm:$0xff]  ;;  %v9730_v39 = vld [vmem:[#allocation156_spill] sm:$0xff] }
 0x28b   : > { %9716 = vst [vmem:[#allocation182_spill] sm:$0xff] %v6184_v27  ;;  %v6199_v9 = vmul.f32 %v9722_v14, %v5749_v60  ;;  %v6207_v43 = vsel %vm1567_vm5, %v1560_v33, 0.0  ;;  %v6211_v30 = vmul.f32 %v9728_v23, %v9727_v54  ;;  %v6215_v46 = vmul.f32 %v9731_v32, %v9730_v39  ;;  %v9733_v60 = vld [vmem:[#allocation102_spill] sm:$0xff]  ;;  %v9736_v61 = vld [vmem:[#allocation155_spill] sm:$0xff] }
 0x28c   : > { %9721 = vst [vmem:[#allocation109_spill] sm:$0xff] %v6195_v20  ;;  %9726 = vst [vmem:[#allocation185_spill] sm:$0xff] %v6207_v43  ;;  %v1669_v22 = vadd.f32 %v1653_v13, %v1633_v47  ;;  %v6221_v7 = vmul.f32 %v9736_v61, %v9735_v36  ;;  %v1485_v33 = vmul.f32 %v9696_v10, %v6184_v27  ;;  %v6231_v54 = vsel %vm1567_vm5, %v1561_v50, 0.0  ;;  %v9740_v13 = vld [vmem:[#allocation86_spill] sm:$0xff] }
 0x28d   : > { %9723 = vst [vmem:[#allocation183_spill] sm:$0xff] %v6199_v9  ;;  %9729 = vst [vmem:[#allocation186_spill] sm:$0xff] %v6211_v30  ;;  %v9734_v9 = vld [vmem:[#allocation85_spill] sm:$0xff]  ;;  %v6227_v16 = vsel %vm1536_vm4, %v1518_v42, %v1532_v45  ;;  %v1465_v39 = vadd.f32 %v1449_v21, %v1429_v5  ;;  %v6243_v45 = vld [vmem:[%s4716_s1 + $0x78] sm:$0xff]  ;;  %v1941_v30 = vmul.f32 %v5880_v51, %v9695_v6 }
 0x28e   : > { %9732 = vst [vmem:[#allocation156_spill] sm:$0xff] %v6215_v46  ;;  %v1725_v31 = vmul.f32 %v9734_v9, %v9733_v60  ;;  %9737 = vst [vmem:[#allocation187_spill] sm:$0xff] %v6221_v7  ;;  %v1705_v47 = vadd.f32 %v1689_v38, %v1669_v22  ;;  %v1761_v46 = vmul.f32 %v9740_v13, %v6203_v19  ;;  %v9741_v60 = vld [vmem:[#allocation87_spill] sm:$0xff]  ;;  %v6238_v7 = vld [vmem:[%s4716_s1 + $0x70] sm:$0xff]  ;;  %v9750_v18 = vrot.slane %v6243_v45, 1 }
 0x28f   : > { %9738 = vst [vmem:[#allocation188_spill] sm:$0xff] %v6227_v16  ;;  %9739 = vst [vmem:[#allocation189_spill] sm:$0xff] %v6231_v54  ;;  %v1797_v36 = vmul.f32 %v9741_v60, %v6207_v43  ;;  %v9743_v22 = vld [vmem:[#allocation88_spill] sm:$0xff]  ;;  %v9744_v19 = vld [vmem:[#allocation147_spill] sm:$0xff]  ;;  %v6263_v48 = vadd.f32 %v1485_v33, %v1465_v39  ;;  %v2049_v20 = vmul.f32 %v9749_v1, %v5892_v55  ;;  %v9751_v24 = vrot.slane %v6238_v7, 1 }
 0x290   : > { %9742 = vst [vmem:[#allocation190_spill] sm:$0xff] %v6243_v45  ;;  %v1741_v21 = vadd.f32 %v1725_v31, %v1705_v47  ;;  %v1833_v38 = vmul.f32 %v9743_v22, %v6231_v54  ;;  %v1869_v63 = vmul.f32 %v9744_v19, %v5422_v29  ;;  %v9745_v27 = vld [vmem:[#allocation150_spill] sm:$0xff]  ;;  %v9746_v42 = vld [vmem:[#allocation108_spill] sm:$0xff]  ;;  %v9747_v47 = vld [vmem:[#allocation111_spill] sm:$0xff]  ;;  %v9756_v39 = vrot.slane %v5943_v41, 1 }
 0x291   : > { %v1905_v10 = vmul.f32 %v9745_v27, %v5509_v37  ;;  %v1977_v50 = vmul.f32 %v6238_v7, %v9746_v42  ;;  %v2013_v54 = vmul.f32 %v9747_v47, %v5873_v2  ;;  %9748 = vst [vmem:[#allocation191_spill] sm:$0xff] %v6263_v48  ;;  %v6273_v12 = vsel %vm2137_vm6, %v9751_v24, %v9750_v18  ;;  %v9763_v6 = vld [vmem:[#allocation127_spill] sm:$0xff]  ;;  %v9768_v24 = vld [vmem:[#allocation130_spill] sm:$0xff] }
 0x292   : > { %v1777_v31 = vadd.f32 %v1761_v46, %v1741_v21  ;;  %9752 = vst [vmem:[#allocation192_spill] sm:$0xff] %v6273_v12  ;;  %v9753_v46 = vrot.slane %v5940_v40, 1  ;;  %v9754_v21 = vrot.slane %v5873_v2, 1  ;;  %v9757_v43 = vrot.slane %v5892_v55, 1  ;;  %v9766_v29 = vld [vmem:[#allocation123_spill] sm:$0xff] }
 0x293   : > { %v9760_v37 = vrot.slane %v5946_v0, 1  ;;  %v2085_v18 = vmul.f32 %v9762_v8, %v5946_v0  ;;  %v9780_v13 = vrot.slane %v5943_v41, 2 }
 0x294   : > { %v6281_v5 = vsel %vm2137_vm6, %v9754_v21, %v9753_v46  ;;  %v1813_v33 = vadd.f32 %v1797_v36, %v1777_v31  ;;  %v6289_v15 = vsel %vm2137_vm6, %v9757_v43, %v9756_v39  ;;  %v9759_v21 = vrot.slane %v5974_v3, 1  ;;  %v9764_v36 = vld [vmem:[#allocation128_spill] sm:$0xff] }
 0x295   : > { %9755 = vst [vmem:[#allocation193_spill] sm:$0xff] %v6281_v5  ;;  %9758 = vst [vmem:[#allocation194_spill] sm:$0xff] %v6289_v15  ;;  %v2218_v46 = vmul.f32 %v9703_v17, %v9763_v6  ;;  %v6325_v16 = vmul.f32 %v9768_v24, %v6281_v5  ;;  %v6329_v6 = vmul.f32 %v9770_v57, %v6289_v15  ;;  %v9778_v5 = vrot.slane %v5873_v2, 2 }
 0x296   : > { %v1849_v31 = vadd.f32 %v1833_v38, %v1813_v33  ;;  %v6303_v43 = vsel %vm2137_vm6, %v9760_v37, %v9759_v21  ;;  %v6313_v38 = vmul.f32 %v9720_v25, %v9764_v36  ;;  %v9765_v33 = vld [vmem:[#allocation129_spill] sm:$0xff]  ;;  %v9772_v36 = vld [vmem:[#allocation132_spill] sm:$0xff] }
 0x297   : > { %9761 = vst [vmem:[#allocation195_spill] sm:$0xff] %v6303_v43  ;;  %v6317_v22 = vmul.f32 %v9766_v29, %v9765_v33  ;;  %v9767_v21 = vld [vmem:[#allocation125_spill] sm:$0xff]  ;;  %9769 = vst [vmem:[#allocation196_spill] sm:$0xff] %v6325_v16  ;;  %v6333_v60 = vmul.f32 %v9772_v36, %v6303_v43  ;;  %v9774_v33 = vrot.slane %v6243_v45, 2  ;;  %v9781_v43 = vrot.slane %v5892_v55, 2 }
 0x298   : > { %v1885_v37 = vadd.f32 %v1869_v63, %v1849_v31  ;;  %v6321_v39 = vmul.f32 %v9767_v21, %v6273_v12  ;;  %9771 = vst [vmem:[#allocation197_spill] sm:$0xff] %v6329_v6  ;;  %v9775_v63 = vrot.slane %v6238_v7, 2  ;;  %v9777_v12 = vrot.slane %v5940_v40, 2 }
 0x299   : > { %9773 = vst [vmem:[#allocation198_spill] sm:$0xff] %v6333_v60  ;;  %v6357_v9 = vsel %vm2486_vm7, %v9781_v43, %v9780_v13  ;;  %v6376_v13 = vmul.f32 %v9728_v23, %v9788_v62  ;;  %v9791_v43 = vld [vmem:[#allocation136_spill] sm:$0xff]  ;;  %v1970_v6 = vmul.f32 %v9793_v34, %v9746_v42  ;;  %v9799_v62 = vld [vmem:[#allocation139_spill] sm:$0xff] }
 0x29a   : > { %v6341_v31 = vsel %vm2486_vm7, %v9775_v63, %v9774_v33  ;;  %v6349_v15 = vsel %vm2486_vm7, %v9778_v5, %v9777_v12  ;;  %9782 = vst [vmem:[#allocation201_spill] sm:$0xff] %v6357_v9  ;;  %v1921_v11 = vadd.f32 %v1905_v10, %v1885_v37  ;;  %v9783_v33 = vrot.slane %v5974_v3, 2  ;;  %v9790_v10 = vld [vmem:[#allocation145_spill] sm:$0xff]  ;;  %v9819_v23 = vld [vmem:[#allocation31_spill] sm:$0xff] }
 0x29b   : > { %9776 = vst [vmem:[#allocation199_spill] sm:$0xff] %v6341_v31  ;;  %9779 = vst [vmem:[#allocation200_spill] sm:$0xff] %v6349_v15  ;;  %v9784_v63 = vrot.slane %v5946_v0, 2  ;;  %v6369_v12 = vmul.f32 %v9722_v14, %v9786_v49  ;;  %v6372_v5 = vadd.s32 8, %v4714_v4  ;;  %v6380_v37 = vmul.f32 %v9791_v43, %v9790_v10  ;;  %v9795_v49 = vld [vmem:[#allocation137_spill] sm:$0xff]  ;;  %v9797_v14 = vld [vmem:[#allocation138_spill] sm:$0xff] }
 0x29c   : > { %9789 = vst [vmem:[#allocation204_spill] sm:$0xff] %v6376_v13  ;;  %v1957_v44 = vadd.f32 %v1941_v30, %v1921_v11  ;;  %v6392_v48 = vmul.f32 %v9797_v14, %v6349_v15  ;;  %v6396_v13 = vmul.f32 %v9799_v62, %v6357_v9  ;;  %v9801_v10 = vld [vmem:[#allocation140_spill] sm:$0xff]  ;;  %v1986_v11 = vadd.f32 %v1970_v6, %v6150_v56  ;;  %v9803_v30 = vld [vmem:[#allocation153_spill] sm:$0xff]  ;;  %v9810_v14 = vld [vmem:[#allocation26_spill] sm:$0xff] }
 0x29d   : > { %v6365_v60 = vsel %vm2486_vm7, %v9784_v63, %v9783_v33  ;;  %9787 = vst [vmem:[#allocation203_spill] sm:$0xff] %v6369_v12  ;;  %9792 = vst [vmem:[#allocation205_spill] sm:$0xff] %v6380_v37  ;;  %v9794_v33 = vld [vmem:[#allocation152_spill] sm:$0xff]  ;;  %v6388_v12 = vmul.f32 %v9795_v49, %v6341_v31  ;;  %v2042_v31 = vmul.f32 %v9803_v30, %v9749_v1  ;;  %v6419_v56 = vadd.s32 1, %v6372_v5  ;;  %v9830_v0 = vld [vmem:[#allocation35_spill] sm:$0xff] }
 0x29e   : > { %9785 = vst [vmem:[#allocation202_spill] sm:$0xff] %v6365_v60  ;;  %v2006_v63 = vmul.f32 %v9794_v33, %v9747_v47  ;;  %9798 = vst [vmem:[#allocation152_spill] sm:$0xff] %v6392_v48  ;;  %v6400_v37 = vmul.f32 %v9801_v10, %v6365_v60  ;;  %v1993_v47 = vadd.f32 %v1977_v50, %v1957_v44  ;;  %v9806_v15 = vld [vmem:[#allocation24_spill] sm:$0xff]  ;;  %v9811_v60 = vrot.slane %v9810_v14, 1 }
 0x29f   : > { %9796 = vst [vmem:[#allocation149_spill] sm:$0xff] %v6388_v12  ;;  %9800 = vst [vmem:[#allocation206_spill] sm:$0xff] %v6396_v13  ;;  %v9804_v12 = vld [vmem:[#allocation23_spill] sm:$0xff]  ;;  %v9807_v48 = vrot.slane %v9806_v15, 1  ;;  %v9808_v13 = vld [vmem:[#allocation25_spill] sm:$0xff]  ;;  %v2078_v44 = vmul.f32 %v5895_v28, %v9762_v8  ;;  %v9820_v16 = vrot.slane %v9819_v23, 1 }
 0x2a0   : > { %9802 = vst [vmem:[#allocation207_spill] sm:$0xff] %v6400_v37  ;;  %v9805_v49 = vrot.slane %v9804_v12, 1  ;;  %v9809_v62 = vrot.slane %v9808_v13, 1  ;;  %9812 = vst [vmem:[#allocation153_spill] sm:$0xff] %v6419_v56  ;;  %v2022_v6 = vadd.f32 %v2006_v63, %v1986_v11  ;;  %v9813_v50 = vld [vmem:[#allocation28_spill] sm:$0xff]  ;;  %v9815_v37 = vld [vmem:[#allocation29_spill] sm:$0xff] }
 0x2a1   : > { %v9814_v1 = vrot.slane %v9813_v50, 1  ;;  %v9816_v10 = vrot.slane %v9815_v37, 1  ;;  %vm2171_vm9 = vcmp.lt.s32.totalorder %v6419_v56, 16  ;;  %v9826_v11 = vld [vmem:[#allocation33_spill] sm:$0xff]  ;;  %v9966_v56 = vrot.slane %v6238_v7, 2 }
 0x2a2   : > { %v2152_v9 = vsel %vm2137_vm6, %v9807_v48, %v9805_v49  ;;  %v2153_v42 = vsel %vm2137_vm6, %v9811_v60, %v9809_v62  ;;  %v9817_v48 = vld [vmem:[#allocation30_spill] sm:$0xff]  ;;  %v2029_v60 = vadd.f32 %v2013_v54, %v1993_v47  ;;  %v2058_v37 = vadd.f32 %v2042_v31, %v2022_v6 }
 0x2a3   : > { %v2154_v49 = vsel %vm2137_vm6, %v9816_v10, %v9814_v1  ;;  %v9818_v43 = vrot.slane %v9817_v48, 1  ;;  %v2179_v1 = vsel %vm2171_vm9, %v2152_v9, 0.0  ;;  %v6443_v10 = vsel %vm2171_vm9, %v2153_v42, 0.0 }
 0x2a4   : > { %9821 = vst [vmem:[#allocation23_spill] sm:$0xff] %v6443_v10  ;;  %v2065_v23 = vadd.f32 %v2049_v20, %v2029_v60  ;;  %v6448_v54 = vsel %vm2171_vm9, %v2154_v49, 0.0  ;;  %v2211_v9 = vmul.f32 %v9703_v17, %v2179_v1  ;;  %v2247_v42 = vmul.f32 %v9720_v25, %v6443_v10  ;;  %v9824_v60 = vld [vmem:[#allocation32_spill] sm:$0xff]  ;;  %v9834_v10 = vld [vmem:[#allocation37_spill] sm:$0xff] }
 0x2a5   : > { %v2155_v62 = vsel %vm2137_vm6, %v9820_v16, %v9818_v43  ;;  %9822 = vst [vmem:[#allocation24_spill] sm:$0xff] %v6448_v54  ;;  %v2094_v43 = vadd.f32 %v2078_v44, %v2058_v37  ;;  %v9825_v8 = vrot.slane %v9824_v60, 1  ;;  %v9827_v49 = vrot.slane %v9826_v11, 1  ;;  %v9832_v44 = vld [vmem:[#allocation36_spill] sm:$0xff] }
 0x2a6   : > { %v6452_v47 = vsel %vm2171_vm9, %v2155_v62, 0.0  ;;  %v2101_v6 = vadd.f32 %v2085_v18, %v2065_v23  ;;  %v9828_v62 = vld [vmem:[#allocation34_spill] sm:$0xff]  ;;  %v9831_v31 = vrot.slane %v9830_v0, 1  ;;  %v9833_v1 = vrot.slane %v9832_v44, 1  ;;  %v9837_v0 = vld [vmem:[#allocation144_spill] sm:$0xff] }
 0x2a7   : > { %9823 = vst [vmem:[#allocation25_spill] sm:$0xff] %v6452_v47  ;;  %v2156_v63 = vsel %vm2137_vm6, %v9827_v49, %v9825_v8  ;;  %v9829_v16 = vrot.slane %v9828_v62, 1  ;;  %v9835_v23 = vrot.slane %v9834_v10, 1  ;;  %v2227_v20 = vadd.f32 %v2211_v9, %v2094_v43 }
 0x2a8   : > { %v2283_v25 = vmul.f32 %v9766_v29, %v6448_v54  ;;  %v2319_v8 = vmul.f32 %v9767_v21, %v6452_v47  ;;  %v2234_v49 = vadd.f32 %v2218_v46, %v2101_v6  ;;  %v6482_v17 = vadd.s32 2, %v6372_v5 }
 0x2a9   : > { %v2157_v37 = vsel %vm2137_vm6, %v9831_v31, %v9829_v16  ;;  %v2158_v18 = vsel %vm2137_vm6, %v9835_v23, %v9833_v1  ;;  %v9838_v16 = vrot.slane %v9837_v0, 3  ;;  %v9839_v31 = vld [vmem:[#allocation148_spill] sm:$0xff]  ;;  %v9841_v43 = vrot.slane %v5837_v52, 3 }
 0x2aa   : > { %9836 = vst [vmem:[#allocation26_spill] sm:$0xff] %v6482_v17  ;;  %v9840_v44 = vrot.slane %v9839_v31, 3  ;;  %v9842_v9 = vrot.slane %v5857_v58, 3  ;;  %v2263_v46 = vadd.f32 %v2247_v42, %v2227_v20  ;;  %v9843_v6 = vrot.slane %v5841_v59, 3  ;;  %v9845_v31 = vld [vmem:[#allocation146_spill] sm:$0xff] }
 0x2ab   : > { %v9844_v23 = vrot.slane %v5864_v53, 3  ;;  %v9848_v52 = vrot.slane %v9744_v19, 3  ;;  %v9849_v42 = vrot.slane %v9794_v33, 3  ;;  %v2270_v53 = vadd.f32 %v6313_v38, %v2234_v49 }
 0x2ac   : > { %v6490_v10 = vsel %vm2835_vm8, %v9840_v44, %v9838_v16  ;;  %v6498_v1 = vsel %vm2835_vm8, %v9842_v9, %v9841_v43  ;;  %v9846_v44 = vrot.slane %v9845_v31, 3  ;;  %v9847_v16 = vrot.slane %v9793_v34, 3  ;;  %v9885_v31 = vld [vmem:[#allocation160_spill] sm:$0xff] }
 0x2ad   : > { %v6506_v0 = vsel %vm2835_vm8, %v9844_v23, %v9843_v6  ;;  %v6522_v59 = vsel %vm2835_vm8, %v9849_v42, %v9848_v52  ;;  %v6527_v20 = vsel %vm2171_vm9, %v2156_v63, 0.0  ;;  %v9851_v34 = vrot.slane %v9745_v27, 3  ;;  %v9883_v27 = vld [vmem:[#allocation197_spill] sm:$0xff] }
 0x2ae   : > { %v6514_v58 = vsel %vm2835_vm8, %v9847_v16, %v9846_v44  ;;  %9850 = vst [vmem:[#allocation28_spill] sm:$0xff] %v6527_v20  ;;  %v9852_v43 = vrot.slane %v9803_v30, 3  ;;  %v9853_v6 = vrot.slane %v5880_v51, 3  ;;  %v9854_v23 = vrot.slane %v5895_v28, 3 }
 0x2af   : > { %v2299_v38 = vadd.f32 %v2283_v25, %v2263_v46  ;;  %v2355_v63 = vmul.f32 %v9768_v24, %v6527_v20  ;;  %v9855_v49 = vrot.slane %v9804_v12, 2  ;;  %v9856_v16 = vrot.slane %v9806_v15, 2  ;;  %v9916_v24 = vld [vmem:[#allocation37_spill] sm:$0xff] }
 0x2b0   : > { %v6535_v9 = vsel %vm2835_vm8, %v9852_v43, %v9851_v34  ;;  %v6543_v44 = vsel %vm2835_vm8, %v9854_v23, %v9853_v6  ;;  %vm2520_vm10 = vcmp.lt.s32.totalorder %v6482_v17, 16  ;;  %v2306_v42 = vadd.f32 %v6317_v22, %v2270_v53 }
 0x2b1   : > { %v2501_v52 = vsel %vm2486_vm7, %v9856_v16, %v9855_v49  ;;  %v6558_v43 = vmul.f32 %v9731_v32, %v5955_v35  ;;  %v6562_v25 = vsel %vm2171_vm9, %v2157_v37, 0.0  ;;  %v6566_v15 = vmul.f32 %v9736_v61, %v5963_v26  ;;  %v9878_v26 = vld [vmem:[#allocation157_spill] sm:$0xff] }
 0x2b2   : > { %9857 = vst [vmem:[#allocation30_spill] sm:$0xff] %v6562_v25  ;;  %v2335_v12 = vadd.f32 %v2319_v8, %v2299_v38  ;;  %v2391_v46 = vmul.f32 %v9770_v57, %v6562_v25  ;;  %v9858_v22 = vrot.slane %v9808_v13, 2  ;;  %v9859_v53 = vrot.slane %v9810_v14, 2 }
 0x2b3   : > { %v2342_v23 = vadd.f32 %v6321_v39, %v2306_v42  ;;  %v9860_v37 = vrot.slane %v6243_v45, 3  ;;  %v9861_v49 = vrot.slane %v6238_v7, 3  ;;  %v6587_v8 = vsel %vm2171_vm9, %v2158_v18, 0.0 }
 0x2b4   : > { %v2502_v6 = vsel %vm2486_vm7, %v9859_v53, %v9858_v22  ;;  %9863 = vst [vmem:[#allocation33_spill] sm:$0xff] %v6587_v8  ;;  %v2528_v14 = vsel %vm2520_vm10, %v2501_v52, 0.0  ;;  %v9864_v13 = vrot.slane %v5940_v40, 3  ;;  %v9865_v38 = vrot.slane %v5873_v2, 3  ;;  %v9870_v52 = vld [vmem:[#allocation196_spill] sm:$0xff] }
 0x2b5   : > { %v6583_v16 = vsel %vm2835_vm8, %v9861_v49, %v9860_v37  ;;  %v2371_v42 = vadd.f32 %v2355_v63, %v2335_v12  ;;  %v2427_v22 = vmul.f32 %v9772_v36, %v6587_v8  ;;  %v9867_v53 = vrot.slane %v9813_v50, 2  ;;  %v9868_v37 = vld [vmem:[#allocation29_spill] sm:$0xff]  ;;  %v9875_v50 = vld [vmem:[#allocation191_spill] sm:$0xff]  ;;  %v9876_v12 = vld [vmem:[#allocation110_spill] sm:$0xff] }
 0x2b6   : > { %9862 = vst [vmem:[#allocation32_spill] sm:$0xff] %v6583_v16  ;;  %v6597_v39 = vsel %vm2835_vm8, %v9865_v38, %v9864_v13  ;;  %v9869_v18 = vrot.slane %v9868_v37, 2  ;;  %v2378_v34 = vadd.f32 %v9870_v52, %v2342_v23  ;;  %v9871_v47 = vrot.slane %v5943_v41, 3  ;;  %v9877_v37 = vld [vmem:[#allocation61_spill] sm:$0xff]  ;;  %v9880_v52 = vld [vmem:[#allocation31_spill] sm:$0xff] }
 0x2b7   : > { %9866 = vst [vmem:[#allocation34_spill] sm:$0xff] %v6597_v39  ;;  %v9872_v54 = vrot.slane %v5892_v55, 3  ;;  %v6618_v63 = vsel %vm2520_vm10, %v2502_v6, 0.0  ;;  %v1634_v38 = vadd.f32 %v9876_v12, %v9875_v50  ;;  %v2407_v23 = vadd.f32 %v2391_v46, %v2371_v42  ;;  %v9888_v46 = vld [vmem:[#allocation163_spill] sm:$0xff] }
 0x2b8   : > { %v2503_v49 = vsel %vm2486_vm7, %v9869_v18, %v9867_v53  ;;  %9874 = vst [vmem:[#allocation148_spill] sm:$0xff] %v6618_v63  ;;  %v6624_v53 = vmul.f32 %v9878_v26, %v9877_v37  ;;  %v9879_v18 = vrot.slane %v9817_v48, 2  ;;  %v9881_v35 = vrot.slane %v9880_v52, 2  ;;  %v9900_v36 = vld [vmem:[#allocation75_spill] sm:$0xff] }
 0x2b9   : > { %v6614_v13 = vsel %vm2835_vm8, %v9872_v54, %v9871_v47  ;;  %v9882_v47 = vld [vmem:[#allocation133_spill] sm:$0xff]  ;;  %v2414_v6 = vadd.f32 %v9883_v27, %v2378_v34  ;;  %v9884_v19 = vrot.slane %v5974_v3, 3  ;;  %v9886_v50 = vrot.slane %v9885_v31, 3 }
 0x2ba   : > { %9873 = vst [vmem:[#allocation144_spill] sm:$0xff] %v6614_v13  ;;  %v2504_v54 = vsel %vm2486_vm7, %v9881_v35, %v9879_v18  ;;  %v2560_v51 = vmul.f32 %v9882_v47, %v2528_v14  ;;  %v6644_v48 = vmul.f32 %v9888_v46, %v6583_v16  ;;  %v6648_v42 = vsel %vm2520_vm10, %v2503_v49, 0.0  ;;  %v9891_v35 = vld [vmem:[#allocation164_spill] sm:$0xff]  ;;  %v9893_v27 = vld [vmem:[#allocation165_spill] sm:$0xff] }
 0x2bb   : > { %v6640_v12 = vsel %vm2835_vm8, %v9886_v50, %v9884_v19  ;;  %9890 = vst [vmem:[#allocation191_spill] sm:$0xff] %v6648_v42  ;;  %v6652_v14 = vmul.f32 %v9891_v35, %v6597_v39  ;;  %v6656_v34 = vmul.f32 %v9893_v27, %v6614_v13  ;;  %v2443_v18 = vadd.f32 %v2427_v22, %v2407_v23  ;;  %v9895_v19 = vld [vmem:[#allocation135_spill] sm:$0xff]  ;;  %v9896_v50 = vld [vmem:[#allocation198_spill] sm:$0xff]  ;;  %v9901_v13 = vld [vmem:[#allocation84_spill] sm:$0xff] }
 0x2bc   : > { %9887 = vst [vmem:[#allocation29_spill] sm:$0xff] %v6640_v12  ;;  %9889 = vst [vmem:[#allocation196_spill] sm:$0xff] %v6644_v48  ;;  %v2596_v52 = vmul.f32 %v9895_v19, %v6618_v63  ;;  %v2450_v37 = vadd.f32 %v9896_v50, %v2414_v6  ;;  %v9897_v16 = vrot.slane %v9824_v60, 2  ;;  %v9898_v47 = vrot.slane %v9826_v11, 2  ;;  %v9902_v23 = vld [vmem:[#allocation136_spill] sm:$0xff] }
 0x2bd   : > { %9892 = vst [vmem:[#allocation110_spill] sm:$0xff] %v6652_v14  ;;  %9894 = vst [vmem:[#allocation31_spill] sm:$0xff] %v6656_v34  ;;  %v6669_v39 = vsel %vm2520_vm10, %v2504_v54, 0.0  ;;  %v1690_v34 = vmul.f32 %v9901_v13, %v9900_v36  ;;  %v2576_v22 = vadd.f32 %v2560_v51, %v2443_v18  ;;  %v2632_v63 = vmul.f32 %v9902_v23, %v6648_v42  ;;  %v9907_v54 = vld [vmem:[#allocation203_spill] sm:$0xff]  ;;  %v9911_v42 = vld [vmem:[#allocation116_spill] sm:$0xff] }
 0x2be   : > { %v2505_v49 = vsel %vm2486_vm7, %v9898_v47, %v9897_v16  ;;  %9899 = vst [vmem:[#allocation197_spill] sm:$0xff] %v6669_v39  ;;  %v6676_v6 = vadd.s32 3, %v6372_v5  ;;  %v9904_v60 = vrot.slane %v5940_v40, 7  ;;  %v9905_v11 = vrot.slane %v5873_v2, 7  ;;  %v9909_v36 = vld [vmem:[#allocation35_spill] sm:$0xff]  ;;  %v9912_v13 = vld [vmem:[#allocation101_spill] sm:$0xff] }
 0x2bf   : > { %v2583_v47 = vadd.f32 %v9907_v54, %v2450_v37  ;;  %v9908_v50 = vrot.slane %v9828_v62, 2  ;;  %v9910_v51 = vrot.slane %v9909_v36, 2  ;;  %v1670_v5 = vadd.f32 %v9911_v42, %v1634_v38  ;;  %v9913_v23 = vld [vmem:[#allocation85_spill] sm:$0xff]  ;;  %v9914_v14 = vld [vmem:[#allocation36_spill] sm:$0xff] }
 0x2c0   : > { %9903 = vst [vmem:[#allocation160_spill] sm:$0xff] %v6676_v6  ;;  %v6684_v16 = vsel %vm1536_vm4, %v9905_v11, %v9904_v60  ;;  %v1726_v19 = vmul.f32 %v9913_v23, %v9912_v13  ;;  %v9915_v57 = vrot.slane %v9914_v14, 2  ;;  %v9917_v48 = vrot.slane %v9916_v24, 2  ;;  %v9918_v62 = vld [vmem:[#allocation137_spill] sm:$0xff]  ;;  %v9922_v42 = vld [vmem:[#allocation204_spill] sm:$0xff] }
 0x2c1   : > { %9906 = vst [vmem:[#allocation198_spill] sm:$0xff] %v6684_v16  ;;  %v2506_v18 = vsel %vm2486_vm7, %v9910_v51, %v9908_v50  ;;  %v2612_v37 = vadd.f32 %v2596_v52, %v2576_v22  ;;  %v2668_v11 = vmul.f32 %v9918_v62, %v6669_v39  ;;  %v9919_v36 = vrot.slane %v5943_v41, 7  ;;  %v9926_v51 = vld [vmem:[#allocation138_spill] sm:$0xff]  ;;  %v9932_v13 = vld [vmem:[#allocation140_spill] sm:$0xff] }
 0x2c2   : > { %v2507_v60 = vsel %vm2486_vm7, %v9917_v48, %v9915_v57  ;;  %v9920_v54 = vrot.slane %v5892_v55, 7  ;;  %v2619_v50 = vadd.f32 %v9922_v42, %v2583_v47  ;;  %v6715_v24 = vsel %vm2520_vm10, %v2505_v49, 0.0  ;;  %v9924_v57 = vld [vmem:[#allocation86_spill] sm:$0xff] }
 0x2c3   : > { %9923 = vst [vmem:[#allocation35_spill] sm:$0xff] %v6715_v24  ;;  %v1706_v14 = vadd.f32 %v1690_v34, %v1670_v5  ;;  %v1762_v48 = vmul.f32 %v9924_v57, %v6684_v16  ;;  %v6721_v52 = vsel %vm2520_vm10, %v2506_v18, 0.0  ;;  %v2648_v22 = vadd.f32 %v2632_v63, %v2612_v37  ;;  %v9929_v5 = vld [vmem:[#allocation87_spill] sm:$0xff]  ;;  %v9930_v42 = vld [vmem:[#allocation58_spill] sm:$0xff] }
 0x2c4   : > { %v6710_v38 = vsel %vm1536_vm4, %v9920_v54, %v9919_v36  ;;  %9925 = vst [vmem:[#allocation116_spill] sm:$0xff] %v6721_v52  ;;  %v2704_v39 = vmul.f32 %v9926_v51, %v6715_v24  ;;  %vm2869_vm11 = vcmp.lt.s32.totalorder %v6676_v6, 16  ;;  %v9927_v36 = vld [vmem:[#allocation205_spill] sm:$0xff]  ;;  %v6729_v49 = vsel %vm2520_vm10, %v2507_v60, 0.0  ;;  %v9931_v37 = vld [vmem:[#allocation139_spill] sm:$0xff] }
 0x2c5   : > { %9921 = vst [vmem:[#allocation203_spill] sm:$0xff] %v6710_v38  ;;  %v2655_v47 = vadd.f32 %v9927_v36, %v2619_v50  ;;  %9928 = vst [vmem:[#allocation36_spill] sm:$0xff] %v6729_v49  ;;  %v1742_v34 = vadd.f32 %v1726_v19, %v1706_v14  ;;  %v1798_v54 = vmul.f32 %v9929_v5, %v6710_v38  ;;  %v9933_v50 = vld [vmem:[#allocation149_spill] sm:$0xff]  ;;  %v2877_v19 = vsel %vm2869_vm11, %v6490_v10, 0.0  ;;  %v9934_v14 = vld [vmem:[#allocation188_spill] sm:$0xff] }
 0x2c6   : > { %v6735_v18 = vmul.f32 %v9930_v42, %v6640_v12  ;;  %v2684_v63 = vadd.f32 %v2668_v11, %v2648_v22  ;;  %v2740_v16 = vmul.f32 %v9931_v37, %v6721_v52  ;;  %v2776_v57 = vmul.f32 %v9932_v13, %v6729_v49  ;;  %v9935_v38 = vld [vmem:[#allocation88_spill] sm:$0xff] }
 0x2c7   : > { %v2691_v36 = vadd.f32 %v9933_v50, %v2655_v47  ;;  %v1778_v60 = vadd.f32 %v1762_v48, %v1742_v34  ;;  %v1834_v5 = vmul.f32 %v9935_v38, %v9934_v14  ;;  %v6750_v11 = vsel %vm2869_vm11, %v6498_v1, 0.0  ;;  %v9939_v10 = vld [vmem:[#allocation152_spill] sm:$0xff]  ;;  %v9941_v1 = vld [vmem:[#allocation90_spill] sm:$0xff] }
 0x2c8   : > { %v2720_v23 = vadd.f32 %v2704_v39, %v2684_v63  ;;  %9936 = vst [vmem:[#allocation37_spill] sm:$0xff] %v6750_v11  ;;  %v6755_v22 = vsel %vm2869_vm11, %v6506_v0, 0.0  ;;  %v6760_v47 = vsel %vm2869_vm11, %v6514_v58, 0.0  ;;  %v6766_v39 = vsel %vm2869_vm11, %v6522_v59, 0.0 }
 0x2c9   : > { %9937 = vst [vmem:[#allocation204_spill] sm:$0xff] %v6755_v22  ;;  %9938 = vst [vmem:[#allocation205_spill] sm:$0xff] %v6760_v47  ;;  %v2727_v48 = vadd.f32 %v9939_v10, %v2691_v36  ;;  %v1814_v34 = vadd.f32 %v1798_v54, %v1778_v60  ;;  %v1870_v63 = vmul.f32 %v9794_v33, %v9941_v1  ;;  %v6773_v0 = vsel %vm2869_vm11, %v6535_v9, 0.0  ;;  %v9944_v10 = vld [vmem:[#allocation206_spill] sm:$0xff]  ;;  %v9945_v33 = vld [vmem:[#allocation103_spill] sm:$0xff] }
 0x2ca   : > { %9940 = vst [vmem:[#allocation149_spill] sm:$0xff] %v6766_v39  ;;  %v2756_v50 = vadd.f32 %v2740_v16, %v2720_v23  ;;  %9942 = vst [vmem:[#allocation152_spill] sm:$0xff] %v6773_v0  ;;  %v6778_v58 = vsel %vm2869_vm11, %v6543_v44, 0.0  ;;  %v2909_v36 = vmul.f32 %v9731_v32, %v2877_v19  ;;  %v2945_v54 = vmul.f32 %v9736_v61, %v6750_v11  ;;  %v9946_v19 = vld [vmem:[#allocation207_spill] sm:$0xff] }
 0x2cb   : > { %9943 = vst [vmem:[#allocation208_spill] sm:$0xff] %v6778_v58  ;;  %v2763_v59 = vadd.f32 %v9944_v10, %v2727_v48  ;;  %v1850_v60 = vadd.f32 %v1834_v5, %v1814_v34  ;;  %v1906_v23 = vmul.f32 %v9803_v30, %v9945_v33  ;;  %v2981_v9 = vmul.f32 %v9878_v26, %v6755_v22  ;;  %v9947_v5 = vld [vmem:[#allocation104_spill] sm:$0xff] }
 0x2cc   : > { %v2792_v16 = vadd.f32 %v2776_v57, %v2756_v50  ;;  %v3017_v14 = vmul.f32 %v9888_v46, %v6760_v47  ;;  %v3053_v44 = vmul.f32 %v9891_v35, %v6766_v39  ;;  %v3089_v48 = vmul.f32 %v9893_v27, %v6773_v0  ;;  %v9948_v57 = vld [vmem:[#allocation108_spill] sm:$0xff] }
 0x2cd   : > { %v2799_v12 = vadd.f32 %v9946_v19, %v2763_v59  ;;  %v1886_v10 = vadd.f32 %v1870_v63, %v1850_v60  ;;  %v1942_v34 = vmul.f32 %v5895_v28, %v9947_v5  ;;  %v1978_v50 = vmul.f32 %v6243_v45, %v9948_v57 }
 0x2ce   : > { %v2925_v30 = vadd.f32 %v2909_v36, %v2792_v16  ;;  %v9949_v22 = vrot.slane %v6238_v7, 1  ;;  %v9950_v47 = vrot.slane %v6243_v45, 1  ;;  %v9951_v59 = vrot.slane %v5873_v2, 1 }
 0x2cf   : > { %v9952_v19 = vrot.slane %v5940_v40, 1  ;;  %v2932_v28 = vadd.f32 %v6558_v43, %v2799_v12  ;;  %v1922_v36 = vadd.f32 %v1906_v23, %v1886_v10  ;;  %v9953_v60 = vrot.slane %v5892_v55, 1  ;;  %v9957_v43 = vld [vmem:[#allocation111_spill] sm:$0xff]  ;;  %v9958_v23 = vld [vmem:[#allocation113_spill] sm:$0xff] }
 0x2d0   : > { %v2159_v11 = vsel %vm2137_vm6, %v9950_v47, %v9949_v22  ;;  %v9954_v16 = vrot.slane %v5943_v41, 1  ;;  %v9955_v1 = vrot.slane %v9885_v31, 1  ;;  %v9956_v22 = vrot.slane %v5974_v3, 1 }
 0x2d1   : > { %v2160_v63 = vsel %vm2137_vm6, %v9952_v19, %v9951_v59  ;;  %v2961_v38 = vadd.f32 %v2945_v54, %v2925_v30  ;;  %v3125_v59 = vmul.f32 %v9930_v42, %v6778_v58  ;;  %v2014_v12 = vmul.f32 %v9957_v43, %v5940_v40 }
 0x2d2   : > { %v2161_v33 = vsel %vm2137_vm6, %v9954_v16, %v9953_v60  ;;  %v2162_v47 = vsel %vm2137_vm6, %v9956_v22, %v9955_v1  ;;  %v2050_v10 = vmul.f32 %v9958_v23, %v5943_v41  ;;  %v2968_v19 = vadd.f32 %v6566_v15, %v2932_v28  ;;  %v9959_v16 = vld [vmem:[#allocation119_spill] sm:$0xff] }
 0x2d3   : > { %v1958_v60 = vadd.f32 %v1942_v34, %v1922_v36  ;;  %v2086_v27 = vmul.f32 %v9959_v16, %v5974_v3  ;;  %v6835_v35 = vsel %vm2171_vm9, %v2159_v11, 0.0  ;;  %v2997_v1 = vadd.f32 %v2981_v9, %v2961_v38  ;;  %v9964_v36 = vld [vmem:[#allocation121_spill] sm:$0xff]  ;;  %v9965_v38 = vld [vmem:[#allocation122_spill] sm:$0xff] }
 0x2d4   : > { %9960 = vst [vmem:[#allocation206_spill] sm:$0xff] %v6835_v35  ;;  %v6839_v54 = vsel %vm2171_vm9, %v2160_v63, 0.0  ;;  %v6843_v30 = vsel %vm2171_vm9, %v2161_v33, 0.0  ;;  %v6847_v15 = vsel %vm2171_vm9, %v2162_v47, 0.0  ;;  %v3004_v34 = vadd.f32 %v6624_v53, %v2968_v19 }
 0x2d5   : > { %9961 = vst [vmem:[#allocation207_spill] sm:$0xff] %v6839_v54  ;;  %9962 = vst [vmem:[#allocation209_spill] sm:$0xff] %v6843_v30  ;;  %v1994_v28 = vadd.f32 %v1978_v50, %v1958_v60  ;;  %v2219_v11 = vmul.f32 %v9964_v36, %v6527_v20  ;;  %v2255_v9 = vmul.f32 %v9965_v38, %v6562_v25  ;;  %v9967_v47 = vrot.slane %v6243_v45, 2  ;;  %v9968_v50 = vld [vmem:[#allocation196_spill] sm:$0xff]  ;;  %v9969_v20 = vld [vmem:[#allocation130_spill] sm:$0xff] }
 0x2d6   : > { %9963 = vst [vmem:[#allocation210_spill] sm:$0xff] %v6847_v15  ;;  %v3033_v22 = vadd.f32 %v3017_v14, %v2997_v1  ;;  %v2291_v63 = vmul.f32 %v9766_v29, %v6587_v8  ;;  %v2327_v33 = vmul.f32 %v9767_v21, %v6835_v35  ;;  %v3040_v19 = vadd.f32 %v9968_v50, %v3004_v34  ;;  %v9972_v38 = vld [vmem:[#allocation131_spill] sm:$0xff] }
 0x2d7   : > { %v2508_v53 = vsel %vm2486_vm7, %v9967_v47, %v9966_v56  ;;  %v2030_v60 = vadd.f32 %v2014_v12, %v1994_v28  ;;  %v2363_v25 = vmul.f32 %v9969_v20, %v6839_v54  ;;  %v9970_v14 = vrot.slane %v5873_v2, 2 }
 0x2d8   : > { %v9971_v1 = vrot.slane %v5940_v40, 2  ;;  %v3069_v8 = vadd.f32 %v3053_v44, %v3033_v22  ;;  %v6875_v36 = vmul.f32 %v9972_v38, %v6843_v30  ;;  %v9973_v56 = vrot.slane %v5892_v55, 2 }
 0x2d9   : > { %v9974_v34 = vrot.slane %v5943_v41, 2  ;;  %v9975_v28 = vrot.slane %v9885_v31, 2  ;;  %v9976_v47 = vrot.slane %v5974_v3, 2  ;;  %v2066_v22 = vadd.f32 %v2050_v10, %v2030_v60  ;;  %v9983_v10 = vld [vmem:[#allocation31_spill] sm:$0xff] }
 0x2da   : > { %v2509_v35 = vsel %vm2486_vm7, %v9971_v1, %v9970_v14  ;;  %v9977_v14 = vld [vmem:[#allocation110_spill] sm:$0xff]  ;;  %v9978_v1 = vld [vmem:[#allocation132_spill] sm:$0xff]  ;;  %v6896_v54 = vsel %vm2520_vm10, %v2508_v53, 0.0  ;;  %v3105_v42 = vadd.f32 %v3089_v48, %v3069_v8  ;;  %v9986_v48 = vld [vmem:[#allocation133_spill] sm:$0xff] }
 0x2db   : > { %v2510_v12 = vsel %vm2486_vm7, %v9974_v34, %v9973_v56  ;;  %v2511_v50 = vsel %vm2486_vm7, %v9976_v47, %v9975_v28  ;;  %v3076_v44 = vadd.f32 %v9977_v14, %v3040_v19  ;;  %v6892_v30 = vmul.f32 %v9978_v1, %v6847_v15  ;;  %9979 = vst [vmem:[#allocation196_spill] sm:$0xff] %v6896_v54  ;;  %v9981_v34 = vld [vmem:[#allocation146_spill] sm:$0xff]  ;;  %v9982_v28 = vld [vmem:[#allocation147_spill] sm:$0xff] }
 0x2dc   : > { %v6900_v56 = vsel %vm2520_vm10, %v2509_v35, 0.0  ;;  %v1935_v46 = vmul.f32 %v9981_v34, %v9947_v5  ;;  %v1971_v19 = vmul.f32 %v9982_v28, %v9948_v57  ;;  %v2102_v47 = vadd.f32 %v2086_v27, %v2066_v22  ;;  %v9987_v34 = vld [vmem:[#allocation179_spill] sm:$0xff]  ;;  %v9988_v28 = vld [vmem:[#allocation150_spill] sm:$0xff] }
 0x2dd   : > { %9980 = vst [vmem:[#allocation110_spill] sm:$0xff] %v6900_v56  ;;  %v3112_v60 = vadd.f32 %v9983_v10, %v3076_v44  ;;  %v6909_v14 = vsel %vm2520_vm10, %v2510_v12, 0.0  ;;  %v6913_v8 = vsel %vm2520_vm10, %v2511_v50, 0.0  ;;  %v3141_v35 = vadd.f32 %v3125_v59, %v3105_v42  ;;  %v9989_v12 = vld [vmem:[#allocation135_spill] sm:$0xff]  ;;  %v9990_v50 = vld [vmem:[#allocation136_spill] sm:$0xff] }
 0x2de   : > { %9984 = vst [vmem:[#allocation146_spill] sm:$0xff] %v6909_v14  ;;  %9985 = vst [vmem:[#allocation147_spill] sm:$0xff] %v6913_v8  ;;  %v6917_v53 = vmul.f32 %v9986_v48, %v6715_v24  ;;  %v1951_v15 = vadd.f32 %v1935_v46, %v9987_v34  ;;  %v2007_v44 = vmul.f32 %v9988_v28, %v9957_v43  ;;  %v9991_v46 = vrot.slane %v6238_v7, 3  ;;  %v6944_v28 = vld [vmem:[%s4716_s1 + $0xb0] sm:$0xff]  ;;  %v10018_v43 = vld [vmem:[#allocation44_spill] sm:$0xff] }
 0x2df   : > { %v3148_v27 = vadd.f32 %v6735_v18, %v3112_v60  ;;  %v2235_v22 = vadd.f32 %v2219_v11, %v2102_v47  ;;  %v6925_v10 = vmul.f32 %v9989_v12, %v6721_v52  ;;  %v6929_v42 = vmul.f32 %v9990_v50, %v6729_v49  ;;  %3705 = vmatmul.mubr.f32.vlgmr.msra.gmra.mrb[0].mxu0 %v3141_v35  ;;  %v9993_v60 = vld [vmem:[#allocation151_spill] sm:$0xff]  ;;  %v10008_v24 = vld [vmem:[#allocation42_spill] sm:$0xff] }
 0x2e0   : > { %v6933_v59 = vmul.f32 %v9918_v62, %v6896_v54  ;;  %v9992_v34 = vrot.slane %v6243_v45, 3  ;;  %v1987_v11 = vadd.f32 %v1971_v19, %v1951_v15  ;;  %v2043_v47 = vmul.f32 %v9993_v60, %v9958_v23  ;;  %v6959_v15 = vld [vmem:[%s4716_s1 + $0xb8] sm:$0xff]  ;;  %v10010_v48 = vld [vmem:[#allocation50_spill] sm:$0xff] }
 0x2e1   : > { %3716 = vmatprep.mubr.f32.mxu1 %v3148_v27  ;;  %v2271_v17 = vadd.f32 %v2255_v9, %v2235_v22  ;;  %v6948_v35 = vmul.f32 %v9926_v51, %v6900_v56  ;;  %v6952_v54 = vmul.f32 %v9931_v37, %v6909_v14  ;;  %v6956_v49 = vmul.f32 %v9932_v13, %v6913_v8  ;;  %v10005_v56 = vld [vmem:[#allocation41_spill] sm:$0xff]  ;;  %v10016_v23 = vld [vmem:[#allocation166_spill] sm:$0xff] }
 0x2e2   : > { %v2857_v18 = vsel %vm2835_vm8, %v9992_v34, %v9991_v46  ;;  %v9994_v19 = vrot.slane %v5873_v2, 3  ;;  %v9995_v46 = vrot.slane %v5940_v40, 3  ;;  %v9996_v27 = vrot.slane %v5892_v55, 3 }
 0x2e3   : > { %v9997_v22 = vrot.slane %v5943_v41, 3  ;;  %v2023_v60 = vadd.f32 %v2007_v44, %v1987_v11  ;;  %v2079_v8 = vmul.f32 %v6238_v7, %v9959_v16  ;;  %v2307_v14 = vadd.f32 %v2291_v63, %v2271_v17  ;;  %v10001_v11 = vld [vmem:[#allocation45_spill] sm:$0xff]  ;;  %v10003_v17 = vld [vmem:[#allocation38_spill] sm:$0xff] }
 0x2e4   : > { %v2858_v9 = vsel %vm2835_vm8, %v9995_v46, %v9994_v19  ;;  %v9998_v2 = vrot.slane %v9885_v31, 3  ;;  %v9999_v40 = vrot.slane %v5974_v3, 3  ;;  %v6985_v55 = vsel %vm2869_vm11, %v2857_v18, 0.0  ;;  %v10004_v3 = vld [vmem:[#allocation51_spill] sm:$0xff]  ;;  %v10007_v18 = vld [vmem:[#allocation52_spill] sm:$0xff] }
 0x2e5   : > { %v6973_v34 = vsel %vm2835_vm8, %v9997_v22, %v9996_v27  ;;  %10000 = vst [vmem:[#allocation31_spill] sm:$0xff] %v6985_v55  ;;  %v821_v41 = vrot.slane %v6944_v28, 5  ;;  %v2059_v46 = vadd.f32 %v2043_v47, %v2023_v60  ;;  %v835_v44 = vrot.slane %v6959_v15, 5  ;;  %v10002_v27 = vld [vmem:[#allocation40_spill] sm:$0xff]  ;;  %v10009_v47 = vld [vmem:[#allocation126_spill] sm:$0xff] }
 0x2e6   : > { %v2860_v19 = vsel %vm2835_vm8, %v9999_v40, %v9998_v2  ;;  %v921_v22 = vmul.f32 %v10002_v27, %v10001_v11  ;;  %v922_v31 = vmul.f32 %v10002_v27, %v10003_v17  ;;  %v2343_v63 = vadd.f32 %v2327_v33, %v2307_v14  ;;  %v10006_v2 = vld [vmem:[#allocation39_spill] sm:$0xff] }
 0x2e7   : > { %v957_v52 = vmul.f32 %v10005_v56, %v10004_v3  ;;  %v958_v40 = vmul.f32 %v10005_v56, %v10006_v2  ;;  %v993_v45 = vmul.f32 %v10008_v24, %v10007_v18  ;;  %v2095_v12 = vadd.f32 %v2079_v8, %v2059_v46  ;;  %v10013_v2 = vld [vmem:[#allocation120_spill] sm:$0xff]  ;;  %v10014_v18 = vld [vmem:[#allocation169_spill] sm:$0xff]  ;;  %v10015_v8 = vld [vmem:[#allocation43_spill] sm:$0xff] }
 0x2e8   : > { %v2284_v60 = vmul.f32 %v9766_v29, %v10009_v47  ;;  %v864_v11 = vsel %vm838_vm0, %v835_v44, %v821_v41  ;;  %v994_v17 = vmul.f32 %v10008_v24, %v10010_v48  ;;  %v2379_v33 = vadd.f32 %v2363_v25, %v2343_v63  ;;  %v10017_v29 = vld [vmem:[#allocation170_spill] sm:$0xff]  ;;  %v10019_v48 = vld [vmem:[#allocation167_spill] sm:$0xff] }
 0x2e9   : > { %v7007_v27 = vsel %vm869_vm1, %v864_v11, 0.0  ;;  %v973_v3 = vadd.f32 %v957_v52, %v921_v22  ;;  %v974_v56 = vadd.f32 %v958_v40, %v922_v31  ;;  %v2228_v16 = vadd.f32 %v10013_v2, %v2095_v12  ;;  %v10020_v52 = vld [vmem:[#allocation109_spill] sm:$0xff]  ;;  %v10021_v31 = vld [vmem:[#allocation127_spill] sm:$0xff] }
 0x2ea   : > { %10012 = vst [vmem:[#allocation179_spill] sm:$0xff] %v7007_v27  ;;  %v1029_v46 = vmul.f32 %v10015_v8, %v10014_v18  ;;  %v1030_v47 = vmul.f32 %v10015_v8, %v10016_v23  ;;  %v1065_v57 = vmul.f32 %v10018_v43, %v10017_v29  ;;  %v2415_v24 = vadd.f32 %v6875_v36, %v2379_v33  ;;  %v10023_v40 = vld [vmem:[#allocation171_spill] sm:$0xff]  ;;  %v10024_v8 = vld [vmem:[#allocation48_spill] sm:$0xff] }
 0x2eb   : > { %v1009_v25 = vadd.f32 %v993_v45, %v973_v3  ;;  %v1010_v63 = vadd.f32 %v994_v17, %v974_v56  ;;  %v1066_v11 = vmul.f32 %v10018_v43, %v10019_v48  ;;  %v2264_v22 = vadd.f32 %v10020_v52, %v2228_v16  ;;  %v10025_v56 = vld [vmem:[#allocation168_spill] sm:$0xff] }
 0x2ec   : > { %v2320_v12 = vmul.f32 %v9767_v21, %v10021_v31  ;;  %v7024_v2 = vsel %vm838_vm0, %v821_v41, %v835_v44  ;;  %v1101_v23 = vmul.f32 %v10024_v8, %v10023_v40  ;;  %v2451_v29 = vadd.f32 %v6892_v30, %v2415_v24  ;;  %v10027_v33 = vld [vmem:[#allocation128_spill] sm:$0xff]  ;;  %v10028_v41 = vld [vmem:[#allocation49_spill] sm:$0xff] }
 0x2ed   : > { %10022 = vst [vmem:[#allocation150_spill] sm:$0xff] %v7024_v2  ;;  %v1045_v36 = vadd.f32 %v1029_v46, %v1009_v25  ;;  %v1046_v45 = vadd.f32 %v1030_v47, %v1010_v63  ;;  %v1102_v3 = vmul.f32 %v10024_v8, %v10025_v56  ;;  %v7033_v16 = vsel %vm2869_vm11, %v2858_v9, 0.0  ;;  %v10029_v46 = vld [vmem:[#allocation129_spill] sm:$0xff]  ;;  %v10030_v9 = vld [vmem:[#allocation192_spill] sm:$0xff] }
 0x2ee   : > { %10026 = vst [vmem:[#allocation151_spill] sm:$0xff] %v7033_v16  ;;  %v2300_v17 = vadd.f32 %v2284_v60, %v2264_v22  ;;  %v2356_v52 = vmul.f32 %v9969_v20, %v10027_v33  ;;  %v1137_v44 = vmul.f32 %v10028_v41, %v7007_v27  ;;  %v2584_v31 = vadd.f32 %v6917_v53, %v2451_v29  ;;  %v10031_v63 = vld [vmem:[#allocation68_spill] sm:$0xff]  ;;  %v10032_v22 = vld [vmem:[#allocation59_spill] sm:$0xff] }
 0x2ef   : > { %v1081_v43 = vadd.f32 %v1065_v57, %v1045_v36  ;;  %v1082_v24 = vadd.f32 %v1066_v11, %v1046_v45  ;;  %v1138_v30 = vmul.f32 %v10028_v41, %v7024_v2  ;;  %v2392_v25 = vmul.f32 %v9972_v38, %v10029_v46  ;;  %v10033_v29 = vld [vmem:[#allocation55_spill] sm:$0xff]  ;;  %v10034_v36 = vld [vmem:[#allocation69_spill] sm:$0xff]  ;;  %v10035_v45 = vld [vmem:[#allocation60_spill] sm:$0xff] }
 0x2f0   : > { %v2336_v47 = vadd.f32 %v2320_v12, %v2300_v17  ;;  %v2428_v60 = vmul.f32 %v9978_v1, %v10030_v9  ;;  %v1270_v8 = vmul.f32 %v10032_v22, %v10031_v63  ;;  %v2620_v56 = vadd.f32 %v6925_v10, %v2584_v31  ;;  %v10036_v63 = vld [vmem:[#allocation56_spill] sm:$0xff] }
 0x2f1   : > { %v1117_v27 = vadd.f32 %v1101_v23, %v1081_v43  ;;  %v1118_v40 = vadd.f32 %v1102_v3, %v1082_v24  ;;  %v1271_v57 = vmul.f32 %v10032_v22, %v10033_v29  ;;  %v1170_v11 = vrot.slane %v6944_v28, 6  ;;  %v10039_v3 = vld [vmem:[#allocation72_spill] sm:$0xff]  ;;  %v10043_v29 = vld [vmem:[#allocation65_spill] sm:$0xff] }
 0x2f2   : > { %v2372_v53 = vadd.f32 %v2356_v52, %v2336_v47  ;;  %v1184_v12 = vrot.slane %v6959_v15, 6  ;;  %v1306_v17 = vmul.f32 %v10035_v45, %v10034_v36  ;;  %v2656_v2 = vadd.f32 %v6929_v42, %v2620_v56  ;;  %v10040_v52 = vld [vmem:[#allocation62_spill] sm:$0xff]  ;;  %v10041_v56 = vld [vmem:[#allocation76_spill] sm:$0xff]  ;;  %v10058_v22 = vld [vmem:[#allocation145_spill] sm:$0xff] }
 0x2f3   : > { %v1153_v48 = vadd.f32 %v1137_v44, %v1117_v27  ;;  %v1154_v14 = vadd.f32 %v1138_v30, %v1118_v40  ;;  %v1307_v10 = vmul.f32 %v10035_v45, %v10036_v63  ;;  %v7061_v43 = vsel %vm2869_vm11, %v6973_v34, 0.0  ;;  %v10072_v18 = vld [vmem:[#allocation84_spill] sm:$0xff] }
 0x2f4   : > { %10037 = vst [vmem:[#allocation45_spill] sm:$0xff] %v7061_v43  ;;  %v7065_v23 = vsel %vm2869_vm11, %v2860_v19, 0.0  ;;  %v2408_v31 = vadd.f32 %v2392_v25, %v2372_v53  ;;  %v1342_v24 = vmul.f32 %v10040_v52, %v10039_v3  ;;  %v2692_v42 = vadd.f32 %v6933_v59, %v2656_v2  ;;  %v10042_v19 = vld [vmem:[#allocation172_spill] sm:$0xff]  ;;  %v10044_v59 = vld [vmem:[#allocation175_spill] sm:$0xff] }
 0x2f5   : > { %10038 = vst [vmem:[#allocation38_spill] sm:$0xff] %v7065_v23  ;;  %v1286_v27 = vadd.f32 %v1270_v8, %v1153_v48  ;;  %v1287_v40 = vadd.f32 %v1271_v57, %v1154_v14  ;;  %v1343_v44 = vmul.f32 %v10040_v52, %v10041_v56  ;;  %v2917_v30 = vmul.f32 %v9731_v32, %v6766_v39  ;;  %v10045_v2 = vld [vmem:[#allocation183_spill] sm:$0xff]  ;;  %v10046_v57 = vld [vmem:[#allocation141_spill] sm:$0xff] }
 0x2f6   : > { %v2444_v34 = vadd.f32 %v2428_v60, %v2408_v31  ;;  %v1213_v47 = vsel %vm1187_vm2, %v1184_v12, %v1170_v11  ;;  %v1378_v25 = vmul.f32 %v10043_v29, %v10042_v19  ;;  %v2728_v53 = vadd.f32 %v6948_v35, %v2692_v42 }
 0x2f7   : > { %v1322_v45 = vadd.f32 %v1306_v17, %v1286_v27  ;;  %v1323_v63 = vadd.f32 %v1307_v10, %v1287_v40  ;;  %v1379_v48 = vmul.f32 %v10043_v29, %v10044_v59  ;;  %v2953_v14 = vmul.f32 %v9736_v61, %v6773_v0  ;;  %v10047_v17 = vld [vmem:[#allocation173_spill] sm:$0xff]  ;;  %v10048_v10 = vld [vmem:[#allocation67_spill] sm:$0xff]  ;;  %v10049_v27 = vld [vmem:[#allocation186_spill] sm:$0xff] }
 0x2f8   : > { %v2989_v8 = vmul.f32 %v9878_v26, %v6778_v58  ;;  %v2577_v60 = vadd.f32 %v10045_v2, %v2444_v34  ;;  %v2633_v31 = vmul.f32 %v9990_v50, %v10046_v57  ;;  %v2764_v52 = vadd.f32 %v6952_v54, %v2728_v53  ;;  %v10050_v29 = vld [vmem:[#allocation142_spill] sm:$0xff]  ;;  %v10056_v53 = vld [vmem:[#allocation163_spill] sm:$0xff] }
 0x2f9   : > { %v1358_v56 = vadd.f32 %v1342_v24, %v1322_v45  ;;  %v1359_v35 = vadd.f32 %v1343_v44, %v1323_v63  ;;  %v1414_v42 = vmul.f32 %v10048_v10, %v10047_v17  ;;  %v2669_v59 = vmul.f32 %v9918_v62, %v10050_v29  ;;  %v10053_v34 = vld [vmem:[#allocation178_spill] sm:$0xff]  ;;  %v10057_v17 = vld [vmem:[#allocation143_spill] sm:$0xff] }
 0x2fa   : > { %v2613_v40 = vadd.f32 %v10049_v27, %v2577_v60  ;;  %v7096_v19 = vsel %vm1218_vm3, %v1213_v47, 0.0  ;;  %v1415_v2 = vmul.f32 %v10048_v10, %v10053_v34  ;;  %v2800_v57 = vadd.f32 %v6956_v49, %v2764_v52  ;;  %v10054_v63 = vld [vmem:[#allocation174_spill] sm:$0xff]  ;;  %v10060_v52 = vld [vmem:[#allocation47_spill] sm:$0xff] }
 0x2fb   : > { %10052 = vst [vmem:[#allocation120_spill] sm:$0xff] %v7096_v19  ;;  %v1394_v54 = vadd.f32 %v1378_v25, %v1358_v56  ;;  %v1395_v45 = vadd.f32 %v1379_v48, %v1359_v35  ;;  %v10055_v24 = vld [vmem:[#allocation46_spill] sm:$0xff]  ;;  %v3025_v60 = vmul.f32 %v10056_v53, %v6985_v55  ;;  %v2705_v29 = vmul.f32 %v9926_v51, %v10057_v17  ;;  %v10086_v0 = vld [vmem:[#allocation187_spill] sm:$0xff] }
 0x2fc   : > { %v1450_v44 = vmul.f32 %v10055_v24, %v10054_v63  ;;  %v2649_v27 = vadd.f32 %v2633_v31, %v2613_v40  ;;  %v2741_v47 = vmul.f32 %v9931_v37, %v10058_v22  ;;  %v2933_v6 = vadd.f32 %v2917_v30, %v2800_v57  ;;  %v10061_v48 = vld [vmem:[#allocation182_spill] sm:$0xff]  ;;  %v10062_v30 = vld [vmem:[#allocation89_spill] sm:$0xff] }
 0x2fd   : > { %v7111_v34 = vsel %vm1187_vm2, %v1170_v11, %v1184_v12  ;;  %v1430_v49 = vadd.f32 %v1414_v42, %v1394_v54  ;;  %v1486_v56 = vmul.f32 %v10060_v52, %v7096_v19  ;;  %v1451_v35 = vmul.f32 %v10055_v24, %v10061_v48  ;;  %v10063_v57 = vld [vmem:[#allocation82_spill] sm:$0xff]  ;;  %v10064_v11 = vld [vmem:[#allocation164_spill] sm:$0xff]  ;;  %v10065_v42 = vld [vmem:[#allocation165_spill] sm:$0xff] }
 0x2fe   : > { %10059 = vst [vmem:[#allocation109_spill] sm:$0xff] %v7111_v34  ;;  %v2685_v25 = vadd.f32 %v2669_v59, %v2649_v27  ;;  %v1519_v31 = vrot.slane %v6944_v28, 7  ;;  %v1533_v40 = vrot.slane %v6959_v15, 7  ;;  %v2969_v63 = vadd.f32 %v2953_v14, %v2933_v6  ;;  %v10066_v27 = vld [vmem:[#allocation199_spill] sm:$0xff]  ;;  %v10067_v24 = vld [vmem:[#allocation58_spill] sm:$0xff]  ;;  %v10068_v14 = vld [vmem:[#allocation92_spill] sm:$0xff] }
 0x2ff   : > { %v1431_v3 = vadd.f32 %v1415_v2, %v1395_v45  ;;  %v1466_v10 = vadd.f32 %v1450_v44, %v1430_v49  ;;  %v1619_v36 = vmul.f32 %v10063_v57, %v10062_v30  ;;  %v3061_v12 = vmul.f32 %v10064_v11, %v7033_v16  ;;  %v10069_v2 = vld [vmem:[#allocation83_spill] sm:$0xff] }
 0x300   : > { %v3097_v54 = vmul.f32 %v10065_v42, %v7061_v43  ;;  %v2721_v59 = vadd.f32 %v2705_v29, %v2685_v25  ;;  %v2777_v19 = vmul.f32 %v9932_v13, %v10066_v27  ;;  %v3005_v48 = vadd.f32 %v2989_v8, %v2969_v63  ;;  %v10070_v49 = vld [vmem:[#allocation159_spill] sm:$0xff]  ;;  %v10071_v63 = vld [vmem:[#allocation102_spill] sm:$0xff] }
 0x301   : > { %v3133_v41 = vmul.f32 %v10067_v24, %v7065_v23  ;;  %v1502_v6 = vadd.f32 %v1486_v56, %v1466_v10  ;;  %v1655_v45 = vmul.f32 %v10069_v2, %v10068_v14  ;;  %v2982_v30 = vmul.f32 %v9878_v26, %v10070_v49  ;;  %v10073_v56 = vld [vmem:[#allocation161_spill] sm:$0xff] }
 0x302   : > { %v2757_v44 = vadd.f32 %v2741_v47, %v2721_v59  ;;  %v1487_v16 = vmul.f32 %v10060_v52, %v7111_v34  ;;  %v1562_v29 = vsel %vm1536_vm4, %v1533_v40, %v1519_v31  ;;  %v3041_v25 = vadd.f32 %v3025_v60, %v3005_v48  ;;  %v10074_v47 = vld [vmem:[#allocation162_spill] sm:$0xff]  ;;  %v10075_v49 = vld [vmem:[#allocation61_spill] sm:$0xff] }
 0x303   : > { %v1467_v43 = vadd.f32 %v1451_v35, %v1431_v3  ;;  %v1635_v8 = vadd.f32 %v1619_v36, %v1502_v6  ;;  %v1691_v23 = vmul.f32 %v10072_v18, %v10071_v63  ;;  %v3018_v14 = vmul.f32 %v10056_v53, %v10073_v56  ;;  %v10078_v36 = vld [vmem:[#allocation184_spill] sm:$0xff]  ;;  %v10079_v60 = vld [vmem:[#allocation85_spill] sm:$0xff]  ;;  %v10083_v63 = vld [vmem:[#allocation74_spill] sm:$0xff] }
 0x304   : > { %v2793_v10 = vadd.f32 %v2777_v19, %v2757_v44  ;;  %v3054_v59 = vmul.f32 %v10064_v11, %v10074_v47  ;;  %v3090_v55 = vmul.f32 %v10065_v42, %v10075_v49  ;;  %v3077_v34 = vadd.f32 %v3061_v12, %v3041_v25  ;;  %v10080_v35 = vld [vmem:[#allocation156_spill] sm:$0xff]  ;;  %v10085_v52 = vld [vmem:[#allocation86_spill] sm:$0xff]  ;;  %v10089_v42 = vld [vmem:[#allocation87_spill] sm:$0xff] }
 0x305   : > { %v7147_v58 = vsel %vm1567_vm5, %v1562_v29, 0.0  ;;  %v1671_v3 = vadd.f32 %v1655_v45, %v1635_v8  ;;  %v1727_v48 = vmul.f32 %v10079_v60, %v10078_v36  ;;  %v10081_v6 = vld [vmem:[#allocation32_spill] sm:$0xff]  ;;  %v7156_v56 = vsel %vm1536_vm4, %v1519_v31, %v1533_v40  ;;  %v10084_v8 = vld [vmem:[#allocation185_spill] sm:$0xff] }
 0x306   : > { %10077 = vst [vmem:[#allocation68_spill] sm:$0xff] %v7147_v58  ;;  %v2926_v19 = vadd.f32 %v10080_v35, %v2793_v10  ;;  %v3126_v44 = vmul.f32 %v10067_v24, %v10081_v6  ;;  %10082 = vst [vmem:[#allocation183_spill] sm:$0xff] %v7156_v56  ;;  %v1620_v12 = vmul.f32 %v10063_v57, %v10083_v63  ;;  %v10087_v35 = vld [vmem:[#allocation75_spill] sm:$0xff]  ;;  %v10088_v24 = vld [vmem:[#allocation189_spill] sm:$0xff] }
 0x307   : > { %v3113_v25 = vadd.f32 %v3097_v54, %v3077_v34  ;;  %v1503_v29 = vadd.f32 %v1487_v16, %v1467_v43  ;;  %v1707_v45 = vadd.f32 %v1691_v23, %v1671_v3  ;;  %v1763_v36 = vmul.f32 %v10085_v52, %v10084_v8  ;;  %v10090_v40 = vld [vmem:[#allocation88_spill] sm:$0xff]  ;;  %v7176_v54 = vld [vmem:[%s4716_s1 + $0x50] sm:$0xff]  ;;  %v10099_v8 = vld [vmem:[#allocation111_spill] sm:$0xff] }
 0x308   : > { %v2962_v10 = vadd.f32 %v10086_v0, %v2926_v19  ;;  %v1656_v39 = vmul.f32 %v10069_v2, %v10087_v35  ;;  %v1799_v31 = vmul.f32 %v10089_v42, %v10088_v24  ;;  %v1835_v11 = vmul.f32 %v10090_v40, %v7147_v58  ;;  %10092 = vst [vmem:[#allocation156_spill] sm:$0xff] %v7176_v54  ;;  %v10093_v3 = vld [vmem:[#allocation90_spill] sm:$0xff]  ;;  %v7181_v24 = vld [vmem:[%s4716_s1 + $0x60] sm:$0xff] }
 0x309   : > { %v3149_v63 = vadd.f32 %v3133_v41, %v3113_v25  ;;  %v1743_v34 = vadd.f32 %v1727_v48, %v1707_v45  ;;  %v7173_v0 = vmul.f32 %v10090_v40, %v7156_v56  ;;  %v1871_v19 = vmul.f32 %v7176_v54, %v10093_v3  ;;  %10094 = vst [vmem:[#allocation187_spill] sm:$0xff] %v7181_v24  ;;  %v10095_v41 = vld [vmem:[#allocation103_spill] sm:$0xff]  ;;  %v10097_v16 = vld [vmem:[#allocation108_spill] sm:$0xff]  ;;  %v7193_v58 = vld [vmem:[%s4716_s1 + $0x90] sm:$0xff] }
 0x30a   : > { %v2998_v23 = vadd.f32 %v2982_v30, %v2962_v10  ;;  %v1907_v48 = vmul.f32 %v7181_v24, %v10095_v41  ;;  %v1636_v25 = vadd.f32 %v1620_v12, %v1503_v29  ;;  %v1943_v30 = vmul.f32 %v6238_v7, %v9947_v5  ;;  %v7188_v10 = vld [vmem:[%s4716_s1 + $0x80] sm:$0xff]  ;;  %10098 = vst [vmem:[#allocation212_spill] sm:$0xff] %v7193_v58  ;;  %v10102_v7 = vld [vmem:[#allocation119_spill] sm:$0xff] }
 0x30b   : > { %10091 = vst [vmem:[#allocation186_spill] sm:$0xff] %v7173_v0  ;;  %3717 = vmatmul.mubr.f32.vlgmr.msra.gmra.mrb[0].mxu1 %v3149_v63  ;;  %v1779_v45 = vadd.f32 %v1763_v36, %v1743_v34  ;;  %10096 = vst [vmem:[#allocation211_spill] sm:$0xff] %v7188_v10  ;;  %v1979_v43 = vmul.f32 %v7188_v10, %v10097_v16  ;;  %v2015_v2 = vmul.f32 %v7193_v58, %v10099_v8  ;;  %v7198_v35 = vld [vmem:[%s4716_s1 + $0xa0] sm:$0xff]  ;;  %v10101_v63 = vld [vmem:[#allocation113_spill] sm:$0xff] }
 0x30c   : > { %v3034_v56 = vadd.f32 %v3018_v14, %v2998_v23  ;;  %10100 = vst [vmem:[#allocation213_spill] sm:$0xff] %v7198_v35  ;;  %v7202_v36 = vmul.f32 %v7198_v35, %v10101_v63  ;;  %v7206_v12 = vmul.f32 %v10102_v7, %v6944_v28  ;;  %v10103_v34 = vrot.slane %v6959_v15, 1  ;;  %v10106_v58 = vld [vmem:[#allocation121_spill] sm:$0xff]  ;;  %v10107_v35 = vld [vmem:[#allocation122_spill] sm:$0xff]  ;;  %v7229_v54 = vld [vmem:[%s4716_s1 + $0x38] sm:$0xff] }
 0x30d   : > { %v1815_v29 = vadd.f32 %v1799_v31, %v1779_v45  ;;  %v10104_v14 = vrot.slane %v6944_v28, 1  ;;  %v7218_v57 = vmul.f32 %v10106_v58, %v10027_v33  ;;  %v7222_v10 = vmul.f32 %v10107_v35, %v10029_v46  ;;  %v10109_v31 = vld [vmem:[#allocation123_spill] sm:$0xff]  ;;  %10111 = vst [vmem:[#allocation217_spill] sm:$0xff] %v7229_v54  ;;  %v10114_v0 = vld [vmem:[#allocation180_spill] sm:$0xff] }
 0x30e   : > { %v3070_v24 = vadd.f32 %v3054_v59, %v3034_v56  ;;  %v7226_v45 = vmul.f32 %v10109_v31, %v10030_v9  ;;  %v1672_v40 = vadd.f32 %v1656_v39, %v1636_v25  ;;  %v10113_v9 = vld [vmem:[#allocation193_spill] sm:$0xff]  ;;  %v10116_v39 = vld [vmem:[#allocation194_spill] sm:$0xff]  ;;  %v10117_v25 = vld [vmem:[#allocation195_spill] sm:$0xff] }
 0x30f   : > { %v7214_v23 = vsel %vm2137_vm6, %v10104_v14, %v10103_v34  ;;  %10108 = vst [vmem:[#allocation215_spill] sm:$0xff] %v7222_v10  ;;  %v1936_v34 = vmul.f32 %v7229_v54, %v9947_v5  ;;  %v7234_v14 = vld [vmem:[%s4716_s1 + $0x48] sm:$0xff]  ;;  %v1851_v41 = vadd.f32 %v1835_v11, %v1815_v29  ;;  %v7246_v54 = vld [vmem:[%s4716_s1 + $0x58] sm:$0xff]  ;;  %v7252_v11 = vmul.f32 %v9969_v20, %v10116_v39 }
 0x310   : > { %10105 = vst [vmem:[#allocation214_spill] sm:$0xff] %v7214_v23  ;;  %10110 = vst [vmem:[#allocation216_spill] sm:$0xff] %v7226_v45  ;;  %v1972_v33 = vmul.f32 %v7234_v14, %v10097_v16  ;;  %v3106_v59 = vadd.f32 %v3090_v55, %v3070_v24  ;;  %v7242_v45 = vmul.f32 %v9767_v21, %v10113_v9  ;;  %v7267_v56 = vld [vmem:[%s4716_s1 + $0x68] sm:$0xff]  ;;  %v10121_v39 = vrot.slane %v6959_v15, 2 }
 0x311   : > { %10112 = vst [vmem:[#allocation218_spill] sm:$0xff] %v7234_v14  ;;  %v1952_v10 = vadd.f32 %v1936_v34, %v10114_v0  ;;  %10115 = vst [vmem:[#allocation180_spill] sm:$0xff] %v7246_v54  ;;  %v2008_v5 = vmul.f32 %v7246_v54, %v10099_v8  ;;  %v1887_v14 = vadd.f32 %v1871_v19, %v1851_v41  ;;  %v10118_v0 = vld [vmem:[#allocation133_spill] sm:$0xff] }
 0x312   : > { %v7256_v29 = vmul.f32 %v9972_v38, %v10117_v25  ;;  %v7260_v55 = vmul.f32 %v9978_v1, %v7214_v23  ;;  %v3142_v24 = vadd.f32 %v3126_v44, %v3106_v59  ;;  %v7264_v34 = vmul.f32 %v10118_v0, %v10057_v17  ;;  %10120 = vst [vmem:[#allocation220_spill] sm:$0xff] %v7267_v56  ;;  %v10124_v44 = vld [vmem:[#allocation135_spill] sm:$0xff]  ;;  %v10127_v17 = vld [vmem:[#allocation190_spill] sm:$0xff] }
 0x313   : > { %v1988_v46 = vadd.f32 %v1972_v33, %v1952_v10  ;;  %v2044_v19 = vmul.f32 %v7267_v56, %v10101_v63  ;;  %v1923_v41 = vadd.f32 %v1907_v48, %v1887_v14  ;;  %v10122_v25 = vrot.slane %v6944_v28, 2 }
 0x314   : > { %10119 = vst [vmem:[#allocation219_spill] sm:$0xff] %v7264_v34  ;;  %v7281_v59 = vmul.f32 %v10124_v44, %v10058_v22  ;;  %v7285_v33 = vmul.f32 %v9990_v50, %v10066_v27  ;;  %3707 = vmatprep.mubr.f32.mxu0 %v3142_v24  ;;  %v2080_v9 = vmul.f32 %v10127_v17, %v10102_v7  ;;  %v10130_v22 = vld [vmem:[#allocation201_spill] sm:$0xff]  ;;  %v10132_v27 = vld [vmem:[#allocation202_spill] sm:$0xff]  ;;  %v10136_v17 = vld [vmem:[#allocation23_spill] sm:$0xff] }
 0x315   : > { %v7277_v23 = vsel %vm2486_vm7, %v10122_v25, %v10121_v39  ;;  %v2024_v14 = vadd.f32 %v2008_v5, %v1988_v46  ;;  %v1959_v34 = vadd.f32 %v1943_v30, %v1923_v41  ;;  %v10128_v39 = vld [vmem:[#allocation200_spill] sm:$0xff]  ;;  %v7301_v24 = vmul.f32 %v9931_v37, %v10132_v27 }
 0x316   : > { %10123 = vst [vmem:[#allocation221_spill] sm:$0xff] %v7277_v23  ;;  %10125 = vst [vmem:[#allocation222_spill] sm:$0xff] %v7281_v59  ;;  %v7293_v25 = vmul.f32 %v9918_v62, %v10128_v39  ;;  %v7297_v59 = vmul.f32 %v9926_v51, %v10130_v22  ;;  %v7305_v10 = vmul.f32 %v9932_v13, %v7277_v23  ;;  %v10139_v22 = vld [vmem:[#allocation101_spill] sm:$0xff]  ;;  %v10140_v39 = vrot.slane %v6959_v15, 3 }
 0x317   : > { %10126 = vst [vmem:[#allocation223_spill] sm:$0xff] %v7285_v33  ;;  %10133 = vst [vmem:[#allocation225_spill] sm:$0xff] %v7301_v24  ;;  %v7309_v5 = vmul.f32 %v9731_v32, %v10074_v47  ;;  %v2060_v46 = vadd.f32 %v2044_v19, %v2024_v14  ;;  %v2213_v30 = vmul.f32 %v10106_v58, %v10136_v17  ;;  %v10141_v47 = vrot.slane %v6944_v28, 3  ;;  %v10144_v17 = vld [vmem:[#allocation198_spill] sm:$0xff]  ;;  %v10149_v24 = vld [vmem:[#allocation164_spill] sm:$0xff] }
 0x318   : > { %10129 = vst [vmem:[#allocation190_spill] sm:$0xff] %v7293_v25  ;;  %10131 = vst [vmem:[#allocation224_spill] sm:$0xff] %v7297_v59  ;;  %v1995_v41 = vadd.f32 %v1979_v43, %v1959_v34  ;;  %v7315_v48 = vmul.f32 %v9736_v61, %v10075_v49  ;;  %v7319_v27 = vmul.f32 %v9878_v26, %v10081_v6  ;;  %v10143_v34 = vld [vmem:[#allocation24_spill] sm:$0xff]  ;;  %v10154_v59 = vld [vmem:[#allocation25_spill] sm:$0xff] }
 0x319   : > { %10134 = vst [vmem:[#allocation226_spill] sm:$0xff] %v7305_v10  ;;  %10135 = vst [vmem:[#allocation227_spill] sm:$0xff] %v7309_v5  ;;  %v1692_v23 = vmul.f32 %v10072_v18, %v10139_v22  ;;  %v7329_v19 = vsel %vm2835_vm8, %v10141_v47, %v10140_v39  ;;  %v2096_v43 = vadd.f32 %v2080_v9, %v2060_v46  ;;  %v10147_v22 = vld [vmem:[#allocation203_spill] sm:$0xff]  ;;  %v10148_v10 = vld [vmem:[#allocation144_spill] sm:$0xff] }
 0x31a   : > { %10137 = vst [vmem:[#allocation23_spill] sm:$0xff] %v7315_v48  ;;  %10138 = vst [vmem:[#allocation228_spill] sm:$0xff] %v7319_v27  ;;  %v2249_v14 = vmul.f32 %v10107_v35, %v10143_v34  ;;  %v1728_v49 = vmul.f32 %v10079_v60, %v10144_v17  ;;  %v2031_v6 = vadd.f32 %v2015_v2, %v1995_v41  ;;  %v10145_v27 = vld [vmem:[#allocation34_spill] sm:$0xff]  ;;  %v10151_v9 = vld [vmem:[#allocation29_spill] sm:$0xff] }
 0x31b   : > { %10142 = vst [vmem:[#allocation229_spill] sm:$0xff] %v7329_v19  ;;  %v7337_v48 = vmul.f32 %v10056_v53, %v10145_v27  ;;  %v1708_v18 = vadd.f32 %v1692_v23, %v1672_v40  ;;  %v1764_v5 = vmul.f32 %v10085_v52, %v10147_v22  ;;  %v7343_v47 = vmul.f32 %v10149_v24, %v10148_v10  ;;  %v10152_v39 = vld [vmem:[#allocation165_spill] sm:$0xff]  ;;  %v10155_v27 = vld [vmem:[#allocation58_spill] sm:$0xff]  ;;  %v10157_v22 = vld [vmem:[#allocation188_spill] sm:$0xff] }
 0x31c   : > { %v7347_v46 = vmul.f32 %v10152_v39, %v10151_v9  ;;  %v2229_v34 = vadd.f32 %v2213_v30, %v2096_v43  ;;  %v2285_v2 = vmul.f32 %v10109_v31, %v10154_v59  ;;  %v2067_v41 = vadd.f32 %v7202_v36, %v2031_v6  ;;  %v10159_v9 = vld [vmem:[#allocation30_spill] sm:$0xff]  ;;  %v10160_v43 = vld [vmem:[#allocation33_spill] sm:$0xff] }
 0x31d   : > { %10146 = vst [vmem:[#allocation230_spill] sm:$0xff] %v7337_v48  ;;  %10150 = vst [vmem:[#allocation231_spill] sm:$0xff] %v7343_v47  ;;  %v7354_v40 = vmul.f32 %v10155_v27, %v7329_v19  ;;  %v1744_v23 = vadd.f32 %v1728_v49, %v1708_v18  ;;  %v1800_v17 = vmul.f32 %v10089_v42, %v10157_v22  ;;  %v10158_v47 = vld [vmem:[#allocation28_spill] sm:$0xff]  ;;  %v10161_v36 = vld [vmem:[#allocation206_spill] sm:$0xff] }
 0x31e   : > { %10153 = vst [vmem:[#allocation232_spill] sm:$0xff] %v7347_v46  ;;  %v2265_v10 = vadd.f32 %v2249_v14, %v2229_v34  ;;  %v2321_v48 = vmul.f32 %v9767_v21, %v10158_v47  ;;  %v2357_v30 = vmul.f32 %v9969_v20, %v10159_v9  ;;  %v2393_v59 = vmul.f32 %v9972_v38, %v10160_v43  ;;  %v10163_v34 = vld [vmem:[#allocation191_spill] sm:$0xff]  ;;  %v10164_v47 = vld [vmem:[#allocation197_spill] sm:$0xff] }
 0x31f   : > { %10156 = vst [vmem:[#allocation233_spill] sm:$0xff] %v7354_v40  ;;  %v2103_v6 = vadd.f32 %v7206_v12, %v2067_v41  ;;  %v2429_v19 = vmul.f32 %v9978_v1, %v10161_v36  ;;  %v10162_v40 = vld [vmem:[#allocation148_spill] sm:$0xff]  ;;  %v1780_v49 = vadd.f32 %v1764_v5, %v1744_v23  ;;  %v2598_v14 = vmul.f32 %v10124_v44, %v10163_v34  ;;  %v10165_v42 = vld [vmem:[#allocation35_spill] sm:$0xff]  ;;  %v10178_v33 = vld [vmem:[#allocation205_spill] sm:$0xff] }
 0x320   : > { %v2562_v18 = vmul.f32 %v10118_v0, %v10162_v40  ;;  %v2301_v22 = vadd.f32 %v2285_v2, %v2265_v10  ;;  %v2634_v46 = vmul.f32 %v9990_v50, %v10164_v47  ;;  %v7375_v52 = vmul.f32 %v9918_v62, %v10165_v42  ;;  %v10166_v41 = vld [vmem:[#allocation116_spill] sm:$0xff]  ;;  %v10171_v47 = vld [vmem:[#allocation37_spill] sm:$0xff] }
 0x321   : > { %v2236_v12 = vadd.f32 %v7218_v57, %v2103_v6  ;;  %v7380_v60 = vmul.f32 %v9926_v51, %v10166_v41  ;;  %v1816_v25 = vadd.f32 %v1800_v17, %v1780_v49  ;;  %v1872_v10 = vmul.f32 %v7246_v54, %v10093_v3  ;;  %v10167_v2 = vld [vmem:[#allocation36_spill] sm:$0xff]  ;;  %v10173_v6 = vld [vmem:[#allocation215_spill] sm:$0xff] }
 0x322   : > { %v2337_v5 = vadd.f32 %v2321_v48, %v2301_v22  ;;  %v7386_v40 = vmul.f32 %v9931_v37, %v10167_v2  ;;  %v10169_v23 = vld [vmem:[#allocation196_spill] sm:$0xff]  ;;  %v7394_v57 = vmul.f32 %v9731_v32, %v10171_v47  ;;  %v10176_v22 = vld [vmem:[#allocation186_spill] sm:$0xff]  ;;  %v10177_v54 = vld [vmem:[#allocation103_spill] sm:$0xff] }
 0x323   : > { %v7390_v42 = vmul.f32 %v9932_v13, %v10169_v23  ;;  %v2272_v17 = vadd.f32 %v10173_v6, %v2236_v12  ;;  %v10174_v49 = vld [vmem:[#allocation204_spill] sm:$0xff]  ;;  %v1852_v48 = vadd.f32 %v10176_v22, %v1816_v25  ;;  %v1908_v3 = vmul.f32 %v7267_v56, %v10177_v54  ;;  %v10180_v47 = vld [vmem:[#allocation149_spill] sm:$0xff] }
 0x324   : > { %10168 = vst [vmem:[#allocation148_spill] sm:$0xff] %v7386_v40  ;;  %10172 = vst [vmem:[#allocation37_spill] sm:$0xff] %v7394_v57  ;;  %v7399_v34 = vmul.f32 %v9736_v61, %v10174_v49  ;;  %v2373_v40 = vadd.f32 %v2357_v30, %v2337_v5  ;;  %v7410_v57 = vmul.f32 %v10056_v53, %v10180_v47  ;;  %v10182_v12 = vld [vmem:[#allocation152_spill] sm:$0xff]  ;;  %v7422_v5 = vld [vmem:[%s4716_s1 + $0x78] sm:$0xff] }
 0x325   : > { %10170 = vst [vmem:[#allocation234_spill] sm:$0xff] %v7390_v42  ;;  %v7406_v42 = vmul.f32 %v9878_v26, %v10178_v33  ;;  %v7414_v6 = vmul.f32 %v10149_v24, %v10182_v12  ;;  %v10183_v49 = vld [vmem:[#allocation216_spill] sm:$0xff]  ;;  %v1888_v30 = vadd.f32 %v1872_v10, %v1852_v48  ;;  %v10187_v47 = vld [vmem:[#allocation31_spill] sm:$0xff]  ;;  %v7431_v54 = vld [vmem:[%s4716_s1 + $0x88] sm:$0xff]  ;;  %v2088_v24 = vmul.f32 %v10102_v7, %v6959_v15 }
 0x326   : > { %10175 = vst [vmem:[#allocation215_spill] sm:$0xff] %v7399_v34  ;;  %10181 = vst [vmem:[#allocation235_spill] sm:$0xff] %v7410_v57  ;;  %v2308_v25 = vadd.f32 %v10183_v49, %v2272_v17  ;;  %v10184_v22 = vld [vmem:[#allocation208_spill] sm:$0xff]  ;;  %v2409_v34 = vadd.f32 %v2393_v59, %v2373_v40  ;;  %v7428_v57 = vmul.f32 %v10155_v27, %v10187_v47  ;;  %v10190_v49 = vrot.slane %v6944_v28, 1  ;;  %v7443_v59 = vld [vmem:[%s4716_s1 + $0x98] sm:$0xff] }
 0x327   : > { %10179 = vst [vmem:[#allocation186_spill] sm:$0xff] %v7406_v42  ;;  %v7419_v56 = vmul.f32 %v10152_v39, %v10184_v22  ;;  %10185 = vst [vmem:[#allocation216_spill] sm:$0xff] %v7422_v5  ;;  %v10186_v33 = vld [vmem:[#allocation104_spill] sm:$0xff]  ;;  %v1980_v17 = vmul.f32 %v7431_v54, %v10097_v16  ;;  %v10191_v39 = vrot.slane %v6959_v15, 1  ;;  %v2016_v40 = vmul.f32 %v7443_v59, %v10099_v8  ;;  %v7448_v27 = vld [vmem:[%s4716_s1 + $0xa8] sm:$0xff] }
 0x328   : > { %v1944_v42 = vmul.f32 %v7422_v5, %v10186_v33  ;;  %10188 = vst [vmem:[#allocation236_spill] sm:$0xff] %v7428_v57  ;;  %10189 = vst [vmem:[#allocation237_spill] sm:$0xff] %v7431_v54  ;;  %v2344_v48 = vadd.f32 %v7242_v45, %v2308_v25  ;;  %v1924_v5 = vadd.f32 %v1908_v3, %v1888_v30  ;;  %v10195_v45 = vld [vmem:[#allocation49_spill] sm:$0xff]  ;;  %v10198_v7 = vrot.slane %v6944_v28, 2 }
 0x329   : > { %v2163_v10 = vsel %vm2137_vm6, %v10191_v39, %v10190_v49  ;;  %10192 = vst [vmem:[#allocation238_spill] sm:$0xff] %v7443_v59  ;;  %10193 = vst [vmem:[#allocation239_spill] sm:$0xff] %v7448_v27  ;;  %v2052_v54 = vmul.f32 %v7448_v27, %v10101_v63  ;;  %v2445_v16 = vadd.f32 %v2429_v19, %v2409_v34  ;;  %v10194_v49 = vld [vmem:[#allocation169_spill] sm:$0xff] }
 0x32a   : > { %v2221_v39 = vmul.f32 %v10106_v58, %v10159_v9  ;;  %v1131_v3 = vmul.f32 %v10195_v45, %v10194_v49  ;;  %v2380_v25 = vadd.f32 %v7252_v11, %v2344_v48  ;;  %v1960_v30 = vadd.f32 %v1944_v42, %v1924_v5  ;;  %v10200_v11 = vld [vmem:[#allocation79_spill] sm:$0xff] }
 0x32b   : > { %v7461_v59 = vsel %vm2171_vm9, %v2163_v10, 0.0  ;;  %v2257_v27 = vmul.f32 %v10107_v35, %v10160_v43  ;;  %v2578_v19 = vadd.f32 %v2562_v18, %v2445_v16  ;;  %v2293_v34 = vmul.f32 %v10109_v31, %v10161_v36  ;;  %v10201_v48 = vld [vmem:[#allocation207_spill] sm:$0xff]  ;;  %v10202_v43 = vld [vmem:[#allocation209_spill] sm:$0xff]  ;;  %v10203_v36 = vld [vmem:[#allocation210_spill] sm:$0xff] }
 0x32c   : > { %10197 = vst [vmem:[#allocation240_spill] sm:$0xff] %v7461_v59  ;;  %v10199_v9 = vrot.slane %v6959_v15, 2  ;;  %v1147_v42 = vadd.f32 %v1131_v3, %v10200_v11  ;;  %v2416_v5 = vadd.f32 %v7256_v29, %v2380_v25  ;;  %v1996_v10 = vadd.f32 %v1980_v17, %v1960_v30  ;;  %v10210_v25 = vld [vmem:[#allocation146_spill] sm:$0xff] }
 0x32d   : > { %v2329_v57 = vmul.f32 %v9767_v21, %v10201_v48  ;;  %v7479_v16 = vmul.f32 %v9969_v20, %v10202_v43  ;;  %v2614_v18 = vadd.f32 %v2598_v14, %v2578_v19  ;;  %v7483_v31 = vmul.f32 %v9972_v38, %v10203_v36  ;;  %v10217_v43 = vld [vmem:[#allocation147_spill] sm:$0xff]  ;;  %v10249_v20 = vld [vmem:[#allocation52_spill] sm:$0xff] }
 0x32e   : > { %v2512_v58 = vsel %vm2486_vm7, %v10199_v9, %v10198_v7  ;;  %v7487_v7 = vmul.f32 %v9978_v1, %v7461_v59  ;;  %v10204_v9 = vld [vmem:[#allocation81_spill] sm:$0xff]  ;;  %v2452_v29 = vadd.f32 %v7260_v55, %v2416_v5  ;;  %v2032_v17 = vadd.f32 %v2016_v40, %v1996_v10  ;;  %v10208_v40 = vld [vmem:[#allocation219_spill] sm:$0xff] }
 0x32f   : > { %v1280_v3 = vadd.f32 %v10204_v9, %v1147_v42  ;;  %v7493_v30 = vsel %vm2520_vm10, %v2512_v58, 0.0  ;;  %v7497_v14 = vmul.f32 %v10118_v0, %v10166_v41  ;;  %v2650_v19 = vadd.f32 %v2634_v46, %v2614_v18  ;;  %v10207_v42 = vld [vmem:[#allocation66_spill] sm:$0xff]  ;;  %v10240_v1 = vld [vmem:[#allocation103_spill] sm:$0xff] }
 0x330   : > { %10206 = vst [vmem:[#allocation79_spill] sm:$0xff] %v7493_v30  ;;  %v7501_v11 = vmul.f32 %v10124_v44, %v10167_v2  ;;  %v7505_v59 = vmul.f32 %v9990_v50, %v10169_v23  ;;  %v2585_v5 = vadd.f32 %v10208_v40, %v2452_v29  ;;  %v2068_v10 = vadd.f32 %v2052_v54, %v2032_v17  ;;  %v10209_v58 = vld [vmem:[#allocation110_spill] sm:$0xff]  ;;  %v10214_v54 = vld [vmem:[#allocation69_spill] sm:$0xff]  ;;  %v10215_v17 = vld [vmem:[#allocation67_spill] sm:$0xff] }
 0x331   : > { %v1316_v55 = vadd.f32 %v10207_v42, %v1280_v3  ;;  %v7511_v9 = vmul.f32 %v9918_v62, %v10209_v58  ;;  %v7515_v46 = vmul.f32 %v9926_v51, %v10210_v25  ;;  %v2686_v18 = vadd.f32 %v7375_v52, %v2650_v19  ;;  %v10213_v42 = vld [vmem:[#allocation95_spill] sm:$0xff]  ;;  %v10216_v58 = vld [vmem:[#allocation222_spill] sm:$0xff]  ;;  %v10219_v19 = vld [vmem:[#allocation72_spill] sm:$0xff] }
 0x332   : > { %v10211_v2 = vrot.slane %v6944_v28, 3  ;;  %v10212_v23 = vrot.slane %v6959_v15, 3  ;;  %v1408_v40 = vmul.f32 %v10215_v17, %v10214_v54  ;;  %v2621_v41 = vadd.f32 %v10216_v58, %v2585_v5  ;;  %v10221_v5 = vld [vmem:[#allocation223_spill] sm:$0xff]  ;;  %v10234_v51 = vld [vmem:[#allocation102_spill] sm:$0xff]  ;;  %v10238_v50 = vld [vmem:[#allocation88_spill] sm:$0xff] }
 0x333   : > { %v1352_v29 = vadd.f32 %v10213_v42, %v1316_v55  ;;  %v2104_v36 = vadd.f32 %v2088_v24, %v2068_v10  ;;  %v7530_v25 = vmul.f32 %v9931_v37, %v10217_v43  ;;  %v7534_v28 = vmul.f32 %v9932_v13, %v7493_v30  ;;  %v10220_v55 = vld [vmem:[#allocation46_spill] sm:$0xff]  ;;  %v10225_v43 = vld [vmem:[#allocation172_spill] sm:$0xff]  ;;  %v10235_v62 = vld [vmem:[#allocation87_spill] sm:$0xff] }
 0x334   : > { %v2861_v3 = vsel %vm2835_vm8, %v10212_v23, %v10211_v2  ;;  %v2722_v15 = vadd.f32 %v7380_v60, %v2686_v18  ;;  %v7539_v52 = vmul.f32 %v9731_v32, %v10182_v12  ;;  %v10218_v2 = vld [vmem:[#allocation98_spill] sm:$0xff]  ;;  %v1444_v24 = vmul.f32 %v10220_v55, %v10219_v19  ;;  %v10224_v18 = vld [vmem:[#allocation148_spill] sm:$0xff]  ;;  %v10244_v38 = vld [vmem:[#allocation51_spill] sm:$0xff] }
 0x335   : > { %v1388_v23 = vadd.f32 %v10218_v2, %v1352_v29  ;;  %v2657_v10 = vadd.f32 %v10221_v5, %v2621_v41  ;;  %v2237_v58 = vadd.f32 %v2221_v39, %v2104_v36  ;;  %v7547_v30 = vsel %vm2869_vm11, %v2861_v3, 0.0  ;;  %v10226_v41 = vld [vmem:[#allocation47_spill] sm:$0xff]  ;;  %v10227_v39 = vld [vmem:[#allocation190_spill] sm:$0xff]  ;;  %v10245_v32 = vld [vmem:[#allocation40_spill] sm:$0xff] }
 0x336   : > { %10223 = vst [vmem:[#allocation81_spill] sm:$0xff] %v7547_v30  ;;  %v7551_v60 = vmul.f32 %v9736_v61, %v10184_v22  ;;  %v2758_v12 = vadd.f32 %v10224_v18, %v2722_v15  ;;  %v7556_v29 = vmul.f32 %v9878_v26, %v10187_v47  ;;  %v1480_v36 = vmul.f32 %v10226_v41, %v10225_v43  ;;  %v10228_v3 = vld [vmem:[#allocation151_spill] sm:$0xff]  ;;  %v10229_v22 = vld [vmem:[#allocation89_spill] sm:$0xff]  ;;  %v7568_v18 = vld [vmem:[%s4716_s1 + $0xc0] sm:$0xff] }
 0x337   : > { %v1424_v2 = vadd.f32 %v1408_v40, %v1388_v23  ;;  %v2693_v5 = vadd.f32 %v10227_v39, %v2657_v10  ;;  %v2273_v42 = vadd.f32 %v2257_v27, %v2237_v58  ;;  %v7563_v48 = vmul.f32 %v10056_v53, %v10228_v3  ;;  %v10230_v61 = vld [vmem:[#allocation85_spill] sm:$0xff]  ;;  %v10231_v47 = vld [vmem:[#allocation234_spill] sm:$0xff]  ;;  %v10232_v40 = vld [vmem:[#allocation92_spill] sm:$0xff] }
 0x338   : > { %v1721_v15 = vmul.f32 %v10230_v61, %v10229_v22  ;;  %v2794_v26 = vadd.f32 %v10231_v47, %v2758_v12  ;;  %v10233_v23 = vld [vmem:[#allocation86_spill] sm:$0xff]  ;;  %v1793_v10 = vmul.f32 %v10235_v62, %v10234_v51  ;;  %v7576_v27 = vld [vmem:[%s4716_s1 + $0xc8] sm:$0xff]  ;;  %v10236_v58 = vld [vmem:[#allocation224_spill] sm:$0xff] }
 0x339   : > { %v1460_v13 = vadd.f32 %v1444_v24, %v1424_v2  ;;  %v1757_v37 = vmul.f32 %v10233_v23, %v10232_v40  ;;  %v2729_v39 = vadd.f32 %v10236_v58, %v2693_v5  ;;  %v2309_v3 = vadd.f32 %v2293_v34, %v2273_v42  ;;  %v10237_v53 = vld [vmem:[#allocation184_spill] sm:$0xff]  ;;  %v7582_v22 = vld [vmem:[%s4716_s1 + $0x30] sm:$0xff]  ;;  %v10241_v12 = vld [vmem:[#allocation37_spill] sm:$0xff] }
 0x33a   : > { %v1829_v44 = vmul.f32 %v10238_v50, %v10237_v53  ;;  %10239 = vst [vmem:[#allocation66_spill] sm:$0xff] %v7582_v22  ;;  %v7586_v47 = vmul.f32 %v7582_v22, %v10240_v1  ;;  %v2927_v24 = vadd.f32 %v10241_v12, %v2794_v26  ;;  %v7590_v23 = vld [vmem:[%s4716_s1 + $0x40] sm:$0xff]  ;;  %v822_v34 = vrot.slane %v7568_v18, 5  ;;  %v10243_v42 = vld [vmem:[#allocation225_spill] sm:$0xff]  ;;  %v10246_v1 = vld [vmem:[#allocation215_spill] sm:$0xff] }
 0x33b   : > { %v1496_v2 = vadd.f32 %v1480_v36, %v1460_v13  ;;  %10242 = vst [vmem:[#allocation219_spill] sm:$0xff] %v7590_v23  ;;  %v7594_v62 = vmul.f32 %v7590_v23, %v10186_v33  ;;  %v2765_v5 = vadd.f32 %v10243_v42, %v2729_v39  ;;  %v2345_v58 = vadd.f32 %v2329_v57, %v2309_v3  ;;  %v10247_v26 = vld [vmem:[#allocation105_spill] sm:$0xff]  ;;  %v10248_v36 = vld [vmem:[#allocation39_spill] sm:$0xff]  ;;  %v10251_v53 = vld [vmem:[#allocation226_spill] sm:$0xff] }
 0x33c   : > { %v836_v50 = vrot.slane %v7576_v27, 5  ;;  %v923_v22 = vmul.f32 %v10245_v32, %v10244_v38  ;;  %v2963_v61 = vadd.f32 %v10246_v1, %v2927_v24  ;;  %v924_v12 = vmul.f32 %v10245_v32, %v10248_v36  ;;  %v10250_v23 = vld [vmem:[#allocation41_spill] sm:$0xff]  ;;  %v10253_v1 = vld [vmem:[#allocation186_spill] sm:$0xff]  ;;  %v10254_v24 = vld [vmem:[#allocation112_spill] sm:$0xff] }
 0x33d   : > { %v1629_v13 = vadd.f32 %v10247_v26, %v1496_v2  ;;  %v959_v33 = vmul.f32 %v10250_v23, %v10249_v20  ;;  %v2801_v21 = vadd.f32 %v10251_v53, %v2765_v5  ;;  %v2381_v39 = vadd.f32 %v7479_v16, %v2345_v58  ;;  %v10257_v36 = vld [vmem:[#allocation50_spill] sm:$0xff]  ;;  %v10258_v5 = vld [vmem:[#allocation227_spill] sm:$0xff] }
 0x33e   : > { %v7611_v57 = vsel %vm838_vm0, %v822_v34, %v836_v50  ;;  %v865_v38 = vsel %vm838_vm0, %v836_v50, %v822_v34  ;;  %v2999_v3 = vadd.f32 %v10253_v1, %v2963_v61  ;;  %v960_v53 = vmul.f32 %v10250_v23, %v10257_v36  ;;  %v10259_v20 = vld [vmem:[#allocation42_spill] sm:$0xff]  ;;  %v10260_v50 = vld [vmem:[#allocation235_spill] sm:$0xff]  ;;  %v10261_v61 = vld [vmem:[#allocation117_spill] sm:$0xff] }
 0x33f   : > { %10252 = vst [vmem:[#allocation95_spill] sm:$0xff] %v7611_v57  ;;  %v1665_v2 = vadd.f32 %v10254_v24, %v1629_v13  ;;  %v7619_v26 = vsel %vm869_vm1, %v865_v38, 0.0  ;;  %v2934_v16 = vadd.f32 %v10258_v5, %v2801_v21  ;;  %v2417_v58 = vadd.f32 %v7483_v31, %v2381_v39  ;;  %v10262_v24 = vld [vmem:[#allocation166_spill] sm:$0xff]  ;;  %v10263_v42 = vld [vmem:[#allocation23_spill] sm:$0xff] }
 0x340   : > { %10256 = vst [vmem:[#allocation69_spill] sm:$0xff] %v7619_v26  ;;  %v975_v32 = vadd.f32 %v959_v33, %v923_v22  ;;  %v995_v0 = vmul.f32 %v10259_v20, %v10194_v49  ;;  %v3035_v34 = vadd.f32 %v10260_v50, %v2999_v3  ;;  %v976_v13 = vadd.f32 %v960_v53, %v924_v12  ;;  %v10264_v21 = vld [vmem:[#allocation170_spill] sm:$0xff]  ;;  %v10265_v5 = vld [vmem:[#allocation43_spill] sm:$0xff] }
 0x341   : > { %v1701_v1 = vadd.f32 %v10261_v61, %v1665_v2  ;;  %v996_v38 = vmul.f32 %v10259_v20, %v10262_v24  ;;  %v2970_v51 = vadd.f32 %v10263_v42, %v2934_v16  ;;  %v2453_v23 = vadd.f32 %v7487_v7, %v2417_v58  ;;  %v10266_v49 = vld [vmem:[#allocation167_spill] sm:$0xff]  ;;  %v10267_v2 = vld [vmem:[#allocation228_spill] sm:$0xff]  ;;  %v10315_v20 = vld [vmem:[#allocation101_spill] sm:$0xff] }
 0x342   : > { %v1011_v36 = vadd.f32 %v995_v0, %v975_v32  ;;  %v1031_v31 = vmul.f32 %v10265_v5, %v10264_v21  ;;  %v3071_v33 = vadd.f32 %v7414_v6, %v3035_v34  ;;  %v1032_v3 = vmul.f32 %v10265_v5, %v10266_v49  ;;  %v10268_v61 = vld [vmem:[#allocation171_spill] sm:$0xff]  ;;  %v10269_v42 = vld [vmem:[#allocation44_spill] sm:$0xff]  ;;  %v10275_v5 = vld [vmem:[#allocation150_spill] sm:$0xff] }
 0x343   : > { %v1737_v22 = vadd.f32 %v1721_v15, %v1701_v1  ;;  %v1012_v39 = vadd.f32 %v996_v38, %v976_v13  ;;  %v3006_v12 = vadd.f32 %v10267_v2, %v2970_v51  ;;  %v2586_v53 = vadd.f32 %v7497_v14, %v2453_v23  ;;  %v10270_v58 = vld [vmem:[#allocation168_spill] sm:$0xff]  ;;  %v10271_v15 = vld [vmem:[#allocation230_spill] sm:$0xff]  ;;  %v10272_v38 = vld [vmem:[#allocation179_spill] sm:$0xff] }
 0x344   : > { %v1047_v50 = vadd.f32 %v1031_v31, %v1011_v36  ;;  %v1067_v16 = vmul.f32 %v10269_v42, %v10268_v61  ;;  %v3107_v32 = vadd.f32 %v7419_v56, %v3071_v33  ;;  %v1068_v6 = vmul.f32 %v10269_v42, %v10270_v58  ;;  %v10273_v51 = vld [vmem:[#allocation48_spill] sm:$0xff]  ;;  %v10310_v58 = vld [vmem:[#allocation82_spill] sm:$0xff] }
 0x345   : > { %v1773_v0 = vadd.f32 %v1757_v37, %v1737_v22  ;;  %v1048_v7 = vadd.f32 %v1032_v3, %v1012_v39  ;;  %v3042_v34 = vadd.f32 %v10271_v15, %v3006_v12  ;;  %v2622_v1 = vadd.f32 %v7501_v11, %v2586_v53  ;;  %v10274_v14 = vld [vmem:[#allocation236_spill] sm:$0xff]  ;;  %v10276_v37 = vld [vmem:[#allocation231_spill] sm:$0xff] }
 0x346   : > { %v1083_v13 = vadd.f32 %v1067_v16, %v1047_v50  ;;  %v1103_v2 = vmul.f32 %v10273_v51, %v10272_v38  ;;  %v3143_v23 = vadd.f32 %v10274_v14, %v3107_v32  ;;  %v1104_v56 = vmul.f32 %v10273_v51, %v10275_v5  ;;  %v10277_v50 = vld [vmem:[#allocation232_spill] sm:$0xff] }
 0x347   : > { %v1809_v36 = vadd.f32 %v1793_v10, %v1773_v0  ;;  %v1084_v31 = vadd.f32 %v1068_v6, %v1048_v7  ;;  %v3078_v33 = vadd.f32 %v10276_v37, %v3042_v34  ;;  %v2658_v22 = vadd.f32 %v7505_v59, %v2622_v1  ;;  %v10278_v59 = vld [vmem:[#allocation176_spill] sm:$0xff]  ;;  %v10279_v34 = vld [vmem:[#allocation59_spill] sm:$0xff] }
 0x348   : > { %v1119_v39 = vadd.f32 %v1103_v2, %v1083_v13  ;;  %v1139_v3 = vmul.f32 %v10195_v45, %v7619_v26  ;;  %3708 = vmatmul.mubr.f32.gmra.mrb[2].mxu0 %v3143_v23  ;;  %v1140_v53 = vmul.f32 %v10195_v45, %v7611_v57  ;;  %v1171_v10 = vrot.slane %v7568_v18, 6  ;;  %v10281_v2 = vld [vmem:[#allocation233_spill] sm:$0xff]  ;;  %v10285_v37 = vld [vmem:[#allocation156_spill] sm:$0xff]  ;;  %v7694_v57 = vld [vmem:[%s4716_s1 + $0x70] sm:$0xff] }
 0x349   : > { %v1845_v11 = vadd.f32 %v1829_v44, %v1809_v36  ;;  %v1120_v12 = vadd.f32 %v1104_v56, %v1084_v31  ;;  %v3114_v16 = vadd.f32 %v10277_v50, %v3078_v33  ;;  %v2694_v32 = vadd.f32 %v7511_v9, %v2658_v22  ;;  %v10280_v44 = vld [vmem:[#allocation56_spill] sm:$0xff]  ;;  %v10282_v36 = vld [vmem:[#allocation45_spill] sm:$0xff]  ;;  %10294 = vst [vmem:[#allocation222_spill] sm:$0xff] %v7694_v57 }
 0x34a   : > { %v1155_v0 = vadd.f32 %v1139_v3, %v1119_v39  ;;  %v1185_v7 = vrot.slane %v7576_v27, 6  ;;  %v1272_v1 = vmul.f32 %v10279_v34, %v10214_v54  ;;  %v1273_v13 = vmul.f32 %v10279_v34, %v10280_v44  ;;  %v10283_v31 = vld [vmem:[#allocation164_spill] sm:$0xff]  ;;  %v10364_v44 = vld [vmem:[#allocation163_spill] sm:$0xff] }
 0x34b   : > { %v1881_v6 = vadd.f32 %v10278_v59, %v1845_v11  ;;  %v1156_v15 = vadd.f32 %v1140_v53, %v1120_v12  ;;  %v3150_v14 = vadd.f32 %v10281_v2, %v3114_v16  ;;  %v2730_v23 = vadd.f32 %v7515_v46, %v2694_v32  ;;  %v10284_v9 = vld [vmem:[#allocation108_spill] sm:$0xff]  ;;  %v10288_v16 = vld [vmem:[#allocation62_spill] sm:$0xff]  ;;  %v10289_v59 = vld [vmem:[#allocation187_spill] sm:$0xff] }
 0x34c   : > { %v3063_v56 = vmul.f32 %v10283_v31, %v10282_v36  ;;  %v1973_v33 = vmul.f32 %v10285_v37, %v10284_v9  ;;  %v1214_v39 = vsel %vm1187_vm2, %v1185_v7, %v1171_v10  ;;  %v1288_v3 = vadd.f32 %v1272_v1, %v1155_v0  ;;  %v10286_v12 = vld [vmem:[#allocation60_spill] sm:$0xff]  ;;  %v10290_v0 = vld [vmem:[#allocation175_spill] sm:$0xff]  ;;  %v10291_v1 = vld [vmem:[#allocation173_spill] sm:$0xff] }
 0x34d   : > { %v1917_v22 = vadd.f32 %v7586_v47, %v1881_v6  ;;  %v1289_v54 = vadd.f32 %v1273_v13, %v1156_v15  ;;  %3719 = vmatprep.mubr.f32.mxu1 %v3150_v14  ;;  %v2766_v11 = vadd.f32 %v7530_v25, %v2730_v23  ;;  %v1308_v46 = vmul.f32 %v10286_v12, %v10219_v19  ;;  %v10287_v53 = vld [vmem:[#allocation76_spill] sm:$0xff]  ;;  %v10292_v13 = vld [vmem:[#allocation65_spill] sm:$0xff]  ;;  %v10293_v37 = vld [vmem:[#allocation178_spill] sm:$0xff] }
 0x34e   : > { %v1309_v50 = vmul.f32 %v10286_v12, %v10287_v53  ;;  %v1344_v32 = vmul.f32 %v10288_v16, %v10225_v43  ;;  %v2009_v6 = vmul.f32 %v10289_v59, %v10099_v8  ;;  %v1345_v15 = vmul.f32 %v10288_v16, %v10290_v0  ;;  %v10297_v16 = vld [vmem:[#allocation174_spill] sm:$0xff]  ;;  %v10337_v19 = vld [vmem:[#allocation132_spill] sm:$0xff]  ;;  %v10362_v53 = vld [vmem:[#allocation157_spill] sm:$0xff] }
 0x34f   : > { %v1953_v47 = vadd.f32 %v7594_v62, %v1917_v22  ;;  %v1380_v25 = vmul.f32 %v10292_v13, %v10291_v1  ;;  %v2802_v2 = vadd.f32 %v7534_v28, %v2766_v11  ;;  %v1324_v14 = vadd.f32 %v1308_v46, %v1288_v3  ;;  %v10298_v11 = vld [vmem:[#allocation182_spill] sm:$0xff] }
 0x350   : > { %v1325_v23 = vadd.f32 %v1309_v50, %v1289_v54  ;;  %v1381_v12 = vmul.f32 %v10292_v13, %v10293_v37  ;;  %v2045_v62 = vmul.f32 %v7694_v57, %v10101_v63  ;;  %v7700_v26 = vsel %vm1218_vm3, %v1214_v39, 0.0  ;;  %v10299_v50 = vld [vmem:[#allocation119_spill] sm:$0xff]  ;;  %v10302_v39 = vld [vmem:[#allocation120_spill] sm:$0xff] }
 0x351   : > { %v1989_v34 = vadd.f32 %v1973_v33, %v1953_v47  ;;  %10296 = vst [vmem:[#allocation98_spill] sm:$0xff] %v7700_v26  ;;  %v1416_v5 = vmul.f32 %v10215_v17, %v10297_v16  ;;  %v2935_v28 = vadd.f32 %v7539_v52, %v2802_v2  ;;  %v1360_v3 = vadd.f32 %v1344_v32, %v1324_v14  ;;  %v10300_v47 = vld [vmem:[#allocation211_spill] sm:$0xff]  ;;  %v10303_v32 = vld [vmem:[#allocation109_spill] sm:$0xff]  ;;  %v10304_v2 = vld [vmem:[#allocation38_spill] sm:$0xff] }
 0x352   : > { %v1361_v54 = vadd.f32 %v1345_v15, %v1325_v23  ;;  %v1417_v46 = vmul.f32 %v10215_v17, %v10298_v11  ;;  %v2081_v13 = vmul.f32 %v10300_v47, %v10299_v50  ;;  %v7711_v37 = vsel %vm1187_vm2, %v1171_v10, %v1185_v7  ;;  %v10305_v14 = vld [vmem:[#allocation165_spill] sm:$0xff]  ;;  %v10363_v17 = vld [vmem:[#allocation162_spill] sm:$0xff] }
 0x353   : > { %v2025_v33 = vadd.f32 %v2009_v6, %v1989_v34  ;;  %10301 = vst [vmem:[#allocation223_spill] sm:$0xff] %v7711_v37  ;;  %v1452_v22 = vmul.f32 %v10220_v55, %v10302_v39  ;;  %v2971_v16 = vadd.f32 %v7551_v60, %v2935_v28  ;;  %v1396_v42 = vadd.f32 %v1380_v25, %v1360_v3  ;;  %v10306_v6 = vld [vmem:[#allocation58_spill] sm:$0xff]  ;;  %v10308_v3 = vld [vmem:[#allocation127_spill] sm:$0xff] }
 0x354   : > { %v1397_v52 = vadd.f32 %v1381_v12, %v1361_v54  ;;  %v1453_v15 = vmul.f32 %v10220_v55, %v10303_v32  ;;  %v3099_v34 = vmul.f32 %v10305_v14, %v10304_v2  ;;  %v3135_v23 = vmul.f32 %v10306_v6, %v7547_v30  ;;  %v10307_v25 = vld [vmem:[#allocation126_spill] sm:$0xff]  ;;  %v10309_v54 = vld [vmem:[#allocation123_spill] sm:$0xff] }
 0x355   : > { %v2061_v11 = vadd.f32 %v2045_v62, %v2025_v33  ;;  %v1488_v10 = vmul.f32 %v10226_v41, %v7700_v26  ;;  %v3007_v7 = vadd.f32 %v7556_v29, %v2971_v16  ;;  %v1432_v39 = vadd.f32 %v1416_v5, %v1396_v42  ;;  %v10311_v29 = vld [vmem:[#allocation75_spill] sm:$0xff]  ;;  %v10312_v42 = vld [vmem:[#allocation124_spill] sm:$0xff] }
 0x356   : > { %v1433_v38 = vadd.f32 %v1417_v46, %v1397_v52  ;;  %v1489_v60 = vmul.f32 %v10226_v41, %v7711_v37  ;;  %v2250_v28 = vmul.f32 %v10107_v35, %v10307_v25  ;;  %v2286_v32 = vmul.f32 %v10309_v54, %v10308_v3  ;;  %v10313_v46 = vld [vmem:[#allocation102_spill] sm:$0xff]  ;;  %v10314_v52 = vld [vmem:[#allocation83_spill] sm:$0xff]  ;;  %v10355_v41 = vld [vmem:[#allocation200_spill] sm:$0xff] }
 0x357   : > { %v2097_v12 = vadd.f32 %v2081_v13, %v2061_v11  ;;  %v1621_v62 = vmul.f32 %v10310_v58, %v10232_v40  ;;  %v3043_v33 = vadd.f32 %v7563_v48, %v3007_v7  ;;  %v1468_v26 = vadd.f32 %v1452_v22, %v1432_v39  ;;  %v10316_v22 = vld [vmem:[#allocation134_spill] sm:$0xff]  ;;  %v10318_v7 = vld [vmem:[#allocation128_spill] sm:$0xff] }
 0x358   : > { %v1469_v61 = vadd.f32 %v1453_v15, %v1433_v38  ;;  %v1622_v5 = vmul.f32 %v10310_v58, %v10311_v29  ;;  %v1520_v13 = vrot.slane %v7568_v18, 7  ;;  %v1534_v11 = vrot.slane %v7576_v27, 7  ;;  %v10317_v38 = vld [vmem:[#allocation133_spill] sm:$0xff]  ;;  %v10321_v40 = vld [vmem:[#allocation84_spill] sm:$0xff] }
 0x359   : > { %v2230_v16 = vadd.f32 %v10312_v42, %v2097_v12  ;;  %v1657_v25 = vmul.f32 %v10314_v52, %v10313_v46  ;;  %v3079_v3 = vadd.f32 %v3063_v56, %v3043_v33  ;;  %v1504_v37 = vadd.f32 %v1488_v10, %v1468_v26  ;;  %v10319_v58 = vld [vmem:[#allocation125_spill] sm:$0xff]  ;;  %v10320_v42 = vld [vmem:[#allocation184_spill] sm:$0xff]  ;;  %v10322_v46 = vld [vmem:[#allocation198_spill] sm:$0xff] }
 0x35a   : > { %v1505_v49 = vadd.f32 %v1489_v60, %v1469_v61  ;;  %v1658_v48 = vmul.f32 %v10314_v52, %v10315_v20  ;;  %v2563_v39 = vmul.f32 %v10317_v38, %v10316_v22  ;;  %v2322_v12 = vmul.f32 %v10319_v58, %v10318_v7  ;;  %v10323_v56 = vld [vmem:[#allocation129_spill] sm:$0xff]  ;;  %v10324_v10 = vld [vmem:[#allocation130_spill] sm:$0xff] }
 0x35b   : > { %v2266_v15 = vadd.f32 %v2250_v28, %v2230_v16  ;;  %v1693_v1 = vmul.f32 %v10321_v40, %v10320_v42  ;;  %v3115_v30 = vadd.f32 %v3099_v34, %v3079_v3  ;;  %v1637_v43 = vadd.f32 %v1621_v62, %v1504_v37  ;;  %v10325_v28 = vld [vmem:[#allocation185_spill] sm:$0xff]  ;;  %v10327_v42 = vld [vmem:[#allocation203_spill] sm:$0xff]  ;;  %v10329_v34 = vld [vmem:[#allocation154_spill] sm:$0xff] }
 0x35c   : > { %v1638_v2 = vadd.f32 %v1622_v5, %v1505_v49  ;;  %v1694_v26 = vmul.f32 %v10321_v40, %v10322_v46  ;;  %v2358_v60 = vmul.f32 %v10324_v10, %v10323_v56  ;;  %v1563_v33 = vsel %vm1536_vm4, %v1534_v11, %v1520_v13  ;;  %v10326_v16 = vld [vmem:[#allocation85_spill] sm:$0xff]  ;;  %v10328_v49 = vld [vmem:[#allocation158_spill] sm:$0xff]  ;;  %v10331_v5 = vld [vmem:[#allocation192_spill] sm:$0xff] }
 0x35d   : > { %v2302_v61 = vadd.f32 %v2286_v32, %v2266_v15  ;;  %v1729_v22 = vmul.f32 %v10326_v16, %v10325_v28  ;;  %v3151_v7 = vadd.f32 %v3135_v23, %v3115_v30  ;;  %v1673_v52 = vadd.f32 %v1657_v25, %v1637_v43  ;;  %v10332_v15 = vld [vmem:[#allocation131_spill] sm:$0xff]  ;;  %v10333_v43 = vld [vmem:[#allocation189_spill] sm:$0xff]  ;;  %v10335_v25 = vld [vmem:[#allocation188_spill] sm:$0xff] }
 0x35e   : > { %v1674_v36 = vadd.f32 %v1658_v48, %v1638_v2  ;;  %v1730_v37 = vmul.f32 %v10326_v16, %v10327_v42  ;;  %v7761_v3 = vmul.f32 %v10329_v34, %v10328_v49  ;;  %v7765_v32 = vmul.f32 %v10195_v45, %v10264_v21  ;;  %v10334_v2 = vld [vmem:[#allocation86_spill] sm:$0xff]  ;;  %v10336_v49 = vld [vmem:[#allocation193_spill] sm:$0xff] }
 0x35f   : > { %v2338_v62 = vadd.f32 %v2322_v12, %v2302_v61  ;;  %v2394_v40 = vmul.f32 %v10332_v15, %v10331_v5  ;;  %3720 = vmatmul.mubr.f32.gmra.mrb[2].mxu1 %v3151_v7  ;;  %v1709_v28 = vadd.f32 %v1693_v1, %v1673_v52  ;;  %v1765_v23 = vmul.f32 %v10334_v2, %v10333_v43  ;;  %v10341_v52 = vld [vmem:[#allocation68_spill] sm:$0xff]  ;;  %v10342_v7 = vld [vmem:[#allocation87_spill] sm:$0xff]  ;;  %v10346_v20 = vld [vmem:[#allocation142_spill] sm:$0xff] }
 0x360   : > { %10330 = vst [vmem:[#allocation148_spill] sm:$0xff] %v7765_v32  ;;  %v1710_v30 = vadd.f32 %v1694_v26, %v1674_v36  ;;  %v1766_v48 = vmul.f32 %v10334_v2, %v10335_v25  ;;  %v2430_v51 = vmul.f32 %v10337_v19, %v10336_v49  ;;  %v7777_v21 = vsel %vm1536_vm4, %v1520_v13, %v1534_v11  ;;  %v10343_v43 = vld [vmem:[#allocation183_spill] sm:$0xff]  ;;  %v10347_v2 = vld [vmem:[#allocation136_spill] sm:$0xff]  ;;  %v10349_v29 = vld [vmem:[#allocation137_spill] sm:$0xff] }
 0x361   : > { %v2374_v42 = vadd.f32 %v2358_v60, %v2338_v62  ;;  %10338 = vst [vmem:[#allocation190_spill] sm:$0xff] %v7777_v21  ;;  %v7781_v61 = vsel %vm1567_vm5, %v1563_v33, 0.0  ;;  %v1745_v1 = vadd.f32 %v1729_v22, %v1709_v28  ;;  %v1801_v26 = vmul.f32 %v10342_v7, %v10341_v52  ;;  %v10344_v62 = vld [vmem:[#allocation141_spill] sm:$0xff]  ;;  %v10345_v32 = vld [vmem:[#allocation135_spill] sm:$0xff]  ;;  %v10350_v28 = vld [vmem:[#allocation88_spill] sm:$0xff] }
 0x362   : > { %10340 = vst [vmem:[#allocation234_spill] sm:$0xff] %v7781_v61  ;;  %v1746_v36 = vadd.f32 %v1730_v37, %v1710_v30  ;;  %v1802_v25 = vmul.f32 %v10342_v7, %v10343_v43  ;;  %v2599_v46 = vmul.f32 %v10345_v32, %v10344_v62  ;;  %v2635_v13 = vmul.f32 %v10347_v2, %v10346_v20  ;;  %v10348_v11 = vld [vmem:[#allocation143_spill] sm:$0xff]  ;;  %v10351_v43 = vld [vmem:[#allocation145_spill] sm:$0xff]  ;;  %v10356_v20 = vld [vmem:[#allocation140_spill] sm:$0xff] }
 0x363   : > { %v2410_v60 = vadd.f32 %v2394_v40, %v2374_v42  ;;  %v2671_v12 = vmul.f32 %v10349_v29, %v10348_v11  ;;  %v1781_v33 = vadd.f32 %v1765_v23, %v1745_v1  ;;  %v1837_v22 = vmul.f32 %v10350_v28, %v7781_v61  ;;  %v10352_v40 = vld [vmem:[#allocation138_spill] sm:$0xff]  ;;  %v10353_v52 = vld [vmem:[#allocation199_spill] sm:$0xff]  ;;  %v10358_v1 = vld [vmem:[#allocation220_spill] sm:$0xff] }
 0x364   : > { %v1782_v16 = vadd.f32 %v1766_v48, %v1746_v36  ;;  %v1838_v37 = vmul.f32 %v10350_v28, %v7777_v21  ;;  %v2707_v42 = vmul.f32 %v10352_v40, %v10351_v43  ;;  %v10354_v62 = vld [vmem:[#allocation139_spill] sm:$0xff]  ;;  %v2779_v0 = vmul.f32 %v10356_v20, %v10355_v41  ;;  %v10357_v23 = vld [vmem:[#allocation90_spill] sm:$0xff]  ;;  %v10361_v28 = vld [vmem:[#allocation161_spill] sm:$0xff] }
 0x365   : > { %v2446_v30 = vadd.f32 %v2430_v51, %v2410_v60  ;;  %v2743_v7 = vmul.f32 %v10354_v62, %v10353_v52  ;;  %v1817_v55 = vadd.f32 %v1801_v26, %v1781_v33  ;;  %v1873_v48 = vmul.f32 %v10289_v59, %v10357_v23  ;;  %v10359_v21 = vld [vmem:[#allocation159_spill] sm:$0xff]  ;;  %v10366_v33 = vld [vmem:[#allocation216_spill] sm:$0xff] }
 0x366   : > { %v1818_v11 = vadd.f32 %v1802_v25, %v1782_v16  ;;  %v1874_v36 = vmul.f32 %v10358_v1, %v10357_v23  ;;  %v10360_v51 = vld [vmem:[#allocation155_spill] sm:$0xff]  ;;  %v7813_v34 = vmul.f32 %v10362_v53, %v10361_v28  ;;  %v7817_v20 = vmul.f32 %v10364_v44, %v10363_v17  ;;  %v10367_v23 = vld [vmem:[#allocation61_spill] sm:$0xff]  ;;  %v10369_v1 = vld [vmem:[#allocation32_spill] sm:$0xff] }
 0x367   : > { %v2579_v61 = vadd.f32 %v2563_v39, %v2446_v30  ;;  %v7809_v60 = vmul.f32 %v10360_v51, %v10359_v21  ;;  %v1853_v16 = vadd.f32 %v1837_v22, %v1817_v55  ;;  %v10365_v26 = vld [vmem:[#allocation103_spill] sm:$0xff]  ;;  %v7825_v21 = vmul.f32 %v10283_v31, %v10367_v23  ;;  %v10371_v53 = vld [vmem:[#allocation34_spill] sm:$0xff] }
 0x368   : > { %v1854_v25 = vadd.f32 %v1838_v37, %v1818_v11  ;;  %v1909_v59 = vmul.f32 %v7694_v57, %v10365_v26  ;;  %v1910_v39 = vmul.f32 %v10366_v33, %v10365_v26  ;;  %v7829_v28 = vmul.f32 %v10305_v14, %v10369_v1  ;;  %v10373_v37 = vld [vmem:[#allocation104_spill] sm:$0xff] }
 0x369   : > { %v2615_v30 = vadd.f32 %v2599_v46, %v2579_v61  ;;  %10368 = vst [vmem:[#allocation224_spill] sm:$0xff] %v7825_v21  ;;  %v7833_v55 = vmul.f32 %v10306_v6, %v10371_v53  ;;  %v1889_v11 = vadd.f32 %v1873_v48, %v1853_v16  ;;  %v1945_v17 = vmul.f32 %v10300_v47, %v10373_v37  ;;  %v10374_v46 = vld [vmem:[#allocation237_spill] sm:$0xff]  ;;  %v10375_v33 = vld [vmem:[#allocation212_spill] sm:$0xff]  ;;  %v10376_v48 = vld [vmem:[#allocation238_spill] sm:$0xff] }
 0x36a   : > { %10370 = vst [vmem:[#allocation37_spill] sm:$0xff] %v7829_v28  ;;  %v1890_v22 = vadd.f32 %v1874_v36, %v1854_v25  ;;  %v1946_v61 = vmul.f32 %v10374_v46, %v10373_v37  ;;  %v1981_v26 = vmul.f32 %v10375_v33, %v10284_v9  ;;  %v9330_v28 = vrot.slane %v7568_v18, 1  ;;  %v10377_v36 = vld [vmem:[#allocation213_spill] sm:$0xff] }
 0x36b   : > { %10372 = vst [vmem:[#allocation225_spill] sm:$0xff] %v7833_v55  ;;  %v2651_v57 = vadd.f32 %v2635_v13, %v2615_v30  ;;  %v9329_v21 = vrot.slane %v7576_v27, 1  ;;  %v1925_v14 = vadd.f32 %v1909_v59, %v1889_v11  ;;  %v1982_v16 = vmul.f32 %v10376_v48, %v10284_v9  ;;  %v10378_v55 = vld [vmem:[#allocation239_spill] sm:$0xff]  ;;  %v7850_v13 = vld [vmem:[%s4716_s1 + $0xb0] sm:$0xff]  ;;  %v10382_v48 = vld [vmem:[#allocation121_spill] sm:$0xff] }
 0x36c   : > { %v1926_v6 = vadd.f32 %v1910_v39, %v1890_v22  ;;  %v2017_v25 = vmul.f32 %v10377_v36, %v10099_v8  ;;  %v2018_v46 = vmul.f32 %v10378_v55, %v10099_v8  ;;  %10379 = vst [vmem:[#allocation51_spill] sm:$0xff] %v7850_v13  ;;  %v2053_v33 = vmul.f32 %v7850_v13, %v10101_v63  ;;  %v7855_v30 = vld [vmem:[%s4716_s1 + $0xb8] sm:$0xff] }
 0x36d   : > { %v2687_v47 = vadd.f32 %v2671_v12, %v2651_v57  ;;  %10380 = vst [vmem:[#allocation215_spill] sm:$0xff] %v7855_v30  ;;  %v2054_v59 = vmul.f32 %v7855_v30, %v10101_v63  ;;  %v1961_v39 = vadd.f32 %v1945_v17, %v1925_v14  ;;  %v2089_v22 = vmul.f32 %v10299_v50, %v7568_v18 }
 0x36e   : > { %v1962_v11 = vadd.f32 %v1946_v61, %v1926_v6  ;;  %v2090_v57 = vmul.f32 %v10299_v50, %v7576_v27  ;;  %v7869_v55 = vsel %vm2137_vm6, %v9330_v28, %v9329_v21  ;;  %v2222_v36 = vmul.f32 %v10382_v48, %v10323_v56  ;;  %v10383_v28 = vld [vmem:[#allocation80_spill] sm:$0xff]  ;;  %v10384_v56 = vld [vmem:[#allocation194_spill] sm:$0xff] }
 0x36f   : > { %v2723_v12 = vadd.f32 %v2707_v42, %v2687_v47  ;;  %10381 = vst [vmem:[#allocation105_spill] sm:$0xff] %v7869_v55  ;;  %v1132_v17 = vmul.f32 %v10195_v45, %v10262_v24  ;;  %v1997_v14 = vadd.f32 %v1981_v26, %v1961_v39  ;;  %v9338_v61 = vrot.slane %v7568_v18, 2  ;;  %v10385_v45 = vld [vmem:[#allocation195_spill] sm:$0xff]  ;;  %v10413_v24 = vld [vmem:[#allocation229_spill] sm:$0xff] }
 0x370   : > { %v1998_v6 = vadd.f32 %v1982_v16, %v1962_v11  ;;  %v9337_v42 = vrot.slane %v7576_v27, 2  ;;  %v2258_v30 = vmul.f32 %v10107_v35, %v10331_v5  ;;  %v2294_v21 = vmul.f32 %v10309_v54, %v10336_v49  ;;  %v10386_v16 = vld [vmem:[#allocation214_spill] sm:$0xff] }
 0x371   : > { %v2759_v47 = vadd.f32 %v2743_v7, %v2723_v12  ;;  %v1148_v13 = vadd.f32 %v1132_v17, %v10383_v28  ;;  %v2033_v50 = vadd.f32 %v2017_v25, %v1997_v14  ;;  %v2330_v63 = vmul.f32 %v10319_v58, %v10384_v56  ;;  %v10387_v28 = vld [vmem:[#allocation91_spill] sm:$0xff] }
 0x372   : > { %v2366_v26 = vmul.f32 %v10324_v10, %v10385_v45  ;;  %v2402_v39 = vmul.f32 %v10332_v15, %v10386_v16  ;;  %v7890_v7 = vmul.f32 %v10337_v19, %v7869_v55  ;;  %v7894_v12 = vmul.f32 %v10317_v38, %v10351_v43 }
 0x373   : > { %v2795_v11 = vadd.f32 %v2779_v0, %v2759_v47  ;;  %v1281_v25 = vadd.f32 %v10387_v28, %v1148_v13  ;;  %v2034_v17 = vadd.f32 %v2018_v46, %v1998_v6  ;;  %v2069_v14 = vadd.f32 %v2053_v33, %v2033_v50  ;;  %v10389_v46 = vld [vmem:[#allocation93_spill] sm:$0xff] }
 0x374   : > { %v7903_v16 = vsel %vm2486_vm7, %v9338_v61, %v9337_v42  ;;  %v7907_v0 = vmul.f32 %v10345_v32, %v10353_v52  ;;  %v7915_v6 = vmul.f32 %v10347_v2, %v10355_v41  ;;  %v10390_v28 = vld [vmem:[#allocation201_spill] sm:$0xff]  ;;  %v10391_v61 = vld [vmem:[#allocation202_spill] sm:$0xff] }
 0x375   : > { %10388 = vst [vmem:[#allocation39_spill] sm:$0xff] %v7903_v16  ;;  %v2928_v47 = vadd.f32 %v7761_v3, %v2795_v11  ;;  %v1317_v50 = vadd.f32 %v10389_v46, %v1281_v25  ;;  %v2105_v33 = vadd.f32 %v2089_v22, %v2069_v14  ;;  %v7919_v42 = vmul.f32 %v10349_v29, %v10390_v28  ;;  %v10392_v11 = vld [vmem:[#allocation221_spill] sm:$0xff]  ;;  %v10393_v25 = vld [vmem:[#allocation96_spill] sm:$0xff]  ;;  %v10395_v46 = vld [vmem:[#allocation67_spill] sm:$0xff] }
 0x376   : > { %v7923_v45 = vmul.f32 %v10352_v40, %v10391_v61  ;;  %v7928_v55 = vmul.f32 %v10354_v62, %v10392_v11  ;;  %v10394_v14 = vld [vmem:[#allocation56_spill] sm:$0xff]  ;;  %v2070_v41 = vadd.f32 %v2054_v59, %v2034_v17  ;;  %v10397_v61 = vld [vmem:[#allocation154_spill] sm:$0xff]  ;;  %v10399_v11 = vrot.slane %v7568_v18, 3  ;;  %v10401_v59 = vld [vmem:[#allocation99_spill] sm:$0xff] }
 0x377   : > { %v2964_v3 = vadd.f32 %v7809_v60, %v2928_v47  ;;  %v1353_v22 = vadd.f32 %v10393_v25, %v1317_v50  ;;  %v1409_v13 = vmul.f32 %v10395_v46, %v10394_v14  ;;  %v2238_v52 = vadd.f32 %v2222_v36, %v2105_v33  ;;  %v10396_v28 = vld [vmem:[#allocation140_spill] sm:$0xff]  ;;  %v10403_v33 = vld [vmem:[#allocation46_spill] sm:$0xff] }
 0x378   : > { %v7935_v43 = vmul.f32 %v10396_v28, %v7903_v16  ;;  %v7939_v56 = vmul.f32 %v10397_v61, %v10367_v23  ;;  %v10398_v47 = vrot.slane %v7576_v27, 3  ;;  %v10402_v17 = vld [vmem:[#allocation76_spill] sm:$0xff]  ;;  %v7955_v23 = vmul.f32 %v10360_v51, %v10369_v1 }
 0x379   : > { %v3000_v60 = vadd.f32 %v7813_v34, %v2964_v3  ;;  %v1389_v36 = vadd.f32 %v10401_v59, %v1353_v22  ;;  %v1445_v25 = vmul.f32 %v10403_v33, %v10402_v17  ;;  %v2274_v16 = vadd.f32 %v2258_v30, %v2238_v52  ;;  %v10405_v34 = vld [vmem:[#allocation157_spill] sm:$0xff]  ;;  %v10407_v14 = vld [vmem:[#allocation144_spill] sm:$0xff]  ;;  %v10411_v52 = vld [vmem:[#allocation175_spill] sm:$0xff] }
 0x37a   : > { %v7948_v50 = vsel %vm2835_vm8, %v10399_v11, %v10398_v47  ;;  %10404 = vst [vmem:[#allocation186_spill] sm:$0xff] %v7955_v23  ;;  %v7959_v3 = vmul.f32 %v10405_v34, %v10371_v53  ;;  %v7963_v49 = vmul.f32 %v10364_v44, %v10407_v14  ;;  %v10409_v47 = vld [vmem:[#allocation29_spill] sm:$0xff]  ;;  %v10412_v30 = vld [vmem:[#allocation47_spill] sm:$0xff]  ;;  %v2106_v1 = vadd.f32 %v2090_v57, %v2070_v41  ;;  %v10419_v33 = vld [vmem:[#allocation74_spill] sm:$0xff] }
 0x37b   : > { %10400 = vst [vmem:[#allocation226_spill] sm:$0xff] %v7948_v50  ;;  %v3036_v11 = vadd.f32 %v7817_v20, %v3000_v60  ;;  %v7968_v22 = vmul.f32 %v10283_v31, %v10409_v47  ;;  %v1425_v59 = vadd.f32 %v1409_v13, %v1389_v36  ;;  %v1481_v5 = vmul.f32 %v10412_v30, %v10411_v52  ;;  %v10414_v23 = vld [vmem:[#allocation165_spill] sm:$0xff]  ;;  %v10421_v13 = vld [vmem:[#allocation75_spill] sm:$0xff]  ;;  %v10422_v36 = vld [vmem:[#allocation86_spill] sm:$0xff] }
 0x37c   : > { %10406 = vst [vmem:[#allocation112_spill] sm:$0xff] %v7959_v3  ;;  %10408 = vst [vmem:[#allocation227_spill] sm:$0xff] %v7963_v49  ;;  %v2310_v17 = vadd.f32 %v2294_v21, %v2274_v16  ;;  %v7974_v53 = vmul.f32 %v10414_v23, %v10413_v24  ;;  %v10416_v3 = vld [vmem:[#allocation58_spill] sm:$0xff]  ;;  %v10418_v49 = vld [vmem:[#allocation224_spill] sm:$0xff]  ;;  %v1758_v31 = vmul.f32 %v10422_v36, %v10421_v13 }
 0x37d   : > { %10410 = vst [vmem:[#allocation235_spill] sm:$0xff] %v7968_v22  ;;  %v7978_v14 = vmul.f32 %v10416_v3, %v7948_v50  ;;  %v3072_v20 = vadd.f32 %v10418_v49, %v3036_v11  ;;  %v1461_v60 = vadd.f32 %v1445_v25, %v1425_v59  ;;  %v10420_v47 = vld [vmem:[#allocation85_spill] sm:$0xff]  ;;  %v10424_v21 = vld [vmem:[#allocation87_spill] sm:$0xff]  ;;  %v10425_v16 = vld [vmem:[#allocation198_spill] sm:$0xff] }
 0x37e   : > { %10415 = vst [vmem:[#allocation117_spill] sm:$0xff] %v7974_v53  ;;  %v1722_v22 = vmul.f32 %v10420_v47, %v10419_v33  ;;  %v2346_v52 = vadd.f32 %v2330_v63, %v2310_v17  ;;  %v10423_v41 = vld [vmem:[#allocation101_spill] sm:$0xff]  ;;  %v10426_v24 = vld [vmem:[#allocation88_spill] sm:$0xff]  ;;  %v10429_v25 = vld [vmem:[#allocation103_spill] sm:$0xff] }
 0x37f   : > { %10417 = vst [vmem:[#allocation23_spill] sm:$0xff] %v7978_v14  ;;  %v1794_v57 = vmul.f32 %v10424_v21, %v10423_v41  ;;  %v1830_v53 = vmul.f32 %v10426_v24, %v10425_v16  ;;  %v10427_v30 = vld [vmem:[#allocation33_spill] sm:$0xff]  ;;  %v1497_v49 = vadd.f32 %v1481_v5, %v1461_v60  ;;  %v10431_v33 = vld [vmem:[#allocation206_spill] sm:$0xff]  ;;  %v10433_v16 = vld [vmem:[#allocation207_spill] sm:$0xff] }
 0x380   : > { %v2223_v50 = vmul.f32 %v10382_v48, %v10427_v30  ;;  %v10428_v14 = vld [vmem:[#allocation37_spill] sm:$0xff]  ;;  %v2259_v13 = vmul.f32 %v10107_v35, %v10431_v33  ;;  %v2382_v63 = vadd.f32 %v2366_v26, %v2346_v52  ;;  %v10432_v17 = vld [vmem:[#allocation218_spill] sm:$0xff]  ;;  %v2295_v24 = vmul.f32 %v10309_v54, %v10433_v16 }
 0x381   : > { %v3108_v3 = vadd.f32 %v10428_v14, %v3072_v20  ;;  %v10430_v11 = vld [vmem:[#allocation217_spill] sm:$0xff]  ;;  %v8000_v41 = vmul.f32 %v10432_v17, %v10373_v37  ;;  %v10435_v14 = vld [vmem:[#allocation106_spill] sm:$0xff]  ;;  %v10436_v20 = vld [vmem:[#allocation180_spill] sm:$0xff]  ;;  %v10439_v52 = vrot.slane %v7568_v18, 1 }
 0x382   : > { %v7994_v59 = vmul.f32 %v10430_v11, %v10429_v25  ;;  %v2239_v21 = vadd.f32 %v2223_v50, %v2106_v1  ;;  %v10434_v36 = vld [vmem:[#allocation225_spill] sm:$0xff]  ;;  %v1630_v5 = vadd.f32 %v10435_v14, %v1497_v49  ;;  %v8008_v60 = vmul.f32 %v10436_v20, %v10284_v9  ;;  %v10437_v11 = vld [vmem:[#allocation220_spill] sm:$0xff]  ;;  %v10442_v49 = vld [vmem:[#allocation114_spill] sm:$0xff] }
 0x383   : > { %v3144_v47 = vadd.f32 %v10434_v36, %v3108_v3  ;;  %v8012_v25 = vmul.f32 %v10437_v11, %v10099_v8  ;;  %v2418_v26 = vadd.f32 %v2402_v39, %v2382_v63  ;;  %v10440_v1 = vrot.slane %v7576_v27, 1  ;;  %v10441_v3 = vld [vmem:[#allocation209_spill] sm:$0xff]  ;;  %v10444_v9 = vld [vmem:[#allocation216_spill] sm:$0xff]  ;;  %v10445_v11 = vld [vmem:[#allocation119_spill] sm:$0xff] }
 0x384   : > { %v2275_v17 = vadd.f32 %v2259_v13, %v2239_v21  ;;  %v2331_v36 = vmul.f32 %v10319_v58, %v10441_v3  ;;  %v1666_v14 = vadd.f32 %v10442_v49, %v1630_v5  ;;  %v10443_v20 = vld [vmem:[#allocation113_spill] sm:$0xff]  ;;  %v10447_v8 = vld [vmem:[#allocation24_spill] sm:$0xff]  ;;  %v10449_v5 = vld [vmem:[#allocation210_spill] sm:$0xff] }
 0x385   : > { %10438 = vst [vmem:[#allocation228_spill] sm:$0xff] %v8012_v25  ;;  %v2164_v50 = vsel %vm2137_vm6, %v10440_v1, %v10439_v52  ;;  %3710 = vmatprep.mubr.f32.mxu0 %v3144_v47  ;;  %v8025_v37 = vmul.f32 %v10444_v9, %v10443_v20  ;;  %v10446_v39 = vld [vmem:[#allocation237_spill] sm:$0xff]  ;;  %v8033_v25 = vmul.f32 %v10382_v48, %v10447_v8  ;;  %v10450_v9 = vld [vmem:[#allocation118_spill] sm:$0xff]  ;;  %v10451_v3 = vld [vmem:[#allocation28_spill] sm:$0xff] }
 0x386   : > { %v8029_v63 = vmul.f32 %v10446_v39, %v10445_v11  ;;  %v2454_v13 = vadd.f32 %v7890_v7, %v2418_v26  ;;  %v10448_v21 = vld [vmem:[#allocation25_spill] sm:$0xff]  ;;  %v2311_v47 = vadd.f32 %v2295_v24, %v2275_v17  ;;  %v2367_v1 = vmul.f32 %v10324_v10, %v10449_v5  ;;  %v10452_v11 = vld [vmem:[#allocation30_spill] sm:$0xff]  ;;  %v10458_v48 = vld [vmem:[#allocation35_spill] sm:$0xff] }
 0x387   : > { %v8038_v52 = vmul.f32 %v10107_v35, %v10448_v21  ;;  %v1702_v49 = vadd.f32 %v10450_v9, %v1666_v14  ;;  %v8045_v39 = vmul.f32 %v10309_v54, %v10451_v3  ;;  %v8049_v8 = vmul.f32 %v10319_v58, %v10452_v11  ;;  %v10455_v14 = vld [vmem:[#allocation240_spill] sm:$0xff]  ;;  %v10472_v54 = vld [vmem:[#allocation205_spill] sm:$0xff]  ;;  %v10532_v35 = vld [vmem:[#allocation23_spill] sm:$0xff] }
 0x388   : > { %v8053_v7 = vsel %vm2171_vm9, %v2164_v50, 0.0  ;;  %v2587_v26 = vadd.f32 %v7894_v12, %v2454_v13  ;;  %v8058_v24 = vmul.f32 %v10324_v10, %v10427_v30  ;;  %v2347_v17 = vadd.f32 %v2331_v36, %v2311_v47  ;;  %v10456_v50 = vld [vmem:[#allocation191_spill] sm:$0xff]  ;;  %v10457_v30 = vld [vmem:[#allocation197_spill] sm:$0xff]  ;;  %v10459_v5 = vld [vmem:[#allocation116_spill] sm:$0xff] }
 0x389   : > { %10454 = vst [vmem:[#allocation230_spill] sm:$0xff] %v8053_v7  ;;  %v2403_v9 = vmul.f32 %v10332_v15, %v10455_v14  ;;  %v1738_v3 = vadd.f32 %v1722_v22, %v1702_v49  ;;  %v8064_v21 = vmul.f32 %v10332_v15, %v10431_v33  ;;  %v8068_v11 = vmul.f32 %v10337_v19, %v10433_v16  ;;  %v10461_v33 = vld [vmem:[#allocation48_spill] sm:$0xff] }
 0x38a   : > { %v8072_v12 = vmul.f32 %v10317_v38, %v10456_v50  ;;  %v2623_v13 = vadd.f32 %v7907_v0, %v2587_v26  ;;  %v8077_v36 = vmul.f32 %v10345_v32, %v10457_v30  ;;  %v2383_v47 = vadd.f32 %v2367_v1, %v2347_v17  ;;  %v10460_v50 = vld [vmem:[#allocation169_spill] sm:$0xff]  ;;  %v10462_v30 = vld [vmem:[#allocation36_spill] sm:$0xff] }
 0x38b   : > { %v2439_v22 = vmul.f32 %v10337_v19, %v8053_v7  ;;  %v1774_v49 = vadd.f32 %v1758_v31, %v1738_v3  ;;  %v8083_v14 = vmul.f32 %v10347_v2, %v10458_v48  ;;  %v8087_v16 = vmul.f32 %v10349_v29, %v10459_v5  ;;  %v10463_v48 = vld [vmem:[#allocation196_spill] sm:$0xff] }
 0x38c   : > { %v1097_v0 = vmul.f32 %v10461_v33, %v10460_v50  ;;  %v2659_v26 = vadd.f32 %v7915_v6, %v2623_v13  ;;  %v8094_v1 = vmul.f32 %v10352_v40, %v10462_v30  ;;  %v2419_v17 = vadd.f32 %v2403_v9, %v2383_v47  ;;  %v10467_v13 = vld [vmem:[#allocation78_spill] sm:$0xff] }
 0x38d   : > { %v2572_v31 = vmul.f32 %v10317_v38, %v10462_v30  ;;  %v1810_v3 = vadd.f32 %v1794_v57, %v1774_v49  ;;  %v8100_v7 = vmul.f32 %v10354_v62, %v10463_v48  ;;  %v10465_v5 = vrot.slane %v7568_v18, 2  ;;  %v10468_v9 = vld [vmem:[#allocation110_spill] sm:$0xff]  ;;  %v10470_v38 = vld [vmem:[#allocation204_spill] sm:$0xff] }
 0x38e   : > { %v10466_v19 = vrot.slane %v7576_v27, 2  ;;  %v1113_v15 = vadd.f32 %v1097_v0, %v10467_v13  ;;  %v2695_v10 = vadd.f32 %v7919_v42, %v2659_v26  ;;  %v8112_v47 = vmul.f32 %v10396_v28, %v10468_v9 }
 0x38f   : > { %10464 = vst [vmem:[#allocation236_spill] sm:$0xff] %v8100_v7  ;;  %v2455_v57 = vadd.f32 %v2439_v22, %v2419_v17  ;;  %v2608_v49 = vmul.f32 %v10345_v32, %v10463_v48  ;;  %v1846_v30 = vadd.f32 %v1830_v53, %v1810_v3  ;;  %v8118_v58 = vmul.f32 %v10397_v61, %v10470_v38  ;;  %v10477_v17 = vld [vmem:[#allocation177_spill] sm:$0xff]  ;;  %v10507_v32 = vld [vmem:[#allocation84_spill] sm:$0xff]  ;;  %v10523_v7 = vld [vmem:[#allocation50_spill] sm:$0xff] }
 0x390   : > { %v2513_v6 = vsel %vm2486_vm7, %v10466_v19, %v10465_v5  ;;  %10469 = vst [vmem:[#allocation231_spill] sm:$0xff] %v8112_v47  ;;  %v8122_v19 = vmul.f32 %v10360_v51, %v10472_v54  ;;  %v10474_v5 = vld [vmem:[#allocation148_spill] sm:$0xff]  ;;  %v2731_v42 = vadd.f32 %v7923_v45, %v2695_v10  ;;  %v2644_v53 = vmul.f32 %v10347_v2, %v10468_v9  ;;  %v10478_v38 = vld [vmem:[#allocation149_spill] sm:$0xff]  ;;  %v10482_v10 = vld [vmem:[#allocation63_spill] sm:$0xff] }
 0x391   : > { %10471 = vst [vmem:[#allocation232_spill] sm:$0xff] %v8118_v58  ;;  %v1149_v0 = vadd.f32 %v10474_v5, %v1113_v15  ;;  %v8128_v13 = vsel %vm2520_vm10, %v2513_v6, 0.0  ;;  %v2588_v22 = vadd.f32 %v2572_v31, %v2455_v57  ;;  %v1882_v3 = vadd.f32 %v10477_v17, %v1846_v30  ;;  %v10483_v5 = vld [vmem:[#allocation146_spill] sm:$0xff]  ;;  %v10484_v30 = vld [vmem:[#allocation147_spill] sm:$0xff] }
 0x392   : > { %10473 = vst [vmem:[#allocation176_spill] sm:$0xff] %v8122_v19  ;;  %10476 = vst [vmem:[#allocation233_spill] sm:$0xff] %v8128_v13  ;;  %v8135_v48 = vmul.f32 %v10405_v34, %v10478_v38  ;;  %v10480_v54 = vrot.slane %v7568_v18, 3  ;;  %v10481_v15 = vrot.slane %v7576_v27, 3  ;;  %v2767_v31 = vadd.f32 %v7928_v55, %v2731_v42  ;;  %v10485_v9 = vld [vmem:[#allocation79_spill] sm:$0xff]  ;;  %v10511_v58 = vld [vmem:[#allocation102_spill] sm:$0xff] }
 0x393   : > { %v1282_v6 = vadd.f32 %v10482_v10, %v1149_v0  ;;  %v2624_v57 = vadd.f32 %v2608_v49, %v2588_v22  ;;  %v2680_v26 = vmul.f32 %v10349_v29, %v10483_v5  ;;  %v2716_v17 = vmul.f32 %v10352_v40, %v10484_v30  ;;  %v10489_v22 = vld [vmem:[#allocation208_spill] sm:$0xff]  ;;  %v10491_v30 = vld [vmem:[#allocation97_spill] sm:$0xff]  ;;  %v10505_v2 = vld [vmem:[#allocation47_spill] sm:$0xff] }
 0x394   : > { %10479 = vst [vmem:[#allocation156_spill] sm:$0xff] %v8135_v48  ;;  %v2862_v45 = vsel %vm2835_vm8, %v10481_v15, %v10480_v54  ;;  %v1918_v38 = vadd.f32 %v7994_v59, %v1882_v3  ;;  %v2752_v18 = vmul.f32 %v10354_v62, %v10485_v9  ;;  %v2788_v27 = vmul.f32 %v10396_v28, %v8128_v13  ;;  %v10486_v54 = vld [vmem:[#allocation94_spill] sm:$0xff]  ;;  %v10490_v3 = vld [vmem:[#allocation31_spill] sm:$0xff]  ;;  %v10492_v13 = vld [vmem:[#allocation72_spill] sm:$0xff] }
 0x395   : > { %v1318_v15 = vadd.f32 %v10486_v54, %v1282_v6  ;;  %v2803_v0 = vadd.f32 %v7935_v43, %v2767_v31  ;;  %v2660_v55 = vadd.f32 %v2644_v53, %v2624_v57  ;;  %v8158_v42 = vsel %vm2869_vm11, %v2862_v45, 0.0  ;;  %v10493_v31 = vld [vmem:[#allocation151_spill] sm:$0xff]  ;;  %v10494_v57 = vld [vmem:[#allocation45_spill] sm:$0xff]  ;;  %v10496_v49 = vld [vmem:[#allocation164_spill] sm:$0xff] }
 0x396   : > { %10488 = vst [vmem:[#allocation187_spill] sm:$0xff] %v8158_v42  ;;  %v2921_v10 = vmul.f32 %v10397_v61, %v10489_v22  ;;  %v1954_v59 = vadd.f32 %v8000_v41, %v1918_v38  ;;  %v2957_v9 = vmul.f32 %v10360_v51, %v10490_v3  ;;  %v1410_v6 = vmul.f32 %v10395_v46, %v10492_v13  ;;  %v10495_v38 = vld [vmem:[#allocation38_spill] sm:$0xff]  ;;  %v10497_v61 = vld [vmem:[#allocation100_spill] sm:$0xff]  ;;  %v10504_v29 = vld [vmem:[#allocation173_spill] sm:$0xff] }
 0x397   : > { %v1354_v5 = vadd.f32 %v10491_v30, %v1318_v15  ;;  %v2936_v43 = vadd.f32 %v7939_v56, %v2803_v0  ;;  %v2696_v53 = vadd.f32 %v2680_v26, %v2660_v55  ;;  %v2993_v45 = vmul.f32 %v10405_v34, %v10493_v31  ;;  %v10498_v15 = vld [vmem:[#allocation172_spill] sm:$0xff]  ;;  %v10499_v28 = vld [vmem:[#allocation46_spill] sm:$0xff]  ;;  %v10501_v55 = vld [vmem:[#allocation81_spill] sm:$0xff] }
 0x398   : > { %v3029_v54 = vmul.f32 %v10364_v44, %v10494_v57  ;;  %v1990_v41 = vadd.f32 %v8008_v60, %v1954_v59  ;;  %v3065_v51 = vmul.f32 %v10496_v49, %v10495_v38  ;;  %v1446_v62 = vmul.f32 %v10499_v28, %v10498_v15  ;;  %v10500_v56 = vld [vmem:[#allocation186_spill] sm:$0xff]  ;;  %v10503_v60 = vld [vmem:[#allocation228_spill] sm:$0xff] }
 0x399   : > { %v1390_v30 = vadd.f32 %v10497_v61, %v1354_v5  ;;  %v2972_v0 = vadd.f32 %v10500_v56, %v2936_v43  ;;  %v2732_v26 = vadd.f32 %v2716_v17, %v2696_v53  ;;  %v8182_v34 = vmul.f32 %v10414_v23, %v10501_v55  ;;  %v10502_v57 = vld [vmem:[#allocation58_spill] sm:$0xff]  ;;  %v10506_v5 = vld [vmem:[#allocation89_spill] sm:$0xff]  ;;  %v10508_v17 = vld [vmem:[#allocation112_spill] sm:$0xff] }
 0x39a   : > { %v8186_v40 = vmul.f32 %v10502_v57, %v8158_v42  ;;  %v2026_v59 = vadd.f32 %v10503_v60, %v1990_v41  ;;  %v1482_v61 = vmul.f32 %v10505_v2, %v10504_v29  ;;  %v1687_v31 = vmul.f32 %v10507_v32, %v10506_v5  ;;  %v8194_v48 = vld [vmem:[%s4716_s1 + $0xd0] sm:$0xff]  ;;  %v10509_v56 = vld [vmem:[#allocation92_spill] sm:$0xff]  ;;  %v10510_v55 = vld [vmem:[#allocation85_spill] sm:$0xff] }
 0x39b   : > { %v1426_v38 = vadd.f32 %v1410_v6, %v1390_v30  ;;  %v3008_v43 = vadd.f32 %v10508_v17, %v2972_v0  ;;  %v2768_v53 = vadd.f32 %v2752_v18, %v2732_v26  ;;  %v1723_v19 = vmul.f32 %v10510_v55, %v10509_v56  ;;  %v10512_v42 = vld [vmem:[#allocation86_spill] sm:$0xff]  ;;  %v8202_v23 = vld [vmem:[%s4716_s1 + $0xd8] sm:$0xff]  ;;  %v10513_v30 = vld [vmem:[#allocation184_spill] sm:$0xff] }
 0x39c   : > { %v1759_v57 = vmul.f32 %v10512_v42, %v10511_v58  ;;  %v2062_v6 = vadd.f32 %v8025_v37, %v2026_v59  ;;  %v10514_v60 = vld [vmem:[#allocation87_spill] sm:$0xff]  ;;  %v10515_v5 = vld [vmem:[#allocation185_spill] sm:$0xff]  ;;  %v10516_v32 = vld [vmem:[#allocation88_spill] sm:$0xff]  ;;  %v823_v42 = vrot.slane %v8194_v48, 5 }
 0x39d   : > { %v1462_v41 = vadd.f32 %v1446_v62, %v1426_v38  ;;  %v1795_v3 = vmul.f32 %v10514_v60, %v10513_v30  ;;  %v8209_v47 = vmul.f32 %v10516_v32, %v10515_v5  ;;  %v10517_v0 = vld [vmem:[#allocation227_spill] sm:$0xff]  ;;  %v2804_v26 = vadd.f32 %v2788_v27, %v2768_v53  ;;  %v10518_v17 = vld [vmem:[#allocation90_spill] sm:$0xff]  ;;  %v10520_v38 = vld [vmem:[#allocation52_spill] sm:$0xff] }
 0x39e   : > { %v3044_v18 = vadd.f32 %v10517_v0, %v3008_v43  ;;  %v10519_v56 = vld [vmem:[#allocation66_spill] sm:$0xff]  ;;  %v2098_v58 = vadd.f32 %v8029_v63, %v2062_v6  ;;  %v837_v62 = vrot.slane %v8202_v23, 5  ;;  %v10521_v59 = vld [vmem:[#allocation40_spill] sm:$0xff]  ;;  %v10522_v30 = vld [vmem:[#allocation235_spill] sm:$0xff] }
 0x39f   : > { %v8214_v55 = vmul.f32 %v10519_v56, %v10518_v17  ;;  %v1498_v37 = vadd.f32 %v1482_v61, %v1462_v41  ;;  %v925_v60 = vmul.f32 %v10521_v59, %v10520_v38  ;;  %v2937_v5 = vadd.f32 %v2921_v10, %v2804_v26  ;;  %v10524_v43 = vld [vmem:[#allocation41_spill] sm:$0xff]  ;;  %v10525_v56 = vld [vmem:[#allocation107_spill] sm:$0xff]  ;;  %v10530_v38 = vld [vmem:[#allocation170_spill] sm:$0xff] }
 0x3a0   : > { %v3080_v32 = vadd.f32 %v10522_v30, %v3044_v18  ;;  %v926_v27 = vmul.f32 %v10521_v59, %v10523_v7  ;;  %v961_v53 = vmul.f32 %v10524_v43, %v10460_v50  ;;  %v2231_v0 = vadd.f32 %v8033_v25, %v2098_v58  ;;  %v10526_v6 = vld [vmem:[#allocation117_spill] sm:$0xff]  ;;  %v10528_v7 = vld [vmem:[#allocation166_spill] sm:$0xff]  ;;  %v10529_v58 = vld [vmem:[#allocation115_spill] sm:$0xff] }
 0x3a1   : > { %v1631_v17 = vadd.f32 %v10525_v56, %v1498_v37  ;;  %v852_v63 = vsel %vm838_vm0, %v823_v42, %v837_v62  ;;  %v866_v61 = vsel %vm838_vm0, %v837_v62, %v823_v42  ;;  %v2973_v30 = vadd.f32 %v2957_v9, %v2937_v5  ;;  %v10531_v59 = vld [vmem:[#allocation42_spill] sm:$0xff]  ;;  %v10535_v10 = vld [vmem:[#allocation43_spill] sm:$0xff] }
 0x3a2   : > { %v3116_v41 = vadd.f32 %v10526_v6, %v3080_v32  ;;  %v905_v18 = vsel %vm869_vm1, %v866_v61, 0.0  ;;  %v962_v26 = vmul.f32 %v10524_v43, %v10528_v7  ;;  %v2267_v50 = vadd.f32 %v8038_v52, %v2231_v0  ;;  %v10533_v32 = vld [vmem:[#allocation167_spill] sm:$0xff] }
 0x3a3   : > { %v1667_v25 = vadd.f32 %v10529_v58, %v1631_v17  ;;  %v977_v37 = vadd.f32 %v961_v53, %v925_v60  ;;  %v997_v56 = vmul.f32 %v10531_v59, %v10530_v38  ;;  %v3009_v42 = vadd.f32 %v2993_v45, %v2973_v30  ;;  %v10534_v43 = vld [vmem:[#allocation171_spill] sm:$0xff]  ;;  %v10536_v53 = vld [vmem:[#allocation168_spill] sm:$0xff] }
 0x3a4   : > { %v3152_v49 = vadd.f32 %v10532_v35, %v3116_v41  ;;  %v978_v62 = vadd.f32 %v962_v26, %v926_v27  ;;  %v998_v9 = vmul.f32 %v10531_v59, %v10533_v32  ;;  %v2303_v5 = vadd.f32 %v8045_v39, %v2267_v50  ;;  %v10537_v58 = vld [vmem:[#allocation179_spill] sm:$0xff]  ;;  %v10538_v35 = vld [vmem:[#allocation44_spill] sm:$0xff]  ;;  %v10539_v26 = vld [vmem:[#allocation150_spill] sm:$0xff] }
 0x3a5   : > { %v1703_v61 = vadd.f32 %v1687_v31, %v1667_v25  ;;  %v1013_v6 = vadd.f32 %v997_v56, %v977_v37  ;;  %v1033_v52 = vmul.f32 %v10535_v10, %v10534_v43  ;;  %v3045_v17 = vadd.f32 %v3029_v54, %v3009_v42  ;;  %v10540_v25 = vld [vmem:[#allocation69_spill] sm:$0xff]  ;;  %v10541_v54 = vld [vmem:[#allocation95_spill] sm:$0xff] }
 0x3a6   : > { %3722 = vmatprep.mubr.f32.mxu1 %v3152_v49  ;;  %v1014_v60 = vadd.f32 %v998_v9, %v978_v62  ;;  %v1034_v0 = vmul.f32 %v10535_v10, %v10536_v53  ;;  %v1069_v45 = vmul.f32 %v10538_v35, %v10537_v58  ;;  %v2339_v27 = vadd.f32 %v8049_v8, %v2303_v5  ;;  %v10542_v42 = vld [vmem:[#allocation49_spill] sm:$0xff]  ;;  %v10547_v58 = vld [vmem:[#allocation104_spill] sm:$0xff] }
 0x3a7   : > { %v1739_v41 = vadd.f32 %v1723_v19, %v1703_v61  ;;  %v1049_v30 = vadd.f32 %v1033_v52, %v1013_v6  ;;  %v1070_v39 = vmul.f32 %v10538_v35, %v10539_v26  ;;  %v3081_v31 = vadd.f32 %v3065_v51, %v3045_v17  ;;  %v10550_v26 = vld [vmem:[#allocation108_spill] sm:$0xff] }
 0x3a8   : > { %v1050_v50 = vadd.f32 %v1034_v0, %v1014_v60  ;;  %v1105_v49 = vmul.f32 %v10461_v33, %v10540_v25  ;;  %v1106_v37 = vmul.f32 %v10461_v33, %v10541_v54  ;;  %v2375_v38 = vadd.f32 %v8058_v24, %v2339_v27  ;;  %v10545_v60 = vld [vmem:[#allocation103_spill] sm:$0xff]  ;;  %v4008_v0 = vld [vmem:[%s4716_s1 + $0x50] sm:$0xff] }
 0x3a9   : > { %v1775_v59 = vadd.f32 %v1759_v57, %v1739_v41  ;;  %v1085_v56 = vadd.f32 %v1069_v45, %v1049_v30  ;;  %v1141_v62 = vmul.f32 %v10542_v42, %v905_v18  ;;  %v3117_v8 = vadd.f32 %v8182_v34, %v3081_v31  ;;  %v10543_v18 = vld [vmem:[#allocation59_spill] sm:$0xff]  ;;  %v10544_v34 = vld [vmem:[#allocation76_spill] sm:$0xff] }
 0x3aa   : > { %v1086_v19 = vadd.f32 %v1070_v39, %v1050_v50  ;;  %v1142_v9 = vmul.f32 %v10542_v42, %v852_v63  ;;  %v1172_v51 = vrot.slane %v8194_v48, 6  ;;  %v2411_v5 = vadd.f32 %v8064_v21, %v2375_v38  ;;  %v10546_v21 = vld [vmem:[#allocation219_spill] sm:$0xff]  ;;  %v10548_v45 = vld [vmem:[#allocation60_spill] sm:$0xff] }
 0x3ab   : > { %v1811_v61 = vadd.f32 %v1795_v3, %v1775_v59  ;;  %v1121_v6 = vadd.f32 %v1105_v49, %v1085_v56  ;;  %v1186_v43 = vrot.slane %v8202_v23, 6  ;;  %v3153_v24 = vadd.f32 %v8186_v40, %v3117_v8  ;;  %v4009_v30 = vld [vmem:[%s4716_s1 + $0x60] sm:$0xff]  ;;  %v10551_v49 = vld [vmem:[#allocation62_spill] sm:$0xff]  ;;  %v10555_v8 = vld [vmem:[#allocation111_spill] sm:$0xff] }
 0x3ac   : > { %v1122_v57 = vadd.f32 %v1106_v37, %v1086_v19  ;;  %v1274_v10 = vmul.f32 %v10543_v18, %v10492_v13  ;;  %v1275_v52 = vmul.f32 %v10543_v18, %v10544_v34  ;;  %v2447_v63 = vadd.f32 %v8068_v11, %v2411_v5  ;;  %v10549_v13 = vld [vmem:[#allocation175_spill] sm:$0xff]  ;;  %v10553_v56 = vld [vmem:[#allocation174_spill] sm:$0xff]  ;;  %v8296_v5 = vld [vmem:[%s4716_s1 + $0x80] sm:$0xff] }
 0x3ad   : > { %v1847_v17 = vadd.f32 %v8209_v47, %v1811_v61  ;;  %v1903_v3 = vmul.f32 %v10546_v21, %v10545_v60  ;;  %v1157_v53 = vadd.f32 %v1141_v62, %v1121_v6  ;;  %3723 = vmatmul.mubr.f32.gmra.mrb[4].mxu1 %v3153_v24  ;;  %v1939_v40 = vmul.f32 %v4008_v0, %v10547_v58  ;;  %v10556_v19 = vld [vmem:[#allocation222_spill] sm:$0xff]  ;;  %v10560_v0 = vld [vmem:[#allocation109_spill] sm:$0xff] }
 0x3ae   : > { %v1158_v35 = vadd.f32 %v1142_v9, %v1122_v57  ;;  %v1310_v27 = vmul.f32 %v10548_v45, %v10498_v15  ;;  %v1311_v41 = vmul.f32 %v10548_v45, %v10549_v13  ;;  %v2580_v11 = vadd.f32 %v8072_v12, %v2447_v63  ;;  %v10552_v15 = vld [vmem:[#allocation178_spill] sm:$0xff] }
 0x3af   : > { %v1883_v47 = vadd.f32 %v8214_v55, %v1847_v17  ;;  %v1975_v39 = vmul.f32 %v4009_v30, %v10550_v26  ;;  %v1290_v31 = vadd.f32 %v1274_v10, %v1157_v53  ;;  %v1215_v50 = vsel %vm1187_vm2, %v1186_v43, %v1172_v51  ;;  %v10554_v55 = vld [vmem:[#allocation65_spill] sm:$0xff]  ;;  %v10557_v6 = vld [vmem:[#allocation182_spill] sm:$0xff] }
 0x3b0   : > { %v1291_v25 = vadd.f32 %v1275_v52, %v1158_v35  ;;  %v1346_v54 = vmul.f32 %v10551_v49, %v10504_v29  ;;  %v1347_v37 = vmul.f32 %v10551_v49, %v10552_v15  ;;  %v2616_v38 = vadd.f32 %v8077_v36, %v2580_v11  ;;  %v10558_v52 = vld [vmem:[#allocation120_spill] sm:$0xff]  ;;  %v10569_v21 = vld [vmem:[#allocation102_spill] sm:$0xff]  ;;  %v10592_v15 = vld [vmem:[#allocation193_spill] sm:$0xff] }
 0x3b1   : > { %v1919_v59 = vadd.f32 %v1903_v3, %v1883_v47  ;;  %v1326_v12 = vadd.f32 %v1310_v27, %v1290_v31  ;;  %v1382_v62 = vmul.f32 %v10554_v55, %v10553_v56  ;;  %v2011_v9 = vmul.f32 %v10556_v19, %v10555_v8  ;;  %v10562_v47 = vld [vmem:[#allocation152_spill] sm:$0xff]  ;;  %v8317_v31 = vld [vmem:[%s4716_s1 + $0x90] sm:$0xff]  ;;  %v10566_v56 = vld [vmem:[#allocation127_spill] sm:$0xff] }
 0x3b2   : > { %v2047_v61 = vmul.f32 %v8296_v5, %v10443_v20  ;;  %v1327_v29 = vadd.f32 %v1311_v41, %v1291_v25  ;;  %v1383_v24 = vmul.f32 %v10554_v55, %v10557_v6  ;;  %v2652_v36 = vadd.f32 %v8083_v14, %v2616_v38  ;;  %v10561_v14 = vld [vmem:[#allocation98_spill] sm:$0xff]  ;;  %v10564_v25 = vld [vmem:[#allocation223_spill] sm:$0xff] }
 0x3b3   : > { %v1955_v57 = vadd.f32 %v1939_v40, %v1919_v59  ;;  %v1362_v10 = vadd.f32 %v1346_v54, %v1326_v12  ;;  %v1418_v63 = vmul.f32 %v10395_v46, %v10558_v52  ;;  %v1201_v17 = vsel %vm1187_vm2, %v1172_v51, %v1186_v43  ;;  %v10563_v51 = vld [vmem:[#allocation119_spill] sm:$0xff]  ;;  %v10565_v59 = vld [vmem:[#allocation164_spill] sm:$0xff] }
 0x3b4   : > { %v1254_v3 = vsel %vm1218_vm3, %v1215_v50, 0.0  ;;  %v1363_v53 = vadd.f32 %v1347_v37, %v1327_v29  ;;  %v1419_v35 = vmul.f32 %v10395_v46, %v10560_v0  ;;  %v2688_v27 = vadd.f32 %v8087_v16, %v2652_v36  ;;  %v10571_v0 = vld [vmem:[#allocation101_spill] sm:$0xff] }
 0x3b5   : > { %v1991_v41 = vadd.f32 %v1975_v39, %v1955_v57  ;;  %v1398_v11 = vadd.f32 %v1382_v62, %v1362_v10  ;;  %v1454_v40 = vmul.f32 %v10499_v28, %v10561_v14  ;;  %v3021_v30 = vmul.f32 %v10364_v44, %v10562_v47  ;;  %v10567_v62 = vld [vmem:[#allocation122_spill] sm:$0xff]  ;;  %v10568_v57 = vld [vmem:[#allocation236_spill] sm:$0xff]  ;;  %v10581_v47 = vld [vmem:[#allocation181_spill] sm:$0xff] }
 0x3b6   : > { %v2083_v43 = vmul.f32 %v8317_v31, %v10563_v51  ;;  %v1399_v50 = vadd.f32 %v1383_v24, %v1363_v53  ;;  %v1455_v54 = vmul.f32 %v10499_v28, %v10564_v25  ;;  %v2724_v37 = vadd.f32 %v8094_v1, %v2688_v27  ;;  %v10570_v53 = vld [vmem:[#allocation82_spill] sm:$0xff] }
 0x3b7   : > { %v2027_v16 = vadd.f32 %v2011_v9, %v1991_v41  ;;  %v1434_v39 = vadd.f32 %v1418_v63, %v1398_v11  ;;  %v1490_v38 = vmul.f32 %v10505_v2, %v1254_v3  ;;  %v3057_v12 = vmul.f32 %v10565_v59, %v10489_v22  ;;  %v10572_v41 = vld [vmem:[#allocation231_spill] sm:$0xff] }
 0x3b8   : > { %v2252_v29 = vmul.f32 %v10567_v62, %v10566_v56  ;;  %v1435_v6 = vadd.f32 %v1419_v35, %v1399_v50  ;;  %v1491_v36 = vmul.f32 %v10505_v2, %v1201_v17  ;;  %v2760_v24 = vadd.f32 %v10568_v57, %v2724_v37  ;;  %v10573_v17 = vld [vmem:[#allocation184_spill] sm:$0xff]  ;;  %v10574_v50 = vld [vmem:[#allocation83_spill] sm:$0xff]  ;;  %v10591_v2 = vld [vmem:[#allocation130_spill] sm:$0xff] }
 0x3b9   : > { %v2063_v10 = vadd.f32 %v2047_v61, %v2027_v16  ;;  %v1470_v52 = vadd.f32 %v1454_v40, %v1434_v39  ;;  %v1623_v1 = vmul.f32 %v10570_v53, %v10569_v21  ;;  %v1521_v63 = vrot.slane %v8194_v48, 7  ;;  %v10575_v61 = vld [vmem:[#allocation31_spill] sm:$0xff]  ;;  %v10576_v40 = vld [vmem:[#allocation165_spill] sm:$0xff]  ;;  %v10577_v16 = vld [vmem:[#allocation128_spill] sm:$0xff] }
 0x3ba   : > { %v1471_v9 = vadd.f32 %v1455_v54, %v1435_v6  ;;  %v1535_v3 = vrot.slane %v8202_v23, 7  ;;  %v1624_v27 = vmul.f32 %v10570_v53, %v10571_v0  ;;  %v2796_v11 = vadd.f32 %v10572_v41, %v2760_v24  ;;  %v10578_v39 = vld [vmem:[#allocation123_spill] sm:$0xff]  ;;  %v10579_v6 = vld [vmem:[#allocation198_spill] sm:$0xff]  ;;  %v10580_v21 = vld [vmem:[#allocation232_spill] sm:$0xff] }
 0x3bb   : > { %v2099_v35 = vadd.f32 %v2083_v43, %v2063_v10  ;;  %v1506_v14 = vadd.f32 %v1490_v38, %v1470_v52  ;;  %v1659_v25 = vmul.f32 %v10574_v50, %v10573_v17  ;;  %v3093_v37 = vmul.f32 %v10576_v40, %v10575_v61  ;;  %v10582_v38 = vld [vmem:[#allocation185_spill] sm:$0xff]  ;;  %v10583_v10 = vld [vmem:[#allocation84_spill] sm:$0xff]  ;;  %v10593_v40 = vld [vmem:[#allocation131_spill] sm:$0xff] }
 0x3bc   : > { %v2288_v54 = vmul.f32 %v10578_v39, %v10577_v16  ;;  %v1507_v56 = vadd.f32 %v1491_v36, %v1471_v9  ;;  %v1660_v57 = vmul.f32 %v10574_v50, %v10579_v6  ;;  %v2929_v22 = vadd.f32 %v10580_v21, %v2796_v11  ;;  %v10584_v41 = vld [vmem:[#allocation129_spill] sm:$0xff]  ;;  %v10586_v36 = vld [vmem:[#allocation203_spill] sm:$0xff]  ;;  %v3706_v6 = vpop.f32.mrb[0].mxu0  ;;  %v10587_v50 = vld [vmem:[#allocation176_spill] sm:$0xff] }
 0x3bd   : > { %v2232_v24 = vadd.f32 %v10581_v47, %v2099_v35  ;;  %v1639_v43 = vadd.f32 %v1623_v1, %v1506_v14  ;;  %v1695_v52 = vmul.f32 %v10583_v10, %v10582_v38  ;;  %v10585_v17 = vld [vmem:[#allocation125_spill] sm:$0xff]  ;;  %v1564_v16 = vsel %vm1536_vm4, %v1535_v3, %v1521_v63  ;;  %3318 = vst [vmem:[%s4610_s10 + $0x8] sm:$0xff] %v3706_v6  ;;  %v3238_v38 = vpop.f32.mrb[1].mxu0  ;;  %v10590_v53 = vld [vmem:[#allocation192_spill] sm:$0xff] }
 0x3be   : > { %v2324_v61 = vmul.f32 %v10585_v17, %v10584_v41  ;;  %v1640_v0 = vadd.f32 %v1624_v27, %v1507_v56  ;;  %v1696_v9 = vmul.f32 %v10583_v10, %v10586_v36  ;;  %v2965_v11 = vadd.f32 %v10587_v50, %v2929_v22  ;;  %v10588_v1 = vld [vmem:[#allocation189_spill] sm:$0xff]  ;;  %v10594_v56 = vld [vmem:[#allocation188_spill] sm:$0xff]  ;;  %3317 = vst [vmem:[%s4610_s10] sm:$0xff] %v3238_v38 }
 0x3bf   : > { %v2268_v21 = vadd.f32 %v2252_v29, %v2232_v24  ;;  %v1675_v47 = vadd.f32 %v1659_v25, %v1639_v43  ;;  %v10589_v35 = vld [vmem:[#allocation85_spill] sm:$0xff]  ;;  %v2360_v41 = vmul.f32 %v10591_v2, %v10590_v53  ;;  %v2396_v28 = vmul.f32 %v10593_v40, %v10592_v15  ;;  %v10595_v10 = vld [vmem:[#allocation156_spill] sm:$0xff]  ;;  %v10597_v24 = vld [vmem:[#allocation86_spill] sm:$0xff] }
 0x3c0   : > { %v1731_v14 = vmul.f32 %v10589_v35, %v10588_v1  ;;  %v1676_v27 = vadd.f32 %v1660_v57, %v1640_v0  ;;  %v1732_v36 = vmul.f32 %v10589_v35, %v10594_v56  ;;  %v3001_v22 = vadd.f32 %v10595_v10, %v2965_v11  ;;  %v10596_v25 = vld [vmem:[#allocation68_spill] sm:$0xff]  ;;  %v10599_v40 = vld [vmem:[#allocation183_spill] sm:$0xff]  ;;  %v10600_v35 = vld [vmem:[#allocation234_spill] sm:$0xff] }
 0x3c1   : > { %v2304_v29 = vadd.f32 %v2288_v54, %v2268_v21  ;;  %v1711_v50 = vadd.f32 %v1695_v52, %v1675_v47  ;;  %v1767_v43 = vmul.f32 %v10597_v24, %v10596_v25  ;;  %v1550_v6 = vsel %vm1536_vm4, %v1521_v63, %v1535_v3  ;;  %v10601_v10 = vld [vmem:[#allocation87_spill] sm:$0xff]  ;;  %v10603_v11 = vld [vmem:[#allocation58_spill] sm:$0xff]  ;;  %v10605_v25 = vld [vmem:[#allocation132_spill] sm:$0xff] }
 0x3c2   : > { %v1603_v13 = vsel %vm1567_vm5, %v1564_v16, 0.0  ;;  %v1712_v2 = vadd.f32 %v1696_v9, %v1676_v27  ;;  %v1768_v0 = vmul.f32 %v10597_v24, %v10599_v40  ;;  %v3037_v57 = vadd.f32 %v3021_v30, %v3001_v22  ;;  %v10602_v52 = vld [vmem:[#allocation151_spill] sm:$0xff]  ;;  %v10604_v47 = vld [vmem:[#allocation194_spill] sm:$0xff]  ;;  %v10607_v30 = vld [vmem:[#allocation88_spill] sm:$0xff] }
 0x3c3   : > { %v2340_v56 = vadd.f32 %v2324_v61, %v2304_v29  ;;  %v1747_v38 = vadd.f32 %v1731_v14, %v1711_v50  ;;  %v1803_v54 = vmul.f32 %v10601_v10, %v10600_v35  ;;  %v3129_v21 = vmul.f32 %v10603_v11, %v10602_v52  ;;  %v10606_v3 = vld [vmem:[#allocation190_spill] sm:$0xff]  ;;  %v10608_v14 = vld [vmem:[#allocation141_spill] sm:$0xff] }
 0x3c4   : > { %v2432_v59 = vmul.f32 %v10605_v25, %v10604_v47  ;;  %v1748_v63 = vadd.f32 %v1732_v36, %v1712_v2  ;;  %v1804_v16 = vmul.f32 %v10601_v10, %v10606_v3  ;;  %v3073_v9 = vadd.f32 %v3057_v12, %v3037_v57  ;;  %v10609_v22 = vld [vmem:[#allocation133_spill] sm:$0xff]  ;;  %v10610_v2 = vld [vmem:[#allocation90_spill] sm:$0xff]  ;;  %v10611_v25 = vld [vmem:[#allocation64_spill] sm:$0xff] }
 0x3c5   : > { %v2376_v27 = vadd.f32 %v2360_v41, %v2340_v56  ;;  %v1783_v40 = vadd.f32 %v1767_v43, %v1747_v38  ;;  %v1839_v61 = vmul.f32 %v10607_v30, %v1603_v13  ;;  %v2565_v29 = vmul.f32 %v10609_v22, %v10608_v14  ;;  %v10612_v3 = vld [vmem:[#allocation77_spill] sm:$0xff]  ;;  %v10613_v41 = vld [vmem:[#allocation142_spill] sm:$0xff]  ;;  %v10614_v43 = vld [vmem:[#allocation135_spill] sm:$0xff] }
 0x3c6   : > { %v1784_v35 = vadd.f32 %v1768_v0, %v1748_v63  ;;  %v1840_v50 = vmul.f32 %v10607_v30, %v1550_v6  ;;  %v3109_v1 = vadd.f32 %v3093_v37, %v3073_v9  ;;  %v1875_v36 = vmul.f32 %v10556_v19, %v10610_v2  ;;  %v8395_v56 = vld [vmem:[%s4716_s1 + $0x78] sm:$0xff] }
 0x3c7   : > { %v2412_v52 = vadd.f32 %v2396_v28, %v2376_v27  ;;  %v1819_v24 = vadd.f32 %v1803_v54, %v1783_v40  ;;  %v1078_v12 = vadd.f32 %v10612_v3, %v10611_v25  ;;  %v2601_v57 = vmul.f32 %v10614_v43, %v10613_v41  ;;  %10615 = vst [vmem:[#allocation211_spill] sm:$0xff] %v8395_v56  ;;  %v8402_v54 = vld [vmem:[%s4716_s1 + $0x88] sm:$0xff]  ;;  %v10617_v9 = vld [vmem:[#allocation143_spill] sm:$0xff] }
 0x3c8   : > { %v1820_v13 = vadd.f32 %v1804_v16, %v1784_v35  ;;  %v1876_v0 = vmul.f32 %v8395_v56, %v10610_v2  ;;  %v3145_v38 = vadd.f32 %v3129_v21, %v3109_v1  ;;  %v1911_v6 = vmul.f32 %v8296_v5, %v10545_v60  ;;  %10616 = vst [vmem:[#allocation126_spill] sm:$0xff] %v8402_v54  ;;  %v4016_v41 = vld [vmem:[%s4716_s1 + $0xa8] sm:$0xff] }
 0x3c9   : > { %v2448_v37 = vadd.f32 %v2432_v59, %v2412_v52  ;;  %v1855_v28 = vadd.f32 %v1839_v61, %v1819_v24  ;;  %v1912_v25 = vmul.f32 %v8402_v54, %v10545_v60  ;;  %v9390_v63 = vrot.slane %v8194_v48, 2  ;;  %v10618_v59 = vld [vmem:[#allocation136_spill] sm:$0xff]  ;;  %v8415_v61 = vld [vmem:[%s4716_s1 + $0x98] sm:$0xff] }
 0x3ca   : > { %v1856_v19 = vadd.f32 %v1840_v50, %v1820_v13  ;;  %v9389_v16 = vrot.slane %v8202_v23, 2  ;;  %3711 = vmatmul.mubr.f32.gmra.mrb[4].mxu0 %v3145_v38  ;;  %v2637_v24 = vmul.f32 %v10618_v59, %v10617_v9  ;;  %v1947_v5 = vmul.f32 %v8317_v31, %v10547_v58  ;;  %10619 = vst [vmem:[#allocation124_spill] sm:$0xff] %v8415_v61  ;;  %v10620_v50 = vld [vmem:[#allocation145_spill] sm:$0xff]  ;;  %v10624_v9 = vld [vmem:[#allocation51_spill] sm:$0xff] }
 0x3cb   : > { %v2581_v21 = vadd.f32 %v2565_v29, %v2448_v37  ;;  %v1891_v52 = vadd.f32 %v1875_v36, %v1855_v28  ;;  %v1134_v27 = vmul.f32 %v10542_v42, %v10533_v32  ;;  %v1948_v14 = vmul.f32 %v8415_v61, %v10547_v58  ;;  %v10621_v31 = vld [vmem:[#allocation137_spill] sm:$0xff]  ;;  %v4015_v32 = vld [vmem:[%s4716_s1 + $0xa0] sm:$0xff]  ;;  %v10622_v28 = vld [vmem:[#allocation199_spill] sm:$0xff] }
 0x3cc   : > { %v1892_v40 = vadd.f32 %v1876_v0, %v1856_v19  ;;  %v8425_v29 = vsel %vm2486_vm7, %v9390_v63, %v9389_v16  ;;  %v2673_v1 = vmul.f32 %v10621_v31, %v10620_v50  ;;  %v1983_v42 = vmul.f32 %v4015_v32, %v10550_v26  ;;  %v10623_v19 = vld [vmem:[#allocation138_spill] sm:$0xff]  ;;  %v10626_v50 = vld [vmem:[#allocation139_spill] sm:$0xff]  ;;  %v10631_v63 = vld [vmem:[#allocation140_spill] sm:$0xff] }
 0x3cd   : > { %v2617_v35 = vadd.f32 %v2601_v57, %v2581_v21  ;;  %v1927_v36 = vadd.f32 %v1911_v6, %v1891_v52  ;;  %v1984_v13 = vmul.f32 %v4016_v41, %v10550_v26  ;;  %v9396_v0 = vrot.slane %v8194_v48, 3  ;;  %v10625_v52 = vld [vmem:[#allocation200_spill] sm:$0xff] }
 0x3ce   : > { %v1928_v3 = vadd.f32 %v1912_v25, %v1892_v40  ;;  %v9395_v38 = vrot.slane %v8202_v23, 3  ;;  %v2709_v57 = vmul.f32 %v10623_v19, %v10622_v28  ;;  %v2019_v6 = vmul.f32 %v10624_v9, %v10555_v8  ;;  %v10627_v25 = vld [vmem:[#allocation215_spill] sm:$0xff] }
 0x3cf   : > { %v2653_v37 = vadd.f32 %v2637_v24, %v2617_v35  ;;  %v1963_v21 = vadd.f32 %v1947_v5, %v1927_v36  ;;  %v2745_v32 = vmul.f32 %v10626_v50, %v10625_v52  ;;  %v2020_v40 = vmul.f32 %v10627_v25, %v10555_v8  ;;  %v4017_v36 = vld [vmem:[%s4716_s1 + $0xc0] sm:$0xff]  ;;  %v10630_v25 = vld [vmem:[#allocation201_spill] sm:$0xff] }
 0x3d0   : > { %v1964_v16 = vadd.f32 %v1948_v14, %v1928_v3  ;;  %v8449_v24 = vsel %vm2835_vm8, %v9396_v0, %v9395_v38  ;;  %v2055_v41 = vmul.f32 %v4017_v36, %v10443_v20  ;;  %v1098_v14 = vmul.f32 %v10461_v33, %v10528_v7  ;;  %v10629_v3 = vld [vmem:[#allocation53_spill] sm:$0xff]  ;;  %v10634_v36 = vld [vmem:[#allocation154_spill] sm:$0xff] }
 0x3d1   : > { %10628 = vst [vmem:[#allocation134_spill] sm:$0xff] %v8449_v24  ;;  %v2689_v5 = vadd.f32 %v2673_v1, %v2653_v37  ;;  %v1999_v35 = vadd.f32 %v1983_v42, %v1963_v21  ;;  %v1267_v9 = vmul.f32 %v10543_v18, %v10629_v3  ;;  %v2781_v61 = vmul.f32 %v10631_v63, %v10630_v25  ;;  %v10632_v42 = vld [vmem:[#allocation54_spill] sm:$0xff]  ;;  %v10633_v21 = vld [vmem:[#allocation159_spill] sm:$0xff]  ;;  %v4018_v7 = vld [vmem:[%s4716_s1 + $0xc8] sm:$0xff] }
 0x3d2   : > { %v2000_v54 = vadd.f32 %v1984_v13, %v1964_v16  ;;  %v2091_v38 = vmul.f32 %v10563_v51, %v8194_v48  ;;  %v1114_v1 = vadd.f32 %v1098_v14, %v1078_v12  ;;  %v1303_v37 = vmul.f32 %v10548_v45, %v10632_v42  ;;  %v10635_v16 = vld [vmem:[#allocation121_spill] sm:$0xff] }
 0x3d3   : > { %v2725_v56 = vadd.f32 %v2709_v57, %v2689_v5  ;;  %v2035_v8 = vadd.f32 %v2019_v6, %v1999_v35  ;;  %v2914_v0 = vmul.f32 %v10634_v36, %v10633_v21  ;;  %v2056_v18 = vmul.f32 %v4018_v7, %v10443_v20  ;;  %v10636_v6 = vld [vmem:[#allocation55_spill] sm:$0xff]  ;;  %v10637_v12 = vld [vmem:[#allocation161_spill] sm:$0xff]  ;;  %v10639_v21 = vld [vmem:[#allocation56_spill] sm:$0xff] }
 0x3d4   : > { %v2036_v33 = vadd.f32 %v2020_v40, %v2000_v54  ;;  %v2224_v13 = vmul.f32 %v10635_v16, %v10590_v53  ;;  %v1150_v57 = vadd.f32 %v1134_v27, %v1114_v1  ;;  %v1339_v5 = vmul.f32 %v10551_v49, %v10636_v6  ;;  %v10638_v35 = vld [vmem:[#allocation155_spill] sm:$0xff]  ;;  %v10645_v6 = vld [vmem:[#allocation164_spill] sm:$0xff]  ;;  %v10655_v20 = vld [vmem:[#allocation178_spill] sm:$0xff] }
 0x3d5   : > { %v2761_v3 = vadd.f32 %v2745_v32, %v2725_v56  ;;  %v2071_v24 = vadd.f32 %v2055_v41, %v2035_v8  ;;  %v2950_v14 = vmul.f32 %v10638_v35, %v10637_v12  ;;  %v2260_v54 = vmul.f32 %v10567_v62, %v10592_v15  ;;  %v10640_v8 = vld [vmem:[#allocation162_spill] sm:$0xff]  ;;  %v10641_v32 = vld [vmem:[#allocation157_spill] sm:$0xff] }
 0x3d6   : > { %v1283_v40 = vadd.f32 %v1267_v9, %v1150_v57  ;;  %v1375_v56 = vmul.f32 %v10554_v55, %v10639_v21  ;;  %v2986_v41 = vmul.f32 %v10641_v32, %v10640_v8  ;;  %v2072_v53 = vadd.f32 %v2056_v18, %v2036_v33  ;;  %v10643_v9 = vld [vmem:[#allocation61_spill] sm:$0xff]  ;;  %v10646_v12 = vld [vmem:[#allocation206_spill] sm:$0xff] }
 0x3d7   : > { %v2797_v45 = vadd.f32 %v2781_v61, %v2761_v3  ;;  %v2107_v42 = vadd.f32 %v2091_v38, %v2071_v24  ;;  %v2092_v27 = vmul.f32 %v10563_v51, %v8202_v23  ;;  %v2296_v61 = vmul.f32 %v10578_v39, %v10604_v47  ;;  %v10642_v24 = vld [vmem:[#allocation195_spill] sm:$0xff]  ;;  %v10661_v32 = vld [vmem:[#allocation73_spill] sm:$0xff] }
 0x3d8   : > { %v1319_v38 = vadd.f32 %v1303_v37, %v1283_v40  ;;  %v2332_v15 = vmul.f32 %v10585_v17, %v10642_v24  ;;  %v3022_v7 = vmul.f32 %v10364_v44, %v10643_v9  ;;  %v2122_v55 = vrot.slane %v8194_v48, 1  ;;  %v10648_v40 = vld [vmem:[#allocation130_spill] sm:$0xff]  ;;  %v10649_v51 = vld [vmem:[#allocation175_spill] sm:$0xff] }
 0x3d9   : > { %v2930_v49 = vadd.f32 %v2914_v0, %v2797_v45  ;;  %v2240_v1 = vadd.f32 %v2224_v13, %v2107_v42  ;;  %v2136_v3 = vrot.slane %v8202_v23, 1  ;;  %v1411_v0 = vmul.f32 %v10395_v46, %v10544_v34  ;;  %v10644_v13 = vld [vmem:[#allocation32_spill] sm:$0xff]  ;;  %v10647_v42 = vld [vmem:[#allocation214_spill] sm:$0xff]  ;;  %v10653_v34 = vld [vmem:[#allocation105_spill] sm:$0xff] }
 0x3da   : > { %v1355_v57 = vadd.f32 %v1339_v5, %v1319_v38  ;;  %v3058_v47 = vmul.f32 %v10645_v6, %v10644_v13  ;;  %v2108_v37 = vadd.f32 %v2092_v27, %v2072_v53  ;;  %v2225_v45 = vmul.f32 %v10635_v16, %v10646_v12  ;;  %v10651_v5 = vld [vmem:[#allocation34_spill] sm:$0xff]  ;;  %v10654_v53 = vld [vmem:[#allocation131_spill] sm:$0xff]  ;;  %v10660_v6 = vld [vmem:[#allocation132_spill] sm:$0xff] }
 0x3db   : > { %v2966_v33 = vadd.f32 %v2950_v14, %v2930_v49  ;;  %v2276_v18 = vadd.f32 %v2260_v54, %v2240_v1  ;;  %v2368_v21 = vmul.f32 %v10648_v40, %v10647_v42  ;;  %v10650_v14 = vld [vmem:[#allocation46_spill] sm:$0xff]  ;;  %v10652_v49 = vld [vmem:[#allocation165_spill] sm:$0xff]  ;;  %v2151_v46 = vsel %vm2137_vm6, %v2122_v55, %v2136_v3  ;;  %v10656_v42 = vld [vmem:[#allocation47_spill] sm:$0xff] }
 0x3dc   : > { %v1391_v9 = vadd.f32 %v1375_v56, %v1355_v57  ;;  %v1447_v54 = vmul.f32 %v10650_v14, %v10649_v51  ;;  %v3094_v1 = vmul.f32 %v10652_v49, %v10651_v5  ;;  %v2404_v27 = vmul.f32 %v10654_v53, %v10653_v34  ;;  %v10658_v56 = vld [vmem:[#allocation82_spill] sm:$0xff]  ;;  %v10662_v34 = vld [vmem:[#allocation83_spill] sm:$0xff] }
 0x3dd   : > { %v3002_v8 = vadd.f32 %v2986_v41, %v2966_v33  ;;  %v2312_v24 = vadd.f32 %v2296_v61, %v2276_v18  ;;  %v1483_v41 = vmul.f32 %v10656_v42, %v10655_v20  ;;  %v10657_v61 = vld [vmem:[#allocation71_spill] sm:$0xff]  ;;  %v10659_v18 = vld [vmem:[#allocation144_spill] sm:$0xff]  ;;  %v2241_v57 = vadd.f32 %v2225_v45, %v2108_v37 }
 0x3de   : > { %v1427_v16 = vadd.f32 %v1411_v0, %v1391_v9  ;;  %v1616_v33 = vmul.f32 %v10658_v56, %v10657_v61  ;;  %v3130_v51 = vmul.f32 %v10603_v11, %v10659_v18  ;;  %v2440_v44 = vmul.f32 %v10660_v6, %v2151_v46  ;;  %v10671_v56 = vld [vmem:[#allocation75_spill] sm:$0xff] }
 0x3df   : > { %v3038_v38 = vadd.f32 %v3022_v7, %v3002_v8  ;;  %v2348_v12 = vadd.f32 %v2332_v15, %v2312_v24  ;;  %v1652_v7 = vmul.f32 %v10662_v34, %v10661_v32  ;;  %v10663_v15 = vld [vmem:[#allocation207_spill] sm:$0xff]  ;;  %v10664_v8 = vld [vmem:[#allocation209_spill] sm:$0xff]  ;;  %v2573_v42 = vmul.f32 %v10609_v22, %v10622_v28  ;;  %v10665_v32 = vld [vmem:[#allocation210_spill] sm:$0xff] }
 0x3e0   : > { %v1463_v26 = vadd.f32 %v1447_v54, %v1427_v16  ;;  %v2261_v0 = vmul.f32 %v10567_v62, %v10663_v15  ;;  %v2297_v20 = vmul.f32 %v10578_v39, %v10664_v8  ;;  %v2165_v16 = vsel %vm2137_vm6, %v2136_v3, %v2122_v55  ;;  %v10674_v34 = vld [vmem:[#allocation202_spill] sm:$0xff] }
 0x3e1   : > { %v3074_v14 = vadd.f32 %v3058_v47, %v3038_v38  ;;  %v2384_v49 = vadd.f32 %v2368_v21, %v2348_v12  ;;  %v2609_v47 = vmul.f32 %v10614_v43, %v10625_v52  ;;  %v2333_v45 = vmul.f32 %v10585_v17, %v10665_v32  ;;  %v10668_v38 = vld [vmem:[#allocation240_spill] sm:$0xff] }
 0x3e2   : > { %v1499_v37 = vadd.f32 %v1483_v41, %v1463_v26  ;;  %v2277_v12 = vadd.f32 %v2261_v0, %v2241_v57  ;;  %v2645_v26 = vmul.f32 %v10618_v59, %v10630_v25  ;;  %v2369_v52 = vmul.f32 %v10648_v40, %v10668_v38  ;;  %v10681_v38 = vld [vmem:[#allocation198_spill] sm:$0xff] }
 0x3e3   : > { %v3110_v24 = vadd.f32 %v3094_v1, %v3074_v14  ;;  %v2420_v9 = vadd.f32 %v2404_v27, %v2384_v49  ;;  %v10666_v1 = vld [vmem:[#allocation74_spill] sm:$0xff]  ;;  %v10667_v49 = vld [vmem:[#allocation84_spill] sm:$0xff]  ;;  %v10669_v55 = vrot.slane %v8194_v48, 2  ;;  %v10670_v3 = vrot.slane %v8202_v23, 2  ;;  %v3718_v14 = vpop.f32.mrb[0].mxu1 }
 0x3e4   : > { %v1632_v46 = vadd.f32 %v1616_v33, %v1499_v37  ;;  %v1688_v27 = vmul.f32 %v10667_v49, %v10666_v1  ;;  %v2313_v28 = vadd.f32 %v2297_v20, %v2277_v12  ;;  %v10672_v33 = vld [vmem:[#allocation85_spill] sm:$0xff]  ;;  %v2205_v25 = vsel %vm2171_vm9, %v2165_v16, 0.0  ;;  %3326 = vst [vmem:[%s4610_s10 + $0x48] sm:$0xff] %v3718_v14  ;;  %v3278_v37 = vpop.f32.mrb[1].mxu1  ;;  %v10685_v57 = vld [vmem:[#allocation110_spill] sm:$0xff] }
 0x3e5   : > { %v3146_v21 = vadd.f32 %v3130_v51, %v3110_v24  ;;  %v2456_v54 = vadd.f32 %v2440_v44, %v2420_v9  ;;  %v2514_v41 = vsel %vm2486_vm7, %v10670_v3, %v10669_v55  ;;  %v1724_v51 = vmul.f32 %v10672_v33, %v10671_v56  ;;  %v10675_v24 = vld [vmem:[#allocation230_spill] sm:$0xff]  ;;  %3325 = vst [vmem:[%s4610_s10 + $0x40] sm:$0xff] %v3278_v37  ;;  %v10682_v3 = vld [vmem:[#allocation196_spill] sm:$0xff]  ;;  %v10684_v56 = vld [vmem:[#allocation203_spill] sm:$0xff] }
 0x3e6   : > { %v1668_v61 = vadd.f32 %v1652_v7, %v1632_v46  ;;  %v2681_v0 = vmul.f32 %v10621_v31, %v10674_v34  ;;  %v2349_v20 = vadd.f32 %v2333_v45, %v2313_v28  ;;  %v2405_v9 = vmul.f32 %v10654_v53, %v10675_v24  ;;  %v10677_v7 = vld [vmem:[#allocation86_spill] sm:$0xff]  ;;  %v10680_v28 = vld [vmem:[#allocation221_spill] sm:$0xff]  ;;  %v4019_v34 = vld [vmem:[%s4716_s1 + $0x38] sm:$0xff] }
 0x3e7   : > { %3713 = vmatprep.mubr.f32.mxu0 %v3146_v21  ;;  %v2589_v44 = vadd.f32 %v2573_v42, %v2456_v54  ;;  %v10676_v42 = vld [vmem:[#allocation101_spill] sm:$0xff]  ;;  %v10678_v54 = vrot.slane %v8194_v48, 3  ;;  %v10679_v46 = vrot.slane %v8202_v23, 3  ;;  %v2441_v1 = vmul.f32 %v10660_v6, %v2205_v25  ;;  %v10686_v24 = vld [vmem:[#allocation146_spill] sm:$0xff] }
 0x3e8   : > { %v1704_v32 = vadd.f32 %v1688_v27, %v1668_v61  ;;  %v1760_v21 = vmul.f32 %v10677_v7, %v10676_v42  ;;  %v2385_v45 = vadd.f32 %v2369_v52, %v2349_v20  ;;  %v1796_v55 = vmul.f32 %v10601_v10, %v10681_v38 }
 0x3e9   : > { %v2625_v12 = vadd.f32 %v2609_v47, %v2589_v44  ;;  %v8555_v16 = vsel %vm2835_vm8, %v10679_v46, %v10678_v54  ;;  %v2717_v47 = vmul.f32 %v10623_v19, %v10680_v28  ;;  %v2574_v23 = vmul.f32 %v10609_v22, %v10682_v3  ;;  %v10683_v44 = vld [vmem:[#allocation39_spill] sm:$0xff] }
 0x3ea   : > { %v1740_v27 = vadd.f32 %v1724_v51, %v1704_v32  ;;  %v2421_v48 = vadd.f32 %v2405_v9, %v2385_v45  ;;  %v2753_v52 = vmul.f32 %v10626_v50, %v10683_v44  ;;  %v2610_v51 = vmul.f32 %v10614_v43, %v10685_v57  ;;  %v4020_v32 = vld [vmem:[%s4716_s1 + $0x48] sm:$0xff]  ;;  %v4021_v45 = vld [vmem:[%s4716_s1 + $0x58] sm:$0xff] }
 0x3eb   : > { %v2661_v49 = vadd.f32 %v2645_v26, %v2625_v12  ;;  %v1832_v26 = vmul.f32 %v10607_v30, %v10684_v56  ;;  %v2789_v10 = vmul.f32 %v10631_v63, %v8425_v29  ;;  %v2646_v9 = vmul.f32 %v10618_v59, %v10686_v24  ;;  %v10687_v29 = vld [vmem:[#allocation147_spill] sm:$0xff] }
 0x3ec   : > { %v1776_v61 = vadd.f32 %v1760_v21, %v1740_v27  ;;  %v2457_v33 = vadd.f32 %v2441_v1, %v2421_v48  ;;  %v2922_v30 = vmul.f32 %v10634_v36, %v10644_v13  ;;  %v1904_v42 = vmul.f32 %v4020_v32, %v10545_v60  ;;  %v10690_v48 = vld [vmem:[#allocation108_spill] sm:$0xff]  ;;  %v10694_v56 = vld [vmem:[#allocation163_spill] sm:$0xff] }
 0x3ed   : > { %v2697_v4 = vadd.f32 %v2681_v0, %v2661_v49  ;;  %v1868_v0 = vmul.f32 %v4019_v34, %v10610_v2  ;;  %v2682_v21 = vmul.f32 %v10621_v31, %v10687_v29  ;;  %v2958_v2 = vmul.f32 %v10638_v35, %v10651_v5  ;;  %v10688_v49 = vld [vmem:[#allocation157_spill] sm:$0xff] }
 0x3ee   : > { %v1812_v14 = vadd.f32 %v1796_v55, %v1776_v61  ;;  %v2590_v20 = vadd.f32 %v2574_v23, %v2457_v33  ;;  %v1940_v1 = vmul.f32 %v4021_v45, %v10547_v58  ;;  %v2994_v13 = vmul.f32 %v10688_v49, %v10659_v18  ;;  %v4022_v55 = vld [vmem:[%s4716_s1 + $0x68] sm:$0xff]  ;;  %s4156_s1 = scalar_lea.vmem %s4155_s5, 4096 }
 0x3ef   : > { %v2733_v25 = vadd.f32 %v2717_v47, %v2697_v4  ;;  %v10689_v47 = vld [vmem:[#allocation79_spill] sm:$0xff]  ;;  %v1976_v23 = vmul.f32 %v4022_v55, %v10690_v48  ;;  %v2554_v44 = vsel %vm2520_vm10, %v2514_v41, 0.0  ;;  %v10693_v58 = vld [vmem:[#allocation29_spill] sm:$0xff]  ;;  %v10707_v55 = vld [vmem:[#allocation134_spill] sm:$0xff]  ;;  %p4158_p9 = scmp.lt.s32.totalorder %s4156_s1, %s4150_s6 }
 0x3f0   : > { %v1848_v12 = vadd.f32 %v1832_v26, %v1812_v14  ;;  %v2626_v7 = vadd.f32 %v2610_v51, %v2590_v20  ;;  %v2718_v27 = vmul.f32 %v10623_v19, %v10689_v47  ;;  %v3030_v26 = vmul.f32 %v10694_v56, %v10693_v58  ;;  %v10695_v51 = vld [vmem:[#allocation111_spill] sm:$0xff]  ;;  %v10697_v20 = vld [vmem:[#allocation229_spill] sm:$0xff] }
 0x3f1   : > { %v2769_v37 = vadd.f32 %v2753_v52, %v2733_v25  ;;  %v10692_v52 = vld [vmem:[#allocation233_spill] sm:$0xff]  ;;  %v10696_v25 = vld [vmem:[#allocation211_spill] sm:$0xff]  ;;  %v2790_v34 = vmul.f32 %v10631_v63, %v2554_v44  ;;  %v3138_v48 = vmul.f32 %v10603_v11, %v10707_v55  ;;  %p4159_p1 = por %p4158_p9, %p4157_p8 }
 0x3f2   : > { %v1884_v46 = vadd.f32 %v1868_v0, %v1848_v12  ;;  %v2662_v28 = vadd.f32 %v2646_v9, %v2626_v7  ;;  %v2754_v61 = vmul.f32 %v10626_v50, %v10692_v52  ;;  %v10698_v9 = vld [vmem:[#allocation164_spill] sm:$0xff]  ;;  %v10700_v12 = vld [vmem:[#allocation126_spill] sm:$0xff]  ;;  %v10701_v7 = vld [vmem:[#allocation31_spill] sm:$0xff] }
 0x3f3   : > { %v2805_v54 = vadd.f32 %v2789_v10, %v2769_v37  ;;  %v2012_v10 = vmul.f32 %v10696_v25, %v10695_v51  ;;  %v3066_v37 = vmul.f32 %v10698_v9, %v10697_v20  ;;  %v2923_v29 = vmul.f32 %v10634_v36, %v10701_v7  ;;  %v10708_v4 = vld [vmem:[#allocation25_spill] sm:$0xff]  ;;  %v10713_v20 = vld [vmem:[#allocation30_spill] sm:$0xff]  ;;  %p4160_p6 = pnand %p4159_p1, %p4153_p13 }
 0x3f4   : > { %v1920_v38 = vadd.f32 %v1904_v42, %v1884_v46  ;;  %v2698_v5 = vadd.f32 %v2682_v21, %v2662_v28  ;;  %v10705_v28 = vld [vmem:[#allocation124_spill] sm:$0xff]  ;;  %v10709_v44 = vld [vmem:[#allocation121_spill] sm:$0xff] }
 0x3f5   : > { %v2938_v60 = vadd.f32 %v2922_v30, %v2805_v54  ;;  %v10699_v30 = vld [vmem:[#allocation113_spill] sm:$0xff]  ;;  %v10702_v54 = vld [vmem:[#allocation226_spill] sm:$0xff] }
 0x3f6   : > { %v1956_v33 = vadd.f32 %v1940_v1, %v1920_v38  ;;  %v2734_v14 = vadd.f32 %v2718_v27, %v2698_v5  ;;  %v2048_v32 = vmul.f32 %v10700_v12, %v10699_v30  ;;  %v10704_v1 = vld [vmem:[#allocation119_spill] sm:$0xff]  ;;  %v2217_v5 = vmul.f32 %v10709_v44, %v10708_v4  ;;  %v10714_v30 = vld [vmem:[#allocation81_spill] sm:$0xff] }
 0x3f7   : > { %v2974_v18 = vadd.f32 %v2958_v2, %v2938_v60  ;;  %v10703_v2 = vld [vmem:[#allocation165_spill] sm:$0xff]  ;;  %v2084_v47 = vmul.f32 %v10705_v28, %v10704_v1  ;;  %v10706_v27 = vld [vmem:[#allocation151_spill] sm:$0xff]  ;;  %v3067_v12 = vmul.f32 %v10698_v9, %v10714_v30  ;;  %v10718_v28 = vld [vmem:[#allocation206_spill] sm:$0xff] }
 0x3f8   : > { %v1992_v41 = vadd.f32 %v1976_v23, %v1956_v33  ;;  %v2770_v42 = vadd.f32 %v2754_v61, %v2734_v14  ;;  %v3102_v46 = vmul.f32 %v10703_v2, %v10702_v54  ;;  %v2959_v60 = vmul.f32 %v10638_v35, %v10706_v27  ;;  %v10710_v61 = vld [vmem:[#allocation45_spill] sm:$0xff]  ;;  %v10711_v33 = vld [vmem:[#allocation28_spill] sm:$0xff] }
 0x3f9   : > { %v3010_v0 = vadd.f32 %v2994_v13, %v2974_v18  ;;  %v2995_v58 = vmul.f32 %v10688_v49, %v10710_v61  ;;  %v2253_v51 = vmul.f32 %v10567_v62, %v10711_v33  ;;  %v10719_v4 = vld [vmem:[#allocation197_spill] sm:$0xff] }
 0x3fa   : > { %v2028_v45 = vadd.f32 %v2012_v10, %v1992_v41  ;;  %v2806_v13 = vadd.f32 %v2790_v34, %v2770_v42  ;;  %v10712_v10 = vld [vmem:[#allocation38_spill] sm:$0xff]  ;;  %v10715_v42 = vld [vmem:[#allocation33_spill] sm:$0xff]  ;;  %v2566_v44 = vmul.f32 %v10609_v22, %v10719_v4  ;;  %v2746_v22 = vmul.f32 %v10626_v50, %v10685_v57 }
 0x3fb   : > { %v3046_v21 = vadd.f32 %v3030_v26, %v3010_v0  ;;  %v3031_v14 = vmul.f32 %v10694_v56, %v10712_v10 }
 0x3fc   : > { %v2064_v23 = vadd.f32 %v2048_v32, %v2028_v45  ;;  %v2939_v52 = vadd.f32 %v2923_v29, %v2806_v13  ;;  %v2325_v29 = vmul.f32 %v10585_v17, %v10715_v42 }
 0x3fd   : > { %v3082_v38 = vadd.f32 %v3066_v37, %v3046_v21  ;;  %v2289_v37 = vmul.f32 %v10578_v39, %v10713_v20  ;;  %v2903_v21 = vsel %vm2869_vm11, %v8555_v16, 0.0  ;;  %v2361_v39 = vmul.f32 %v10648_v40, %v10718_v28  ;;  %v10720_v40 = vld [vmem:[#allocation35_spill] sm:$0xff] }
 0x3fe   : > { %v2100_v18 = vadd.f32 %v2084_v47, %v2064_v23  ;;  %v2975_v25 = vadd.f32 %v2959_v60, %v2939_v52  ;;  %v3139_v13 = vmul.f32 %v10603_v11, %v2903_v21  ;;  %v2433_v16 = vmul.f32 %v10660_v6, %v10664_v8 }
 0x3ff   : > { %v3118_v26 = vadd.f32 %v3102_v46, %v3082_v38  ;;  %v10717_v46 = vld [vmem:[#allocation187_spill] sm:$0xff]  ;;  %v2397_v38 = vmul.f32 %v10654_v53, %v10663_v15  ;;  %v2602_v52 = vmul.f32 %v10614_v43, %v10720_v40  ;;  %v10722_v15 = vld [vmem:[#allocation36_spill] sm:$0xff]  ;;  %v2710_v6 = vmul.f32 %v10623_v19, %v10682_v3 }
 0x400   : > { %v2233_v0 = vadd.f32 %v2217_v5, %v2100_v18  ;;  %v3011_v41 = vadd.f32 %v2995_v58, %v2975_v25  ;;  %v3103_v45 = vmul.f32 %v10703_v2, %v10717_v46  ;;  %v2674_v33 = vmul.f32 %v10621_v31, %v10722_v15  ;;  %v10724_v31 = vld [vmem:[#allocation149_spill] sm:$0xff]  ;;  %v10725_v19 = vld [vmem:[#allocation152_spill] sm:$0xff] }
 0x401   : > { %v3154_v34 = vadd.f32 %v3138_v48, %v3118_v26  ;;  %v10721_v26 = vld [vmem:[#allocation116_spill] sm:$0xff]  ;;  %v2782_v43 = vmul.f32 %v10631_v63, %v10686_v24  ;;  %v2987_v3 = vmul.f32 %v10688_v49, %v10725_v19  ;;  %v3059_v24 = vmul.f32 %v10698_v9, %v10701_v7 }
 0x402   : > { %v2269_v32 = vadd.f32 %v2253_v51, %v2233_v0  ;;  %v3047_v54 = vadd.f32 %v3031_v14, %v3011_v41  ;;  %v2638_v18 = vmul.f32 %v10618_v59, %v10721_v26  ;;  %v10723_v59 = vld [vmem:[#allocation205_spill] sm:$0xff]  ;;  %v2951_v0 = vmul.f32 %v10638_v35, %v10724_v31  ;;  %v10726_v41 = vld [vmem:[#allocation208_spill] sm:$0xff] }
 0x403   : > { %3725 = vmatprep.mubr.f32.mxu1 %v3154_v34  ;;  %v2915_v14 = vmul.f32 %v10634_v36, %v10723_v59  ;;  %v3023_v50 = vmul.f32 %v10694_v56, %v10726_v41  ;;  %v3095_v49 = vmul.f32 %v10703_v2, %v10706_v27  ;;  %v3131_v56 = vmul.f32 %v10603_v11, %v10710_v61 }
 0x404   : > { %v2305_v1 = vadd.f32 %v2289_v37, %v2269_v32  ;;  %v3083_v47 = vadd.f32 %v3067_v12, %v3047_v54 }
 0x406   : > { %v2341_v60 = vadd.f32 %v2325_v29, %v2305_v1  ;;  %v3119_v17 = vadd.f32 %v3103_v45, %v3083_v47 }
 0x408   : > { %v2377_v55 = vadd.f32 %v2361_v39, %v2341_v60  ;;  %v3155_v48 = vadd.f32 %v3139_v13, %v3119_v17 }
 0x40a   : > { %v2413_v23 = vadd.f32 %v2397_v38, %v2377_v55  ;;  %3726 = vmatmul.mubr.f32.gmra.mrb[6].mxu1 %v3155_v48 }
 0x40c   : > { %v2449_v5 = vadd.f32 %v2433_v16, %v2413_v23 }
 0x40e   : > { %v2582_v58 = vadd.f32 %v2566_v44, %v2449_v5 }
 0x410   : > { %v2618_v53 = vadd.f32 %v2602_v52, %v2582_v58 }
 0x412   : > { %v2654_v51 = vadd.f32 %v2638_v18, %v2618_v53 }
 0x414   : > { %v2690_v8 = vadd.f32 %v2674_v33, %v2654_v51 }
 0x416   : > { %v2726_v25 = vadd.f32 %v2710_v6, %v2690_v8 }
 0x418   : > { %v2762_v10 = vadd.f32 %v2746_v22, %v2726_v25 }
 0x41a   : > { %v2798_v34 = vadd.f32 %v2782_v43, %v2762_v10 }
 0x41b   : > { %v3709_v57 = vpop.f32.mrb[2].mxu0 }
 0x41c   : > { %v2931_v20 = vadd.f32 %v2915_v14, %v2798_v34  ;;  %3320 = vst [vmem:[%s4610_s10 + $0x18] sm:$0xff] %v3709_v57  ;;  %v3248_v36 = vpop.f32.mrb[3].mxu0 }
 0x41d   : > { %3319 = vst [vmem:[%s4610_s10 + $0x10] sm:$0xff] %v3248_v36 }
 0x41e   : > { %v2967_v37 = vadd.f32 %v2951_v0, %v2931_v20 }
 0x420   : > { %v3003_v63 = vadd.f32 %v2987_v3, %v2967_v37 }
 0x422   : > { %v3039_v35 = vadd.f32 %v3023_v50, %v3003_v63 }
 0x424   : > { %v3075_v30 = vadd.f32 %v3059_v24, %v3039_v35 }
 0x426   : > { %v3111_v12 = vadd.f32 %v3095_v49, %v3075_v30 }
 0x428   : > { %v3147_v32 = vadd.f32 %v3131_v56, %v3111_v12 }
 0x42a   : > { %3714 = vmatmul.mubr.f32.gmra.mrb[6].mxu0 %v3147_v32 }
 0x432   : > { %v3721_v9 = vpop.f32.mrb[2].mxu1 }
 0x433   : > { %3328 = vst [vmem:[%s4610_s10 + $0x58] sm:$0xff] %v3721_v9  ;;  %v3288_v7 = vpop.f32.mrb[3].mxu1 }
 0x434   : > { %3327 = vst [vmem:[%s4610_s10 + $0x50] sm:$0xff] %v3288_v7 }
 0x480   : > { %v3724_v42 = vpop.f32.mrb[4].mxu1 }
 0x481   : > { %3330 = vst [vmem:[%s4610_s10 + $0x68] sm:$0xff] %v3724_v42  ;;  %v3298_v2 = vpop.f32.mrb[5].mxu1 }
 0x482   : > { %3329 = vst [vmem:[%s4610_s10 + $0x60] sm:$0xff] %v3298_v2 }
 0x49d   : > { %v3712_v27 = vpop.f32.mrb[4].mxu0 }
 0x49e   : > { %3322 = vst [vmem:[%s4610_s10 + $0x28] sm:$0xff] %v3712_v27  ;;  %v3258_v11 = vpop.f32.mrb[5].mxu0 }
 0x49f   : > { %3321 = vst [vmem:[%s4610_s10 + $0x20] sm:$0xff] %v3258_v11 }
 0x4dd   : > { %v3727_v61 = vpop.f32.mrb[6].mxu1 }
 0x4de   : > { %3332 = vst [vmem:[%s4610_s10 + $0x78] sm:$0xff] %v3727_v61  ;;  %v3308_v29 = vpop.f32.mrb[7].mxu1 }
 0x4df   : > { %3331 = vst [vmem:[%s4610_s10 + $0x70] sm:$0xff] %v3308_v29 }
 0x4fd   : > { %v3715_v62 = vpop.f32.mrb[6].mxu0 }
 0x4fe   : > { %3324 = vst [vmem:[%s4610_s10 + $0x38] sm:$0xff] %v3715_v62  ;;  %v3268_v21 = vpop.f32.mrb[7].mxu0 }
 0x4ff   : > { %3323 = vst [vmem:[%s4610_s10 + $0x30] sm:$0xff] %v3268_v21 }
 0x500   : > { %4163 = shalt.err (!%p4160_p6)
}
 0x501   : > { %s4164_s3 = scalar_lea.hbm %s8686_s7, 2048  ;;  %s4168_s16 = scalar_lea.hbm %s10729_s30, 8192 }
 0x502   : > { %p4165_p11 = scmp.ne.s32.totalorder %s8686_s7, %s4164_s3  ;;  %p4169_p10 = scmp.lt.u32.totalorder %s8686_s7, %s10729_s30 }
 0x503   : > { %p4170_p0 = scmp.lt.u32.totalorder %s4168_s16, %s4164_s3  ;;  %p4172_p3 = scmp.lt.u32.totalorder %s4164_s3, %s8686_s7 }
 0x504   : > { %p4166_p2 = pnand %p4165_p11, %p10730_p5 }
 0x505   : > { %p4171_p12 = por %p4170_p0, %p4169_p10 }
 0x506   : > { %p4167_p4 = pneg %p4166_p2 }
 0x507   : > { %p4173_p7 = por %p4172_p3, %p4171_p12 }
 0x509   : > { %p4174_p13 = pnand %p4173_p7, %p4167_p4 }
 0x50b   : > { %4177 = shalt.err (!%p4174_p13)
}
 0x50c   : > { %s4295_s2 = smov 128   ;;  %s4296_s25 = smov 8  }
 0x50d   : > { %3842 = dma.vmem_to_hbm [thread:$0]  (%p10730_p5), %s8688_s18, 2048, %s8686_s7, %s8694_s24, %s4295_s2, %s4295_s2, %s4296_s25  }
 0x50e PF: > { %s10731_s21 = sld [smem:[#allocation19_spill]]  ;;  %s10732_s6 = sld [smem:[#allocation22_spill]] }
 0x50f   : > { %p3874_p8 = scmp.ge.s32.totalorder %s4284_s28, 2 }
 0x514   : > { %s3365_s29 = sand.u32 1, %s10731_s21   ;;  %p10733_p9 = scmp.ne.s32.totalorder %s10732_s6, 0 }
 0x515   : > { %s3366_s5 = scalar_lea.sflag [#allocation5], %s3365_s29 }
 0x516   : > { %p3862_p1 = pnand %p3874_p8, %p10733_p9 }
 0x518   : > { %4239 = dma.done.wait (!%p3862_p1), %s3366_s5, 2048  }
 0x519   : > { %4241 = vsyncadd (!%p3862_p1), %s3366_s5, 4294965248  ;;  %s24_s28 = sadd.s32 1, %s4284_s28   ;;  %s10734_s18 = smov %s4248_s19 }
 0x51a   : > { %p21_p6 = scmp.ge.s32.totalorder %s24_s28, 6   ;;  %s10735_s19 = smov %s4252_s20 }
 0x51b   : > { %s10736_s20 = smov %s4538_s8  ;;  %s10737_s21 = smov %s4260_s22 }
 0x51c   : > { %s10738_s22 = smov %s4264_s23  ;;  %s10739_s23 = smov %s4535_s12 }
 0x51d   : > { %s10740_s24 = smov %s4276_s26  ;;  %s10741_s25 = smov %s4280_s27 }
 0x51e   : > { %s10742_s26 = smov %s10745_s11  ;;  %s10743_s27 = smov %s10749_s13 }
 0x51f   :  { %23 = sbr.rel (!%p21_p6) target bundleno = 17 (0x11), region = 109 }
 0x526   :  { %3371 = vsyncpa [#allocation4], 1 }
 0x527   :  { %3373 = vsyncpa [#allocation4 + $0x1], 1 }
 0x528   :  { %3374 = vsyncpa [#allocation8], 1 }
 0x529   :  { %3375 = vsyncpa [#allocation11], 1 }
 0x52a   :  { %3376 = vsyncpa [#allocation5], 1 }
 0x52b   :  { %3378 = vsyncpa [#allocation5 + $0x1], 1 }
 0x52c   :  { %3379 = vsyncpa [#allocation6], 1 }
 0x52d   :  { %3381 = vsyncpa [#allocation6 + $0x1], 1 }

</bundles_post_ra>
